<compile_context>
chip_gen: v6e
topology: v6e:2x2x1
jax: 0.10.0
libtpu: 0.0.40
codegen_flags: <defaults>
</compile_context>

<pallas_src>
import functools

import jax
import jax.numpy as jnp
from jax import lax
from jax.experimental import pallas as pl
from jax.experimental.pallas import tpu as pltpu

# ----------------------------- config (scaled 1/4 of ResNet-101) -------------
BASE = 16                    # conv1 width (64 in the real net)
BLOCKS = (1, 1, 1, 1)        # (3, 4, 23, 3) in the real net
PLANES = (BASE, BASE * 2, BASE * 4, BASE * 8)
STRIDES = (1, 2, 2, 2)
EXPANSION = 4
NUM_CLASSES = 10             # 1000 in the real net
BN_EPS = 1e-5
LANE = 128
ACT_DTYPE = jnp.bfloat16     # inter-layer activation dtype (halves HBM traffic)


def _round_up(x, m):
    return (x + m - 1) // m * m


def _divisor_tile(total, cap, unit=8):
    """Largest multiple-of-`unit` divisor of `total` that is <= cap."""
    best = unit
    d = unit
    while d <= cap and d <= total:
        if total % d == 0:
            best = d
        d += unit
    return best


def _tm_cap():
    # Bigger M tiles on 128-MiB-VMEM parts (v5e/v6e); stay at 512 on v7x (64 MiB).
    try:
        info = pltpu.get_tpu_info()
        vmem = getattr(info, "vmem_capacity_bytes", 0) or 0
        return 1024 if vmem >= 100 * (1 << 20) else 512
    except Exception:
        return 512


TM_CAP = _tm_cap()


def _mosaic_params(n_grid_dims, block_bytes):
    # Scoped-VMEM limit derived from the actual (double-buffered) block
    # footprint plus slack, capped well below the v7x 64 MiB physical VMEM.
    limit = int(min(32 << 20, max(2 * block_bytes + (4 << 20), 8 << 20)))
    return pltpu.CompilerParams(
        dimension_semantics=("parallel",) * n_grid_dims,
        vmem_limit_bytes=limit)


# ----------------------------- Pallas kernels --------------------------------
def _matmul_kernel(a_ref, w_ref, b_ref, *rest, relu, has_res):
    """y = A @ W (bf16 in, f32 acc) + bias [+ residual] [ReLU]; store o.dtype."""
    o_ref = rest[-1]
    acc = jnp.dot(a_ref[...], w_ref[...], preferred_element_type=jnp.float32)
    y = acc + b_ref[...]
    if has_res:
        y = y + rest[0][...].astype(jnp.float32)
    if relu:
        y = jnp.maximum(y, 0.0)
    o_ref[...] = y.astype(o_ref.dtype)


def _conv_row_kernel(*refs, col_taps, cin, ow, relu):
    """One padded input row per dh; dw taps sliced in-kernel; k*k MXU dots."""
    k = len(col_taps)
    x_refs = refs[:k]
    w_ref, b_ref, o_ref = refs[k], refs[k + 1], refs[k + 2]
    acc = None
    t = 0
    for dh in range(k):
        for (w0, c0) in col_taps:
            a = x_refs[dh][w0:w0 + ow, c0:c0 + cin]
            d = jnp.dot(a, w_ref[t], preferred_element_type=jnp.float32)
            acc = d if acc is None else acc + d
            t += 1
    y = acc + b_ref[...]
    if relu:
        y = jnp.maximum(y, 0.0)
    o_ref[...] = y.astype(o_ref.dtype)


def _pool_row_kernel(*refs, col_taps, cin, ow, op):
    """k*k window max/mean reduced from in-kernel taps of one row per dh."""
    k = len(col_taps)
    x_refs = refs[:k]
    o_ref = refs[-1]
    r = None
    for dh in range(k):
        for (w0, c0) in col_taps:
            a = x_refs[dh][w0:w0 + ow, c0:c0 + cin]
            if op == "max":
                r = a if r is None else jnp.maximum(r, a)
            else:
                a = a.astype(jnp.float32)
                r = a if r is None else r + a
    if op == "mean":
        r = r * (1.0 / float(k * k))
    o_ref[...] = r.astype(o_ref.dtype)


def _l2norm_kernel(x_ref, o_ref):
    # torch.norm(x, p=2, dim=1, keepdim=True); x / norm   (rsqrt on the EUP)
    x = x_ref[...].astype(jnp.float32)
    ss = jnp.sum(x * x, axis=1, keepdims=True)
    o_ref[...] = (x * lax.rsqrt(ss + 1e-24)).astype(o_ref.dtype)


# ----------------------------- Pallas call wrappers ---------------------------
def matmul_bias(a, wmat, bias, *, relu, residual=None, out_dtype=ACT_DTYPE):
    """y = a @ wmat + bias [+ residual] [ReLU]; BN scale pre-folded into wmat."""
    M, K = a.shape
    Kw, Np = wmat.shape
    assert K == Kw, (K, Kw)
    a = a.astype(ACT_DTYPE)
    if residual is not None:
        residual = residual.astype(ACT_DTYPE)

    Mp = _round_up(M, 8)
    if Mp != M:                               # only the tiny FC batch hits this
        a = jnp.pad(a, ((0, Mp - M), (0, 0)))
        if residual is not None:
            residual = jnp.pad(residual, ((0, Mp - M), (0, 0)))

    tm = Mp if Mp <= TM_CAP else _divisor_tile(Mp, TM_CAP)
    tn = 256 if Np % 256 == 0 else 128
    tn = min(tn, Np)
    # Keep the pipeline / both TensorCores fed: avoid 1-step grids when possible.
    if (Mp // tm) * (Np // tn) < 2:
        if tn > 128:
            tn = 128
        if (Mp // tm) * (Np // tn) < 2 and Mp >= 16:
            tm = _divisor_tile(Mp, max(Mp // 2, 8))

    in_specs = [pl.BlockSpec((tm, K), lambda i, j: (i, 0)),
                pl.BlockSpec((K, tn), lambda i, j: (0, j)),
                pl.BlockSpec((1, tn), lambda i, j: (0, j))]
    args = [a, wmat, bias]
    if residual is not None:
        in_specs.append(pl.BlockSpec((tm, tn), lambda i, j: (i, j)))
        args.append(residual)

    block_bytes = 2 * (tm * K * 2 + K * tn * 2 + tn * 4 + tm * tn * 4
                       + (tm * tn * 2 if residual is not None else 0))
    out = pl.pallas_call(
        functools.partial(_matmul_kernel, relu=relu,
                          has_res=residual is not None),
        out_shape=jax.ShapeDtypeStruct((Mp, Np), out_dtype),
        grid=(Mp // tm, Np // tn),
        in_specs=in_specs,
        out_specs=pl.BlockSpec((tm, tn), lambda i, j: (i, j)),
        compiler_params=_mosaic_params(2, block_bytes),
    )(*args)
    return out[:M] if Mp != M else out


def _col_taps(ksize, stride, cin):
    # (sublane start, lane start) per dw tap, after the W-fold for stride > 1.
    if stride == 1:
        return tuple((dw, 0) for dw in range(ksize))
    return tuple((dw // stride, (dw % stride) * cin) for dw in range(ksize))


def _window_conv(xp, wmat, bias, *, ksize, stride, oh, ow, relu):
    """KxK conv from the padded NHWC activation with in-kernel window taps.

    xp: (N, Hp, Wp, Cp) padded activation (Cp lane-padded).  For stride>1 the
    W dim is folded (free reshape) so every tap is an unstrided sublane/lane
    slice.  Grid = (N, OH, Cout tiles); each step emits one lane-dense output
    row; the same xp buffer is passed once per dh (element-level row index
    maps), so no window copies are ever written to HBM.
    """
    N, HP, WP, cin = xp.shape
    assert wmat.shape[1] == cin
    if stride > 1:
        if WP % stride:
            # TODO(synk): pad W to a multiple of the stride for odd widths.
            raise NotImplementedError("padded width must divide the stride")
        xp = xp.reshape(N, HP, WP // stride, stride * cin)   # free reshape
    taps = _col_taps(ksize, stride, cin)
    n_taps, _, np_ = wmat.shape
    assert n_taps == ksize * ksize
    tn = min(128, np_)

    def x_map(dh):
        return lambda n, r, j, _dh=dh: (n, r * stride + _dh, 0, 0)

    x_specs = [pl.BlockSpec((None, None, xp.shape[2], xp.shape[3]), x_map(dh))
               for dh in range(ksize)]
    w_spec = pl.BlockSpec((n_taps, cin, tn), lambda n, r, j: (0, 0, j))
    b_spec = pl.BlockSpec((1, tn), lambda n, r, j: (0, j))
    out_spec = pl.BlockSpec((None, None, ow, tn), lambda n, r, j: (n, r, 0, j))

    block_bytes = 2 * (ksize * xp.shape[2] * xp.shape[3] * 2
                       + n_taps * cin * tn * 2 + tn * 4 + ow * tn * 2)
    return pl.pallas_call(
        functools.partial(_conv_row_kernel, col_taps=taps, cin=cin, ow=ow,
                          relu=relu),
        out_shape=jax.ShapeDtypeStruct((N, oh, ow, np_), ACT_DTYPE),
        grid=(N, oh, np_ // tn),
        in_specs=x_specs + [w_spec, b_spec],
        out_specs=out_spec,
        compiler_params=_mosaic_params(3, block_bytes),
    )(*([xp] * ksize), wmat, bias)


def conv3x3_bn(x, p, *, stride, relu=True):
    N, H, W, _ = x.shape
    oh = (H + 2 - 3) // stride + 1
    ow = (W + 2 - 3) // stride + 1
    xp = jnp.pad(x, ((0, 0), (1, 1), (1, 1), (0, 0)))
    return _window_conv(xp, p["wmat"], p["bias"], ksize=3, stride=stride,
                        oh=oh, ow=ow, relu=relu)


def conv1x1_bn(x, p, *, stride=1, relu, residual=None, out_dtype=ACT_DTYPE):
    if stride != 1:
        x = x[:, ::stride, ::stride, :]
    N, H, W, C = x.shape
    a = x.reshape(N * H * W, C)                               # free reshape
    res = None
    if residual is not None:
        res = residual.reshape(N * H * W, residual.shape[-1])
    y = matmul_bias(a, p["wmat"], p["bias"], relu=relu, residual=res,
                    out_dtype=out_dtype)
    return y.reshape(N, H, W, -1)


def conv7x7_bn(x, p):
    # conv1 (cin=3): concat-im2col path; K padded 147 -> 256 for lane-dense A.
    N, H, W, C = x.shape
    k, s, pad = 7, 2, 3
    oh = (H + 2 * pad - k) // s + 1
    ow = (W + 2 * pad - k) // s + 1
    xp = jnp.pad(x, ((0, 0), (pad, pad), (pad, pad), (0, 0)))
    taps = []
    for dh in range(k):
        for dw in range(k):
            taps.append(lax.slice(
                xp, (0, dh, dw, 0),
                (N, dh + s * (oh - 1) + 1, dw + s * (ow - 1) + 1, C),
                (1, s, s, 1)))
    a = jnp.concatenate(taps, axis=-1).reshape(N * oh * ow, k * k * C)
    kp = p["wmat"].shape[0]
    a = jnp.pad(a, ((0, 0), (0, kp - a.shape[1])))
    y = matmul_bias(a, p["wmat"], p["bias"], relu=True)
    return y.reshape(N, oh, ow, -1)


def pool2d(x, ksize, stride, pad, op):
    N, H, W, C = x.shape
    oh = (H + 2 * pad - ksize) // stride + 1
    ow = (W + 2 * pad - ksize) // stride + 1
    pad_val = -jnp.inf if op == "max" else 0.0
    xp = (jnp.pad(x, ((0, 0), (pad, pad), (pad, pad), (0, 0)),
                  constant_values=pad_val) if pad else x)
    HP, WP = xp.shape[1], xp.shape[2]
    if stride > 1:
        if WP % stride:
            raise NotImplementedError("padded width must divide the stride")
        xp = xp.reshape(N, HP, WP // stride, stride * C)      # free reshape
    taps = _col_taps(ksize, stride, C)

    def x_map(dh):
        return lambda n, r, _dh=dh: (n, r * stride + _dh, 0, 0)

    x_specs = [pl.BlockSpec((None, None, xp.shape[2], xp.shape[3]), x_map(dh))
               for dh in range(ksize)]
    out_spec = pl.BlockSpec((None, None, ow, C), lambda n, r: (n, r, 0, 0))
    block_bytes = 2 * (ksize * xp.shape[2] * xp.shape[3] * 2 + ow * C * 2)
    return pl.pallas_call(
        functools.partial(_pool_row_kernel, col_taps=taps, cin=C, ow=ow, op=op),
        out_shape=jax.ShapeDtypeStruct((N, oh, ow, C), ACT_DTYPE),
        grid=(N, oh),
        in_specs=x_specs,
        out_specs=out_spec,
        compiler_params=_mosaic_params(2, block_bytes),
    )(*([xp] * ksize))


def l2_normalize(x):
    # Tiny (B, F) tensor -> single block; cast to f32 inside the kernel.
    B, F = x.shape
    return pl.pallas_call(
        _l2norm_kernel,
        out_shape=jax.ShapeDtypeStruct((B, F), jnp.float32),
        grid=(1,),
        in_specs=[pl.BlockSpec((B, F), lambda i: (0, 0))],
        out_specs=pl.BlockSpec((B, F), lambda i: (0, 0)),
    )(x)


def linear(x, p, *, out_dtype=ACT_DTYPE):
    # nn.Linear: y = x @ W.T + b (W pre-transposed, lane-padded at prep time)
    return matmul_bias(x, p["wmat"], p["bias"], relu=False, out_dtype=out_dtype)


# ----------------------------- model -----------------------------------------
def bottleneck(x, p, stride):
    out = conv1x1_bn(x, p["conv1"], relu=True)
    out = conv3x3_bn(out, p["conv2"], stride=stride, relu=True)
    if "down" in p:
        identity = conv1x1_bn(x, p["down"], stride=stride, relu=False)
    else:
        identity = x
    # residual add + ReLU fused into the conv3 matmul epilogue
    return conv1x1_bn(out, p["conv3"], relu=True, residual=identity)


def forward(params, x_nchw):
    # NCHW (PyTorch convention) -> NHWC for the kernels, bf16 activations
    x = jnp.transpose(x_nchw, (0, 2, 3, 1)).astype(ACT_DTYPE)

    x = conv7x7_bn(x, params["conv1"])            # conv1 + bn1 + relu
    x = pool2d(x, 3, 2, 1, "max")                 # maxpool 3x3, stride 2, pad 1
    for li in range(4):                           # layer1..layer4
        for bi, blk in enumerate(params[f"layer{li + 1}"]):
            x = bottleneck(x, blk, STRIDES[li] if bi == 0 else 1)

    c_real = PLANES[3] * EXPANSION
    x = x[..., :c_real]                           # strip lane padding (no-op here)
    # backbone.avgpool -> 2x2 spatial (fc1 in_features = C*2*2)
    N, H, W, _ = x.shape
    if H > 2 or W > 2:
        x = pool2d(x, H // 2, H // 2, 0, "mean")
    # x.view(N, -1) with PyTorch NCHW ordering (c, h, w)
    feat = jnp.transpose(x, (0, 3, 1, 2)).reshape(N, -1)

    feat = l2_normalize(feat)                     # l2_norm
    # dropout: eval-mode identity
    feat = linear(feat, params["fc1"])
    feat = l2_normalize(feat)                     # l2_norm
    # dropout: eval-mode identity
    logits = linear(feat, params["fc2"], out_dtype=jnp.float32)
    return logits[:, :NUM_CLASSES]                # drop lane padding


# ----------------------------- deterministic params ---------------------------
def _fold_bn(key, cout):
    kg, kb, km, kv = jax.random.split(key, 4)
    gamma = 1.0 + 0.1 * jax.random.normal(kg, (cout,), jnp.float32)
    beta = 0.1 * jax.random.normal(kb, (cout,), jnp.float32)
    mean = 0.1 * jax.random.normal(km, (cout,), jnp.float32)
    var = 1.0 + 0.1 * jnp.abs(jax.random.normal(kv, (cout,), jnp.float32))
    scale = gamma / jnp.sqrt(var + BN_EPS)        # fold BN into scale/bias
    bias = beta - mean * scale
    return scale, bias


def _make_conv_bn(key, cin, cin_p, cout, ksize, *, kind):
    """Conv+BN params; BN scale folded into the weights (f32) before bf16 cast.

    kind "1x1":    wmat (cin_p, Np)
    kind "3x3":    wmat (9, cin_p, Np)                 (in-kernel window taps)
    kind "im2col": wmat (round_up(k*k*cin, 128), Np)   (conv1 concat path)
    """
    kw_, kbn = jax.random.split(key)
    fan_in = cin * ksize * ksize
    w = jax.random.normal(kw_, (cout, cin, ksize, ksize), jnp.float32)
    w = w * jnp.sqrt(2.0 / fan_in)
    scale, bias = _fold_bn(kbn, cout)
    w = w * scale[:, None, None, None]            # fold BN scale (f32)
    np_ = _round_up(cout, LANE)
    b = jnp.zeros((1, np_), jnp.float32).at[0, :cout].set(bias)
    w_t = jnp.transpose(w, (2, 3, 1, 0))          # (kh, kw, cin, cout)
    if kind == "1x1":
        wmat = jnp.zeros((cin_p, np_), jnp.float32)
        wmat = wmat.at[:cin, :cout].set(w_t[0, 0])
    elif kind == "3x3":
        wmat = jnp.zeros((ksize * ksize, cin_p, np_), jnp.float32)
        wmat = wmat.at[:, :cin, :cout].set(w_t.reshape(ksize * ksize, cin, cout))
    else:                                         # "im2col" (conv1)
        k_real = ksize * ksize * cin
        kp = _round_up(k_real, LANE)
        wmat = jnp.zeros((kp, np_), jnp.float32)
        wmat = wmat.at[:k_real, :cout].set(w_t.reshape(k_real, cout))
    return {"wmat": wmat.astype(ACT_DTYPE), "bias": b}


def _make_linear(key, fin, fout):
    kw_, kb = jax.random.split(key)
    w = jax.random.normal(kw_, (fout, fin), jnp.float32) / jnp.sqrt(float(fin))
    b = 0.01 * jax.random.normal(kb, (fout,), jnp.float32)
    np_ = _round_up(fout, LANE)
    wmat = jnp.zeros((fin, np_), jnp.float32).at[:, :fout].set(w.T)
    bias = jnp.zeros((1, np_), jnp.float32).at[0, :fout].set(b)
    return {"wmat": wmat.astype(ACT_DTYPE), "bias": bias}


def make_params(key):
    keys = iter(jax.random.split(key, 256))
    nk = lambda: next(keys)
    params = {"conv1": _make_conv_bn(nk(), 3, 3, BASE, 7, kind="im2col")}
    in_c, in_cp = BASE, _round_up(BASE, LANE)
    for li in range(4):
        planes = PLANES[li]
        planes_p = _round_up(planes, LANE)
        out_c = planes * EXPANSION
        blocks = []
        for bi in range(BLOCKS[li]):
            stride = STRIDES[li] if bi == 0 else 1
            blk = {
                "conv1": _make_conv_bn(nk(), in_c, in_cp, planes, 1, kind="1x1"),
                "conv2": _make_conv_bn(nk(), planes, planes_p, planes, 3,
                                       kind="3x3"),
                "conv3": _make_conv_bn(nk(), planes, planes_p, out_c, 1,
                                       kind="1x1"),
            }
            if stride != 1 or in_c != out_c:
                blk["down"] = _make_conv_bn(nk(), in_c, in_cp, out_c, 1,
                                            kind="1x1")
            blocks.append(blk)
            in_c, in_cp = out_c, _round_up(out_c, LANE)
        params[f"layer{li + 1}"] = blocks
    feat = in_c * 4                 # 2x2 adaptive avgpool, flattened (mirrors 8192)
    hidden = feat // 4              # mirrors fc1: 8192 -> 2048
    params["fc1"] = _make_linear(nk(), feat, hidden)
    params["fc2"] = _make_linear(nk(), hidden, NUM_CLASSES)
    return params


# ----------------------------- main -------------------------------------------
if __name__ == "__main__":
    key = jax.random.PRNGKey(0)
    pkey, xkey = jax.random.split(key)
    params = make_params(pkey)
    # NCHW input; 64x64 gives a 2x2 map before the (2,2) adaptive avgpool
    x = jax.random.normal(xkey, (2, 3, 64, 64), jnp.float32)

    fwd = jax.jit(forward)
    out = jax.block_until_ready(fwd(params, x))

    assert out.shape == (2, NUM_CLASSES), out.shape
    assert bool(jnp.all(jnp.isfinite(out)))
    print("KERNEL_OK")
</pallas_src>

<mosaic_0001>
module attributes {stable_mosaic.version = 11 : i64} {
  func.func @_matmul_kernel(%arg0: i32, %arg1: i32, %arg2: memref<512x256xbf16, #tpu.memory_space<vmem>>, %arg3: memref<256x128xbf16, #tpu.memory_space<vmem>>, %arg4: memref<1x128xf32, #tpu.memory_space<vmem>>, %arg5: memref<512x128xbf16, #tpu.memory_space<vmem>>) attributes {dimension_semantics = [#tpu.dimension_semantics<parallel>, #tpu.dimension_semantics<parallel>], iteration_bounds = array<i64: 4, 1>, scalar_prefetch = 0 : i64, scratch_operands = 0 : i64, tpu.core_type = #tpu.core_type<tc>, window_params = [{transform_indices = @transform_0, window_bounds = array<i64: 512, 256>}, {transform_indices = @transform_1, window_bounds = array<i64: 256, 128>}, {transform_indices = @transform_2, window_bounds = array<i64: 1, 128>}, {transform_indices = @transform_3, window_bounds = array<i64: 512, 128>}]} {
    %c0 = arith.constant 0 : index
    %c0_0 = arith.constant 0 : index
    %0 = vector.load %arg2[%c0, %c0_0] : memref<512x256xbf16, #tpu.memory_space<vmem>>, vector<512x256xbf16>
    %c0_1 = arith.constant 0 : index
    %c0_2 = arith.constant 0 : index
    %1 = vector.load %arg3[%c0_1, %c0_2] : memref<256x128xbf16, #tpu.memory_space<vmem>>, vector<256x128xbf16>
    %cst = arith.constant dense<0.000000e+00> : vector<512x128xf32>
    %2 = tpu.matmul %0, %1, %cst {dimension_numbers = #tpu.dot_dimension_numbers<[1], [0], [0], [1], [0, 0, 1, 1], [], []>} : vector<512x256xbf16>, vector<256x128xbf16>, vector<512x128xf32> -> vector<512x128xf32>
    %c0_3 = arith.constant 0 : index
    %c0_4 = arith.constant 0 : index
    %3 = vector.load %arg4[%c0_3, %c0_4] : memref<1x128xf32, #tpu.memory_space<vmem>>, vector<1x128xf32>
    %4 = vector.broadcast %3 : vector<1x128xf32> to vector<512x128xf32>
    %5 = arith.addf %2, %4 : vector<512x128xf32>
    %cst_5 = arith.constant 0.000000e+00 : f32
    %6 = vector.broadcast %cst_5 : f32 to vector<512x128xf32>
    %7 = arith.maximumf %5, %6 : vector<512x128xf32>
    %8 = arith.truncf %7 : vector<512x128xf32> to vector<512x128xbf16>
    %c0_6 = arith.constant 0 : index
    %c0_7 = arith.constant 0 : index
    %9 = vector.load %arg5[%c0_6, %c0_7] : memref<512x128xbf16, #tpu.memory_space<vmem>>, vector<512x128xbf16>
    tpu.vector_store %arg5[%c0_6, %c0_7], %8 {strides = array<i32>} : memref<512x128xbf16, #tpu.memory_space<vmem>>, vector<512x128xbf16>,
    return
  }
  func.func @transform_0(%arg0: i32, %arg1: i32) -> (i32, i32) {
    %c0_i32 = arith.constant 0 : i32
    %c0_i32_0 = arith.constant 0 : i32
    return %arg0, %c0_i32 : i32, i32
  }
  func.func @transform_1(%arg0: i32, %arg1: i32) -> (i32, i32) {
    %c0_i32 = arith.constant 0 : i32
    %c0_i32_0 = arith.constant 0 : i32
    return %c0_i32, %arg1 : i32, i32
  }
  func.func @transform_2(%arg0: i32, %arg1: i32) -> (i32, i32) {
    %c0_i32 = arith.constant 0 : i32
    %c0_i32_0 = arith.constant 0 : i32
    return %c0_i32, %arg1 : i32, i32
  }
  func.func @transform_3(%arg0: i32, %arg1: i32) -> (i32, i32) {
    %c0_i32 = arith.constant 0 : i32
    return %arg0, %arg1 : i32, i32
  }
}

module attributes {stable_mosaic.version = 11 : i64} {
  func.func @_pool_row_kernel(%arg0: i32, %arg1: i32, %arg2: memref<1x1x17x256xbf16, #tpu.memory_space<vmem>>, %arg3: memref<1x1x17x256xbf16, #tpu.memory_space<vmem>>, %arg4: memref<1x1x17x256xbf16, #tpu.memory_space<vmem>>, %arg5: memref<1x1x16x128xbf16, #tpu.memory_space<vmem>>) attributes {dimension_semantics = [#tpu.dimension_semantics<parallel>, #tpu.dimension_semantics<parallel>], iteration_bounds = array<i64: 2, 16>, scalar_prefetch = 0 : i64, scratch_operands = 0 : i64, tpu.core_type = #tpu.core_type<tc>, window_params = [{transform_indices = @transform_0, window_bounds = array<i64: 1, 1, 17, 256>}, {transform_indices = @transform_1, window_bounds = array<i64: 1, 1, 17, 256>}, {transform_indices = @transform_2, window_bounds = array<i64: 1, 1, 17, 256>}, {transform_indices = @transform_3, window_bounds = array<i64: 1, 1, 16, 128>}]} {
    %c0 = arith.constant 0 : index
    %c0_0 = arith.constant 0 : index
    %c0_1 = arith.constant 0 : index
    %c0_2 = arith.constant 0 : index
    %0 = vector.load %arg2[%c0, %c0_0, %c0_1, %c0_2] : memref<1x1x17x256xbf16, #tpu.memory_space<vmem>>, vector<1x1x16x128xbf16>
    %1 = vector.shape_cast %0 : vector<1x1x16x128xbf16> to vector<16x128xbf16>
    %c0_3 = arith.constant 0 : index
    %c0_4 = arith.constant 0 : index
    %c0_5 = arith.constant 0 : index
    %c128 = arith.constant 128 : index
    %2 = vector.load %arg2[%c0_3, %c0_4, %c0_5, %c128] : memref<1x1x17x256xbf16, #tpu.memory_space<vmem>>, vector<1x1x16x128xbf16>
    %3 = vector.shape_cast %2 : vector<1x1x16x128xbf16> to vector<16x128xbf16>
    %4 = arith.maximumf %1, %3 : vector<16x128xbf16>
    %c0_6 = arith.constant 0 : index
    %c0_7 = arith.constant 0 : index
    %c1 = arith.constant 1 : index
    %c0_8 = arith.constant 0 : index
    %5 = vector.load %arg2[%c0_6, %c0_7, %c1, %c0_8] : memref<1x1x17x256xbf16, #tpu.memory_space<vmem>>, vector<1x1x16x128xbf16>
    %6 = vector.shape_cast %5 : vector<1x1x16x128xbf16> to vector<16x128xbf16>
    %7 = arith.maximumf %4, %6 : vector<16x128xbf16>
    %c0_9 = arith.constant 0 : index
    %c0_10 = arith.constant 0 : index
    %c0_11 = arith.constant 0 : index
    %c0_12 = arith.constant 0 : index
    %8 = vector.load %arg3[%c0_9, %c0_10, %c0_11, %c0_12] : memref<1x1x17x256xbf16, #tpu.memory_space<vmem>>, vector<1x1x16x128xbf16>
    %9 = vector.shape_cast %8 : vector<1x1x16x128xbf16> to vector<16x128xbf16>
    %10 = arith.maximumf %7, %9 : vector<16x128xbf16>
    %c0_13 = arith.constant 0 : index
    %c0_14 = arith.constant 0 : index
    %c0_15 = arith.constant 0 : index
    %c128_16 = arith.constant 128 : index
    %11 = vector.load %arg3[%c0_13, %c0_14, %c0_15, %c128_16] : memref<1x1x17x256xbf16, #tpu.memory_space<vmem>>, vector<1x1x16x128xbf16>
    %12 = vector.shape_cast %11 : vector<1x1x16x128xbf16> to vector<16x128xbf16>
    %13 = arith.maximumf %10, %12 : vector<16x128xbf16>
    %c0_17 = arith.constant 0 : index
    %c0_18 = arith.constant 0 : index
    %c1_19 = arith.constant 1 : index
    %c0_20 = arith.constant 0 : index
    %14 = vector.load %arg3[%c0_17, %c0_18, %c1_19, %c0_20] : memref<1x1x17x256xbf16, #tpu.memory_space<vmem>>, vector<1x1x16x128xbf16>
    %15 = vector.shape_cast %14 : vector<1x1x16x128xbf16> to vector<16x128xbf16>
    %16 = arith.maximumf %13, %15 : vector<16x128xbf16>
    %c0_21 = arith.constant 0 : index
    %c0_22 = arith.constant 0 : index
    %c0_23 = arith.constant 0 : index
    %c0_24 = arith.constant 0 : index
    %17 = vector.load %arg4[%c0_21, %c0_22, %c0_23, %c0_24] : memref<1x1x17x256xbf16, #tpu.memory_space<vmem>>, vector<1x1x16x128xbf16>
    %18 = vector.shape_cast %17 : vector<1x1x16x128xbf16> to vector<16x128xbf16>
    %19 = arith.maximumf %16, %18 : vector<16x128xbf16>
    %c0_25 = arith.constant 0 : index
    %c0_26 = arith.constant 0 : index
    %c0_27 = arith.constant 0 : index
    %c128_28 = arith.constant 128 : index
    %20 = vector.load %arg4[%c0_25, %c0_26, %c0_27, %c128_28] : memref<1x1x17x256xbf16, #tpu.memory_space<vmem>>, vector<1x1x16x128xbf16>
    %21 = vector.shape_cast %20 : vector<1x1x16x128xbf16> to vector<16x128xbf16>
    %22 = arith.maximumf %19, %21 : vector<16x128xbf16>
    %c0_29 = arith.constant 0 : index
    %c0_30 = arith.constant 0 : index
    %c1_31 = arith.constant 1 : index
    %c0_32 = arith.constant 0 : index
    %23 = vector.load %arg4[%c0_29, %c0_30, %c1_31, %c0_32] : memref<1x1x17x256xbf16, #tpu.memory_space<vmem>>, vector<1x1x16x128xbf16>
    %24 = vector.shape_cast %23 : vector<1x1x16x128xbf16> to vector<16x128xbf16>
    %25 = arith.maximumf %22, %24 : vector<16x128xbf16>
    %c0_33 = arith.constant 0 : index
    %c0_34 = arith.constant 0 : index
    %c0_35 = arith.constant 0 : index
    %c0_36 = arith.constant 0 : index
    %26 = vector.load %arg5[%c0_33, %c0_34, %c0_35, %c0_36] : memref<1x1x16x128xbf16, #tpu.memory_space<vmem>>, vector<1x1x16x128xbf16>
    %27 = vector.shape_cast %26 : vector<1x1x16x128xbf16> to vector<16x128xbf16>
    %28 = vector.shape_cast %25 : vector<16x128xbf16> to vector<1x1x16x128xbf16>
    tpu.vector_store %arg5[%c0_33, %c0_34, %c0_35, %c0_36], %28 {strides = array<i32>} : memref<1x1x16x128xbf16, #tpu.memory_space<vmem>>, vector<1x1x16x128xbf16>,
    return
  }
  func.func @transform_0(%arg0: i32, %arg1: i32) -> (i32, i32, i32, i32) {
    %c2_i32 = arith.constant 2 : i32
    %0 = arith.muli %arg1, %c2_i32 : i32
    %c0_i32 = arith.constant 0 : i32
    %1 = arith.addi %0, %c0_i32 : i32
    %c0_i32_0 = arith.constant 0 : i32
    %c0_i32_1 = arith.constant 0 : i32
    %c0_i32_2 = arith.constant 0 : i32
    return %arg0, %1, %c0_i32_0, %c0_i32_1 : i32, i32, i32, i32
  }
  func.func @transform_1(%arg0: i32, %arg1: i32) -> (i32, i32, i32, i32) {
    %c2_i32 = arith.constant 2 : i32
    %0 = arith.muli %arg1, %c2_i32 : i32
    %c1_i32 = arith.constant 1 : i32
    %1 = arith.addi %0, %c1_i32 : i32
    %c0_i32 = arith.constant 0 : i32
    %c0_i32_0 = arith.constant 0 : i32
    %c0_i32_1 = arith.constant 0 : i32
    return %arg0, %1, %c0_i32, %c0_i32_0 : i32, i32, i32, i32
  }
  func.func @transform_2(%arg0: i32, %arg1: i32) -> (i32, i32, i32, i32) {
    %c2_i32 = arith.constant 2 : i32
    %0 = arith.muli %arg1, %c2_i32 : i32
    %c2_i32_0 = arith.constant 2 : i32
    %1 = arith.addi %0, %c2_i32_0 : i32
    %c0_i32 = arith.constant 0 : i32
    %c0_i32_1 = arith.constant 0 : i32
    %c0_i32_2 = arith.constant 0 : i32
    return %arg0, %1, %c0_i32, %c0_i32_1 : i32, i32, i32, i32
  }
  func.func @transform_3(%arg0: i32, %arg1: i32) -> (i32, i32, i32, i32) {
    %c0_i32 = arith.constant 0 : i32
    %c0_i32_0 = arith.constant 0 : i32
    %c0_i32_1 = arith.constant 0 : i32
    return %arg0, %arg1, %c0_i32, %c0_i32_0 : i32, i32, i32, i32
  }
}

module attributes {stable_mosaic.version = 11 : i64} {
  func.func @_matmul_kernel(%arg0: i32, %arg1: i32, %arg2: memref<256x128xbf16, #tpu.memory_space<vmem>>, %arg3: memref<128x128xbf16, #tpu.memory_space<vmem>>, %arg4: memref<1x128xf32, #tpu.memory_space<vmem>>, %arg5: memref<256x128xbf16, #tpu.memory_space<vmem>>) attributes {dimension_semantics = [#tpu.dimension_semantics<parallel>, #tpu.dimension_semantics<parallel>], iteration_bounds = array<i64: 2, 1>, scalar_prefetch = 0 : i64, scratch_operands = 0 : i64, tpu.core_type = #tpu.core_type<tc>, window_params = [{transform_indices = @transform_0, window_bounds = array<i64: 256, 128>}, {transform_indices = @transform_1, window_bounds = array<i64: 128, 128>}, {transform_indices = @transform_2, window_bounds = array<i64: 1, 128>}, {transform_indices = @transform_3, window_bounds = array<i64: 256, 128>}]} {
    %c0 = arith.constant 0 : index
    %c0_0 = arith.constant 0 : index
    %0 = vector.load %arg2[%c0, %c0_0] : memref<256x128xbf16, #tpu.memory_space<vmem>>, vector<256x128xbf16>
    %c0_1 = arith.constant 0 : index
    %c0_2 = arith.constant 0 : index
    %1 = vector.load %arg3[%c0_1, %c0_2] : memref<128x128xbf16, #tpu.memory_space<vmem>>, vector<128x128xbf16>
    %cst = arith.constant dense<0.000000e+00> : vector<256x128xf32>
    %2 = tpu.matmul %0, %1, %cst {dimension_numbers = #tpu.dot_dimension_numbers<[1], [0], [0], [1], [0, 0, 1, 1], [], []>} : vector<256x128xbf16>, vector<128x128xbf16>, vector<256x128xf32> -> vector<256x128xf32>
    %c0_3 = arith.constant 0 : index
    %c0_4 = arith.constant 0 : index
    %3 = vector.load %arg4[%c0_3, %c0_4] : memref<1x128xf32, #tpu.memory_space<vmem>>, vector<1x128xf32>
    %4 = vector.broadcast %3 : vector<1x128xf32> to vector<256x128xf32>
    %5 = arith.addf %2, %4 : vector<256x128xf32>
    %6 = arith.truncf %5 : vector<256x128xf32> to vector<256x128xbf16>
    %c0_5 = arith.constant 0 : index
    %c0_6 = arith.constant 0 : index
    %7 = vector.load %arg5[%c0_5, %c0_6] : memref<256x128xbf16, #tpu.memory_space<vmem>>, vector<256x128xbf16>
    tpu.vector_store %arg5[%c0_5, %c0_6], %6 {strides = array<i32>} : memref<256x128xbf16, #tpu.memory_space<vmem>>, vector<256x128xbf16>,
    return
  }
  func.func @transform_0(%arg0: i32, %arg1: i32) -> (i32, i32) {
    %c0_i32 = arith.constant 0 : i32
    %c0_i32_0 = arith.constant 0 : i32
    return %arg0, %c0_i32 : i32, i32
  }
  func.func @transform_1(%arg0: i32, %arg1: i32) -> (i32, i32) {
    %c0_i32 = arith.constant 0 : i32
    %c0_i32_0 = arith.constant 0 : i32
    return %c0_i32, %arg1 : i32, i32
  }
  func.func @transform_2(%arg0: i32, %arg1: i32) -> (i32, i32) {
    %c0_i32 = arith.constant 0 : i32
    %c0_i32_0 = arith.constant 0 : i32
    return %c0_i32, %arg1 : i32, i32
  }
  func.func @transform_3(%arg0: i32, %arg1: i32) -> (i32, i32) {
    %c0_i32 = arith.constant 0 : i32
    return %arg0, %arg1 : i32, i32
  }
}

module attributes {stable_mosaic.version = 11 : i64} {
  func.func @_matmul_kernel(%arg0: i32, %arg1: i32, %arg2: memref<256x128xbf16, #tpu.memory_space<vmem>>, %arg3: memref<128x128xbf16, #tpu.memory_space<vmem>>, %arg4: memref<1x128xf32, #tpu.memory_space<vmem>>, %arg5: memref<256x128xbf16, #tpu.memory_space<vmem>>) attributes {dimension_semantics = [#tpu.dimension_semantics<parallel>, #tpu.dimension_semantics<parallel>], iteration_bounds = array<i64: 2, 1>, scalar_prefetch = 0 : i64, scratch_operands = 0 : i64, tpu.core_type = #tpu.core_type<tc>, window_params = [{transform_indices = @transform_0, window_bounds = array<i64: 256, 128>}, {transform_indices = @transform_1, window_bounds = array<i64: 128, 128>}, {transform_indices = @transform_2, window_bounds = array<i64: 1, 128>}, {transform_indices = @transform_3, window_bounds = array<i64: 256, 128>}]} {
    %c0 = arith.constant 0 : index
    %c0_0 = arith.constant 0 : index
    %0 = vector.load %arg2[%c0, %c0_0] : memref<256x128xbf16, #tpu.memory_space<vmem>>, vector<256x128xbf16>
    %c0_1 = arith.constant 0 : index
    %c0_2 = arith.constant 0 : index
    %1 = vector.load %arg3[%c0_1, %c0_2] : memref<128x128xbf16, #tpu.memory_space<vmem>>, vector<128x128xbf16>
    %cst = arith.constant dense<0.000000e+00> : vector<256x128xf32>
    %2 = tpu.matmul %0, %1, %cst {dimension_numbers = #tpu.dot_dimension_numbers<[1], [0], [0], [1], [0, 0, 1, 1], [], []>} : vector<256x128xbf16>, vector<128x128xbf16>, vector<256x128xf32> -> vector<256x128xf32>
    %c0_3 = arith.constant 0 : index
    %c0_4 = arith.constant 0 : index
    %3 = vector.load %arg4[%c0_3, %c0_4] : memref<1x128xf32, #tpu.memory_space<vmem>>, vector<1x128xf32>
    %4 = vector.broadcast %3 : vector<1x128xf32> to vector<256x128xf32>
    %5 = arith.addf %2, %4 : vector<256x128xf32>
    %cst_5 = arith.constant 0.000000e+00 : f32
    %6 = vector.broadcast %cst_5 : f32 to vector<256x128xf32>
    %7 = arith.maximumf %5, %6 : vector<256x128xf32>
    %8 = arith.truncf %7 : vector<256x128xf32> to vector<256x128xbf16>
    %c0_6 = arith.constant 0 : index
    %c0_7 = arith.constant 0 : index
    %9 = vector.load %arg5[%c0_6, %c0_7] : memref<256x128xbf16, #tpu.memory_space<vmem>>, vector<256x128xbf16>
    tpu.vector_store %arg5[%c0_6, %c0_7], %8 {strides = array<i32>} : memref<256x128xbf16, #tpu.memory_space<vmem>>, vector<256x128xbf16>,
    return
  }
  func.func @transform_0(%arg0: i32, %arg1: i32) -> (i32, i32) {
    %c0_i32 = arith.constant 0 : i32
    %c0_i32_0 = arith.constant 0 : i32
    return %arg0, %c0_i32 : i32, i32
  }
  func.func @transform_1(%arg0: i32, %arg1: i32) -> (i32, i32) {
    %c0_i32 = arith.constant 0 : i32
    %c0_i32_0 = arith.constant 0 : i32
    return %c0_i32, %arg1 : i32, i32
  }
  func.func @transform_2(%arg0: i32, %arg1: i32) -> (i32, i32) {
    %c0_i32 = arith.constant 0 : i32
    %c0_i32_0 = arith.constant 0 : i32
    return %c0_i32, %arg1 : i32, i32
  }
  func.func @transform_3(%arg0: i32, %arg1: i32) -> (i32, i32) {
    %c0_i32 = arith.constant 0 : i32
    return %arg0, %arg1 : i32, i32
  }
}

module attributes {stable_mosaic.version = 11 : i64} {
  func.func @_conv_row_kernel(%arg0: i32, %arg1: i32, %arg2: i32, %arg3: memref<1x1x18x128xbf16, #tpu.memory_space<vmem>>, %arg4: memref<1x1x18x128xbf16, #tpu.memory_space<vmem>>, %arg5: memref<1x1x18x128xbf16, #tpu.memory_space<vmem>>, %arg6: memref<9x128x128xbf16, #tpu.memory_space<vmem>>, %arg7: memref<1x128xf32, #tpu.memory_space<vmem>>, %arg8: memref<1x1x16x128xbf16, #tpu.memory_space<vmem>>) attributes {dimension_semantics = [#tpu.dimension_semantics<parallel>, #tpu.dimension_semantics<parallel>, #tpu.dimension_semantics<parallel>], iteration_bounds = array<i64: 2, 16, 1>, scalar_prefetch = 0 : i64, scratch_operands = 0 : i64, tpu.core_type = #tpu.core_type<tc>, window_params = [{transform_indices = @transform_0, window_bounds = array<i64: 1, 1, 18, 128>}, {transform_indices = @transform_1, window_bounds = array<i64: 1, 1, 18, 128>}, {transform_indices = @transform_2, window_bounds = array<i64: 1, 1, 18, 128>}, {transform_indices = @transform_3, window_bounds = array<i64: 9, 128, 128>}, {transform_indices = @transform_4, window_bounds = array<i64: 1, 128>}, {transform_indices = @transform_5, window_bounds = array<i64: 1, 1, 16, 128>}]} {
    %c0 = arith.constant 0 : index
    %c0_0 = arith.constant 0 : index
    %c0_1 = arith.constant 0 : index
    %c0_2 = arith.constant 0 : index
    %0 = vector.load %arg3[%c0, %c0_0, %c0_1, %c0_2] : memref<1x1x18x128xbf16, #tpu.memory_space<vmem>>, vector<1x1x16x128xbf16>
    %1 = vector.shape_cast %0 : vector<1x1x16x128xbf16> to vector<16x128xbf16>
    %c0_3 = arith.constant 0 : index
    %c0_4 = arith.constant 0 : index
    %c0_5 = arith.constant 0 : index
    %2 = vector.load %arg6[%c0_3, %c0_4, %c0_5] : memref<9x128x128xbf16, #tpu.memory_space<vmem>>, vector<1x128x128xbf16>
    %3 = vector.shape_cast %2 : vector<1x128x128xbf16> to vector<128x128xbf16>
    %cst = arith.constant dense<0.000000e+00> : vector<16x128xf32>
    %4 = tpu.matmul %1, %3, %cst {dimension_numbers = #tpu.dot_dimension_numbers<[1], [0], [0], [1], [0, 0, 1, 1], [], []>} : vector<16x128xbf16>, vector<128x128xbf16>, vector<16x128xf32> -> vector<16x128xf32>
    %c0_6 = arith.constant 0 : index
    %c0_7 = arith.constant 0 : index
    %c1 = arith.constant 1 : index
    %c0_8 = arith.constant 0 : index
    %5 = vector.load %arg3[%c0_6, %c0_7, %c1, %c0_8] : memref<1x1x18x128xbf16, #tpu.memory_space<vmem>>, vector<1x1x16x128xbf16>
    %6 = vector.shape_cast %5 : vector<1x1x16x128xbf16> to vector<16x128xbf16>
    %c1_9 = arith.constant 1 : index
    %c0_10 = arith.constant 0 : index
    %c0_11 = arith.constant 0 : index
    %7 = vector.load %arg6[%c1_9, %c0_10, %c0_11] : memref<9x128x128xbf16, #tpu.memory_space<vmem>>, vector<1x128x128xbf16>
    %8 = vector.shape_cast %7 : vector<1x128x128xbf16> to vector<128x128xbf16>
    %cst_12 = arith.constant dense<0.000000e+00> : vector<16x128xf32>
    %9 = tpu.matmul %6, %8, %cst_12 {dimension_numbers = #tpu.dot_dimension_numbers<[1], [0], [0], [1], [0, 0, 1, 1], [], []>} : vector<16x128xbf16>, vector<128x128xbf16>, vector<16x128xf32> -> vector<16x128xf32>
    %10 = arith.addf %4, %9 : vector<16x128xf32>
    %c0_13 = arith.constant 0 : index
    %c0_14 = arith.constant 0 : index
    %c2 = arith.constant 2 : index
    %c0_15 = arith.constant 0 : index
    %11 = vector.load %arg3[%c0_13, %c0_14, %c2, %c0_15] : memref<1x1x18x128xbf16, #tpu.memory_space<vmem>>, vector<1x1x16x128xbf16>
    %12 = vector.shape_cast %11 : vector<1x1x16x128xbf16> to vector<16x128xbf16>
    %c2_16 = arith.constant 2 : index
    %c0_17 = arith.constant 0 : index
    %c0_18 = arith.constant 0 : index
    %13 = vector.load %arg6[%c2_16, %c0_17, %c0_18] : memref<9x128x128xbf16, #tpu.memory_space<vmem>>, vector<1x128x128xbf16>
    %14 = vector.shape_cast %13 : vector<1x128x128xbf16> to vector<128x128xbf16>
    %cst_19 = arith.constant dense<0.000000e+00> : vector<16x128xf32>
    %15 = tpu.matmul %12, %14, %cst_19 {dimension_numbers = #tpu.dot_dimension_numbers<[1], [0], [0], [1], [0, 0, 1, 1], [], []>} : vector<16x128xbf16>, vector<128x128xbf16>, vector<16x128xf32> -> vector<16x128xf32>
    %16 = arith.addf %10, %15 : vector<16x128xf32>
    %c0_20 = arith.constant 0 : index
    %c0_21 = arith.constant 0 : index
    %c0_22 = arith.constant 0 : index
    %c0_23 = arith.constant 0 : index
    %17 = vector.load %arg4[%c0_20, %c0_21, %c0_22, %c0_23] : memref<1x1x18x128xbf16, #tpu.memory_space<vmem>>, vector<1x1x16x128xbf16>
    %18 = vector.shape_cast %17 : vector<1x1x16x128xbf16> to vector<16x128xbf16>
    %c3 = arith.constant 3 : index
    %c0_24 = arith.constant 0 : index
    %c0_25 = arith.constant 0 : index
    %19 = vector.load %arg6[%c3, %c0_24, %c0_25] : memref<9x128x128xbf16, #tpu.memory_space<vmem>>, vector<1x128x128xbf16>
    %20 = vector.shape_cast %19 : vector<1x128x128xbf16> to vector<128x128xbf16>
    %cst_26 = arith.constant dense<0.000000e+00> : vector<16x128xf32>
    %21 = tpu.matmul %18, %20, %cst_26 {dimension_numbers = #tpu.dot_dimension_numbers<[1], [0], [0], [1], [0, 0, 1, 1], [], []>} : vector<16x128xbf16>, vector<128x128xbf16>, vector<16x128xf32> -> vector<16x128xf32>
    %22 = arith.addf %16, %21 : vector<16x128xf32>
    %c0_27 = arith.constant 0 : index
    %c0_28 = arith.constant 0 : index
    %c1_29 = arith.constant 1 : index
    %c0_30 = arith.constant 0 : index
    %23 = vector.load %arg4[%c0_27, %c0_28, %c1_29, %c0_30] : memref<1x1x18x128xbf16, #tpu.memory_space<vmem>>, vector<1x1x16x128xbf16>
    %24 = vector.shape_cast %23 : vector<1x1x16x128xbf16> to vector<16x128xbf16>
    %c4 = arith.constant 4 : index
    %c0_31 = arith.constant 0 : index
    %c0_32 = arith.constant 0 : index
    %25 = vector.load %arg6[%c4, %c0_31, %c0_32] : memref<9x128x128xbf16, #tpu.memory_space<vmem>>, vector<1x128x128xbf16>
    %26 = vector.shape_cast %25 : vector<1x128x128xbf16> to vector<128x128xbf16>
    %cst_33 = arith.constant dense<0.000000e+00> : vector<16x128xf32>
    %27 = tpu.matmul %24, %26, %cst_33 {dimension_numbers = #tpu.dot_dimension_numbers<[1], [0], [0], [1], [0, 0, 1, 1], [], []>} : vector<16x128xbf16>, vector<128x128xbf16>, vector<16x128xf32> -> vector<16x128xf32>
    %28 = arith.addf %22, %27 : vector<16x128xf32>
    %c0_34 = arith.constant 0 : index
    %c0_35 = arith.constant 0 : index
    %c2_36 = arith.constant 2 : index
    %c0_37 = arith.constant 0 : index
    %29 = vector.load %arg4[%c0_34, %c0_35, %c2_36, %c0_37] : memref<1x1x18x128xbf16, #tpu.memory_space<vmem>>, vector<1x1x16x128xbf16>
    %30 = vector.shape_cast %29 : vector<1x1x16x128xbf16> to vector<16x128xbf16>
    %c5 = arith.constant 5 : index
    %c0_38 = arith.constant 0 : index
    %c0_39 = arith.constant 0 : index
    %31 = vector.load %arg6[%c5, %c0_38, %c0_39] : memref<9x128x128xbf16, #tpu.memory_space<vmem>>, vector<1x128x128xbf16>
    %32 = vector.shape_cast %31 : vector<1x128x128xbf16> to vector<128x128xbf16>
    %cst_40 = arith.constant dense<0.000000e+00> : vector<16x128xf32>
    %33 = tpu.matmul %30, %32, %cst_40 {dimension_numbers = #tpu.dot_dimension_numbers<[1], [0], [0], [1], [0, 0, 1, 1], [], []>} : vector<16x128xbf16>, vector<128x128xbf16>, vector<16x128xf32> -> vector<16x128xf32>
    %34 = arith.addf %28, %33 : vector<16x128xf32>
    %c0_41 = arith.constant 0 : index
    %c0_42 = arith.constant 0 : index
    %c0_43 = arith.constant 0 : index
    %c0_44 = arith.constant 0 : index
    %35 = vector.load %arg5[%c0_41, %c0_42, %c0_43, %c0_44] : memref<1x1x18x128xbf16, #tpu.memory_space<vmem>>, vector<1x1x16x128xbf16>
    %36 = vector.shape_cast %35 : vector<1x1x16x128xbf16> to vector<16x128xbf16>
    %c6 = arith.constant 6 : index
    %c0_45 = arith.constant 0 : index
    %c0_46 = arith.constant 0 : index
    %37 = vector.load %arg6[%c6, %c0_45, %c0_46] : memref<9x128x128xbf16, #tpu.memory_space<vmem>>, vector<1x128x128xbf16>
    %38 = vector.shape_cast %37 : vector<1x128x128xbf16> to vector<128x128xbf16>
    %cst_47 = arith.constant dense<0.000000e+00> : vector<16x128xf32>
    %39 = tpu.matmul %36, %38, %cst_47 {dimension_numbers = #tpu.dot_dimension_numbers<[1], [0], [0], [1], [0, 0, 1, 1], [], []>} : vector<16x128xbf16>, vector<128x128xbf16>, vector<16x128xf32> -> vector<16x128xf32>
    %40 = arith.addf %34, %39 : vector<16x128xf32>
    %c0_48 = arith.constant 0 : index
    %c0_49 = arith.constant 0 : index
    %c1_50 = arith.constant 1 : index
    %c0_51 = arith.constant 0 : index
    %41 = vector.load %arg5[%c0_48, %c0_49, %c1_50, %c0_51] : memref<1x1x18x128xbf16, #tpu.memory_space<vmem>>, vector<1x1x16x128xbf16>
    %42 = vector.shape_cast %41 : vector<1x1x16x128xbf16> to vector<16x128xbf16>
    %c7 = arith.constant 7 : index
    %c0_52 = arith.constant 0 : index
    %c0_53 = arith.constant 0 : index
    %43 = vector.load %arg6[%c7, %c0_52, %c0_53] : memref<9x128x128xbf16, #tpu.memory_space<vmem>>, vector<1x128x128xbf16>
    %44 = vector.shape_cast %43 : vector<1x128x128xbf16> to vector<128x128xbf16>
    %cst_54 = arith.constant dense<0.000000e+00> : vector<16x128xf32>
    %45 = tpu.matmul %42, %44, %cst_54 {dimension_numbers = #tpu.dot_dimension_numbers<[1], [0], [0], [1], [0, 0, 1, 1], [], []>} : vector<16x128xbf16>, vector<128x128xbf16>, vector<16x128xf32> -> vector<16x128xf32>
    %46 = arith.addf %40, %45 : vector<16x128xf32>
    %c0_55 = arith.constant 0 : index
    %c0_56 = arith.constant 0 : index
    %c2_57 = arith.constant 2 : index
    %c0_58 = arith.constant 0 : index
    %47 = vector.load %arg5[%c0_55, %c0_56, %c2_57, %c0_58] : memref<1x1x18x128xbf16, #tpu.memory_space<vmem>>, vector<1x1x16x128xbf16>
    %48 = vector.shape_cast %47 : vector<1x1x16x128xbf16> to vector<16x128xbf16>
    %c8 = arith.constant 8 : index
    %c0_59 = arith.constant 0 : index
    %c0_60 = arith.constant 0 : index
    %49 = vector.load %arg6[%c8, %c0_59, %c0_60] : memref<9x128x128xbf16, #tpu.memory_space<vmem>>, vector<1x128x128xbf16>
    %50 = vector.shape_cast %49 : vector<1x128x128xbf16> to vector<128x128xbf16>
    %cst_61 = arith.constant dense<0.000000e+00> : vector<16x128xf32>
    %51 = tpu.matmul %48, %50, %cst_61 {dimension_numbers = #tpu.dot_dimension_numbers<[1], [0], [0], [1], [0, 0, 1, 1], [], []>} : vector<16x128xbf16>, vector<128x128xbf16>, vector<16x128xf32> -> vector<16x128xf32>
    %52 = arith.addf %46, %51 : vector<16x128xf32>
    %c0_62 = arith.constant 0 : index
    %c0_63 = arith.constant 0 : index
    %53 = vector.load %arg7[%c0_62, %c0_63] : memref<1x128xf32, #tpu.memory_space<vmem>>, vector<1x128xf32>
    %54 = vector.broadcast %53 : vector<1x128xf32> to vector<16x128xf32>
    %55 = arith.addf %52, %54 : vector<16x128xf32>
    %cst_64 = arith.constant 0.000000e+00 : f32
    %56 = vector.broadcast %cst_64 : f32 to vector<16x128xf32>
    %57 = arith.maximumf %55, %56 : vector<16x128xf32>
    %58 = arith.truncf %57 : vector<16x128xf32> to vector<16x128xbf16>
    %c0_65 = arith.constant 0 : index
    %c0_66 = arith.constant 0 : index
    %c0_67 = arith.constant 0 : index
    %c0_68 = arith.constant 0 : index
    %59 = vector.load %arg8[%c0_65, %c0_66, %c0_67, %c0_68] : memref<1x1x16x128xbf16, #tpu.memory_space<vmem>>, vector<1x1x16x128xbf16>
    %60 = vector.shape_cast %59 : vector<1x1x16x128xbf16> to vector<16x128xbf16>
    %61 = vector.shape_cast %58 : vector<16x128xbf16> to vector<1x1x16x128xbf16>
    tpu.vector_store %arg8[%c0_65, %c0_66, %c0_67, %c0_68], %61 {strides = array<i32>} : memref<1x1x16x128xbf16, #tpu.memory_space<vmem>>, vector<1x1x16x128xbf16>,
    return
  }
  func.func @transform_0(%arg0: i32, %arg1: i32, %arg2: i32) -> (i32, i32, i32, i32) {
    %c1_i32 = arith.constant 1 : i32
    %0 = arith.muli %arg1, %c1_i32 : i32
    %c0_i32 = arith.constant 0 : i32
    %1 = arith.addi %0, %c0_i32 : i32
    %c0_i32_0 = arith.constant 0 : i32
    %c0_i32_1 = arith.constant 0 : i32
    %c0_i32_2 = arith.constant 0 : i32
    return %arg0, %1, %c0_i32_0, %c0_i32_1 : i32, i32, i32, i32
  }
  func.func @transform_1(%arg0: i32, %arg1: i32, %arg2: i32) -> (i32, i32, i32, i32) {
    %c1_i32 = arith.constant 1 : i32
    %0 = arith.muli %arg1, %c1_i32 : i32
    %c1_i32_0 = arith.constant 1 : i32
    %1 = arith.addi %0, %c1_i32_0 : i32
    %c0_i32 = arith.constant 0 : i32
    %c0_i32_1 = arith.constant 0 : i32
    %c0_i32_2 = arith.constant 0 : i32
    return %arg0, %1, %c0_i32, %c0_i32_1 : i32, i32, i32, i32
  }
  func.func @transform_2(%arg0: i32, %arg1: i32, %arg2: i32) -> (i32, i32, i32, i32) {
    %c1_i32 = arith.constant 1 : i32
    %0 = arith.muli %arg1, %c1_i32 : i32
    %c2_i32 = arith.constant 2 : i32
    %1 = arith.addi %0, %c2_i32 : i32
    %c0_i32 = arith.constant 0 : i32
    %c0_i32_0 = arith.constant 0 : i32
    %c0_i32_1 = arith.constant 0 : i32
    return %arg0, %1, %c0_i32, %c0_i32_0 : i32, i32, i32, i32
  }
  func.func @transform_3(%arg0: i32, %arg1: i32, %arg2: i32) -> (i32, i32, i32) {
    %c0_i32 = arith.constant 0 : i32
    %c0_i32_0 = arith.constant 0 : i32
    %c0_i32_1 = arith.constant 0 : i32
    return %c0_i32, %c0_i32_0, %arg2 : i32, i32, i32
  }
  func.func @transform_4(%arg0: i32, %arg1: i32, %arg2: i32) -> (i32, i32) {
    %c0_i32 = arith.constant 0 : i32
    %c0_i32_0 = arith.constant 0 : i32
    return %c0_i32, %arg2 : i32, i32
  }
  func.func @transform_5(%arg0: i32, %arg1: i32, %arg2: i32) -> (i32, i32, i32, i32) {
    %c0_i32 = arith.constant 0 : i32
    %c0_i32_0 = arith.constant 0 : i32
    return %arg0, %arg1, %c0_i32, %arg2 : i32, i32, i32, i32
  }
}

module attributes {stable_mosaic.version = 11 : i64} {
  func.func @_matmul_kernel(%arg0: i32, %arg1: i32, %arg2: memref<256x128xbf16, #tpu.memory_space<vmem>>, %arg3: memref<128x128xbf16, #tpu.memory_space<vmem>>, %arg4: memref<1x128xf32, #tpu.memory_space<vmem>>, %arg5: memref<256x128xbf16, #tpu.memory_space<vmem>>, %arg6: memref<256x128xbf16, #tpu.memory_space<vmem>>) attributes {dimension_semantics = [#tpu.dimension_semantics<parallel>, #tpu.dimension_semantics<parallel>], iteration_bounds = array<i64: 2, 1>, scalar_prefetch = 0 : i64, scratch_operands = 0 : i64, tpu.core_type = #tpu.core_type<tc>, window_params = [{transform_indices = @transform_0, window_bounds = array<i64: 256, 128>}, {transform_indices = @transform_1, window_bounds = array<i64: 128, 128>}, {transform_indices = @transform_2, window_bounds = array<i64: 1, 128>}, {transform_indices = @transform_3, window_bounds = array<i64: 256, 128>}, {transform_indices = @transform_4, window_bounds = array<i64: 256, 128>}]} {
    %c0 = arith.constant 0 : index
    %c0_0 = arith.constant 0 : index
    %0 = vector.load %arg2[%c0, %c0_0] : memref<256x128xbf16, #tpu.memory_space<vmem>>, vector<256x128xbf16>
    %c0_1 = arith.constant 0 : index
    %c0_2 = arith.constant 0 : index
    %1 = vector.load %arg3[%c0_1, %c0_2] : memref<128x128xbf16, #tpu.memory_space<vmem>>, vector<128x128xbf16>
    %cst = arith.constant dense<0.000000e+00> : vector<256x128xf32>
    %2 = tpu.matmul %0, %1, %cst {dimension_numbers = #tpu.dot_dimension_numbers<[1], [0], [0], [1], [0, 0, 1, 1], [], []>} : vector<256x128xbf16>, vector<128x128xbf16>, vector<256x128xf32> -> vector<256x128xf32>
    %c0_3 = arith.constant 0 : index
    %c0_4 = arith.constant 0 : index
    %3 = vector.load %arg4[%c0_3, %c0_4] : memref<1x128xf32, #tpu.memory_space<vmem>>, vector<1x128xf32>
    %4 = vector.broadcast %3 : vector<1x128xf32> to vector<256x128xf32>
    %5 = arith.addf %2, %4 : vector<256x128xf32>
    %c0_5 = arith.constant 0 : index
    %c0_6 = arith.constant 0 : index
    %6 = vector.load %arg5[%c0_5, %c0_6] : memref<256x128xbf16, #tpu.memory_space<vmem>>, vector<256x128xbf16>
    %7 = arith.extf %6 : vector<256x128xbf16> to vector<256x128xf32>
    %8 = arith.addf %5, %7 : vector<256x128xf32>
    %cst_7 = arith.constant 0.000000e+00 : f32
    %9 = vector.broadcast %cst_7 : f32 to vector<256x128xf32>
    %10 = arith.maximumf %8, %9 : vector<256x128xf32>
    %11 = arith.truncf %10 : vector<256x128xf32> to vector<256x128xbf16>
    %c0_8 = arith.constant 0 : index
    %c0_9 = arith.constant 0 : index
    %12 = vector.load %arg6[%c0_8, %c0_9] : memref<256x128xbf16, #tpu.memory_space<vmem>>, vector<256x128xbf16>
    tpu.vector_store %arg6[%c0_8, %c0_9], %11 {strides = array<i32>} : memref<256x128xbf16, #tpu.memory_space<vmem>>, vector<256x128xbf16>,
    return
  }
  func.func @transform_0(%arg0: i32, %arg1: i32) -> (i32, i32) {
    %c0_i32 = arith.constant 0 : i32
    %c0_i32_0 = arith.constant 0 : i32
    return %arg0, %c0_i32 : i32, i32
  }
  func.func @transform_1(%arg0: i32, %arg1: i32) -> (i32, i32) {
    %c0_i32 = arith.constant 0 : i32
    %c0_i32_0 = arith.constant 0 : i32
    return %c0_i32, %arg1 : i32, i32
  }
  func.func @transform_2(%arg0: i32, %arg1: i32) -> (i32, i32) {
    %c0_i32 = arith.constant 0 : i32
    %c0_i32_0 = arith.constant 0 : i32
    return %c0_i32, %arg1 : i32, i32
  }
  func.func @transform_3(%arg0: i32, %arg1: i32) -> (i32, i32) {
    %c0_i32 = arith.constant 0 : i32
    return %arg0, %arg1 : i32, i32
  }
  func.func @transform_4(%arg0: i32, %arg1: i32) -> (i32, i32) {
    %c0_i32 = arith.constant 0 : i32
    return %arg0, %arg1 : i32, i32
  }
}

module attributes {stable_mosaic.version = 11 : i64} {
  func.func @_matmul_kernel(%arg0: i32, %arg1: i32, %arg2: memref<64x128xbf16, #tpu.memory_space<vmem>>, %arg3: memref<128x128xbf16, #tpu.memory_space<vmem>>, %arg4: memref<1x128xf32, #tpu.memory_space<vmem>>, %arg5: memref<64x128xbf16, #tpu.memory_space<vmem>>) attributes {dimension_semantics = [#tpu.dimension_semantics<parallel>, #tpu.dimension_semantics<parallel>], iteration_bounds = array<i64: 2, 1>, scalar_prefetch = 0 : i64, scratch_operands = 0 : i64, tpu.core_type = #tpu.core_type<tc>, window_params = [{transform_indices = @transform_0, window_bounds = array<i64: 64, 128>}, {transform_indices = @transform_1, window_bounds = array<i64: 128, 128>}, {transform_indices = @transform_2, window_bounds = array<i64: 1, 128>}, {transform_indices = @transform_3, window_bounds = array<i64: 64, 128>}]} {
    %c0 = arith.constant 0 : index
    %c0_0 = arith.constant 0 : index
    %0 = vector.load %arg2[%c0, %c0_0] : memref<64x128xbf16, #tpu.memory_space<vmem>>, vector<64x128xbf16>
    %c0_1 = arith.constant 0 : index
    %c0_2 = arith.constant 0 : index
    %1 = vector.load %arg3[%c0_1, %c0_2] : memref<128x128xbf16, #tpu.memory_space<vmem>>, vector<128x128xbf16>
    %cst = arith.constant dense<0.000000e+00> : vector<64x128xf32>
    %2 = tpu.matmul %0, %1, %cst {dimension_numbers = #tpu.dot_dimension_numbers<[1], [0], [0], [1], [0, 0, 1, 1], [], []>} : vector<64x128xbf16>, vector<128x128xbf16>, vector<64x128xf32> -> vector<64x128xf32>
    %c0_3 = arith.constant 0 : index
    %c0_4 = arith.constant 0 : index
    %3 = vector.load %arg4[%c0_3, %c0_4] : memref<1x128xf32, #tpu.memory_space<vmem>>, vector<1x128xf32>
    %4 = vector.broadcast %3 : vector<1x128xf32> to vector<64x128xf32>
    %5 = arith.addf %2, %4 : vector<64x128xf32>
    %6 = arith.truncf %5 : vector<64x128xf32> to vector<64x128xbf16>
    %c0_5 = arith.constant 0 : index
    %c0_6 = arith.constant 0 : index
    %7 = vector.load %arg5[%c0_5, %c0_6] : memref<64x128xbf16, #tpu.memory_space<vmem>>, vector<64x128xbf16>
    tpu.vector_store %arg5[%c0_5, %c0_6], %6 {strides = array<i32>} : memref<64x128xbf16, #tpu.memory_space<vmem>>, vector<64x128xbf16>,
    return
  }
  func.func @transform_0(%arg0: i32, %arg1: i32) -> (i32, i32) {
    %c0_i32 = arith.constant 0 : i32
    %c0_i32_0 = arith.constant 0 : i32
    return %arg0, %c0_i32 : i32, i32
  }
  func.func @transform_1(%arg0: i32, %arg1: i32) -> (i32, i32) {
    %c0_i32 = arith.constant 0 : i32
    %c0_i32_0 = arith.constant 0 : i32
    return %c0_i32, %arg1 : i32, i32
  }
  func.func @transform_2(%arg0: i32, %arg1: i32) -> (i32, i32) {
    %c0_i32 = arith.constant 0 : i32
    %c0_i32_0 = arith.constant 0 : i32
    return %c0_i32, %arg1 : i32, i32
  }
  func.func @transform_3(%arg0: i32, %arg1: i32) -> (i32, i32) {
    %c0_i32 = arith.constant 0 : i32
    return %arg0, %arg1 : i32, i32
  }
}

module attributes {stable_mosaic.version = 11 : i64} {
  func.func @_conv_row_kernel(%arg0: i32, %arg1: i32, %arg2: i32, %arg3: memref<1x1x9x256xbf16, #tpu.memory_space<vmem>>, %arg4: memref<1x1x9x256xbf16, #tpu.memory_space<vmem>>, %arg5: memref<1x1x9x256xbf16, #tpu.memory_space<vmem>>, %arg6: memref<9x128x128xbf16, #tpu.memory_space<vmem>>, %arg7: memref<1x128xf32, #tpu.memory_space<vmem>>, %arg8: memref<1x1x8x128xbf16, #tpu.memory_space<vmem>>) attributes {dimension_semantics = [#tpu.dimension_semantics<parallel>, #tpu.dimension_semantics<parallel>, #tpu.dimension_semantics<parallel>], iteration_bounds = array<i64: 2, 8, 1>, scalar_prefetch = 0 : i64, scratch_operands = 0 : i64, tpu.core_type = #tpu.core_type<tc>, window_params = [{transform_indices = @transform_0, window_bounds = array<i64: 1, 1, 9, 256>}, {transform_indices = @transform_1, window_bounds = array<i64: 1, 1, 9, 256>}, {transform_indices = @transform_2, window_bounds = array<i64: 1, 1, 9, 256>}, {transform_indices = @transform_3, window_bounds = array<i64: 9, 128, 128>}, {transform_indices = @transform_4, window_bounds = array<i64: 1, 128>}, {transform_indices = @transform_5, window_bounds = array<i64: 1, 1, 8, 128>}]} {
    %c0 = arith.constant 0 : index
    %c0_0 = arith.constant 0 : index
    %c0_1 = arith.constant 0 : index
    %c0_2 = arith.constant 0 : index
    %0 = vector.load %arg3[%c0, %c0_0, %c0_1, %c0_2] : memref<1x1x9x256xbf16, #tpu.memory_space<vmem>>, vector<1x1x8x128xbf16>
    %1 = vector.shape_cast %0 : vector<1x1x8x128xbf16> to vector<8x128xbf16>
    %c0_3 = arith.constant 0 : index
    %c0_4 = arith.constant 0 : index
    %c0_5 = arith.constant 0 : index
    %2 = vector.load %arg6[%c0_3, %c0_4, %c0_5] : memref<9x128x128xbf16, #tpu.memory_space<vmem>>, vector<1x128x128xbf16>
    %3 = vector.shape_cast %2 : vector<1x128x128xbf16> to vector<128x128xbf16>
    %cst = arith.constant dense<0.000000e+00> : vector<8x128xf32>
    %4 = tpu.matmul %1, %3, %cst {dimension_numbers = #tpu.dot_dimension_numbers<[1], [0], [0], [1], [0, 0, 1, 1], [], []>} : vector<8x128xbf16>, vector<128x128xbf16>, vector<8x128xf32> -> vector<8x128xf32>
    %c0_6 = arith.constant 0 : index
    %c0_7 = arith.constant 0 : index
    %c0_8 = arith.constant 0 : index
    %c128 = arith.constant 128 : index
    %5 = vector.load %arg3[%c0_6, %c0_7, %c0_8, %c128] : memref<1x1x9x256xbf16, #tpu.memory_space<vmem>>, vector<1x1x8x128xbf16>
    %6 = vector.shape_cast %5 : vector<1x1x8x128xbf16> to vector<8x128xbf16>
    %c1 = arith.constant 1 : index
    %c0_9 = arith.constant 0 : index
    %c0_10 = arith.constant 0 : index
    %7 = vector.load %arg6[%c1, %c0_9, %c0_10] : memref<9x128x128xbf16, #tpu.memory_space<vmem>>, vector<1x128x128xbf16>
    %8 = vector.shape_cast %7 : vector<1x128x128xbf16> to vector<128x128xbf16>
    %cst_11 = arith.constant dense<0.000000e+00> : vector<8x128xf32>
    %9 = tpu.matmul %6, %8, %cst_11 {dimension_numbers = #tpu.dot_dimension_numbers<[1], [0], [0], [1], [0, 0, 1, 1], [], []>} : vector<8x128xbf16>, vector<128x128xbf16>, vector<8x128xf32> -> vector<8x128xf32>
    %10 = arith.addf %4, %9 : vector<8x128xf32>
    %c0_12 = arith.constant 0 : index
    %c0_13 = arith.constant 0 : index
    %c1_14 = arith.constant 1 : index
    %c0_15 = arith.constant 0 : index
    %11 = vector.load %arg3[%c0_12, %c0_13, %c1_14, %c0_15] : memref<1x1x9x256xbf16, #tpu.memory_space<vmem>>, vector<1x1x8x128xbf16>
    %12 = vector.shape_cast %11 : vector<1x1x8x128xbf16> to vector<8x128xbf16>
    %c2 = arith.constant 2 : index
    %c0_16 = arith.constant 0 : index
    %c0_17 = arith.constant 0 : index
    %13 = vector.load %arg6[%c2, %c0_16, %c0_17] : memref<9x128x128xbf16, #tpu.memory_space<vmem>>, vector<1x128x128xbf16>
    %14 = vector.shape_cast %13 : vector<1x128x128xbf16> to vector<128x128xbf16>
    %cst_18 = arith.constant dense<0.000000e+00> : vector<8x128xf32>
    %15 = tpu.matmul %12, %14, %cst_18 {dimension_numbers = #tpu.dot_dimension_numbers<[1], [0], [0], [1], [0, 0, 1, 1], [], []>} : vector<8x128xbf16>, vector<128x128xbf16>, vector<8x128xf32> -> vector<8x128xf32>
    %16 = arith.addf %10, %15 : vector<8x128xf32>
    %c0_19 = arith.constant 0 : index
    %c0_20 = arith.constant 0 : index
    %c0_21 = arith.constant 0 : index
    %c0_22 = arith.constant 0 : index
    %17 = vector.load %arg4[%c0_19, %c0_20, %c0_21, %c0_22] : memref<1x1x9x256xbf16, #tpu.memory_space<vmem>>, vector<1x1x8x128xbf16>
    %18 = vector.shape_cast %17 : vector<1x1x8x128xbf16> to vector<8x128xbf16>
    %c3 = arith.constant 3 : index
    %c0_23 = arith.constant 0 : index
    %c0_24 = arith.constant 0 : index
    %19 = vector.load %arg6[%c3, %c0_23, %c0_24] : memref<9x128x128xbf16, #tpu.memory_space<vmem>>, vector<1x128x128xbf16>
    %20 = vector.shape_cast %19 : vector<1x128x128xbf16> to vector<128x128xbf16>
    %cst_25 = arith.constant dense<0.000000e+00> : vector<8x128xf32>
    %21 = tpu.matmul %18, %20, %cst_25 {dimension_numbers = #tpu.dot_dimension_numbers<[1], [0], [0], [1], [0, 0, 1, 1], [], []>} : vector<8x128xbf16>, vector<128x128xbf16>, vector<8x128xf32> -> vector<8x128xf32>
    %22 = arith.addf %16, %21 : vector<8x128xf32>
    %c0_26 = arith.constant 0 : index
    %c0_27 = arith.constant 0 : index
    %c0_28 = arith.constant 0 : index
    %c128_29 = arith.constant 128 : index
    %23 = vector.load %arg4[%c0_26, %c0_27, %c0_28, %c128_29] : memref<1x1x9x256xbf16, #tpu.memory_space<vmem>>, vector<1x1x8x128xbf16>
    %24 = vector.shape_cast %23 : vector<1x1x8x128xbf16> to vector<8x128xbf16>
    %c4 = arith.constant 4 : index
    %c0_30 = arith.constant 0 : index
    %c0_31 = arith.constant 0 : index
    %25 = vector.load %arg6[%c4, %c0_30, %c0_31] : memref<9x128x128xbf16, #tpu.memory_space<vmem>>, vector<1x128x128xbf16>
    %26 = vector.shape_cast %25 : vector<1x128x128xbf16> to vector<128x128xbf16>
    %cst_32 = arith.constant dense<0.000000e+00> : vector<8x128xf32>
    %27 = tpu.matmul %24, %26, %cst_32 {dimension_numbers = #tpu.dot_dimension_numbers<[1], [0], [0], [1], [0, 0, 1, 1], [], []>} : vector<8x128xbf16>, vector<128x128xbf16>, vector<8x128xf32> -> vector<8x128xf32>
    %28 = arith.addf %22, %27 : vector<8x128xf32>
    %c0_33 = arith.constant 0 : index
    %c0_34 = arith.constant 0 : index
    %c1_35 = arith.constant 1 : index
    %c0_36 = arith.constant 0 : index
    %29 = vector.load %arg4[%c0_33, %c0_34, %c1_35, %c0_36] : memref<1x1x9x256xbf16, #tpu.memory_space<vmem>>, vector<1x1x8x128xbf16>
    %30 = vector.shape_cast %29 : vector<1x1x8x128xbf16> to vector<8x128xbf16>
    %c5 = arith.constant 5 : index
    %c0_37 = arith.constant 0 : index
    %c0_38 = arith.constant 0 : index
    %31 = vector.load %arg6[%c5, %c0_37, %c0_38] : memref<9x128x128xbf16, #tpu.memory_space<vmem>>, vector<1x128x128xbf16>
    %32 = vector.shape_cast %31 : vector<1x128x128xbf16> to vector<128x128xbf16>
    %cst_39 = arith.constant dense<0.000000e+00> : vector<8x128xf32>
    %33 = tpu.matmul %30, %32, %cst_39 {dimension_numbers = #tpu.dot_dimension_numbers<[1], [0], [0], [1], [0, 0, 1, 1], [], []>} : vector<8x128xbf16>, vector<128x128xbf16>, vector<8x128xf32> -> vector<8x128xf32>
    %34 = arith.addf %28, %33 : vector<8x128xf32>
    %c0_40 = arith.constant 0 : index
    %c0_41 = arith.constant 0 : index
    %c0_42 = arith.constant 0 : index
    %c0_43 = arith.constant 0 : index
    %35 = vector.load %arg5[%c0_40, %c0_41, %c0_42, %c0_43] : memref<1x1x9x256xbf16, #tpu.memory_space<vmem>>, vector<1x1x8x128xbf16>
    %36 = vector.shape_cast %35 : vector<1x1x8x128xbf16> to vector<8x128xbf16>
    %c6 = arith.constant 6 : index
    %c0_44 = arith.constant 0 : index
    %c0_45 = arith.constant 0 : index
    %37 = vector.load %arg6[%c6, %c0_44, %c0_45] : memref<9x128x128xbf16, #tpu.memory_space<vmem>>, vector<1x128x128xbf16>
    %38 = vector.shape_cast %37 : vector<1x128x128xbf16> to vector<128x128xbf16>
    %cst_46 = arith.constant dense<0.000000e+00> : vector<8x128xf32>
    %39 = tpu.matmul %36, %38, %cst_46 {dimension_numbers = #tpu.dot_dimension_numbers<[1], [0], [0], [1], [0, 0, 1, 1], [], []>} : vector<8x128xbf16>, vector<128x128xbf16>, vector<8x128xf32> -> vector<8x128xf32>
    %40 = arith.addf %34, %39 : vector<8x128xf32>
    %c0_47 = arith.constant 0 : index
    %c0_48 = arith.constant 0 : index
    %c0_49 = arith.constant 0 : index
    %c128_50 = arith.constant 128 : index
    %41 = vector.load %arg5[%c0_47, %c0_48, %c0_49, %c128_50] : memref<1x1x9x256xbf16, #tpu.memory_space<vmem>>, vector<1x1x8x128xbf16>
    %42 = vector.shape_cast %41 : vector<1x1x8x128xbf16> to vector<8x128xbf16>
    %c7 = arith.constant 7 : index
    %c0_51 = arith.constant 0 : index
    %c0_52 = arith.constant 0 : index
    %43 = vector.load %arg6[%c7, %c0_51, %c0_52] : memref<9x128x128xbf16, #tpu.memory_space<vmem>>, vector<1x128x128xbf16>
    %44 = vector.shape_cast %43 : vector<1x128x128xbf16> to vector<128x128xbf16>
    %cst_53 = arith.constant dense<0.000000e+00> : vector<8x128xf32>
    %45 = tpu.matmul %42, %44, %cst_53 {dimension_numbers = #tpu.dot_dimension_numbers<[1], [0], [0], [1], [0, 0, 1, 1], [], []>} : vector<8x128xbf16>, vector<128x128xbf16>, vector<8x128xf32> -> vector<8x128xf32>
    %46 = arith.addf %40, %45 : vector<8x128xf32>
    %c0_54 = arith.constant 0 : index
    %c0_55 = arith.constant 0 : index
    %c1_56 = arith.constant 1 : index
    %c0_57 = arith.constant 0 : index
    %47 = vector.load %arg5[%c0_54, %c0_55, %c1_56, %c0_57] : memref<1x1x9x256xbf16, #tpu.memory_space<vmem>>, vector<1x1x8x128xbf16>
    %48 = vector.shape_cast %47 : vector<1x1x8x128xbf16> to vector<8x128xbf16>
    %c8 = arith.constant 8 : index
    %c0_58 = arith.constant 0 : index
    %c0_59 = arith.constant 0 : index
    %49 = vector.load %arg6[%c8, %c0_58, %c0_59] : memref<9x128x128xbf16, #tpu.memory_space<vmem>>, vector<1x128x128xbf16>
    %50 = vector.shape_cast %49 : vector<1x128x128xbf16> to vector<128x128xbf16>
    %cst_60 = arith.constant dense<0.000000e+00> : vector<8x128xf32>
    %51 = tpu.matmul %48, %50, %cst_60 {dimension_numbers = #tpu.dot_dimension_numbers<[1], [0], [0], [1], [0, 0, 1, 1], [], []>} : vector<8x128xbf16>, vector<128x128xbf16>, vector<8x128xf32> -> vector<8x128xf32>
    %52 = arith.addf %46, %51 : vector<8x128xf32>
    %c0_61 = arith.constant 0 : index
    %c0_62 = arith.constant 0 : index
    %53 = vector.load %arg7[%c0_61, %c0_62] : memref<1x128xf32, #tpu.memory_space<vmem>>, vector<1x128xf32>
    %54 = vector.broadcast %53 : vector<1x128xf32> to vector<8x128xf32>
    %55 = arith.addf %52, %54 : vector<8x128xf32>
    %cst_63 = arith.constant 0.000000e+00 : f32
    %56 = vector.broadcast %cst_63 : f32 to vector<8x128xf32>
    %57 = arith.maximumf %55, %56 : vector<8x128xf32>
    %58 = arith.truncf %57 : vector<8x128xf32> to vector<8x128xbf16>
    %c0_64 = arith.constant 0 : index
    %c0_65 = arith.constant 0 : index
    %c0_66 = arith.constant 0 : index
    %c0_67 = arith.constant 0 : index
    %59 = vector.load %arg8[%c0_64, %c0_65, %c0_66, %c0_67] : memref<1x1x8x128xbf16, #tpu.memory_space<vmem>>, vector<1x1x8x128xbf16>
    %60 = vector.shape_cast %59 : vector<1x1x8x128xbf16> to vector<8x128xbf16>
    %61 = vector.shape_cast %58 : vector<8x128xbf16> to vector<1x1x8x128xbf16>
    tpu.vector_store %arg8[%c0_64, %c0_65, %c0_66, %c0_67], %61 {strides = array<i32>} : memref<1x1x8x128xbf16, #tpu.memory_space<vmem>>, vector<1x1x8x128xbf16>,
    return
  }
  func.func @transform_0(%arg0: i32, %arg1: i32, %arg2: i32) -> (i32, i32, i32, i32) {
    %c2_i32 = arith.constant 2 : i32
    %0 = arith.muli %arg1, %c2_i32 : i32
    %c0_i32 = arith.constant 0 : i32
    %1 = arith.addi %0, %c0_i32 : i32
    %c0_i32_0 = arith.constant 0 : i32
    %c0_i32_1 = arith.constant 0 : i32
    %c0_i32_2 = arith.constant 0 : i32
    return %arg0, %1, %c0_i32_0, %c0_i32_1 : i32, i32, i32, i32
  }
  func.func @transform_1(%arg0: i32, %arg1: i32, %arg2: i32) -> (i32, i32, i32, i32) {
    %c2_i32 = arith.constant 2 : i32
    %0 = arith.muli %arg1, %c2_i32 : i32
    %c1_i32 = arith.constant 1 : i32
    %1 = arith.addi %0, %c1_i32 : i32
    %c0_i32 = arith.constant 0 : i32
    %c0_i32_0 = arith.constant 0 : i32
    %c0_i32_1 = arith.constant 0 : i32
    return %arg0, %1, %c0_i32, %c0_i32_0 : i32, i32, i32, i32
  }
  func.func @transform_2(%arg0: i32, %arg1: i32, %arg2: i32) -> (i32, i32, i32, i32) {
    %c2_i32 = arith.constant 2 : i32
    %0 = arith.muli %arg1, %c2_i32 : i32
    %c2_i32_0 = arith.constant 2 : i32
    %1 = arith.addi %0, %c2_i32_0 : i32
    %c0_i32 = arith.constant 0 : i32
    %c0_i32_1 = arith.constant 0 : i32
    %c0_i32_2 = arith.constant 0 : i32
    return %arg0, %1, %c0_i32, %c0_i32_1 : i32, i32, i32, i32
  }
  func.func @transform_3(%arg0: i32, %arg1: i32, %arg2: i32) -> (i32, i32, i32) {
    %c0_i32 = arith.constant 0 : i32
    %c0_i32_0 = arith.constant 0 : i32
    %c0_i32_1 = arith.constant 0 : i32
    return %c0_i32, %c0_i32_0, %arg2 : i32, i32, i32
  }
  func.func @transform_4(%arg0: i32, %arg1: i32, %arg2: i32) -> (i32, i32) {
    %c0_i32 = arith.constant 0 : i32
    %c0_i32_0 = arith.constant 0 : i32
    return %c0_i32, %arg2 : i32, i32
  }
  func.func @transform_5(%arg0: i32, %arg1: i32, %arg2: i32) -> (i32, i32, i32, i32) {
    %c0_i32 = arith.constant 0 : i32
    %c0_i32_0 = arith.constant 0 : i32
    return %arg0, %arg1, %c0_i32, %arg2 : i32, i32, i32, i32
  }
}

module attributes {stable_mosaic.version = 11 : i64} {
  func.func @_matmul_kernel(%arg0: i32, %arg1: i32, %arg2: memref<64x128xbf16, #tpu.memory_space<vmem>>, %arg3: memref<128x128xbf16, #tpu.memory_space<vmem>>, %arg4: memref<1x128xf32, #tpu.memory_space<vmem>>, %arg5: memref<64x128xbf16, #tpu.memory_space<vmem>>, %arg6: memref<64x128xbf16, #tpu.memory_space<vmem>>) attributes {dimension_semantics = [#tpu.dimension_semantics<parallel>, #tpu.dimension_semantics<parallel>], iteration_bounds = array<i64: 2, 1>, scalar_prefetch = 0 : i64, scratch_operands = 0 : i64, tpu.core_type = #tpu.core_type<tc>, window_params = [{transform_indices = @transform_0, window_bounds = array<i64: 64, 128>}, {transform_indices = @transform_1, window_bounds = array<i64: 128, 128>}, {transform_indices = @transform_2, window_bounds = array<i64: 1, 128>}, {transform_indices = @transform_3, window_bounds = array<i64: 64, 128>}, {transform_indices = @transform_4, window_bounds = array<i64: 64, 128>}]} {
    %c0 = arith.constant 0 : index
    %c0_0 = arith.constant 0 : index
    %0 = vector.load %arg2[%c0, %c0_0] : memref<64x128xbf16, #tpu.memory_space<vmem>>, vector<64x128xbf16>
    %c0_1 = arith.constant 0 : index
    %c0_2 = arith.constant 0 : index
    %1 = vector.load %arg3[%c0_1, %c0_2] : memref<128x128xbf16, #tpu.memory_space<vmem>>, vector<128x128xbf16>
    %cst = arith.constant dense<0.000000e+00> : vector<64x128xf32>
    %2 = tpu.matmul %0, %1, %cst {dimension_numbers = #tpu.dot_dimension_numbers<[1], [0], [0], [1], [0, 0, 1, 1], [], []>} : vector<64x128xbf16>, vector<128x128xbf16>, vector<64x128xf32> -> vector<64x128xf32>
    %c0_3 = arith.constant 0 : index
    %c0_4 = arith.constant 0 : index
    %3 = vector.load %arg4[%c0_3, %c0_4] : memref<1x128xf32, #tpu.memory_space<vmem>>, vector<1x128xf32>
    %4 = vector.broadcast %3 : vector<1x128xf32> to vector<64x128xf32>
    %5 = arith.addf %2, %4 : vector<64x128xf32>
    %c0_5 = arith.constant 0 : index
    %c0_6 = arith.constant 0 : index
    %6 = vector.load %arg5[%c0_5, %c0_6] : memref<64x128xbf16, #tpu.memory_space<vmem>>, vector<64x128xbf16>
    %7 = arith.extf %6 : vector<64x128xbf16> to vector<64x128xf32>
    %8 = arith.addf %5, %7 : vector<64x128xf32>
    %cst_7 = arith.constant 0.000000e+00 : f32
    %9 = vector.broadcast %cst_7 : f32 to vector<64x128xf32>
    %10 = arith.maximumf %8, %9 : vector<64x128xf32>
    %11 = arith.truncf %10 : vector<64x128xf32> to vector<64x128xbf16>
    %c0_8 = arith.constant 0 : index
    %c0_9 = arith.constant 0 : index
    %12 = vector.load %arg6[%c0_8, %c0_9] : memref<64x128xbf16, #tpu.memory_space<vmem>>, vector<64x128xbf16>
    tpu.vector_store %arg6[%c0_8, %c0_9], %11 {strides = array<i32>} : memref<64x128xbf16, #tpu.memory_space<vmem>>, vector<64x128xbf16>,
    return
  }
  func.func @transform_0(%arg0: i32, %arg1: i32) -> (i32, i32) {
    %c0_i32 = arith.constant 0 : i32
    %c0_i32_0 = arith.constant 0 : i32
    return %arg0, %c0_i32 : i32, i32
  }
  func.func @transform_1(%arg0: i32, %arg1: i32) -> (i32, i32) {
    %c0_i32 = arith.constant 0 : i32
    %c0_i32_0 = arith.constant 0 : i32
    return %c0_i32, %arg1 : i32, i32
  }
  func.func @transform_2(%arg0: i32, %arg1: i32) -> (i32, i32) {
    %c0_i32 = arith.constant 0 : i32
    %c0_i32_0 = arith.constant 0 : i32
    return %c0_i32, %arg1 : i32, i32
  }
  func.func @transform_3(%arg0: i32, %arg1: i32) -> (i32, i32) {
    %c0_i32 = arith.constant 0 : i32
    return %arg0, %arg1 : i32, i32
  }
  func.func @transform_4(%arg0: i32, %arg1: i32) -> (i32, i32) {
    %c0_i32 = arith.constant 0 : i32
    return %arg0, %arg1 : i32, i32
  }
}

module attributes {stable_mosaic.version = 11 : i64} {
  func.func @_matmul_kernel(%arg0: i32, %arg1: i32, %arg2: memref<64x128xbf16, #tpu.memory_space<vmem>>, %arg3: memref<128x128xbf16, #tpu.memory_space<vmem>>, %arg4: memref<1x128xf32, #tpu.memory_space<vmem>>, %arg5: memref<64x128xbf16, #tpu.memory_space<vmem>>) attributes {dimension_semantics = [#tpu.dimension_semantics<parallel>, #tpu.dimension_semantics<parallel>], iteration_bounds = array<i64: 2, 1>, scalar_prefetch = 0 : i64, scratch_operands = 0 : i64, tpu.core_type = #tpu.core_type<tc>, window_params = [{transform_indices = @transform_0, window_bounds = array<i64: 64, 128>}, {transform_indices = @transform_1, window_bounds = array<i64: 128, 128>}, {transform_indices = @transform_2, window_bounds = array<i64: 1, 128>}, {transform_indices = @transform_3, window_bounds = array<i64: 64, 128>}]} {
    %c0 = arith.constant 0 : index
    %c0_0 = arith.constant 0 : index
    %0 = vector.load %arg2[%c0, %c0_0] : memref<64x128xbf16, #tpu.memory_space<vmem>>, vector<64x128xbf16>
    %c0_1 = arith.constant 0 : index
    %c0_2 = arith.constant 0 : index
    %1 = vector.load %arg3[%c0_1, %c0_2] : memref<128x128xbf16, #tpu.memory_space<vmem>>, vector<128x128xbf16>
    %cst = arith.constant dense<0.000000e+00> : vector<64x128xf32>
    %2 = tpu.matmul %0, %1, %cst {dimension_numbers = #tpu.dot_dimension_numbers<[1], [0], [0], [1], [0, 0, 1, 1], [], []>} : vector<64x128xbf16>, vector<128x128xbf16>, vector<64x128xf32> -> vector<64x128xf32>
    %c0_3 = arith.constant 0 : index
    %c0_4 = arith.constant 0 : index
    %3 = vector.load %arg4[%c0_3, %c0_4] : memref<1x128xf32, #tpu.memory_space<vmem>>, vector<1x128xf32>
    %4 = vector.broadcast %3 : vector<1x128xf32> to vector<64x128xf32>
    %5 = arith.addf %2, %4 : vector<64x128xf32>
    %cst_5 = arith.constant 0.000000e+00 : f32
    %6 = vector.broadcast %cst_5 : f32 to vector<64x128xf32>
    %7 = arith.maximumf %5, %6 : vector<64x128xf32>
    %8 = arith.truncf %7 : vector<64x128xf32> to vector<64x128xbf16>
    %c0_6 = arith.constant 0 : index
    %c0_7 = arith.constant 0 : index
    %9 = vector.load %arg5[%c0_6, %c0_7] : memref<64x128xbf16, #tpu.memory_space<vmem>>, vector<64x128xbf16>
    tpu.vector_store %arg5[%c0_6, %c0_7], %8 {strides = array<i32>} : memref<64x128xbf16, #tpu.memory_space<vmem>>, vector<64x128xbf16>,
    return
  }
  func.func @transform_0(%arg0: i32, %arg1: i32) -> (i32, i32) {
    %c0_i32 = arith.constant 0 : i32
    %c0_i32_0 = arith.constant 0 : i32
    return %arg0, %c0_i32 : i32, i32
  }
  func.func @transform_1(%arg0: i32, %arg1: i32) -> (i32, i32) {
    %c0_i32 = arith.constant 0 : i32
    %c0_i32_0 = arith.constant 0 : i32
    return %c0_i32, %arg1 : i32, i32
  }
  func.func @transform_2(%arg0: i32, %arg1: i32) -> (i32, i32) {
    %c0_i32 = arith.constant 0 : i32
    %c0_i32_0 = arith.constant 0 : i32
    return %c0_i32, %arg1 : i32, i32
  }
  func.func @transform_3(%arg0: i32, %arg1: i32) -> (i32, i32) {
    %c0_i32 = arith.constant 0 : i32
    return %arg0, %arg1 : i32, i32
  }
}

module attributes {stable_mosaic.version = 11 : i64} {
  func.func @_matmul_kernel(%arg0: i32, %arg1: i32, %arg2: memref<32x128xbf16, #tpu.memory_space<vmem>>, %arg3: memref<128x128xbf16, #tpu.memory_space<vmem>>, %arg4: memref<1x128xf32, #tpu.memory_space<vmem>>, %arg5: memref<32x128xbf16, #tpu.memory_space<vmem>>) attributes {dimension_semantics = [#tpu.dimension_semantics<parallel>, #tpu.dimension_semantics<parallel>], iteration_bounds = array<i64: 1, 2>, scalar_prefetch = 0 : i64, scratch_operands = 0 : i64, tpu.core_type = #tpu.core_type<tc>, window_params = [{transform_indices = @transform_0, window_bounds = array<i64: 32, 128>}, {transform_indices = @transform_1, window_bounds = array<i64: 128, 128>}, {transform_indices = @transform_2, window_bounds = array<i64: 1, 128>}, {transform_indices = @transform_3, window_bounds = array<i64: 32, 128>}]} {
    %c0 = arith.constant 0 : index
    %c0_0 = arith.constant 0 : index
    %0 = vector.load %arg2[%c0, %c0_0] : memref<32x128xbf16, #tpu.memory_space<vmem>>, vector<32x128xbf16>
    %c0_1 = arith.constant 0 : index
    %c0_2 = arith.constant 0 : index
    %1 = vector.load %arg3[%c0_1, %c0_2] : memref<128x128xbf16, #tpu.memory_space<vmem>>, vector<128x128xbf16>
    %cst = arith.constant dense<0.000000e+00> : vector<32x128xf32>
    %2 = tpu.matmul %0, %1, %cst {dimension_numbers = #tpu.dot_dimension_numbers<[1], [0], [0], [1], [0, 0, 1, 1], [], []>} : vector<32x128xbf16>, vector<128x128xbf16>, vector<32x128xf32> -> vector<32x128xf32>
    %c0_3 = arith.constant 0 : index
    %c0_4 = arith.constant 0 : index
    %3 = vector.load %arg4[%c0_3, %c0_4] : memref<1x128xf32, #tpu.memory_space<vmem>>, vector<1x128xf32>
    %4 = vector.broadcast %3 : vector<1x128xf32> to vector<32x128xf32>
    %5 = arith.addf %2, %4 : vector<32x128xf32>
    %6 = arith.truncf %5 : vector<32x128xf32> to vector<32x128xbf16>
    %c0_5 = arith.constant 0 : index
    %c0_6 = arith.constant 0 : index
    %7 = vector.load %arg5[%c0_5, %c0_6] : memref<32x128xbf16, #tpu.memory_space<vmem>>, vector<32x128xbf16>
    tpu.vector_store %arg5[%c0_5, %c0_6], %6 {strides = array<i32>} : memref<32x128xbf16, #tpu.memory_space<vmem>>, vector<32x128xbf16>,
    return
  }
  func.func @transform_0(%arg0: i32, %arg1: i32) -> (i32, i32) {
    %c0_i32 = arith.constant 0 : i32
    %c0_i32_0 = arith.constant 0 : i32
    return %arg0, %c0_i32 : i32, i32
  }
  func.func @transform_1(%arg0: i32, %arg1: i32) -> (i32, i32) {
    %c0_i32 = arith.constant 0 : i32
    %c0_i32_0 = arith.constant 0 : i32
    return %c0_i32, %arg1 : i32, i32
  }
  func.func @transform_2(%arg0: i32, %arg1: i32) -> (i32, i32) {
    %c0_i32 = arith.constant 0 : i32
    %c0_i32_0 = arith.constant 0 : i32
    return %c0_i32, %arg1 : i32, i32
  }
  func.func @transform_3(%arg0: i32, %arg1: i32) -> (i32, i32) {
    %c0_i32 = arith.constant 0 : i32
    return %arg0, %arg1 : i32, i32
  }
}

module attributes {stable_mosaic.version = 11 : i64} {
  func.func @_matmul_kernel(%arg0: i32, %arg1: i32, %arg2: memref<32x128xbf16, #tpu.memory_space<vmem>>, %arg3: memref<128x128xbf16, #tpu.memory_space<vmem>>, %arg4: memref<1x128xf32, #tpu.memory_space<vmem>>, %arg5: memref<32x128xbf16, #tpu.memory_space<vmem>>, %arg6: memref<32x128xbf16, #tpu.memory_space<vmem>>) attributes {dimension_semantics = [#tpu.dimension_semantics<parallel>, #tpu.dimension_semantics<parallel>], iteration_bounds = array<i64: 1, 2>, scalar_prefetch = 0 : i64, scratch_operands = 0 : i64, tpu.core_type = #tpu.core_type<tc>, window_params = [{transform_indices = @transform_0, window_bounds = array<i64: 32, 128>}, {transform_indices = @transform_1, window_bounds = array<i64: 128, 128>}, {transform_indices = @transform_2, window_bounds = array<i64: 1, 128>}, {transform_indices = @transform_3, window_bounds = array<i64: 32, 128>}, {transform_indices = @transform_4, window_bounds = array<i64: 32, 128>}]} {
    %c0 = arith.constant 0 : index
    %c0_0 = arith.constant 0 : index
    %0 = vector.load %arg2[%c0, %c0_0] : memref<32x128xbf16, #tpu.memory_space<vmem>>, vector<32x128xbf16>
    %c0_1 = arith.constant 0 : index
    %c0_2 = arith.constant 0 : index
    %1 = vector.load %arg3[%c0_1, %c0_2] : memref<128x128xbf16, #tpu.memory_space<vmem>>, vector<128x128xbf16>
    %cst = arith.constant dense<0.000000e+00> : vector<32x128xf32>
    %2 = tpu.matmul %0, %1, %cst {dimension_numbers = #tpu.dot_dimension_numbers<[1], [0], [0], [1], [0, 0, 1, 1], [], []>} : vector<32x128xbf16>, vector<128x128xbf16>, vector<32x128xf32> -> vector<32x128xf32>
    %c0_3 = arith.constant 0 : index
    %c0_4 = arith.constant 0 : index
    %3 = vector.load %arg4[%c0_3, %c0_4] : memref<1x128xf32, #tpu.memory_space<vmem>>, vector<1x128xf32>
    %4 = vector.broadcast %3 : vector<1x128xf32> to vector<32x128xf32>
    %5 = arith.addf %2, %4 : vector<32x128xf32>
    %c0_5 = arith.constant 0 : index
    %c0_6 = arith.constant 0 : index
    %6 = vector.load %arg5[%c0_5, %c0_6] : memref<32x128xbf16, #tpu.memory_space<vmem>>, vector<32x128xbf16>
    %7 = arith.extf %6 : vector<32x128xbf16> to vector<32x128xf32>
    %8 = arith.addf %5, %7 : vector<32x128xf32>
    %cst_7 = arith.constant 0.000000e+00 : f32
    %9 = vector.broadcast %cst_7 : f32 to vector<32x128xf32>
    %10 = arith.maximumf %8, %9 : vector<32x128xf32>
    %11 = arith.truncf %10 : vector<32x128xf32> to vector<32x128xbf16>
    %c0_8 = arith.constant 0 : index
    %c0_9 = arith.constant 0 : index
    %12 = vector.load %arg6[%c0_8, %c0_9] : memref<32x128xbf16, #tpu.memory_space<vmem>>, vector<32x128xbf16>
    tpu.vector_store %arg6[%c0_8, %c0_9], %11 {strides = array<i32>} : memref<32x128xbf16, #tpu.memory_space<vmem>>, vector<32x128xbf16>,
    return
  }
  func.func @transform_0(%arg0: i32, %arg1: i32) -> (i32, i32) {
    %c0_i32 = arith.constant 0 : i32
    %c0_i32_0 = arith.constant 0 : i32
    return %arg0, %c0_i32 : i32, i32
  }
  func.func @transform_1(%arg0: i32, %arg1: i32) -> (i32, i32) {
    %c0_i32 = arith.constant 0 : i32
    %c0_i32_0 = arith.constant 0 : i32
    return %c0_i32, %arg1 : i32, i32
  }
  func.func @transform_2(%arg0: i32, %arg1: i32) -> (i32, i32) {
    %c0_i32 = arith.constant 0 : i32
    %c0_i32_0 = arith.constant 0 : i32
    return %c0_i32, %arg1 : i32, i32
  }
  func.func @transform_3(%arg0: i32, %arg1: i32) -> (i32, i32) {
    %c0_i32 = arith.constant 0 : i32
    return %arg0, %arg1 : i32, i32
  }
  func.func @transform_4(%arg0: i32, %arg1: i32) -> (i32, i32) {
    %c0_i32 = arith.constant 0 : i32
    return %arg0, %arg1 : i32, i32
  }
}

module attributes {stable_mosaic.version = 11 : i64} {
  func.func @_matmul_kernel(%arg0: i32, %arg1: i32, %arg2: memref<16x256xbf16, #tpu.memory_space<vmem>>, %arg3: memref<256x128xbf16, #tpu.memory_space<vmem>>, %arg4: memref<1x128xf32, #tpu.memory_space<vmem>>, %arg5: memref<16x128xbf16, #tpu.memory_space<vmem>>) attributes {dimension_semantics = [#tpu.dimension_semantics<parallel>, #tpu.dimension_semantics<parallel>], iteration_bounds = array<i64: 2, 1>, scalar_prefetch = 0 : i64, scratch_operands = 0 : i64, tpu.core_type = #tpu.core_type<tc>, window_params = [{transform_indices = @transform_0, window_bounds = array<i64: 16, 256>}, {transform_indices = @transform_1, window_bounds = array<i64: 256, 128>}, {transform_indices = @transform_2, window_bounds = array<i64: 1, 128>}, {transform_indices = @transform_3, window_bounds = array<i64: 16, 128>}]} {
    %c0 = arith.constant 0 : index
    %c0_0 = arith.constant 0 : index
    %0 = vector.load %arg2[%c0, %c0_0] : memref<16x256xbf16, #tpu.memory_space<vmem>>, vector<16x256xbf16>
    %c0_1 = arith.constant 0 : index
    %c0_2 = arith.constant 0 : index
    %1 = vector.load %arg3[%c0_1, %c0_2] : memref<256x128xbf16, #tpu.memory_space<vmem>>, vector<256x128xbf16>
    %cst = arith.constant dense<0.000000e+00> : vector<16x128xf32>
    %2 = tpu.matmul %0, %1, %cst {dimension_numbers = #tpu.dot_dimension_numbers<[1], [0], [0], [1], [0, 0, 1, 1], [], []>} : vector<16x256xbf16>, vector<256x128xbf16>, vector<16x128xf32> -> vector<16x128xf32>
    %c0_3 = arith.constant 0 : index
    %c0_4 = arith.constant 0 : index
    %3 = vector.load %arg4[%c0_3, %c0_4] : memref<1x128xf32, #tpu.memory_space<vmem>>, vector<1x128xf32>
    %4 = vector.broadcast %3 : vector<1x128xf32> to vector<16x128xf32>
    %5 = arith.addf %2, %4 : vector<16x128xf32>
    %cst_5 = arith.constant 0.000000e+00 : f32
    %6 = vector.broadcast %cst_5 : f32 to vector<16x128xf32>
    %7 = arith.maximumf %5, %6 : vector<16x128xf32>
    %8 = arith.truncf %7 : vector<16x128xf32> to vector<16x128xbf16>
    %c0_6 = arith.constant 0 : index
    %c0_7 = arith.constant 0 : index
    %9 = vector.load %arg5[%c0_6, %c0_7] : memref<16x128xbf16, #tpu.memory_space<vmem>>, vector<16x128xbf16>
    tpu.vector_store %arg5[%c0_6, %c0_7], %8 {strides = array<i32>} : memref<16x128xbf16, #tpu.memory_space<vmem>>, vector<16x128xbf16>,
    return
  }
  func.func @transform_0(%arg0: i32, %arg1: i32) -> (i32, i32) {
    %c0_i32 = arith.constant 0 : i32
    %c0_i32_0 = arith.constant 0 : i32
    return %arg0, %c0_i32 : i32, i32
  }
  func.func @transform_1(%arg0: i32, %arg1: i32) -> (i32, i32) {
    %c0_i32 = arith.constant 0 : i32
    %c0_i32_0 = arith.constant 0 : i32
    return %c0_i32, %arg1 : i32, i32
  }
  func.func @transform_2(%arg0: i32, %arg1: i32) -> (i32, i32) {
    %c0_i32 = arith.constant 0 : i32
    %c0_i32_0 = arith.constant 0 : i32
    return %c0_i32, %arg1 : i32, i32
  }
  func.func @transform_3(%arg0: i32, %arg1: i32) -> (i32, i32) {
    %c0_i32 = arith.constant 0 : i32
    return %arg0, %arg1 : i32, i32
  }
}

module attributes {stable_mosaic.version = 11 : i64} {
  func.func @_conv_row_kernel(%arg0: i32, %arg1: i32, %arg2: i32, %arg3: memref<1x1x5x256xbf16, #tpu.memory_space<vmem>>, %arg4: memref<1x1x5x256xbf16, #tpu.memory_space<vmem>>, %arg5: memref<1x1x5x256xbf16, #tpu.memory_space<vmem>>, %arg6: memref<9x128x128xbf16, #tpu.memory_space<vmem>>, %arg7: memref<1x128xf32, #tpu.memory_space<vmem>>, %arg8: memref<1x1x4x128xbf16, #tpu.memory_space<vmem>>) attributes {dimension_semantics = [#tpu.dimension_semantics<parallel>, #tpu.dimension_semantics<parallel>, #tpu.dimension_semantics<parallel>], iteration_bounds = array<i64: 2, 4, 1>, scalar_prefetch = 0 : i64, scratch_operands = 0 : i64, tpu.core_type = #tpu.core_type<tc>, window_params = [{transform_indices = @transform_0, window_bounds = array<i64: 1, 1, 5, 256>}, {transform_indices = @transform_1, window_bounds = array<i64: 1, 1, 5, 256>}, {transform_indices = @transform_2, window_bounds = array<i64: 1, 1, 5, 256>}, {transform_indices = @transform_3, window_bounds = array<i64: 9, 128, 128>}, {transform_indices = @transform_4, window_bounds = array<i64: 1, 128>}, {transform_indices = @transform_5, window_bounds = array<i64: 1, 1, 4, 128>}]} {
    %c0 = arith.constant 0 : index
    %c0_0 = arith.constant 0 : index
    %c0_1 = arith.constant 0 : index
    %c0_2 = arith.constant 0 : index
    %0 = vector.load %arg3[%c0, %c0_0, %c0_1, %c0_2] : memref<1x1x5x256xbf16, #tpu.memory_space<vmem>>, vector<1x1x4x128xbf16>
    %1 = vector.shape_cast %0 : vector<1x1x4x128xbf16> to vector<4x128xbf16>
    %c0_3 = arith.constant 0 : index
    %c0_4 = arith.constant 0 : index
    %c0_5 = arith.constant 0 : index
    %2 = vector.load %arg6[%c0_3, %c0_4, %c0_5] : memref<9x128x128xbf16, #tpu.memory_space<vmem>>, vector<1x128x128xbf16>
    %3 = vector.shape_cast %2 : vector<1x128x128xbf16> to vector<128x128xbf16>
    %cst = arith.constant dense<0.000000e+00> : vector<4x128xf32>
    %4 = tpu.matmul %1, %3, %cst {dimension_numbers = #tpu.dot_dimension_numbers<[1], [0], [0], [1], [0, 0, 1, 1], [], []>} : vector<4x128xbf16>, vector<128x128xbf16>, vector<4x128xf32> -> vector<4x128xf32>
    %c0_6 = arith.constant 0 : index
    %c0_7 = arith.constant 0 : index
    %c0_8 = arith.constant 0 : index
    %c128 = arith.constant 128 : index
    %5 = vector.load %arg3[%c0_6, %c0_7, %c0_8, %c128] : memref<1x1x5x256xbf16, #tpu.memory_space<vmem>>, vector<1x1x4x128xbf16>
    %6 = vector.shape_cast %5 : vector<1x1x4x128xbf16> to vector<4x128xbf16>
    %c1 = arith.constant 1 : index
    %c0_9 = arith.constant 0 : index
    %c0_10 = arith.constant 0 : index
    %7 = vector.load %arg6[%c1, %c0_9, %c0_10] : memref<9x128x128xbf16, #tpu.memory_space<vmem>>, vector<1x128x128xbf16>
    %8 = vector.shape_cast %7 : vector<1x128x128xbf16> to vector<128x128xbf16>
    %cst_11 = arith.constant dense<0.000000e+00> : vector<4x128xf32>
    %9 = tpu.matmul %6, %8, %cst_11 {dimension_numbers = #tpu.dot_dimension_numbers<[1], [0], [0], [1], [0, 0, 1, 1], [], []>} : vector<4x128xbf16>, vector<128x128xbf16>, vector<4x128xf32> -> vector<4x128xf32>
    %10 = arith.addf %4, %9 : vector<4x128xf32>
    %c0_12 = arith.constant 0 : index
    %c0_13 = arith.constant 0 : index
    %c1_14 = arith.constant 1 : index
    %c0_15 = arith.constant 0 : index
    %11 = vector.load %arg3[%c0_12, %c0_13, %c1_14, %c0_15] : memref<1x1x5x256xbf16, #tpu.memory_space<vmem>>, vector<1x1x4x128xbf16>
    %12 = vector.shape_cast %11 : vector<1x1x4x128xbf16> to vector<4x128xbf16>
    %c2 = arith.constant 2 : index
    %c0_16 = arith.constant 0 : index
    %c0_17 = arith.constant 0 : index
    %13 = vector.load %arg6[%c2, %c0_16, %c0_17] : memref<9x128x128xbf16, #tpu.memory_space<vmem>>, vector<1x128x128xbf16>
    %14 = vector.shape_cast %13 : vector<1x128x128xbf16> to vector<128x128xbf16>
    %cst_18 = arith.constant dense<0.000000e+00> : vector<4x128xf32>
    %15 = tpu.matmul %12, %14, %cst_18 {dimension_numbers = #tpu.dot_dimension_numbers<[1], [0], [0], [1], [0, 0, 1, 1], [], []>} : vector<4x128xbf16>, vector<128x128xbf16>, vector<4x128xf32> -> vector<4x128xf32>
    %16 = arith.addf %10, %15 : vector<4x128xf32>
    %c0_19 = arith.constant 0 : index
    %c0_20 = arith.constant 0 : index
    %c0_21 = arith.constant 0 : index
    %c0_22 = arith.constant 0 : index
    %17 = vector.load %arg4[%c0_19, %c0_20, %c0_21, %c0_22] : memref<1x1x5x256xbf16, #tpu.memory_space<vmem>>, vector<1x1x4x128xbf16>
    %18 = vector.shape_cast %17 : vector<1x1x4x128xbf16> to vector<4x128xbf16>
    %c3 = arith.constant 3 : index
    %c0_23 = arith.constant 0 : index
    %c0_24 = arith.constant 0 : index
    %19 = vector.load %arg6[%c3, %c0_23, %c0_24] : memref<9x128x128xbf16, #tpu.memory_space<vmem>>, vector<1x128x128xbf16>
    %20 = vector.shape_cast %19 : vector<1x128x128xbf16> to vector<128x128xbf16>
    %cst_25 = arith.constant dense<0.000000e+00> : vector<4x128xf32>
    %21 = tpu.matmul %18, %20, %cst_25 {dimension_numbers = #tpu.dot_dimension_numbers<[1], [0], [0], [1], [0, 0, 1, 1], [], []>} : vector<4x128xbf16>, vector<128x128xbf16>, vector<4x128xf32> -> vector<4x128xf32>
    %22 = arith.addf %16, %21 : vector<4x128xf32>
    %c0_26 = arith.constant 0 : index
    %c0_27 = arith.constant 0 : index
    %c0_28 = arith.constant 0 : index
    %c128_29 = arith.constant 128 : index
    %23 = vector.load %arg4[%c0_26, %c0_27, %c0_28, %c128_29] : memref<1x1x5x256xbf16, #tpu.memory_space<vmem>>, vector<1x1x4x128xbf16>
    %24 = vector.shape_cast %23 : vector<1x1x4x128xbf16> to vector<4x128xbf16>
    %c4 = arith.constant 4 : index
    %c0_30 = arith.constant 0 : index
    %c0_31 = arith.constant 0 : index
    %25 = vector.load %arg6[%c4, %c0_30, %c0_31] : memref<9x128x128xbf16, #tpu.memory_space<vmem>>, vector<1x128x128xbf16>
    %26 = vector.shape_cast %25 : vector<1x128x128xbf16> to vector<128x128xbf16>
    %cst_32 = arith.constant dense<0.000000e+00> : vector<4x128xf32>
    %27 = tpu.matmul %24, %26, %cst_32 {dimension_numbers = #tpu.dot_dimension_numbers<[1], [0], [0], [1], [0, 0, 1, 1], [], []>} : vector<4x128xbf16>, vector<128x128xbf16>, vector<4x128xf32> -> vector<4x128xf32>
    %28 = arith.addf %22, %27 : vector<4x128xf32>
    %c0_33 = arith.constant 0 : index
    %c0_34 = arith.constant 0 : index
    %c1_35 = arith.constant 1 : index
    %c0_36 = arith.constant 0 : index
    %29 = vector.load %arg4[%c0_33, %c0_34, %c1_35, %c0_36] : memref<1x1x5x256xbf16, #tpu.memory_space<vmem>>, vector<1x1x4x128xbf16>
    %30 = vector.shape_cast %29 : vector<1x1x4x128xbf16> to vector<4x128xbf16>
    %c5 = arith.constant 5 : index
    %c0_37 = arith.constant 0 : index
    %c0_38 = arith.constant 0 : index
    %31 = vector.load %arg6[%c5, %c0_37, %c0_38] : memref<9x128x128xbf16, #tpu.memory_space<vmem>>, vector<1x128x128xbf16>
    %32 = vector.shape_cast %31 : vector<1x128x128xbf16> to vector<128x128xbf16>
    %cst_39 = arith.constant dense<0.000000e+00> : vector<4x128xf32>
    %33 = tpu.matmul %30, %32, %cst_39 {dimension_numbers = #tpu.dot_dimension_numbers<[1], [0], [0], [1], [0, 0, 1, 1], [], []>} : vector<4x128xbf16>, vector<128x128xbf16>, vector<4x128xf32> -> vector<4x128xf32>
    %34 = arith.addf %28, %33 : vector<4x128xf32>
    %c0_40 = arith.constant 0 : index
    %c0_41 = arith.constant 0 : index
    %c0_42 = arith.constant 0 : index
    %c0_43 = arith.constant 0 : index
    %35 = vector.load %arg5[%c0_40, %c0_41, %c0_42, %c0_43] : memref<1x1x5x256xbf16, #tpu.memory_space<vmem>>, vector<1x1x4x128xbf16>
    %36 = vector.shape_cast %35 : vector<1x1x4x128xbf16> to vector<4x128xbf16>
    %c6 = arith.constant 6 : index
    %c0_44 = arith.constant 0 : index
    %c0_45 = arith.constant 0 : index
    %37 = vector.load %arg6[%c6, %c0_44, %c0_45] : memref<9x128x128xbf16, #tpu.memory_space<vmem>>, vector<1x128x128xbf16>
    %38 = vector.shape_cast %37 : vector<1x128x128xbf16> to vector<128x128xbf16>
    %cst_46 = arith.constant dense<0.000000e+00> : vector<4x128xf32>
    %39 = tpu.matmul %36, %38, %cst_46 {dimension_numbers = #tpu.dot_dimension_numbers<[1], [0], [0], [1], [0, 0, 1, 1], [], []>} : vector<4x128xbf16>, vector<128x128xbf16>, vector<4x128xf32> -> vector<4x128xf32>
    %40 = arith.addf %34, %39 : vector<4x128xf32>
    %c0_47 = arith.constant 0 : index
    %c0_48 = arith.constant 0 : index
    %c0_49 = arith.constant 0 : index
    %c128_50 = arith.constant 128 : index
    %41 = vector.load %arg5[%c0_47, %c0_48, %c0_49, %c128_50] : memref<1x1x5x256xbf16, #tpu.memory_space<vmem>>, vector<1x1x4x128xbf16>
    %42 = vector.shape_cast %41 : vector<1x1x4x128xbf16> to vector<4x128xbf16>
    %c7 = arith.constant 7 : index
    %c0_51 = arith.constant 0 : index
    %c0_52 = arith.constant 0 : index
    %43 = vector.load %arg6[%c7, %c0_51, %c0_52] : memref<9x128x128xbf16, #tpu.memory_space<vmem>>, vector<1x128x128xbf16>
    %44 = vector.shape_cast %43 : vector<1x128x128xbf16> to vector<128x128xbf16>
    %cst_53 = arith.constant dense<0.000000e+00> : vector<4x128xf32>
    %45 = tpu.matmul %42, %44, %cst_53 {dimension_numbers = #tpu.dot_dimension_numbers<[1], [0], [0], [1], [0, 0, 1, 1], [], []>} : vector<4x128xbf16>, vector<128x128xbf16>, vector<4x128xf32> -> vector<4x128xf32>
    %46 = arith.addf %40, %45 : vector<4x128xf32>
    %c0_54 = arith.constant 0 : index
    %c0_55 = arith.constant 0 : index
    %c1_56 = arith.constant 1 : index
    %c0_57 = arith.constant 0 : index
    %47 = vector.load %arg5[%c0_54, %c0_55, %c1_56, %c0_57] : memref<1x1x5x256xbf16, #tpu.memory_space<vmem>>, vector<1x1x4x128xbf16>
    %48 = vector.shape_cast %47 : vector<1x1x4x128xbf16> to vector<4x128xbf16>
    %c8 = arith.constant 8 : index
    %c0_58 = arith.constant 0 : index
    %c0_59 = arith.constant 0 : index
    %49 = vector.load %arg6[%c8, %c0_58, %c0_59] : memref<9x128x128xbf16, #tpu.memory_space<vmem>>, vector<1x128x128xbf16>
    %50 = vector.shape_cast %49 : vector<1x128x128xbf16> to vector<128x128xbf16>
    %cst_60 = arith.constant dense<0.000000e+00> : vector<4x128xf32>
    %51 = tpu.matmul %48, %50, %cst_60 {dimension_numbers = #tpu.dot_dimension_numbers<[1], [0], [0], [1], [0, 0, 1, 1], [], []>} : vector<4x128xbf16>, vector<128x128xbf16>, vector<4x128xf32> -> vector<4x128xf32>
    %52 = arith.addf %46, %51 : vector<4x128xf32>
    %c0_61 = arith.constant 0 : index
    %c0_62 = arith.constant 0 : index
    %53 = vector.load %arg7[%c0_61, %c0_62] : memref<1x128xf32, #tpu.memory_space<vmem>>, vector<1x128xf32>
    %54 = vector.broadcast %53 : vector<1x128xf32> to vector<4x128xf32>
    %55 = arith.addf %52, %54 : vector<4x128xf32>
    %cst_63 = arith.constant 0.000000e+00 : f32
    %56 = vector.broadcast %cst_63 : f32 to vector<4x128xf32>
    %57 = arith.maximumf %55, %56 : vector<4x128xf32>
    %58 = arith.truncf %57 : vector<4x128xf32> to vector<4x128xbf16>
    %c0_64 = arith.constant 0 : index
    %c0_65 = arith.constant 0 : index
    %c0_66 = arith.constant 0 : index
    %c0_67 = arith.constant 0 : index
    %59 = vector.load %arg8[%c0_64, %c0_65, %c0_66, %c0_67] : memref<1x1x4x128xbf16, #tpu.memory_space<vmem>>, vector<1x1x4x128xbf16>
    %60 = vector.shape_cast %59 : vector<1x1x4x128xbf16> to vector<4x128xbf16>
    %61 = vector.shape_cast %58 : vector<4x128xbf16> to vector<1x1x4x128xbf16>
    tpu.vector_store %arg8[%c0_64, %c0_65, %c0_66, %c0_67], %61 {strides = array<i32>} : memref<1x1x4x128xbf16, #tpu.memory_space<vmem>>, vector<1x1x4x128xbf16>,
    return
  }
  func.func @transform_0(%arg0: i32, %arg1: i32, %arg2: i32) -> (i32, i32, i32, i32) {
    %c2_i32 = arith.constant 2 : i32
    %0 = arith.muli %arg1, %c2_i32 : i32
    %c0_i32 = arith.constant 0 : i32
    %1 = arith.addi %0, %c0_i32 : i32
    %c0_i32_0 = arith.constant 0 : i32
    %c0_i32_1 = arith.constant 0 : i32
    %c0_i32_2 = arith.constant 0 : i32
    return %arg0, %1, %c0_i32_0, %c0_i32_1 : i32, i32, i32, i32
  }
  func.func @transform_1(%arg0: i32, %arg1: i32, %arg2: i32) -> (i32, i32, i32, i32) {
    %c2_i32 = arith.constant 2 : i32
    %0 = arith.muli %arg1, %c2_i32 : i32
    %c1_i32 = arith.constant 1 : i32
    %1 = arith.addi %0, %c1_i32 : i32
    %c0_i32 = arith.constant 0 : i32
    %c0_i32_0 = arith.constant 0 : i32
    %c0_i32_1 = arith.constant 0 : i32
    return %arg0, %1, %c0_i32, %c0_i32_0 : i32, i32, i32, i32
  }
  func.func @transform_2(%arg0: i32, %arg1: i32, %arg2: i32) -> (i32, i32, i32, i32) {
    %c2_i32 = arith.constant 2 : i32
    %0 = arith.muli %arg1, %c2_i32 : i32
    %c2_i32_0 = arith.constant 2 : i32
    %1 = arith.addi %0, %c2_i32_0 : i32
    %c0_i32 = arith.constant 0 : i32
    %c0_i32_1 = arith.constant 0 : i32
    %c0_i32_2 = arith.constant 0 : i32
    return %arg0, %1, %c0_i32, %c0_i32_1 : i32, i32, i32, i32
  }
  func.func @transform_3(%arg0: i32, %arg1: i32, %arg2: i32) -> (i32, i32, i32) {
    %c0_i32 = arith.constant 0 : i32
    %c0_i32_0 = arith.constant 0 : i32
    %c0_i32_1 = arith.constant 0 : i32
    return %c0_i32, %c0_i32_0, %arg2 : i32, i32, i32
  }
  func.func @transform_4(%arg0: i32, %arg1: i32, %arg2: i32) -> (i32, i32) {
    %c0_i32 = arith.constant 0 : i32
    %c0_i32_0 = arith.constant 0 : i32
    return %c0_i32, %arg2 : i32, i32
  }
  func.func @transform_5(%arg0: i32, %arg1: i32, %arg2: i32) -> (i32, i32, i32, i32) {
    %c0_i32 = arith.constant 0 : i32
    %c0_i32_0 = arith.constant 0 : i32
    return %arg0, %arg1, %c0_i32, %arg2 : i32, i32, i32, i32
  }
}

module attributes {stable_mosaic.version = 11 : i64} {
  func.func @_matmul_kernel(%arg0: i32, %arg1: i32, %arg2: memref<8x256xbf16, #tpu.memory_space<vmem>>, %arg3: memref<256x256xbf16, #tpu.memory_space<vmem>>, %arg4: memref<1x256xf32, #tpu.memory_space<vmem>>, %arg5: memref<8x256xbf16, #tpu.memory_space<vmem>>) attributes {dimension_semantics = [#tpu.dimension_semantics<parallel>, #tpu.dimension_semantics<parallel>], iteration_bounds = array<i64: 1, 2>, scalar_prefetch = 0 : i64, scratch_operands = 0 : i64, tpu.core_type = #tpu.core_type<tc>, window_params = [{transform_indices = @transform_0, window_bounds = array<i64: 8, 256>}, {transform_indices = @transform_1, window_bounds = array<i64: 256, 256>}, {transform_indices = @transform_2, window_bounds = array<i64: 1, 256>}, {transform_indices = @transform_3, window_bounds = array<i64: 8, 256>}]} {
    %c0 = arith.constant 0 : index
    %c0_0 = arith.constant 0 : index
    %0 = vector.load %arg2[%c0, %c0_0] : memref<8x256xbf16, #tpu.memory_space<vmem>>, vector<8x256xbf16>
    %c0_1 = arith.constant 0 : index
    %c0_2 = arith.constant 0 : index
    %1 = vector.load %arg3[%c0_1, %c0_2] : memref<256x256xbf16, #tpu.memory_space<vmem>>, vector<256x256xbf16>
    %cst = arith.constant dense<0.000000e+00> : vector<8x256xf32>
    %2 = tpu.matmul %0, %1, %cst {dimension_numbers = #tpu.dot_dimension_numbers<[1], [0], [0], [1], [0, 0, 1, 1], [], []>} : vector<8x256xbf16>, vector<256x256xbf16>, vector<8x256xf32> -> vector<8x256xf32>
    %c0_3 = arith.constant 0 : index
    %c0_4 = arith.constant 0 : index
    %3 = vector.load %arg4[%c0_3, %c0_4] : memref<1x256xf32, #tpu.memory_space<vmem>>, vector<1x256xf32>
    %4 = vector.broadcast %3 : vector<1x256xf32> to vector<8x256xf32>
    %5 = arith.addf %2, %4 : vector<8x256xf32>
    %6 = arith.truncf %5 : vector<8x256xf32> to vector<8x256xbf16>
    %c0_5 = arith.constant 0 : index
    %c0_6 = arith.constant 0 : index
    %7 = vector.load %arg5[%c0_5, %c0_6] : memref<8x256xbf16, #tpu.memory_space<vmem>>, vector<8x256xbf16>
    tpu.vector_store %arg5[%c0_5, %c0_6], %6 {strides = array<i32>} : memref<8x256xbf16, #tpu.memory_space<vmem>>, vector<8x256xbf16>,
    return
  }
  func.func @transform_0(%arg0: i32, %arg1: i32) -> (i32, i32) {
    %c0_i32 = arith.constant 0 : i32
    %c0_i32_0 = arith.constant 0 : i32
    return %arg0, %c0_i32 : i32, i32
  }
  func.func @transform_1(%arg0: i32, %arg1: i32) -> (i32, i32) {
    %c0_i32 = arith.constant 0 : i32
    %c0_i32_0 = arith.constant 0 : i32
    return %c0_i32, %arg1 : i32, i32
  }
  func.func @transform_2(%arg0: i32, %arg1: i32) -> (i32, i32) {
    %c0_i32 = arith.constant 0 : i32
    %c0_i32_0 = arith.constant 0 : i32
    return %c0_i32, %arg1 : i32, i32
  }
  func.func @transform_3(%arg0: i32, %arg1: i32) -> (i32, i32) {
    %c0_i32 = arith.constant 0 : i32
    return %arg0, %arg1 : i32, i32
  }
}

module attributes {stable_mosaic.version = 11 : i64} {
  func.func @_conv_row_kernel(%arg0: i32, %arg1: i32, %arg2: i32, %arg3: memref<1x1x3x256xbf16, #tpu.memory_space<vmem>>, %arg4: memref<1x1x3x256xbf16, #tpu.memory_space<vmem>>, %arg5: memref<1x1x3x256xbf16, #tpu.memory_space<vmem>>, %arg6: memref<9x128x128xbf16, #tpu.memory_space<vmem>>, %arg7: memref<1x128xf32, #tpu.memory_space<vmem>>, %arg8: memref<1x1x2x128xbf16, #tpu.memory_space<vmem>>) attributes {dimension_semantics = [#tpu.dimension_semantics<parallel>, #tpu.dimension_semantics<parallel>, #tpu.dimension_semantics<parallel>], iteration_bounds = array<i64: 2, 2, 1>, scalar_prefetch = 0 : i64, scratch_operands = 0 : i64, tpu.core_type = #tpu.core_type<tc>, window_params = [{transform_indices = @transform_0, window_bounds = array<i64: 1, 1, 3, 256>}, {transform_indices = @transform_1, window_bounds = array<i64: 1, 1, 3, 256>}, {transform_indices = @transform_2, window_bounds = array<i64: 1, 1, 3, 256>}, {transform_indices = @transform_3, window_bounds = array<i64: 9, 128, 128>}, {transform_indices = @transform_4, window_bounds = array<i64: 1, 128>}, {transform_indices = @transform_5, window_bounds = array<i64: 1, 1, 2, 128>}]} {
    %c0 = arith.constant 0 : index
    %c0_0 = arith.constant 0 : index
    %c0_1 = arith.constant 0 : index
    %c0_2 = arith.constant 0 : index
    %0 = vector.load %arg3[%c0, %c0_0, %c0_1, %c0_2] : memref<1x1x3x256xbf16, #tpu.memory_space<vmem>>, vector<1x1x2x128xbf16>
    %1 = vector.shape_cast %0 : vector<1x1x2x128xbf16> to vector<2x128xbf16>
    %c0_3 = arith.constant 0 : index
    %c0_4 = arith.constant 0 : index
    %c0_5 = arith.constant 0 : index
    %2 = vector.load %arg6[%c0_3, %c0_4, %c0_5] : memref<9x128x128xbf16, #tpu.memory_space<vmem>>, vector<1x128x128xbf16>
    %3 = vector.shape_cast %2 : vector<1x128x128xbf16> to vector<128x128xbf16>
    %cst = arith.constant dense<0.000000e+00> : vector<2x128xf32>
    %4 = tpu.matmul %1, %3, %cst {dimension_numbers = #tpu.dot_dimension_numbers<[1], [0], [0], [1], [0, 0, 1, 1], [], []>} : vector<2x128xbf16>, vector<128x128xbf16>, vector<2x128xf32> -> vector<2x128xf32>
    %c0_6 = arith.constant 0 : index
    %c0_7 = arith.constant 0 : index
    %c0_8 = arith.constant 0 : index
    %c128 = arith.constant 128 : index
    %5 = vector.load %arg3[%c0_6, %c0_7, %c0_8, %c128] : memref<1x1x3x256xbf16, #tpu.memory_space<vmem>>, vector<1x1x2x128xbf16>
    %6 = vector.shape_cast %5 : vector<1x1x2x128xbf16> to vector<2x128xbf16>
    %c1 = arith.constant 1 : index
    %c0_9 = arith.constant 0 : index
    %c0_10 = arith.constant 0 : index
    %7 = vector.load %arg6[%c1, %c0_9, %c0_10] : memref<9x128x128xbf16, #tpu.memory_space<vmem>>, vector<1x128x128xbf16>
    %8 = vector.shape_cast %7 : vector<1x128x128xbf16> to vector<128x128xbf16>
    %cst_11 = arith.constant dense<0.000000e+00> : vector<2x128xf32>
    %9 = tpu.matmul %6, %8, %cst_11 {dimension_numbers = #tpu.dot_dimension_numbers<[1], [0], [0], [1], [0, 0, 1, 1], [], []>} : vector<2x128xbf16>, vector<128x128xbf16>, vector<2x128xf32> -> vector<2x128xf32>
    %10 = arith.addf %4, %9 : vector<2x128xf32>
    %c0_12 = arith.constant 0 : index
    %c0_13 = arith.constant 0 : index
    %c1_14 = arith.constant 1 : index
    %c0_15 = arith.constant 0 : index
    %11 = vector.load %arg3[%c0_12, %c0_13, %c1_14, %c0_15] : memref<1x1x3x256xbf16, #tpu.memory_space<vmem>>, vector<1x1x2x128xbf16>
    %12 = vector.shape_cast %11 : vector<1x1x2x128xbf16> to vector<2x128xbf16>
    %c2 = arith.constant 2 : index
    %c0_16 = arith.constant 0 : index
    %c0_17 = arith.constant 0 : index
    %13 = vector.load %arg6[%c2, %c0_16, %c0_17] : memref<9x128x128xbf16, #tpu.memory_space<vmem>>, vector<1x128x128xbf16>
    %14 = vector.shape_cast %13 : vector<1x128x128xbf16> to vector<128x128xbf16>
    %cst_18 = arith.constant dense<0.000000e+00> : vector<2x128xf32>
    %15 = tpu.matmul %12, %14, %cst_18 {dimension_numbers = #tpu.dot_dimension_numbers<[1], [0], [0], [1], [0, 0, 1, 1], [], []>} : vector<2x128xbf16>, vector<128x128xbf16>, vector<2x128xf32> -> vector<2x128xf32>
    %16 = arith.addf %10, %15 : vector<2x128xf32>
    %c0_19 = arith.constant 0 : index
    %c0_20 = arith.constant 0 : index
    %c0_21 = arith.constant 0 : index
    %c0_22 = arith.constant 0 : index
    %17 = vector.load %arg4[%c0_19, %c0_20, %c0_21, %c0_22] : memref<1x1x3x256xbf16, #tpu.memory_space<vmem>>, vector<1x1x2x128xbf16>
    %18 = vector.shape_cast %17 : vector<1x1x2x128xbf16> to vector<2x128xbf16>
    %c3 = arith.constant 3 : index
    %c0_23 = arith.constant 0 : index
    %c0_24 = arith.constant 0 : index
    %19 = vector.load %arg6[%c3, %c0_23, %c0_24] : memref<9x128x128xbf16, #tpu.memory_space<vmem>>, vector<1x128x128xbf16>
    %20 = vector.shape_cast %19 : vector<1x128x128xbf16> to vector<128x128xbf16>
    %cst_25 = arith.constant dense<0.000000e+00> : vector<2x128xf32>
    %21 = tpu.matmul %18, %20, %cst_25 {dimension_numbers = #tpu.dot_dimension_numbers<[1], [0], [0], [1], [0, 0, 1, 1], [], []>} : vector<2x128xbf16>, vector<128x128xbf16>, vector<2x128xf32> -> vector<2x128xf32>
    %22 = arith.addf %16, %21 : vector<2x128xf32>
    %c0_26 = arith.constant 0 : index
    %c0_27 = arith.constant 0 : index
    %c0_28 = arith.constant 0 : index
    %c128_29 = arith.constant 128 : index
    %23 = vector.load %arg4[%c0_26, %c0_27, %c0_28, %c128_29] : memref<1x1x3x256xbf16, #tpu.memory_space<vmem>>, vector<1x1x2x128xbf16>
    %24 = vector.shape_cast %23 : vector<1x1x2x128xbf16> to vector<2x128xbf16>
    %c4 = arith.constant 4 : index
    %c0_30 = arith.constant 0 : index
    %c0_31 = arith.constant 0 : index
    %25 = vector.load %arg6[%c4, %c0_30, %c0_31] : memref<9x128x128xbf16, #tpu.memory_space<vmem>>, vector<1x128x128xbf16>
    %26 = vector.shape_cast %25 : vector<1x128x128xbf16> to vector<128x128xbf16>
    %cst_32 = arith.constant dense<0.000000e+00> : vector<2x128xf32>
    %27 = tpu.matmul %24, %26, %cst_32 {dimension_numbers = #tpu.dot_dimension_numbers<[1], [0], [0], [1], [0, 0, 1, 1], [], []>} : vector<2x128xbf16>, vector<128x128xbf16>, vector<2x128xf32> -> vector<2x128xf32>
    %28 = arith.addf %22, %27 : vector<2x128xf32>
    %c0_33 = arith.constant 0 : index
    %c0_34 = arith.constant 0 : index
    %c1_35 = arith.constant 1 : index
    %c0_36 = arith.constant 0 : index
    %29 = vector.load %arg4[%c0_33, %c0_34, %c1_35, %c0_36] : memref<1x1x3x256xbf16, #tpu.memory_space<vmem>>, vector<1x1x2x128xbf16>
    %30 = vector.shape_cast %29 : vector<1x1x2x128xbf16> to vector<2x128xbf16>
    %c5 = arith.constant 5 : index
    %c0_37 = arith.constant 0 : index
    %c0_38 = arith.constant 0 : index
    %31 = vector.load %arg6[%c5, %c0_37, %c0_38] : memref<9x128x128xbf16, #tpu.memory_space<vmem>>, vector<1x128x128xbf16>
    %32 = vector.shape_cast %31 : vector<1x128x128xbf16> to vector<128x128xbf16>
    %cst_39 = arith.constant dense<0.000000e+00> : vector<2x128xf32>
    %33 = tpu.matmul %30, %32, %cst_39 {dimension_numbers = #tpu.dot_dimension_numbers<[1], [0], [0], [1], [0, 0, 1, 1], [], []>} : vector<2x128xbf16>, vector<128x128xbf16>, vector<2x128xf32> -> vector<2x128xf32>
    %34 = arith.addf %28, %33 : vector<2x128xf32>
    %c0_40 = arith.constant 0 : index
    %c0_41 = arith.constant 0 : index
    %c0_42 = arith.constant 0 : index
    %c0_43 = arith.constant 0 : index
    %35 = vector.load %arg5[%c0_40, %c0_41, %c0_42, %c0_43] : memref<1x1x3x256xbf16, #tpu.memory_space<vmem>>, vector<1x1x2x128xbf16>
    %36 = vector.shape_cast %35 : vector<1x1x2x128xbf16> to vector<2x128xbf16>
    %c6 = arith.constant 6 : index
    %c0_44 = arith.constant 0 : index
    %c0_45 = arith.constant 0 : index
    %37 = vector.load %arg6[%c6, %c0_44, %c0_45] : memref<9x128x128xbf16, #tpu.memory_space<vmem>>, vector<1x128x128xbf16>
    %38 = vector.shape_cast %37 : vector<1x128x128xbf16> to vector<128x128xbf16>
    %cst_46 = arith.constant dense<0.000000e+00> : vector<2x128xf32>
    %39 = tpu.matmul %36, %38, %cst_46 {dimension_numbers = #tpu.dot_dimension_numbers<[1], [0], [0], [1], [0, 0, 1, 1], [], []>} : vector<2x128xbf16>, vector<128x128xbf16>, vector<2x128xf32> -> vector<2x128xf32>
    %40 = arith.addf %34, %39 : vector<2x128xf32>
    %c0_47 = arith.constant 0 : index
    %c0_48 = arith.constant 0 : index
    %c0_49 = arith.constant 0 : index
    %c128_50 = arith.constant 128 : index
    %41 = vector.load %arg5[%c0_47, %c0_48, %c0_49, %c128_50] : memref<1x1x3x256xbf16, #tpu.memory_space<vmem>>, vector<1x1x2x128xbf16>
    %42 = vector.shape_cast %41 : vector<1x1x2x128xbf16> to vector<2x128xbf16>
    %c7 = arith.constant 7 : index
    %c0_51 = arith.constant 0 : index
    %c0_52 = arith.constant 0 : index
    %43 = vector.load %arg6[%c7, %c0_51, %c0_52] : memref<9x128x128xbf16, #tpu.memory_space<vmem>>, vector<1x128x128xbf16>
    %44 = vector.shape_cast %43 : vector<1x128x128xbf16> to vector<128x128xbf16>
    %cst_53 = arith.constant dense<0.000000e+00> : vector<2x128xf32>
    %45 = tpu.matmul %42, %44, %cst_53 {dimension_numbers = #tpu.dot_dimension_numbers<[1], [0], [0], [1], [0, 0, 1, 1], [], []>} : vector<2x128xbf16>, vector<128x128xbf16>, vector<2x128xf32> -> vector<2x128xf32>
    %46 = arith.addf %40, %45 : vector<2x128xf32>
    %c0_54 = arith.constant 0 : index
    %c0_55 = arith.constant 0 : index
    %c1_56 = arith.constant 1 : index
    %c0_57 = arith.constant 0 : index
    %47 = vector.load %arg5[%c0_54, %c0_55, %c1_56, %c0_57] : memref<1x1x3x256xbf16, #tpu.memory_space<vmem>>, vector<1x1x2x128xbf16>
    %48 = vector.shape_cast %47 : vector<1x1x2x128xbf16> to vector<2x128xbf16>
    %c8 = arith.constant 8 : index
    %c0_58 = arith.constant 0 : index
    %c0_59 = arith.constant 0 : index
    %49 = vector.load %arg6[%c8, %c0_58, %c0_59] : memref<9x128x128xbf16, #tpu.memory_space<vmem>>, vector<1x128x128xbf16>
    %50 = vector.shape_cast %49 : vector<1x128x128xbf16> to vector<128x128xbf16>
    %cst_60 = arith.constant dense<0.000000e+00> : vector<2x128xf32>
    %51 = tpu.matmul %48, %50, %cst_60 {dimension_numbers = #tpu.dot_dimension_numbers<[1], [0], [0], [1], [0, 0, 1, 1], [], []>} : vector<2x128xbf16>, vector<128x128xbf16>, vector<2x128xf32> -> vector<2x128xf32>
    %52 = arith.addf %46, %51 : vector<2x128xf32>
    %c0_61 = arith.constant 0 : index
    %c0_62 = arith.constant 0 : index
    %53 = vector.load %arg7[%c0_61, %c0_62] : memref<1x128xf32, #tpu.memory_space<vmem>>, vector<1x128xf32>
    %54 = vector.broadcast %53 : vector<1x128xf32> to vector<2x128xf32>
    %55 = arith.addf %52, %54 : vector<2x128xf32>
    %cst_63 = arith.constant 0.000000e+00 : f32
    %56 = vector.broadcast %cst_63 : f32 to vector<2x128xf32>
    %57 = arith.maximumf %55, %56 : vector<2x128xf32>
    %58 = arith.truncf %57 : vector<2x128xf32> to vector<2x128xbf16>
    %c0_64 = arith.constant 0 : index
    %c0_65 = arith.constant 0 : index
    %c0_66 = arith.constant 0 : index
    %c0_67 = arith.constant 0 : index
    %59 = vector.load %arg8[%c0_64, %c0_65, %c0_66, %c0_67] : memref<1x1x2x128xbf16, #tpu.memory_space<vmem>>, vector<1x1x2x128xbf16>
    %60 = vector.shape_cast %59 : vector<1x1x2x128xbf16> to vector<2x128xbf16>
    %61 = vector.shape_cast %58 : vector<2x128xbf16> to vector<1x1x2x128xbf16>
    tpu.vector_store %arg8[%c0_64, %c0_65, %c0_66, %c0_67], %61 {strides = array<i32>} : memref<1x1x2x128xbf16, #tpu.memory_space<vmem>>, vector<1x1x2x128xbf16>,
    return
  }
  func.func @transform_0(%arg0: i32, %arg1: i32, %arg2: i32) -> (i32, i32, i32, i32) {
    %c2_i32 = arith.constant 2 : i32
    %0 = arith.muli %arg1, %c2_i32 : i32
    %c0_i32 = arith.constant 0 : i32
    %1 = arith.addi %0, %c0_i32 : i32
    %c0_i32_0 = arith.constant 0 : i32
    %c0_i32_1 = arith.constant 0 : i32
    %c0_i32_2 = arith.constant 0 : i32
    return %arg0, %1, %c0_i32_0, %c0_i32_1 : i32, i32, i32, i32
  }
  func.func @transform_1(%arg0: i32, %arg1: i32, %arg2: i32) -> (i32, i32, i32, i32) {
    %c2_i32 = arith.constant 2 : i32
    %0 = arith.muli %arg1, %c2_i32 : i32
    %c1_i32 = arith.constant 1 : i32
    %1 = arith.addi %0, %c1_i32 : i32
    %c0_i32 = arith.constant 0 : i32
    %c0_i32_0 = arith.constant 0 : i32
    %c0_i32_1 = arith.constant 0 : i32
    return %arg0, %1, %c0_i32, %c0_i32_0 : i32, i32, i32, i32
  }
  func.func @transform_2(%arg0: i32, %arg1: i32, %arg2: i32) -> (i32, i32, i32, i32) {
    %c2_i32 = arith.constant 2 : i32
    %0 = arith.muli %arg1, %c2_i32 : i32
    %c2_i32_0 = arith.constant 2 : i32
    %1 = arith.addi %0, %c2_i32_0 : i32
    %c0_i32 = arith.constant 0 : i32
    %c0_i32_1 = arith.constant 0 : i32
    %c0_i32_2 = arith.constant 0 : i32
    return %arg0, %1, %c0_i32, %c0_i32_1 : i32, i32, i32, i32
  }
  func.func @transform_3(%arg0: i32, %arg1: i32, %arg2: i32) -> (i32, i32, i32) {
    %c0_i32 = arith.constant 0 : i32
    %c0_i32_0 = arith.constant 0 : i32
    %c0_i32_1 = arith.constant 0 : i32
    return %c0_i32, %c0_i32_0, %arg2 : i32, i32, i32
  }
  func.func @transform_4(%arg0: i32, %arg1: i32, %arg2: i32) -> (i32, i32) {
    %c0_i32 = arith.constant 0 : i32
    %c0_i32_0 = arith.constant 0 : i32
    return %c0_i32, %arg2 : i32, i32
  }
  func.func @transform_5(%arg0: i32, %arg1: i32, %arg2: i32) -> (i32, i32, i32, i32) {
    %c0_i32 = arith.constant 0 : i32
    %c0_i32_0 = arith.constant 0 : i32
    return %arg0, %arg1, %c0_i32, %arg2 : i32, i32, i32, i32
  }
}

module attributes {stable_mosaic.version = 11 : i64} {
  func.func @_matmul_kernel(%arg0: i32, %arg1: i32, %arg2: memref<8x128xbf16, #tpu.memory_space<vmem>>, %arg3: memref<128x256xbf16, #tpu.memory_space<vmem>>, %arg4: memref<1x256xf32, #tpu.memory_space<vmem>>, %arg5: memref<8x256xbf16, #tpu.memory_space<vmem>>, %arg6: memref<8x256xbf16, #tpu.memory_space<vmem>>) attributes {dimension_semantics = [#tpu.dimension_semantics<parallel>, #tpu.dimension_semantics<parallel>], iteration_bounds = array<i64: 1, 2>, scalar_prefetch = 0 : i64, scratch_operands = 0 : i64, tpu.core_type = #tpu.core_type<tc>, window_params = [{transform_indices = @transform_0, window_bounds = array<i64: 8, 128>}, {transform_indices = @transform_1, window_bounds = array<i64: 128, 256>}, {transform_indices = @transform_2, window_bounds = array<i64: 1, 256>}, {transform_indices = @transform_3, window_bounds = array<i64: 8, 256>}, {transform_indices = @transform_4, window_bounds = array<i64: 8, 256>}]} {
    %c0 = arith.constant 0 : index
    %c0_0 = arith.constant 0 : index
    %0 = vector.load %arg2[%c0, %c0_0] : memref<8x128xbf16, #tpu.memory_space<vmem>>, vector<8x128xbf16>
    %c0_1 = arith.constant 0 : index
    %c0_2 = arith.constant 0 : index
    %1 = vector.load %arg3[%c0_1, %c0_2] : memref<128x256xbf16, #tpu.memory_space<vmem>>, vector<128x256xbf16>
    %cst = arith.constant dense<0.000000e+00> : vector<8x256xf32>
    %2 = tpu.matmul %0, %1, %cst {dimension_numbers = #tpu.dot_dimension_numbers<[1], [0], [0], [1], [0, 0, 1, 1], [], []>} : vector<8x128xbf16>, vector<128x256xbf16>, vector<8x256xf32> -> vector<8x256xf32>
    %c0_3 = arith.constant 0 : index
    %c0_4 = arith.constant 0 : index
    %3 = vector.load %arg4[%c0_3, %c0_4] : memref<1x256xf32, #tpu.memory_space<vmem>>, vector<1x256xf32>
    %4 = vector.broadcast %3 : vector<1x256xf32> to vector<8x256xf32>
    %5 = arith.addf %2, %4 : vector<8x256xf32>
    %c0_5 = arith.constant 0 : index
    %c0_6 = arith.constant 0 : index
    %6 = vector.load %arg5[%c0_5, %c0_6] : memref<8x256xbf16, #tpu.memory_space<vmem>>, vector<8x256xbf16>
    %7 = arith.extf %6 : vector<8x256xbf16> to vector<8x256xf32>
    %8 = arith.addf %5, %7 : vector<8x256xf32>
    %cst_7 = arith.constant 0.000000e+00 : f32
    %9 = vector.broadcast %cst_7 : f32 to vector<8x256xf32>
    %10 = arith.maximumf %8, %9 : vector<8x256xf32>
    %11 = arith.truncf %10 : vector<8x256xf32> to vector<8x256xbf16>
    %c0_8 = arith.constant 0 : index
    %c0_9 = arith.constant 0 : index
    %12 = vector.load %arg6[%c0_8, %c0_9] : memref<8x256xbf16, #tpu.memory_space<vmem>>, vector<8x256xbf16>
    tpu.vector_store %arg6[%c0_8, %c0_9], %11 {strides = array<i32>} : memref<8x256xbf16, #tpu.memory_space<vmem>>, vector<8x256xbf16>,
    return
  }
  func.func @transform_0(%arg0: i32, %arg1: i32) -> (i32, i32) {
    %c0_i32 = arith.constant 0 : i32
    %c0_i32_0 = arith.constant 0 : i32
    return %arg0, %c0_i32 : i32, i32
  }
  func.func @transform_1(%arg0: i32, %arg1: i32) -> (i32, i32) {
    %c0_i32 = arith.constant 0 : i32
    %c0_i32_0 = arith.constant 0 : i32
    return %c0_i32, %arg1 : i32, i32
  }
  func.func @transform_2(%arg0: i32, %arg1: i32) -> (i32, i32) {
    %c0_i32 = arith.constant 0 : i32
    %c0_i32_0 = arith.constant 0 : i32
    return %c0_i32, %arg1 : i32, i32
  }
  func.func @transform_3(%arg0: i32, %arg1: i32) -> (i32, i32) {
    %c0_i32 = arith.constant 0 : i32
    return %arg0, %arg1 : i32, i32
  }
  func.func @transform_4(%arg0: i32, %arg1: i32) -> (i32, i32) {
    %c0_i32 = arith.constant 0 : i32
    return %arg0, %arg1 : i32, i32
  }
}

module attributes {stable_mosaic.version = 11 : i64} {
  func.func @_l2norm_kernel(%arg0: i32, %arg1: memref<2x2048xbf16, #tpu.memory_space<vmem>>, %arg2: memref<2x2048xf32, #tpu.memory_space<vmem>>) attributes {dimension_semantics = [#tpu.dimension_semantics<arbitrary>], iteration_bounds = array<i64: 1>, scalar_prefetch = 0 : i64, scratch_operands = 0 : i64, tpu.core_type = #tpu.core_type<tc>, window_params = [{pipeline_mode = #tpu.pipeline_mode<synchronous>, transform_indices = @transform_0, window_bounds = array<i64: 2, 2048>}, {pipeline_mode = #tpu.pipeline_mode<synchronous>, transform_indices = @transform_1, window_bounds = array<i64: 2, 2048>}]} {
    %c0 = arith.constant 0 : index
    %c0_0 = arith.constant 0 : index
    %0 = vector.load %arg1[%c0, %c0_0] : memref<2x2048xbf16, #tpu.memory_space<vmem>>, vector<2x2048xbf16>
    %1 = arith.extf %0 : vector<2x2048xbf16> to vector<2x2048xf32>
    %2 = arith.mulf %1, %1 : vector<2x2048xf32>
    %cst = arith.constant dense<0.000000e+00> : vector<2xf32>
    %3 = vector.multi_reduction <add>, %2, %cst [1] : vector<2x2048xf32> to vector<2xf32>
    %4 = vector.shape_cast %3 : vector<2xf32> to vector<2x1xf32>
    %cst_1 = arith.constant 1.000000e-24 : f32
    %5 = vector.broadcast %cst_1 : f32 to vector<2x1xf32>
    %6 = arith.addf %4, %5 : vector<2x1xf32>
    %7 = math.rsqrt %6 : vector<2x1xf32>
    %8 = vector.broadcast %7 : vector<2x1xf32> to vector<2x2048xf32>
    %9 = arith.mulf %1, %8 : vector<2x2048xf32>
    %c0_2 = arith.constant 0 : index
    %c0_3 = arith.constant 0 : index
    %10 = vector.load %arg2[%c0_2, %c0_3] : memref<2x2048xf32, #tpu.memory_space<vmem>>, vector<2x2048xf32>
    tpu.vector_store %arg2[%c0_2, %c0_3], %9 {strides = array<i32>} : memref<2x2048xf32, #tpu.memory_space<vmem>>, vector<2x2048xf32>,
    return
  }
  func.func @transform_0(%arg0: i32) -> (i32, i32) {
    %c0_i32 = arith.constant 0 : i32
    %c0_i32_0 = arith.constant 0 : i32
    %c0_i32_1 = arith.constant 0 : i32
    return %c0_i32, %c0_i32_0 : i32, i32
  }
  func.func @transform_1(%arg0: i32) -> (i32, i32) {
    %c0_i32 = arith.constant 0 : i32
    %c0_i32_0 = arith.constant 0 : i32
    %c0_i32_1 = arith.constant 0 : i32
    return %c0_i32, %c0_i32_0 : i32, i32
  }
}

module attributes {stable_mosaic.version = 11 : i64} {
  func.func @_l2norm_kernel(%arg0: i32, %arg1: memref<2x512xbf16, #tpu.memory_space<vmem>>, %arg2: memref<2x512xf32, #tpu.memory_space<vmem>>) attributes {dimension_semantics = [#tpu.dimension_semantics<arbitrary>], iteration_bounds = array<i64: 1>, scalar_prefetch = 0 : i64, scratch_operands = 0 : i64, tpu.core_type = #tpu.core_type<tc>, window_params = [{pipeline_mode = #tpu.pipeline_mode<synchronous>, transform_indices = @transform_0, window_bounds = array<i64: 2, 512>}, {pipeline_mode = #tpu.pipeline_mode<synchronous>, transform_indices = @transform_1, window_bounds = array<i64: 2, 512>}]} {
    %c0 = arith.constant 0 : index
    %c0_0 = arith.constant 0 : index
    %0 = vector.load %arg1[%c0, %c0_0] : memref<2x512xbf16, #tpu.memory_space<vmem>>, vector<2x512xbf16>
    %1 = arith.extf %0 : vector<2x512xbf16> to vector<2x512xf32>
    %2 = arith.mulf %1, %1 : vector<2x512xf32>
    %cst = arith.constant dense<0.000000e+00> : vector<2xf32>
    %3 = vector.multi_reduction <add>, %2, %cst [1] : vector<2x512xf32> to vector<2xf32>
    %4 = vector.shape_cast %3 : vector<2xf32> to vector<2x1xf32>
    %cst_1 = arith.constant 1.000000e-24 : f32
    %5 = vector.broadcast %cst_1 : f32 to vector<2x1xf32>
    %6 = arith.addf %4, %5 : vector<2x1xf32>
    %7 = math.rsqrt %6 : vector<2x1xf32>
    %8 = vector.broadcast %7 : vector<2x1xf32> to vector<2x512xf32>
    %9 = arith.mulf %1, %8 : vector<2x512xf32>
    %c0_2 = arith.constant 0 : index
    %c0_3 = arith.constant 0 : index
    %10 = vector.load %arg2[%c0_2, %c0_3] : memref<2x512xf32, #tpu.memory_space<vmem>>, vector<2x512xf32>
    tpu.vector_store %arg2[%c0_2, %c0_3], %9 {strides = array<i32>} : memref<2x512xf32, #tpu.memory_space<vmem>>, vector<2x512xf32>,
    return
  }
  func.func @transform_0(%arg0: i32) -> (i32, i32) {
    %c0_i32 = arith.constant 0 : i32
    %c0_i32_0 = arith.constant 0 : i32
    %c0_i32_1 = arith.constant 0 : i32
    return %c0_i32, %c0_i32_0 : i32, i32
  }
  func.func @transform_1(%arg0: i32) -> (i32, i32) {
    %c0_i32 = arith.constant 0 : i32
    %c0_i32_0 = arith.constant 0 : i32
    %c0_i32_1 = arith.constant 0 : i32
    return %c0_i32, %c0_i32_0 : i32, i32
  }
}

module attributes {stable_mosaic.version = 11 : i64} {
  func.func @_matmul_kernel(%arg0: i32, %arg1: i32, %arg2: memref<8x2048xbf16, #tpu.memory_space<vmem>>, %arg3: memref<2048x256xbf16, #tpu.memory_space<vmem>>, %arg4: memref<1x256xf32, #tpu.memory_space<vmem>>, %arg5: memref<8x256xbf16, #tpu.memory_space<vmem>>) attributes {dimension_semantics = [#tpu.dimension_semantics<parallel>, #tpu.dimension_semantics<parallel>], iteration_bounds = array<i64: 1, 2>, scalar_prefetch = 0 : i64, scratch_operands = 0 : i64, tpu.core_type = #tpu.core_type<tc>, window_params = [{transform_indices = @transform_0, window_bounds = array<i64: 8, 2048>}, {transform_indices = @transform_1, window_bounds = array<i64: 2048, 256>}, {transform_indices = @transform_2, window_bounds = array<i64: 1, 256>}, {transform_indices = @transform_3, window_bounds = array<i64: 8, 256>}]} {
    %c0 = arith.constant 0 : index
    %c0_0 = arith.constant 0 : index
    %0 = vector.load %arg2[%c0, %c0_0] : memref<8x2048xbf16, #tpu.memory_space<vmem>>, vector<8x2048xbf16>
    %c0_1 = arith.constant 0 : index
    %c0_2 = arith.constant 0 : index
    %1 = vector.load %arg3[%c0_1, %c0_2] : memref<2048x256xbf16, #tpu.memory_space<vmem>>, vector<2048x256xbf16>
    %cst = arith.constant dense<0.000000e+00> : vector<8x256xf32>
    %2 = tpu.matmul %0, %1, %cst {dimension_numbers = #tpu.dot_dimension_numbers<[1], [0], [0], [1], [0, 0, 1, 1], [], []>} : vector<8x2048xbf16>, vector<2048x256xbf16>, vector<8x256xf32> -> vector<8x256xf32>
    %c0_3 = arith.constant 0 : index
    %c0_4 = arith.constant 0 : index
    %3 = vector.load %arg4[%c0_3, %c0_4] : memref<1x256xf32, #tpu.memory_space<vmem>>, vector<1x256xf32>
    %4 = vector.broadcast %3 : vector<1x256xf32> to vector<8x256xf32>
    %5 = arith.addf %2, %4 : vector<8x256xf32>
    %6 = arith.truncf %5 : vector<8x256xf32> to vector<8x256xbf16>
    %c0_5 = arith.constant 0 : index
    %c0_6 = arith.constant 0 : index
    %7 = vector.load %arg5[%c0_5, %c0_6] : memref<8x256xbf16, #tpu.memory_space<vmem>>, vector<8x256xbf16>
    tpu.vector_store %arg5[%c0_5, %c0_6], %6 {strides = array<i32>} : memref<8x256xbf16, #tpu.memory_space<vmem>>, vector<8x256xbf16>,
    return
  }
  func.func @transform_0(%arg0: i32, %arg1: i32) -> (i32, i32) {
    %c0_i32 = arith.constant 0 : i32
    %c0_i32_0 = arith.constant 0 : i32
    return %arg0, %c0_i32 : i32, i32
  }
  func.func @transform_1(%arg0: i32, %arg1: i32) -> (i32, i32) {
    %c0_i32 = arith.constant 0 : i32
    %c0_i32_0 = arith.constant 0 : i32
    return %c0_i32, %arg1 : i32, i32
  }
  func.func @transform_2(%arg0: i32, %arg1: i32) -> (i32, i32) {
    %c0_i32 = arith.constant 0 : i32
    %c0_i32_0 = arith.constant 0 : i32
    return %c0_i32, %arg1 : i32, i32
  }
  func.func @transform_3(%arg0: i32, %arg1: i32) -> (i32, i32) {
    %c0_i32 = arith.constant 0 : i32
    return %arg0, %arg1 : i32, i32
  }
}

module attributes {stable_mosaic.version = 11 : i64} {
  func.func @_matmul_kernel(%arg0: i32, %arg1: i32, %arg2: memref<8x512xbf16, #tpu.memory_space<vmem>>, %arg3: memref<512x128xbf16, #tpu.memory_space<vmem>>, %arg4: memref<1x128xf32, #tpu.memory_space<vmem>>, %arg5: memref<8x128xf32, #tpu.memory_space<vmem>>) attributes {dimension_semantics = [#tpu.dimension_semantics<parallel>, #tpu.dimension_semantics<parallel>], iteration_bounds = array<i64: 1, 1>, scalar_prefetch = 0 : i64, scratch_operands = 0 : i64, tpu.core_type = #tpu.core_type<tc>, window_params = [{transform_indices = @transform_0, window_bounds = array<i64: 8, 512>}, {transform_indices = @transform_1, window_bounds = array<i64: 512, 128>}, {transform_indices = @transform_2, window_bounds = array<i64: 1, 128>}, {transform_indices = @transform_3, window_bounds = array<i64: 8, 128>}]} {
    %c0 = arith.constant 0 : index
    %c0_0 = arith.constant 0 : index
    %0 = vector.load %arg2[%c0, %c0_0] : memref<8x512xbf16, #tpu.memory_space<vmem>>, vector<8x512xbf16>
    %c0_1 = arith.constant 0 : index
    %c0_2 = arith.constant 0 : index
    %1 = vector.load %arg3[%c0_1, %c0_2] : memref<512x128xbf16, #tpu.memory_space<vmem>>, vector<512x128xbf16>
    %cst = arith.constant dense<0.000000e+00> : vector<8x128xf32>
    %2 = tpu.matmul %0, %1, %cst {dimension_numbers = #tpu.dot_dimension_numbers<[1], [0], [0], [1], [0, 0, 1, 1], [], []>} : vector<8x512xbf16>, vector<512x128xbf16>, vector<8x128xf32> -> vector<8x128xf32>
    %c0_3 = arith.constant 0 : index
    %c0_4 = arith.constant 0 : index
    %3 = vector.load %arg4[%c0_3, %c0_4] : memref<1x128xf32, #tpu.memory_space<vmem>>, vector<1x128xf32>
    %4 = vector.broadcast %3 : vector<1x128xf32> to vector<8x128xf32>
    %5 = arith.addf %2, %4 : vector<8x128xf32>
    %c0_5 = arith.constant 0 : index
    %c0_6 = arith.constant 0 : index
    %6 = vector.load %arg5[%c0_5, %c0_6] : memref<8x128xf32, #tpu.memory_space<vmem>>, vector<8x128xf32>
    tpu.vector_store %arg5[%c0_5, %c0_6], %5 {strides = array<i32>} : memref<8x128xf32, #tpu.memory_space<vmem>>, vector<8x128xf32>,
    return
  }
  func.func @transform_0(%arg0: i32, %arg1: i32) -> (i32, i32) {
    %c0_i32 = arith.constant 0 : i32
    %c0_i32_0 = arith.constant 0 : i32
    return %arg0, %c0_i32 : i32, i32
  }
  func.func @transform_1(%arg0: i32, %arg1: i32) -> (i32, i32) {
    %c0_i32 = arith.constant 0 : i32
    %c0_i32_0 = arith.constant 0 : i32
    return %c0_i32, %arg1 : i32, i32
  }
  func.func @transform_2(%arg0: i32, %arg1: i32) -> (i32, i32) {
    %c0_i32 = arith.constant 0 : i32
    %c0_i32_0 = arith.constant 0 : i32
    return %c0_i32, %arg1 : i32, i32
  }
  func.func @transform_3(%arg0: i32, %arg1: i32) -> (i32, i32) {
    %c0_i32 = arith.constant 0 : i32
    return %arg0, %arg1 : i32, i32
  }
}

</mosaic_0001>

<bundles_post_ra>
// kernel: forward.22
= control target key start
LH: loop header
LB: loop body
LE: loop exit
PB: predicated region body
PF: predicated region fallthrough
CT: control target
= control target key end

     0   :  { %s2152_s12 = smov 0   ;;  %s2154_s13 = smov 0   ;;  %s2438_s0 = inlined_call_operand.vmem [shape: bf16[2048,256], index: 0, kind: input, shape index: {}]   ;;  %s2439_s1 = inlined_call_operand.vmem [shape: bf16[256,128], index: 1, kind: input, shape index: {}]   ;;  %s2440_s2 = inlined_call_operand.vmem [shape: f32[1,128], index: 2, kind: input, shape index: {}]   ;;  %s2441_s3 = inlined_call_operand.vmem [shape: bf16[2048,128], index: 3, kind: output, shape index: {}]  }
   0x1   :  { %s2156_s14 = smov 0  }
   0x2 LB: > { %s25_s15 = sadd.s32 1, %s2125_s13  ;;  %p1529_p0 = scmp.ge.s32.totalorder %s2129_s14, 1  ;;  %s2129_s14 = sphi %s2156_s14, %s13_s14   ;;  %s2125_s13 = sphi %s2154_s13, %s2443_s13   ;;  %s2121_s12 = sphi %s2152_s12, %s2442_s12  }
   0x3   : > { %p27_p1 = scmp.ge.s32.totalorder %s25_s15, 4  ;;  %p170_p2 = scmp.lt.s32.totalorder %s2129_s14, 5 }
   0x5   : > { %s2445_s15 = smov (%p27_p1, %s25_s15), 0  ;;  %p171_p3 = pnand %p1529_p0, %p170_p2 }
   0x6   : > { %s1530_s18 = sshll.u32 (!%p171_p3), %s2121_s12, 6 }
   0x7   : > { %174 = sbr.rel (%p171_p3) target bundleno = 401 (0x191), region = 32  ;;  %p206_p4 = scmp.lt.s32.totalorder (!%p171_p3), %s1530_s18, 255 }
   0xc   : > { %v1995_v0 = vld [vmem:[%s2439_s1 + $0x38] sm:$0xff]   ;;  %v2131_v1 = vmov 0   ;;  %v1996_v2 = vld [vmem:[%s2439_s1 + $0x30] sm:$0xff]   ;;  %v1997_v3 = vld [vmem:[%s2439_s1 + $0x28] sm:$0xff]   ;;  %s2447_s18 = smov (!%p206_p4, %s1530_s18), 255 }
   0xd   : > { %748 = vmatprep.subr.bf16.mxu0 %v2131_v1  ;;  %1938 = vmatprep.subr.bf16.mxu1 %v2131_v1  ;;  %v1998_v4 = vld [vmem:[%s2439_s1 + $0x20] sm:$0xff]   ;;  %s1682_s25 = sshll.u32 %s2447_s18, 3  ;;  %v1999_v5 = vld [vmem:[%s2439_s1 + $0x18] sm:$0xff]   ;;  %v2000_v7 = vld [vmem:[%s2439_s1 + $0x10] sm:$0xff]   ;;  %s1534_s6 = sshll.u32 %s2447_s18, 2 }
   0xe   : > { %749 = vmatpush1.bf16.msra.mxu0 %v1995_v0  ;;  %1954 = vmatpush1.bf16.msra.mxu1 %v1995_v0  ;;  %s2199_s30 = scalar_lea.vmem %s2438_s0, %s1682_s25  ;;  %v2001_v9 = vld [vmem:[%s2439_s1 + $0x8] sm:$0xff]   ;;  %v2002_v10 = vld [vmem:[%s2439_s1] sm:$0xff]   ;;  %v2003_v11 = vld [vmem:[%s2439_s1 + $0x78] sm:$0xff]   ;;  %s2335_s8 = scalar_lea.vmem %s2441_s3, %s1534_s6 }
   0xf   : > { %750 = vmatprep.subr.bf16.mxu0 %v2131_v1  ;;  %1939 = vmatprep.subr.bf16.mxu1 %v2131_v1  ;;  %v2013_v6 = vld [vmem:[%s2199_s30 + $0x4] ss:$8 sps:$4 sm:$0xff]   ;;  %v2004_v12 = vld [vmem:[%s2439_s1 + $0x70] sm:$0xff]   ;;  %v2007_v15 = vld [vmem:[%s2439_s1 + $0x58] sm:$0xff]  }
  0x10   : > { %v2016_v8 = vld [vmem:[%s2199_s30 + $0x104] ss:$8 sps:$4 sm:$0xff]   ;;  %780 = vmatprep.mubr.bf16.mxu0 %v2013_v6  ;;  %v2008_v16 = vld [vmem:[%s2439_s1 + $0x50] sm:$0xff]   ;;  %v2011_v19 = vld [vmem:[%s2199_s30] ss:$8 sps:$4 sm:$0xff]  }
  0x11   : > { %908 = vmatprep.mubr.bf16.mxu1 %v2016_v8  ;;  %v2005_v13 = vld [vmem:[%s2439_s1 + $0x68] sm:$0xff]   ;;  %v2006_v14 = vld [vmem:[%s2439_s1 + $0x60] sm:$0xff]   ;;  %v2017_v21 = vld [vmem:[%s2199_s30 + $0x14] ss:$8 sps:$4 sm:$0xff]  }
  0x12   : > { %751 = vmatpush1.bf16.msra.mxu0 %v1996_v2  ;;  %1955 = vmatpush1.bf16.msra.mxu1 %v1996_v2  ;;  %v2009_v17 = vld [vmem:[%s2439_s1 + $0x48] sm:$0xff]   ;;  %v2010_v18 = vld [vmem:[%s2439_s1 + $0x40] sm:$0xff]   ;;  %v2019_v22 = vld [vmem:[%s2199_s30 + $0x114] ss:$8 sps:$4 sm:$0xff]  }
  0x13   : > { %752 = vmatprep.subr.bf16.mxu0 %v2131_v1  ;;  %1940 = vmatprep.subr.bf16.mxu1 %v2131_v1  ;;  %v2014_v20 = vld [vmem:[%s2199_s30 + $0x100] ss:$8 sps:$4 sm:$0xff]   ;;  %v2021_v23 = vld [vmem:[%s2199_s30 + $0x10] ss:$8 sps:$4 sm:$0xff]   ;;  %v2023_v25 = vld [vmem:[%s2199_s30 + $0x24] ss:$8 sps:$4 sm:$0xff]  }
  0x14   : > { %v2022_v24 = vld [vmem:[%s2199_s30 + $0x110] ss:$8 sps:$4 sm:$0xff]   ;;  %v2025_v26 = vld [vmem:[%s2199_s30 + $0x124] ss:$8 sps:$4 sm:$0xff]   ;;  %v2027_v27 = vld [vmem:[%s2199_s30 + $0x20] ss:$8 sps:$4 sm:$0xff]  }
  0x15   : > { %v2028_v28 = vld [vmem:[%s2199_s30 + $0x120] ss:$8 sps:$4 sm:$0xff]   ;;  %v2029_v29 = vld [vmem:[%s2199_s30 + $0x34] ss:$8 sps:$4 sm:$0xff]   ;;  %v2033_v31 = vld [vmem:[%s2199_s30 + $0x30] ss:$8 sps:$4 sm:$0xff]  }
  0x16   : > { %753 = vmatpush1.bf16.msra.mxu0 %v1997_v3  ;;  %1956 = vmatpush1.bf16.msra.mxu1 %v1997_v3  ;;  %v2031_v30 = vld [vmem:[%s2199_s30 + $0x134] ss:$8 sps:$4 sm:$0xff]   ;;  %v2034_v32 = vld [vmem:[%s2199_s30 + $0x130] ss:$8 sps:$4 sm:$0xff]   ;;  %v2035_v33 = vld [vmem:[%s2199_s30 + $0x44] ss:$8 sps:$4 sm:$0xff]  }
  0x17   : > { %754 = vmatprep.subr.bf16.mxu0 %v2131_v1  ;;  %1941 = vmatprep.subr.bf16.mxu1 %v2131_v1  ;;  %v2037_v34 = vld [vmem:[%s2199_s30 + $0x144] ss:$8 sps:$4 sm:$0xff]   ;;  %v2039_v35 = vld [vmem:[%s2199_s30 + $0x40] ss:$8 sps:$4 sm:$0xff]   ;;  %v2041_v37 = vld [vmem:[%s2199_s30 + $0x54] ss:$8 sps:$4 sm:$0xff]  }
  0x18   : > { %v2040_v36 = vld [vmem:[%s2199_s30 + $0x140] ss:$8 sps:$4 sm:$0xff]   ;;  %v2043_v38 = vld [vmem:[%s2199_s30 + $0x154] ss:$8 sps:$4 sm:$0xff]   ;;  %v2045_v39 = vld [vmem:[%s2199_s30 + $0x50] ss:$8 sps:$4 sm:$0xff]  }
  0x19   : > { %v2046_v40 = vld [vmem:[%s2199_s30 + $0x150] ss:$8 sps:$4 sm:$0xff]   ;;  %v2047_v41 = vld [vmem:[%s2199_s30 + $0x64] ss:$8 sps:$4 sm:$0xff]   ;;  %v2051_v43 = vld [vmem:[%s2199_s30 + $0x60] ss:$8 sps:$4 sm:$0xff]  }
  0x1a   : > { %755 = vmatpush1.bf16.msra.mxu0 %v1998_v4  ;;  %1957 = vmatpush1.bf16.msra.mxu1 %v1998_v4  ;;  %v2049_v42 = vld [vmem:[%s2199_s30 + $0x164] ss:$8 sps:$4 sm:$0xff]   ;;  %v2052_v44 = vld [vmem:[%s2199_s30 + $0x160] ss:$8 sps:$4 sm:$0xff]   ;;  %v2053_v45 = vld [vmem:[%s2199_s30 + $0x74] ss:$8 sps:$4 sm:$0xff]  }
  0x1b   : > { %756 = vmatprep.subr.bf16.mxu0 %v2131_v1  ;;  %1942 = vmatprep.subr.bf16.mxu1 %v2131_v1  ;;  %v2055_v46 = vld [vmem:[%s2199_s30 + $0x174] ss:$8 sps:$4 sm:$0xff]   ;;  %v2057_v47 = vld [vmem:[%s2199_s30 + $0x70] ss:$8 sps:$4 sm:$0xff]   ;;  %v2059_v49 = vld [vmem:[%s2199_s30 + $0x84] ss:$8 sps:$4 sm:$0xff]  }
  0x1c   : > { %v2058_v48 = vld [vmem:[%s2199_s30 + $0x170] ss:$8 sps:$4 sm:$0xff]   ;;  %v2061_v50 = vld [vmem:[%s2199_s30 + $0x184] ss:$8 sps:$4 sm:$0xff]   ;;  %v2063_v51 = vld [vmem:[%s2199_s30 + $0x80] ss:$8 sps:$4 sm:$0xff]  }
  0x1d   : > { %v2064_v52 = vld [vmem:[%s2199_s30 + $0x180] ss:$8 sps:$4 sm:$0xff]   ;;  %v2065_v53 = vld [vmem:[%s2199_s30 + $0x94] ss:$8 sps:$4 sm:$0xff]   ;;  %v2069_v55 = vld [vmem:[%s2199_s30 + $0x90] ss:$8 sps:$4 sm:$0xff]  }
  0x1e   : > { %757 = vmatpush1.bf16.msra.mxu0 %v1999_v5  ;;  %1958 = vmatpush1.bf16.msra.mxu1 %v1999_v5  ;;  %v2067_v54 = vld [vmem:[%s2199_s30 + $0x194] ss:$8 sps:$4 sm:$0xff]   ;;  %v2070_v56 = vld [vmem:[%s2199_s30 + $0x190] ss:$8 sps:$4 sm:$0xff]   ;;  %v2071_v57 = vld [vmem:[%s2199_s30 + $0xa4] ss:$8 sps:$4 sm:$0xff]  }
  0x1f   : > { %758 = vmatprep.subr.bf16.mxu0 %v2131_v1  ;;  %1943 = vmatprep.subr.bf16.mxu1 %v2131_v1  ;;  %v2073_v58 = vld [vmem:[%s2199_s30 + $0x1a4] ss:$8 sps:$4 sm:$0xff]   ;;  %v2075_v59 = vld [vmem:[%s2199_s30 + $0xa0] ss:$8 sps:$4 sm:$0xff]   ;;  %v2077_v61 = vld [vmem:[%s2199_s30 + $0xb4] ss:$8 sps:$4 sm:$0xff]  }
  0x20   : > { %v2076_v60 = vld [vmem:[%s2199_s30 + $0x1a0] ss:$8 sps:$4 sm:$0xff]   ;;  %v2079_v62 = vld [vmem:[%s2199_s30 + $0x1b4] ss:$8 sps:$4 sm:$0xff]   ;;  %v2081_v63 = vld [vmem:[%s2199_s30 + $0xb0] ss:$8 sps:$4 sm:$0xff]  }
  0x21   : > { %v2082_v0 = vld [vmem:[%s2199_s30 + $0x1b0] ss:$8 sps:$4 sm:$0xff]   ;;  %v2085_v2 = vld [vmem:[%s2199_s30 + $0x1c4] ss:$8 sps:$4 sm:$0xff]   ;;  %v2087_v3 = vld [vmem:[%s2199_s30 + $0xc0] ss:$8 sps:$4 sm:$0xff]  }
  0x22   : > { %759 = vmatpush1.bf16.msra.mxu0 %v2000_v7  ;;  %1959 = vmatpush1.bf16.msra.mxu1 %v2000_v7  ;;  %v2088_v4 = vld [vmem:[%s2199_s30 + $0x1c0] ss:$8 sps:$4 sm:$0xff]   ;;  %v2089_v5 = vld [vmem:[%s2199_s30 + $0xd4] ss:$8 sps:$4 sm:$0xff]   ;;  %v2093_v7 = vld [vmem:[%s2199_s30 + $0xd0] ss:$8 sps:$4 sm:$0xff]  }
  0x23   : > { %760 = vmatprep.subr.bf16.mxu0 %v2131_v1  ;;  %1944 = vmatprep.subr.bf16.mxu1 %v2131_v1  ;;  %v2091_v6 = vld [vmem:[%s2199_s30 + $0x1d4] ss:$8 sps:$4 sm:$0xff]   ;;  %v2094_v8 = vld [vmem:[%s2199_s30 + $0x1d0] ss:$8 sps:$4 sm:$0xff]  }
  0x26   : > { %761 = vmatpush1.bf16.msra.mxu0 %v2001_v9  ;;  %1960 = vmatpush1.bf16.msra.mxu1 %v2001_v9  ;;  %v2095_v9 = vld [vmem:[%s2199_s30 + $0xe4] ss:$8 sps:$4 sm:$0xff]  }
  0x27   : > { %762 = vmatprep.subr.bf16.mxu0 %v2131_v1  ;;  %1945 = vmatprep.subr.bf16.mxu1 %v2131_v1 }
  0x2a   : > { %763 = vmatpush1.bf16.msra.mxu0 %v2002_v10  ;;  %1961 = vmatpush1.bf16.msra.mxu1 %v2002_v10  ;;  %v2097_v10 = vld [vmem:[%s2199_s30 + $0x1e4] ss:$8 sps:$4 sm:$0xff]  }
  0x2b   : > { %764 = vmatprep.subr.bf16.mxu0 %v2131_v1  ;;  %1946 = vmatprep.subr.bf16.mxu1 %v2131_v1 }
  0x2e   : > { %765 = vmatpush2.bf16.msra.mxu0 %v2003_v11  ;;  %1962 = vmatpush2.bf16.msra.mxu1 %v2003_v11  ;;  %v2099_v11 = vld [vmem:[%s2199_s30 + $0xe0] ss:$8 sps:$4 sm:$0xff]  }
  0x2f   : > { %766 = vmatprep.subr.bf16.mxu0 %v2131_v1  ;;  %1947 = vmatprep.subr.bf16.mxu1 %v2131_v1 }
  0x32   : > { %767 = vmatpush2.bf16.msra.mxu0 %v2004_v12  ;;  %1963 = vmatpush2.bf16.msra.mxu1 %v2004_v12  ;;  %v2100_v12 = vld [vmem:[%s2199_s30 + $0x1e0] ss:$8 sps:$4 sm:$0xff]  }
  0x33   : > { %768 = vmatprep.subr.bf16.mxu0 %v2131_v1  ;;  %1948 = vmatprep.subr.bf16.mxu1 %v2131_v1 }
  0x36   : > { %769 = vmatpush2.bf16.msra.mxu0 %v2005_v13  ;;  %1964 = vmatpush2.bf16.msra.mxu1 %v2005_v13  ;;  %v2101_v13 = vld [vmem:[%s2199_s30 + $0xf4] ss:$8 sps:$4 sm:$0xff]  }
  0x37   : > { %770 = vmatprep.subr.bf16.mxu0 %v2131_v1  ;;  %1949 = vmatprep.subr.bf16.mxu1 %v2131_v1 }
  0x3a   : > { %771 = vmatpush2.bf16.msra.mxu0 %v2006_v14  ;;  %1965 = vmatpush2.bf16.msra.mxu1 %v2006_v14  ;;  %v2103_v14 = vld [vmem:[%s2199_s30 + $0x1f4] ss:$8 sps:$4 sm:$0xff]  }
  0x3b   : > { %772 = vmatprep.subr.bf16.mxu0 %v2131_v1  ;;  %1950 = vmatprep.subr.bf16.mxu1 %v2131_v1 }
  0x3e   : > { %773 = vmatpush2.bf16.msra.mxu0 %v2007_v15  ;;  %1966 = vmatpush2.bf16.msra.mxu1 %v2007_v15  ;;  %v2105_v15 = vld [vmem:[%s2199_s30 + $0xf0] ss:$8 sps:$4 sm:$0xff]  }
  0x3f   : > { %774 = vmatprep.subr.bf16.mxu0 %v2131_v1  ;;  %1951 = vmatprep.subr.bf16.mxu1 %v2131_v1 }
  0x42   : > { %775 = vmatpush2.bf16.msra.mxu0 %v2008_v16  ;;  %1967 = vmatpush2.bf16.msra.mxu1 %v2008_v16  ;;  %v2106_v16 = vld [vmem:[%s2199_s30 + $0x1f0] ss:$8 sps:$4 sm:$0xff]  }
  0x43   : > { %776 = vmatprep.subr.bf16.mxu0 %v2131_v1  ;;  %1952 = vmatprep.subr.bf16.mxu1 %v2131_v1 }
  0x46   : > { %777 = vmatpush2.bf16.msra.mxu0 %v2009_v17  ;;  %1968 = vmatpush2.bf16.msra.mxu1 %v2009_v17  ;;  %v2325_v17 = vld [vmem:[%s2440_s2] ss:$0 sm:$0xff] }
  0x47   : > { %778 = vmatprep.subr.bf16.mxu0 %v2131_v1  ;;  %1953 = vmatprep.subr.bf16.mxu1 %v2131_v1  ;;  %v2083_v1 = vld [vmem:[%s2199_s30 + $0xc4] ss:$8 sps:$4 sm:$0xff]  }
  0x4a   : > { %779 = vmatpush2.bf16.msra.mxu0 %v2010_v18  ;;  %1969 = vmatpush2.bf16.msra.mxu1 %v2010_v18 }
  0x4d   : > { %781 = vmatmul.mubr.bf16.vlgmr.msra.gmra.mxu0 %v2011_v19  ;;  %909 = vmatmul.mubr.bf16.vlgmr.msra.gmra.mxu1 %v2014_v20 }
  0x4e   : > { %788 = vmatprep.mubr.bf16.mxu0 %v2017_v21  ;;  %916 = vmatprep.mubr.bf16.mxu1 %v2019_v22 }
  0x55   : > { %789 = vmatmul.mubr.bf16.gmra.mxu0 %v2021_v23  ;;  %917 = vmatmul.mubr.bf16.gmra.mxu1 %v2022_v24 }
  0x56   : > { %796 = vmatprep.mubr.bf16.mxu0 %v2023_v25  ;;  %924 = vmatprep.mubr.bf16.mxu1 %v2025_v26 }
  0x5d   : > { %797 = vmatmul.mubr.bf16.gmra.mxu0 %v2027_v27  ;;  %925 = vmatmul.mubr.bf16.gmra.mxu1 %v2028_v28 }
  0x5e   : > { %804 = vmatprep.mubr.bf16.mxu0 %v2029_v29  ;;  %932 = vmatprep.mubr.bf16.mxu1 %v2031_v30 }
  0x65   : > { %805 = vmatmul.mubr.bf16.gmra.mxu0 %v2033_v31  ;;  %933 = vmatmul.mubr.bf16.gmra.mxu1 %v2034_v32 }
  0x66   : > { %812 = vmatprep.mubr.bf16.mxu0 %v2035_v33  ;;  %940 = vmatprep.mubr.bf16.mxu1 %v2037_v34 }
  0x6d   : > { %813 = vmatmul.mubr.bf16.gmra.mxu0 %v2039_v35  ;;  %941 = vmatmul.mubr.bf16.gmra.mxu1 %v2040_v36 }
  0x6e   : > { %820 = vmatprep.mubr.bf16.mxu0 %v2041_v37  ;;  %948 = vmatprep.mubr.bf16.mxu1 %v2043_v38 }
  0x75   : > { %821 = vmatmul.mubr.bf16.gmra.mxu0 %v2045_v39  ;;  %949 = vmatmul.mubr.bf16.gmra.mxu1 %v2046_v40 }
  0x76   : > { %828 = vmatprep.mubr.bf16.mxu0 %v2047_v41  ;;  %956 = vmatprep.mubr.bf16.mxu1 %v2049_v42 }
  0x7d   : > { %829 = vmatmul.mubr.bf16.gmra.mxu0 %v2051_v43  ;;  %957 = vmatmul.mubr.bf16.gmra.mxu1 %v2052_v44 }
  0x7e   : > { %836 = vmatprep.mubr.bf16.mxu0 %v2053_v45  ;;  %964 = vmatprep.mubr.bf16.mxu1 %v2055_v46 }
  0x85   : > { %837 = vmatmul.mubr.bf16.gmra.mxu0 %v2057_v47  ;;  %965 = vmatmul.mubr.bf16.gmra.mxu1 %v2058_v48 }
  0x86   : > { %844 = vmatprep.mubr.bf16.mxu0 %v2059_v49  ;;  %972 = vmatprep.mubr.bf16.mxu1 %v2061_v50 }
  0x8d   : > { %845 = vmatmul.mubr.bf16.gmra.mxu0 %v2063_v51  ;;  %973 = vmatmul.mubr.bf16.gmra.mxu1 %v2064_v52 }
  0x8e   : > { %852 = vmatprep.mubr.bf16.mxu0 %v2065_v53  ;;  %980 = vmatprep.mubr.bf16.mxu1 %v2067_v54 }
  0x95   : > { %853 = vmatmul.mubr.bf16.gmra.mxu0 %v2069_v55  ;;  %981 = vmatmul.mubr.bf16.gmra.mxu1 %v2070_v56 }
  0x96   : > { %860 = vmatprep.mubr.bf16.mxu0 %v2071_v57  ;;  %988 = vmatprep.mubr.bf16.mxu1 %v2073_v58 }
  0x9d   : > { %861 = vmatmul.mubr.bf16.gmra.mxu0 %v2075_v59  ;;  %989 = vmatmul.mubr.bf16.gmra.mxu1 %v2076_v60 }
  0x9e   : > { %868 = vmatprep.mubr.bf16.mxu0 %v2077_v61  ;;  %996 = vmatprep.mubr.bf16.mxu1 %v2079_v62 }
  0xa5   : > { %869 = vmatmul.mubr.bf16.gmra.mxu0 %v2081_v63  ;;  %997 = vmatmul.mubr.bf16.gmra.mxu1 %v2082_v0 }
  0xa6   : > { %876 = vmatprep.mubr.bf16.mxu0 %v2083_v1  ;;  %1004 = vmatprep.mubr.bf16.mxu1 %v2085_v2 }
  0xad   : > { %877 = vmatmul.mubr.bf16.gmra.mxu0 %v2087_v3  ;;  %1005 = vmatmul.mubr.bf16.gmra.mxu1 %v2088_v4 }
  0xae   : > { %884 = vmatprep.mubr.bf16.mxu0 %v2089_v5  ;;  %1012 = vmatprep.mubr.bf16.mxu1 %v2091_v6 }
  0xb5   : > { %885 = vmatmul.mubr.bf16.gmra.mxu0 %v2093_v7  ;;  %1013 = vmatmul.mubr.bf16.gmra.mxu1 %v2094_v8 }
  0xb6   : > { %892 = vmatprep.mubr.bf16.mxu0 %v2095_v9  ;;  %1020 = vmatprep.mubr.bf16.mxu1 %v2097_v10 }
  0xbd   : > { %893 = vmatmul.mubr.bf16.gmra.mxu0 %v2099_v11  ;;  %1021 = vmatmul.mubr.bf16.gmra.mxu1 %v2100_v12 }
  0xbe   : > { %900 = vmatprep.mubr.bf16.mxu0 %v2101_v13  ;;  %1028 = vmatprep.mubr.bf16.mxu1 %v2103_v14 }
  0xc5   : > { %901 = vmatmul.mubr.bf16.gmra.mxu0 %v2105_v15  ;;  %1029 = vmatmul.mubr.bf16.gmra.mxu1 %v2106_v16 }
 0x10d   : > { %v782_v18 = vpop.f32.mrf.mxu0  ;;  %v910_v19 = vpop.f32.mrf.mxu1 }
 0x10e   : > { %v783_v22 = vadd.f32 %v2325_v17, %v782_v18  ;;  %v911_v23 = vadd.f32 %v2325_v17, %v910_v19 }
 0x10f   : > { %v784_v20 = vpop.f32.mrf.mxu0  ;;  %v912_v21 = vpop.f32.mrf.mxu1 }
 0x110   : > { %v1037_v30 = vmax.f32 %v783_v22, 0.0  ;;  %v1069_v31 = vmax.f32 %v911_v23, 0.0 }
 0x111   : > { %v785_v24 = vpop.f32.mrf.mxu0  ;;  %v913_v25 = vpop.f32.mrf.mxu1 }
 0x112   : > { %v786_v26 = vadd.f32 %v2325_v17, %v785_v24  ;;  %v914_v27 = vadd.f32 %v2325_v17, %v913_v25 }
 0x113   : > { %v787_v28 = vpop.f32.mrf.mxu0  ;;  %v915_v29 = vpop.f32.mrf.mxu1 }
 0x114   : > { %v1038_v32 = vmax.f32 %v786_v26, 0.0  ;;  %v1070_v33 = vmax.f32 %v914_v27, 0.0 }
 0x115   : > { %v790_v34 = vpop.f32.mrf.mxu0  ;;  %v918_v35 = vpop.f32.mrf.mxu1 }
 0x116   : > { %v1750_v36 = vpack.c.bf16 %v1038_v32, %v1037_v30  ;;  %v1830_v37 = vpack.c.bf16 %v1070_v33, %v1069_v31  ;;  %v791_v40 = vadd.f32 %v2325_v17, %v790_v34  ;;  %v919_v41 = vadd.f32 %v2325_v17, %v918_v35 }
 0x117   : > { %v792_v38 = vpop.f32.mrf.mxu0  ;;  %v920_v39 = vpop.f32.mrf.mxu1 }
 0x118   : > { %1751 = vst [vmem:[%s2335_s8] sm:$0xff] %v1750_v36   ;;  %1922 = vst [vmem:[%s2335_s8 + $0x80] sm:$0xff] %v1830_v37   ;;  %v1039_v48 = vmax.f32 %v791_v40, 0.0  ;;  %v1071_v49 = vmax.f32 %v919_v41, 0.0 }
 0x119   : > { %v793_v42 = vpop.f32.mrf.mxu0  ;;  %v921_v43 = vpop.f32.mrf.mxu1 }
 0x11a   : > { %v794_v44 = vadd.f32 %v2325_v17, %v793_v42  ;;  %v922_v45 = vadd.f32 %v2325_v17, %v921_v43 }
 0x11b   : > { %v795_v46 = vpop.f32.mrf.mxu0  ;;  %v923_v47 = vpop.f32.mrf.mxu1 }
 0x11c   : > { %v1040_v50 = vmax.f32 %v794_v44, 0.0  ;;  %v1072_v51 = vmax.f32 %v922_v45, 0.0 }
 0x11d   : > { %v798_v52 = vpop.f32.mrf.mxu0  ;;  %v926_v53 = vpop.f32.mrf.mxu1 }
 0x11e   : > { %v1755_v54 = vpack.c.bf16 %v1040_v50, %v1039_v48  ;;  %v1835_v55 = vpack.c.bf16 %v1072_v51, %v1071_v49  ;;  %v799_v58 = vadd.f32 %v2325_v17, %v798_v52  ;;  %v927_v59 = vadd.f32 %v2325_v17, %v926_v53 }
 0x11f   : > { %v800_v56 = vpop.f32.mrf.mxu0  ;;  %v928_v57 = vpop.f32.mrf.mxu1 }
 0x120   : > { %1907 = vst [vmem:[%s2335_s8 + $0x8] sm:$0xff] %v1755_v54   ;;  %1923 = vst [vmem:[%s2335_s8 + $0x88] sm:$0xff] %v1835_v55   ;;  %v1041_v2 = vmax.f32 %v799_v58, 0.0  ;;  %v1073_v3 = vmax.f32 %v927_v59, 0.0 }
 0x121   : > { %v801_v60 = vpop.f32.mrf.mxu0  ;;  %v929_v61 = vpop.f32.mrf.mxu1 }
 0x122   : > { %v802_v62 = vadd.f32 %v2325_v17, %v801_v60  ;;  %v930_v63 = vadd.f32 %v2325_v17, %v929_v61 }
 0x123   : > { %v803_v0 = vpop.f32.mrf.mxu0  ;;  %v931_v1 = vpop.f32.mrf.mxu1 }
 0x124   : > { %v1042_v4 = vmax.f32 %v802_v62, 0.0  ;;  %v1074_v5 = vmax.f32 %v930_v63, 0.0 }
 0x125   : > { %v806_v6 = vpop.f32.mrf.mxu0  ;;  %v934_v7 = vpop.f32.mrf.mxu1 }
 0x126   : > { %v1760_v8 = vpack.c.bf16 %v1042_v4, %v1041_v2  ;;  %v1840_v9 = vpack.c.bf16 %v1074_v5, %v1073_v3  ;;  %v807_v12 = vadd.f32 %v2325_v17, %v806_v6  ;;  %v935_v13 = vadd.f32 %v2325_v17, %v934_v7 }
 0x127   : > { %v808_v10 = vpop.f32.mrf.mxu0  ;;  %v936_v11 = vpop.f32.mrf.mxu1 }
 0x128   : > { %1908 = vst [vmem:[%s2335_s8 + $0x10] sm:$0xff] %v1760_v8   ;;  %1924 = vst [vmem:[%s2335_s8 + $0x90] sm:$0xff] %v1840_v9   ;;  %v1043_v21 = vmax.f32 %v807_v12, 0.0  ;;  %v1075_v22 = vmax.f32 %v935_v13, 0.0 }
 0x129   : > { %v809_v14 = vpop.f32.mrf.mxu0  ;;  %v937_v15 = vpop.f32.mrf.mxu1 }
 0x12a   : > { %v810_v16 = vadd.f32 %v2325_v17, %v809_v14  ;;  %v938_v18 = vadd.f32 %v2325_v17, %v937_v15 }
 0x12b   : > { %v811_v19 = vpop.f32.mrf.mxu0  ;;  %v939_v20 = vpop.f32.mrf.mxu1 }
 0x12c   : > { %v1044_v23 = vmax.f32 %v810_v16, 0.0  ;;  %v1076_v24 = vmax.f32 %v938_v18, 0.0 }
 0x12d   : > { %v814_v25 = vpop.f32.mrf.mxu0  ;;  %v942_v26 = vpop.f32.mrf.mxu1 }
 0x12e   : > { %v1765_v27 = vpack.c.bf16 %v1044_v23, %v1043_v21  ;;  %v1845_v28 = vpack.c.bf16 %v1076_v24, %v1075_v22  ;;  %v815_v31 = vadd.f32 %v2325_v17, %v814_v25  ;;  %v943_v32 = vadd.f32 %v2325_v17, %v942_v26 }
 0x12f   : > { %v816_v29 = vpop.f32.mrf.mxu0  ;;  %v944_v30 = vpop.f32.mrf.mxu1 }
 0x130   : > { %1909 = vst [vmem:[%s2335_s8 + $0x18] sm:$0xff] %v1765_v27   ;;  %1925 = vst [vmem:[%s2335_s8 + $0x98] sm:$0xff] %v1845_v28   ;;  %v1045_v39 = vmax.f32 %v815_v31, 0.0  ;;  %v1077_v40 = vmax.f32 %v943_v32, 0.0 }
 0x131   : > { %v817_v33 = vpop.f32.mrf.mxu0  ;;  %v945_v34 = vpop.f32.mrf.mxu1 }
 0x132   : > { %v818_v35 = vadd.f32 %v2325_v17, %v817_v33  ;;  %v946_v36 = vadd.f32 %v2325_v17, %v945_v34 }
 0x133   : > { %v819_v37 = vpop.f32.mrf.mxu0  ;;  %v947_v38 = vpop.f32.mrf.mxu1 }
 0x134   : > { %v1046_v41 = vmax.f32 %v818_v35, 0.0  ;;  %v1078_v42 = vmax.f32 %v946_v36, 0.0 }
 0x135   : > { %v822_v43 = vpop.f32.mrf.mxu0  ;;  %v950_v44 = vpop.f32.mrf.mxu1 }
 0x136   : > { %v1770_v45 = vpack.c.bf16 %v1046_v41, %v1045_v39  ;;  %v1850_v46 = vpack.c.bf16 %v1078_v42, %v1077_v40  ;;  %v823_v49 = vadd.f32 %v2325_v17, %v822_v43  ;;  %v951_v50 = vadd.f32 %v2325_v17, %v950_v44 }
 0x137   : > { %v824_v47 = vpop.f32.mrf.mxu0  ;;  %v952_v48 = vpop.f32.mrf.mxu1 }
 0x138   : > { %1910 = vst [vmem:[%s2335_s8 + $0x20] sm:$0xff] %v1770_v45   ;;  %1926 = vst [vmem:[%s2335_s8 + $0xa0] sm:$0xff] %v1850_v46   ;;  %v1047_v57 = vmax.f32 %v823_v49, 0.0  ;;  %v1079_v58 = vmax.f32 %v951_v50, 0.0 }
 0x139   : > { %v825_v51 = vpop.f32.mrf.mxu0  ;;  %v953_v52 = vpop.f32.mrf.mxu1 }
 0x13a   : > { %v826_v53 = vadd.f32 %v2325_v17, %v825_v51  ;;  %v954_v54 = vadd.f32 %v2325_v17, %v953_v52 }
 0x13b   : > { %v827_v55 = vpop.f32.mrf.mxu0  ;;  %v955_v56 = vpop.f32.mrf.mxu1 }
 0x13c   : > { %v1048_v59 = vmax.f32 %v826_v53, 0.0  ;;  %v1080_v60 = vmax.f32 %v954_v54, 0.0 }
 0x13d   : > { %v830_v61 = vpop.f32.mrf.mxu0  ;;  %v958_v62 = vpop.f32.mrf.mxu1 }
 0x13e   : > { %v1775_v63 = vpack.c.bf16 %v1048_v59, %v1047_v57  ;;  %v1855_v0 = vpack.c.bf16 %v1080_v60, %v1079_v58  ;;  %v831_v3 = vadd.f32 %v2325_v17, %v830_v61  ;;  %v959_v4 = vadd.f32 %v2325_v17, %v958_v62 }
 0x13f   : > { %v832_v1 = vpop.f32.mrf.mxu0  ;;  %v960_v2 = vpop.f32.mrf.mxu1 }
 0x140   : > { %1911 = vst [vmem:[%s2335_s8 + $0x28] sm:$0xff] %v1775_v63   ;;  %1927 = vst [vmem:[%s2335_s8 + $0xa8] sm:$0xff] %v1855_v0   ;;  %v1049_v11 = vmax.f32 %v831_v3, 0.0  ;;  %v1081_v12 = vmax.f32 %v959_v4, 0.0 }
 0x141   : > { %v833_v5 = vpop.f32.mrf.mxu0  ;;  %v961_v6 = vpop.f32.mrf.mxu1 }
 0x142   : > { %v834_v7 = vadd.f32 %v2325_v17, %v833_v5  ;;  %v962_v8 = vadd.f32 %v2325_v17, %v961_v6 }
 0x143   : > { %v835_v9 = vpop.f32.mrf.mxu0  ;;  %v963_v10 = vpop.f32.mrf.mxu1 }
 0x144   : > { %v1050_v13 = vmax.f32 %v834_v7, 0.0  ;;  %v1082_v14 = vmax.f32 %v962_v8, 0.0 }
 0x145   : > { %v838_v15 = vpop.f32.mrf.mxu0  ;;  %v966_v16 = vpop.f32.mrf.mxu1 }
 0x146   : > { %v1780_v18 = vpack.c.bf16 %v1050_v13, %v1049_v11  ;;  %v1860_v19 = vpack.c.bf16 %v1082_v14, %v1081_v12  ;;  %v839_v22 = vadd.f32 %v2325_v17, %v838_v15  ;;  %v967_v23 = vadd.f32 %v2325_v17, %v966_v16 }
 0x147   : > { %v840_v20 = vpop.f32.mrf.mxu0  ;;  %v968_v21 = vpop.f32.mrf.mxu1 }
 0x148   : > { %1912 = vst [vmem:[%s2335_s8 + $0x30] sm:$0xff] %v1780_v18   ;;  %1928 = vst [vmem:[%s2335_s8 + $0xb0] sm:$0xff] %v1860_v19   ;;  %v1051_v30 = vmax.f32 %v839_v22, 0.0  ;;  %v1083_v31 = vmax.f32 %v967_v23, 0.0 }
 0x149   : > { %v841_v24 = vpop.f32.mrf.mxu0  ;;  %v969_v25 = vpop.f32.mrf.mxu1 }
 0x14a   : > { %v842_v26 = vadd.f32 %v2325_v17, %v841_v24  ;;  %v970_v27 = vadd.f32 %v2325_v17, %v969_v25 }
 0x14b   : > { %v843_v28 = vpop.f32.mrf.mxu0  ;;  %v971_v29 = vpop.f32.mrf.mxu1 }
 0x14c   : > { %v1052_v32 = vmax.f32 %v842_v26, 0.0  ;;  %v1084_v33 = vmax.f32 %v970_v27, 0.0 }
 0x14d   : > { %v846_v34 = vpop.f32.mrf.mxu0  ;;  %v974_v35 = vpop.f32.mrf.mxu1 }
 0x14e   : > { %v1785_v36 = vpack.c.bf16 %v1052_v32, %v1051_v30  ;;  %v1865_v37 = vpack.c.bf16 %v1084_v33, %v1083_v31  ;;  %v847_v40 = vadd.f32 %v2325_v17, %v846_v34  ;;  %v975_v41 = vadd.f32 %v2325_v17, %v974_v35 }
 0x14f   : > { %v848_v38 = vpop.f32.mrf.mxu0  ;;  %v976_v39 = vpop.f32.mrf.mxu1 }
 0x150   : > { %1913 = vst [vmem:[%s2335_s8 + $0x38] sm:$0xff] %v1785_v36   ;;  %1929 = vst [vmem:[%s2335_s8 + $0xb8] sm:$0xff] %v1865_v37   ;;  %v1053_v48 = vmax.f32 %v847_v40, 0.0  ;;  %v1085_v49 = vmax.f32 %v975_v41, 0.0 }
 0x151   : > { %v849_v42 = vpop.f32.mrf.mxu0  ;;  %v977_v43 = vpop.f32.mrf.mxu1 }
 0x152   : > { %v850_v44 = vadd.f32 %v2325_v17, %v849_v42  ;;  %v978_v45 = vadd.f32 %v2325_v17, %v977_v43 }
 0x153   : > { %v851_v46 = vpop.f32.mrf.mxu0  ;;  %v979_v47 = vpop.f32.mrf.mxu1 }
 0x154   : > { %v1054_v50 = vmax.f32 %v850_v44, 0.0  ;;  %v1086_v51 = vmax.f32 %v978_v45, 0.0 }
 0x155   : > { %v854_v52 = vpop.f32.mrf.mxu0  ;;  %v982_v53 = vpop.f32.mrf.mxu1 }
 0x156   : > { %v1790_v54 = vpack.c.bf16 %v1054_v50, %v1053_v48  ;;  %v1870_v55 = vpack.c.bf16 %v1086_v51, %v1085_v49  ;;  %v855_v58 = vadd.f32 %v2325_v17, %v854_v52  ;;  %v983_v59 = vadd.f32 %v2325_v17, %v982_v53 }
 0x157   : > { %v856_v56 = vpop.f32.mrf.mxu0  ;;  %v984_v57 = vpop.f32.mrf.mxu1 }
 0x158   : > { %1914 = vst [vmem:[%s2335_s8 + $0x40] sm:$0xff] %v1790_v54   ;;  %1930 = vst [vmem:[%s2335_s8 + $0xc0] sm:$0xff] %v1870_v55   ;;  %v1055_v2 = vmax.f32 %v855_v58, 0.0  ;;  %v1087_v3 = vmax.f32 %v983_v59, 0.0 }
 0x159   : > { %v857_v60 = vpop.f32.mrf.mxu0  ;;  %v985_v61 = vpop.f32.mrf.mxu1 }
 0x15a   : > { %v858_v62 = vadd.f32 %v2325_v17, %v857_v60  ;;  %v986_v63 = vadd.f32 %v2325_v17, %v985_v61 }
 0x15b   : > { %v859_v0 = vpop.f32.mrf.mxu0  ;;  %v987_v1 = vpop.f32.mrf.mxu1 }
 0x15c   : > { %v1056_v4 = vmax.f32 %v858_v62, 0.0  ;;  %v1088_v5 = vmax.f32 %v986_v63, 0.0 }
 0x15d   : > { %v862_v6 = vpop.f32.mrf.mxu0  ;;  %v990_v7 = vpop.f32.mrf.mxu1 }
 0x15e   : > { %v1795_v8 = vpack.c.bf16 %v1056_v4, %v1055_v2  ;;  %v1875_v9 = vpack.c.bf16 %v1088_v5, %v1087_v3  ;;  %v863_v12 = vadd.f32 %v2325_v17, %v862_v6  ;;  %v991_v13 = vadd.f32 %v2325_v17, %v990_v7 }
 0x15f   : > { %v864_v10 = vpop.f32.mrf.mxu0  ;;  %v992_v11 = vpop.f32.mrf.mxu1 }
 0x160   : > { %1915 = vst [vmem:[%s2335_s8 + $0x48] sm:$0xff] %v1795_v8   ;;  %1931 = vst [vmem:[%s2335_s8 + $0xc8] sm:$0xff] %v1875_v9   ;;  %v1057_v21 = vmax.f32 %v863_v12, 0.0  ;;  %v1089_v22 = vmax.f32 %v991_v13, 0.0 }
 0x161   : > { %v865_v14 = vpop.f32.mrf.mxu0  ;;  %v993_v15 = vpop.f32.mrf.mxu1 }
 0x162   : > { %v866_v16 = vadd.f32 %v2325_v17, %v865_v14  ;;  %v994_v18 = vadd.f32 %v2325_v17, %v993_v15 }
 0x163   : > { %v867_v19 = vpop.f32.mrf.mxu0  ;;  %v995_v20 = vpop.f32.mrf.mxu1 }
 0x164   : > { %v1058_v23 = vmax.f32 %v866_v16, 0.0  ;;  %v1090_v24 = vmax.f32 %v994_v18, 0.0 }
 0x165   : > { %v870_v25 = vpop.f32.mrf.mxu0  ;;  %v998_v26 = vpop.f32.mrf.mxu1 }
 0x166   : > { %v1800_v27 = vpack.c.bf16 %v1058_v23, %v1057_v21  ;;  %v1880_v28 = vpack.c.bf16 %v1090_v24, %v1089_v22  ;;  %v871_v31 = vadd.f32 %v2325_v17, %v870_v25  ;;  %v999_v32 = vadd.f32 %v2325_v17, %v998_v26 }
 0x167   : > { %v872_v29 = vpop.f32.mrf.mxu0  ;;  %v1000_v30 = vpop.f32.mrf.mxu1 }
 0x168   : > { %1916 = vst [vmem:[%s2335_s8 + $0x50] sm:$0xff] %v1800_v27   ;;  %1932 = vst [vmem:[%s2335_s8 + $0xd0] sm:$0xff] %v1880_v28   ;;  %v1059_v39 = vmax.f32 %v871_v31, 0.0  ;;  %v1091_v40 = vmax.f32 %v999_v32, 0.0 }
 0x169   : > { %v873_v33 = vpop.f32.mrf.mxu0  ;;  %v1001_v34 = vpop.f32.mrf.mxu1 }
 0x16a   : > { %v874_v35 = vadd.f32 %v2325_v17, %v873_v33  ;;  %v1002_v36 = vadd.f32 %v2325_v17, %v1001_v34 }
 0x16b   : > { %v875_v37 = vpop.f32.mrf.mxu0  ;;  %v1003_v38 = vpop.f32.mrf.mxu1 }
 0x16c   : > { %v1060_v41 = vmax.f32 %v874_v35, 0.0  ;;  %v1092_v42 = vmax.f32 %v1002_v36, 0.0 }
 0x16d   : > { %v878_v43 = vpop.f32.mrf.mxu0  ;;  %v1006_v44 = vpop.f32.mrf.mxu1 }
 0x16e   : > { %v1805_v45 = vpack.c.bf16 %v1060_v41, %v1059_v39  ;;  %v1885_v46 = vpack.c.bf16 %v1092_v42, %v1091_v40  ;;  %v879_v49 = vadd.f32 %v2325_v17, %v878_v43  ;;  %v1007_v50 = vadd.f32 %v2325_v17, %v1006_v44 }
 0x16f   : > { %v880_v47 = vpop.f32.mrf.mxu0  ;;  %v1008_v48 = vpop.f32.mrf.mxu1 }
 0x170   : > { %1917 = vst [vmem:[%s2335_s8 + $0x58] sm:$0xff] %v1805_v45   ;;  %1933 = vst [vmem:[%s2335_s8 + $0xd8] sm:$0xff] %v1885_v46   ;;  %v1061_v57 = vmax.f32 %v879_v49, 0.0  ;;  %v1093_v58 = vmax.f32 %v1007_v50, 0.0 }
 0x171   : > { %v881_v51 = vpop.f32.mrf.mxu0  ;;  %v1009_v52 = vpop.f32.mrf.mxu1 }
 0x172   : > { %v882_v53 = vadd.f32 %v2325_v17, %v881_v51  ;;  %v1010_v54 = vadd.f32 %v2325_v17, %v1009_v52 }
 0x173   : > { %v883_v55 = vpop.f32.mrf.mxu0  ;;  %v1011_v56 = vpop.f32.mrf.mxu1 }
 0x174   : > { %v1062_v59 = vmax.f32 %v882_v53, 0.0  ;;  %v1094_v60 = vmax.f32 %v1010_v54, 0.0 }
 0x175   : > { %v886_v61 = vpop.f32.mrf.mxu0  ;;  %v1014_v62 = vpop.f32.mrf.mxu1 }
 0x176   : > { %v1810_v63 = vpack.c.bf16 %v1062_v59, %v1061_v57  ;;  %v1890_v0 = vpack.c.bf16 %v1094_v60, %v1093_v58  ;;  %v887_v3 = vadd.f32 %v2325_v17, %v886_v61  ;;  %v1015_v4 = vadd.f32 %v2325_v17, %v1014_v62 }
 0x177   : > { %v888_v1 = vpop.f32.mrf.mxu0  ;;  %v1016_v2 = vpop.f32.mrf.mxu1 }
 0x178   : > { %1918 = vst [vmem:[%s2335_s8 + $0x60] sm:$0xff] %v1810_v63   ;;  %1934 = vst [vmem:[%s2335_s8 + $0xe0] sm:$0xff] %v1890_v0   ;;  %v1063_v11 = vmax.f32 %v887_v3, 0.0  ;;  %v1095_v12 = vmax.f32 %v1015_v4, 0.0 }
 0x179   : > { %v889_v5 = vpop.f32.mrf.mxu0  ;;  %v1017_v6 = vpop.f32.mrf.mxu1 }
 0x17a   : > { %v890_v7 = vadd.f32 %v2325_v17, %v889_v5  ;;  %v1018_v8 = vadd.f32 %v2325_v17, %v1017_v6 }
 0x17b   : > { %v891_v9 = vpop.f32.mrf.mxu0  ;;  %v1019_v10 = vpop.f32.mrf.mxu1 }
 0x17c   : > { %v1064_v13 = vmax.f32 %v890_v7, 0.0  ;;  %v1096_v14 = vmax.f32 %v1018_v8, 0.0 }
 0x17d   : > { %v894_v15 = vpop.f32.mrf.mxu0  ;;  %v1022_v16 = vpop.f32.mrf.mxu1 }
 0x17e   : > { %v1815_v18 = vpack.c.bf16 %v1064_v13, %v1063_v11  ;;  %v1895_v19 = vpack.c.bf16 %v1096_v14, %v1095_v12  ;;  %v895_v22 = vadd.f32 %v2325_v17, %v894_v15  ;;  %v1023_v23 = vadd.f32 %v2325_v17, %v1022_v16 }
 0x17f   : > { %v896_v20 = vpop.f32.mrf.mxu0  ;;  %v1024_v21 = vpop.f32.mrf.mxu1 }
 0x180   : > { %1919 = vst [vmem:[%s2335_s8 + $0x68] sm:$0xff] %v1815_v18   ;;  %1935 = vst [vmem:[%s2335_s8 + $0xe8] sm:$0xff] %v1895_v19   ;;  %v1065_v30 = vmax.f32 %v895_v22, 0.0  ;;  %v1097_v31 = vmax.f32 %v1023_v23, 0.0 }
 0x181   : > { %v897_v24 = vpop.f32.mrf.mxu0  ;;  %v1025_v25 = vpop.f32.mrf.mxu1 }
 0x182   : > { %v898_v26 = vadd.f32 %v2325_v17, %v897_v24  ;;  %v1026_v27 = vadd.f32 %v2325_v17, %v1025_v25 }
 0x183   : > { %v899_v28 = vpop.f32.mrf.mxu0  ;;  %v1027_v29 = vpop.f32.mrf.mxu1 }
 0x184   : > { %v1066_v32 = vmax.f32 %v898_v26, 0.0  ;;  %v1098_v33 = vmax.f32 %v1026_v27, 0.0 }
 0x185   : > { %v902_v34 = vpop.f32.mrf.mxu0  ;;  %v1030_v35 = vpop.f32.mrf.mxu1 }
 0x186   : > { %v1820_v36 = vpack.c.bf16 %v1066_v32, %v1065_v30  ;;  %v1900_v37 = vpack.c.bf16 %v1098_v33, %v1097_v31  ;;  %v903_v40 = vadd.f32 %v2325_v17, %v902_v34  ;;  %v1031_v41 = vadd.f32 %v2325_v17, %v1030_v35 }
 0x187   : > { %v904_v38 = vpop.f32.mrf.mxu0  ;;  %v1032_v39 = vpop.f32.mrf.mxu1 }
 0x188   : > { %1920 = vst [vmem:[%s2335_s8 + $0x70] sm:$0xff] %v1820_v36   ;;  %1936 = vst [vmem:[%s2335_s8 + $0xf0] sm:$0xff] %v1900_v37   ;;  %v1067_v48 = vmax.f32 %v903_v40, 0.0  ;;  %v1099_v49 = vmax.f32 %v1031_v41, 0.0 }
 0x189   : > { %v905_v42 = vpop.f32.mrf.mxu0  ;;  %v1033_v43 = vpop.f32.mrf.mxu1 }
 0x18a   : > { %v906_v44 = vadd.f32 %v2325_v17, %v905_v42  ;;  %v1034_v45 = vadd.f32 %v2325_v17, %v1033_v43 }
 0x18b   : > { %v907_v46 = vpop.f32.mrf.mxu0  ;;  %v1035_v47 = vpop.f32.mrf.mxu1 }
 0x18c   : > { %v1068_v50 = vmax.f32 %v906_v44, 0.0  ;;  %v1100_v51 = vmax.f32 %v1034_v45, 0.0 }
 0x18e   : > { %v1825_v52 = vpack.c.bf16 %v1068_v50, %v1067_v48  ;;  %v1905_v53 = vpack.c.bf16 %v1100_v51, %v1099_v49 }
 0x190   : > { %1921 = vst [vmem:[%s2335_s8 + $0x78] sm:$0xff] %v1825_v52   ;;  %1937 = vst [vmem:[%s2335_s8 + $0xf8] sm:$0xff] %v1905_v53  }
 0x191 PF: > { %s13_s14 = sadd.s32 1, %s2129_s14   ;;  %s2442_s12 = smov %s2125_s13 }
 0x192   : > { %p10_p5 = scmp.ge.s32.totalorder %s13_s14, 6   ;;  %s2443_s13 = smov %s2445_s15 }
 0x194   :  { %12 = sbr.rel (!%p10_p5) target bundleno = 2 (0x2), region = 68 }

// kernel: forward.23
= control target key start
LH: loop header
LB: loop body
LE: loop exit
PB: predicated region body
PF: predicated region fallthrough
CT: control target
= control target key end

     0   :  { %s693_s12 = smov 0   ;;  %s695_s13 = smov 0   ;;  %s801_s0 = inlined_call_operand.vmem [shape: bf16[2,34,17,256], index: 0, kind: input, shape index: {}, may-alias: {0,1,2}]   ;;  %s802_s1 = inlined_call_operand.vmem [shape: bf16[2,34,17,256], index: 1, kind: input, shape index: {}, may-alias: {0,1,2}]   ;;  %s803_s2 = inlined_call_operand.vmem [shape: bf16[2,34,17,256], index: 2, kind: input, shape index: {}, may-alias: {0,1,2}]   ;;  %s804_s3 = inlined_call_operand.vmem [shape: bf16[2,16,16,128], index: 3, kind: output, shape index: {}]  }
   0x1   :  { %s697_s14 = smov 0   ;;  %s699_s15 = smov 0  }
   0x2   :  { %s701_s16 = smov 0  }
   0x3 LB: > { %s22_s17 = sadd.s32 1, %s663_s14  ;;  %s25_s18 = sadd.s32 1, %s667_s15  ;;  %s671_s16 = sphi %s701_s16, %s13_s16   ;;  %s667_s15 = sphi %s699_s15, %s810_s15   ;;  %s663_s14 = sphi %s697_s14, %s809_s14   ;;  %s659_s13 = sphi %s695_s13, %s808_s13   ;;  %s655_s12 = sphi %s693_s12, %s807_s12  }
   0x4   : > { %p23_p0 = scmp.ge.s32.totalorder %s22_s17, 16  ;;  %p571_p1 = scmp.ge.s32.totalorder %s671_s16, 1 }
   0x5   : > { %p209_p2 = scmp.lt.s32.totalorder %s671_s16, 33 }
   0x6   : > { %s812_s17 = smov (%p23_p0, %s22_s17), 0  ;;  %s814_s18 = smov (!%p23_p0, %s25_s18), %s667_s15 }
   0x7   : > { %p210_p3 = pnand %p571_p1, %p209_p2  ;;  %p27_p4 = scmp.ge.s32.totalorder %s814_s18, 2 }
   0x8   : > { %s572_s19 = sshll.u32 (!%p210_p3), %s655_s12, 1  ;;  %p265_p5 = scmp.lt.s32.totalorder (!%p210_p3), %s659_s13, 1 }
   0x9   : > { %s816_s18 = smov (%p27_p4, %s814_s18), 0  ;;  %213 = sbr.rel (%p210_p3) target bundleno = 50 (0x32), region = 32 }
   0xa   : > { %p267_p6 = scmp.lt.s32.totalorder (!%p210_p3), %s572_s19, 33  ;;  %s276_s20 = sadd.s32 (!%p210_p3), 1, %s572_s19 }
   0xb   : > { %p279_p7 = scmp.lt.s32.totalorder (!%p210_p3), %s276_s20, 33  ;;  %s289_s24 = sadd.s32 (!%p210_p3), 2, %s572_s19 }
   0xc   : > { %p292_p8 = scmp.lt.s32.totalorder (!%p210_p3), %s289_s24, 33  ;;  %p303_p9 = scmp.lt.s32.totalorder (!%p210_p3), %s655_s12, 15 }
   0xe   : > { %s818_s13 = smov (!%p265_p5, %s659_s13), 1  ;;  %s820_s20 = smov (!%p279_p7, %s276_s20), 33  ;;  %vm317_vm0 = vsmask.f32 3328  ;;  %vm318_vm1 = vsmask.f32 7440 }
   0xf   : > { %s268_s21 = scalar_select %p267_p6, %s572_s19, 33  ;;  %vm747_vm2 = vmor %vm317_vm0, %vm318_vm1 }
  0x10   : > { %s729_s22 = smul.u32 204, %s818_s13  ;;  %s822_s24 = smov (!%p292_p8, %s289_s24), 33 }
  0x11   : > { %s589_s23 = smul.u32 6, %s268_s21  ;;  %s824_s12 = smov (!%p303_p9, %s655_s12), 15 }
  0x12   : > { %s591_s27 = smul.u32 6, %s820_s20 }
  0x13   : > { %s271_s25 = sadd.s32 %s729_s22, %s589_s23  ;;  %s592_s9 = smul.u32 6, %s822_s24 }
  0x14   : > { %s573_s26 = sshll.u32 %s271_s25, 2  ;;  %s283_s4 = sadd.s32 %s591_s27, %s729_s22 }
  0x15   : > { %s273_s30 = scalar_lea.vmem %s801_s0, %s573_s26  ;;  %s575_s5 = sshll.u32 %s283_s4, 2 }
  0x16   : > { %v310_v0 = vld [vmem:[%s273_s30] sm:$0xf]  ;;  %v311_v1 = vld [vmem:[%s273_s30 + $0x8] sm:$0xf]  ;;  %s739_s8 = scalar_lea.vmem %s802_s1, %s575_s5  ;;  %v312_v3 = vld [vmem:[%s273_s30 + $0x4] sm:$0xf]  ;;  %s296_s10 = sadd.s32 %s592_s9, %s729_s22 }
  0x17   : > { %v321_v2 = vshrl.u32 %v310_v0, 16  ;;  %v316_v4 = vld [vmem:[%s273_s30 + $0x10] sm:$0x1]  ;;  %v324_v5 = vshll.u32 %v310_v0, 16  ;;  %v330_v6 = vshll.u32 %v311_v1, 16  ;;  %v334_v8 = vshrl.u32 %v311_v1, 16 }
  0x18   : > { %v340_v9 = vshll.u32 %v316_v4, 16  ;;  %v348_v10 = vld [vmem:[%s739_s8] sm:$0xf]  ;;  %v349_v13 = vld [vmem:[%s739_s8 + $0x8] sm:$0xf]  ;;  %v314_v18 = vmax.bf16 %v312_v3, %v310_v0  ;;  %s577_s11 = sshll.u32 %s296_s10, 2 }
  0x19   : > { %v323_v7 = vrot.slane %v321_v2, 4  ;;  %v326_v11 = vrot.slane %v324_v5, 5  ;;  %v332_v12 = vrot.slane %v330_v6, 5  ;;  %v358_v14 = vshrl.u32 %v348_v10, 16  ;;  %v313_v15 = vld [vmem:[%s273_s30 + $0xc] sm:$0xf]  ;;  %s755_s21 = scalar_lea.vmem %s803_s2, %s577_s11 }
  0x1a   : > { %v336_v16 = vrot.slane %v334_v8, 4  ;;  %v361_v17 = vshll.u32 %v348_v10, 16  ;;  %v342_v20 = vrot.slane %v340_v9, 5  ;;  %v356_v21 = vld [vmem:[%s739_s8 + $0x10] sm:$0x1]  ;;  %v367_v26 = vshll.u32 %v349_v13, 16 }
  0x1b   : > { %v327_v19 = vor.u32 %v326_v11, %v323_v7  ;;  %v360_v22 = vrot.slane %v358_v14, 4  ;;  %v371_v27 = vshrl.u32 %v349_v13, 16  ;;  %v315_v28 = vmax.bf16 %v313_v15, %v311_v1  ;;  %v385_v37 = vld [vmem:[%s755_s21] sm:$0xf]  ;;  %v386_v38 = vld [vmem:[%s755_s21 + $0x8] sm:$0xf] }
  0x1c   : > { %v337_v24 = vor.u32 %v336_v16, %v332_v12  ;;  %v363_v25 = vrot.slane %v361_v17, 5  ;;  %v377_v30 = vshll.u32 %v356_v21, 16  ;;  %v369_v33 = vrot.slane %v367_v26, 5  ;;  %v352_v41 = vld [vmem:[%s739_s8 + $0x4] sm:$0xf]  ;;  %s578_s22 = sshll.u32 %s824_s12, 1 }
  0x1d   : > { %v328_v29 = vrot.slane %v327_v19, 4  ;;  %v373_v34 = vrot.slane %v371_v27, 4  ;;  %v393_v45 = vld [vmem:[%s755_s21 + $0x10] sm:$0x1]  ;;  %v395_v46 = vshrl.u32 %v385_v37, 16  ;;  %v398_v47 = vshll.u32 %v385_v37, 16 }
  0x1e   : > { %v338_v31 = vrot.slane %v337_v24, 4  ;;  %v364_v32 = vor.u32 %v363_v25, %v360_v22  ;;  %v379_v36 = vrot.slane %v377_v30, 5  ;;  %v404_v48 = vshll.u32 %v386_v38, 16  ;;  %v353_v50 = vld [vmem:[%s739_s8 + $0xc] sm:$0xf]  ;;  %s579_s23 = sshll.u32 %s818_s13, 5 }
  0x1f   : > { %v333_v35 = vsel %vm747_vm2, %v328_v29, %v332_v12  ;;  %v374_v43 = vor.u32 %v373_v34, %v369_v33  ;;  %v408_v53 = vshrl.u32 %v386_v38, 16  ;;  %v397_v55 = vrot.slane %v395_v46, 4  ;;  %v389_v4 = vld [vmem:[%s755_s21 + $0x4] sm:$0xf]  ;;  %s307_s24 = sadd.s32 %s579_s23, %s578_s22  ;;  %v390_v7 = vld [vmem:[%s755_s21 + $0xc] sm:$0xf] }
  0x20   : > { %v343_v39 = vsel %vm747_vm2, %v338_v31, %v342_v20  ;;  %v346_v40 = vmax.bf16 %v333_v35, %v314_v18  ;;  %v365_v42 = vrot.slane %v364_v32, 4  ;;  %v400_v56 = vrot.slane %v398_v47, 5  ;;  %s580_s12 = sshll.u32 %s307_s24, 2 }
  0x21   : > { %v347_v44 = vmax.bf16 %v343_v39, %v315_v28  ;;  %v375_v52 = vrot.slane %v374_v43, 4  ;;  %v406_v57 = vrot.slane %v404_v48, 5  ;;  %v410_v60 = vrot.slane %v408_v53, 4  ;;  %s309_s26 = scalar_lea.vmem %s804_s3, %s580_s12 }
  0x22   : > { %v350_v49 = vmax.bf16 %v348_v10, %v346_v40  ;;  %v370_v51 = vsel %vm747_vm2, %v365_v42, %v369_v33  ;;  %v414_v61 = vshll.u32 %v393_v45, 16  ;;  %v401_v63 = vor.u32 %v400_v56, %v397_v55 }
  0x23   : > { %v351_v54 = vmax.bf16 %v349_v13, %v347_v44  ;;  %v380_v59 = vsel %vm747_vm2, %v375_v52, %v379_v36  ;;  %v411_v1 = vor.u32 %v410_v60, %v406_v57 }
  0x24   : > { %v354_v58 = vmax.bf16 %v352_v41, %v350_v49  ;;  %v416_v2 = vrot.slane %v414_v61, 5  ;;  %v402_v5 = vrot.slane %v401_v63, 4 }
  0x25   : > { %v355_v62 = vmax.bf16 %v353_v50, %v351_v54  ;;  %v412_v8 = vrot.slane %v411_v1, 4 }
  0x26   : > { %v383_v0 = vmax.bf16 %v370_v51, %v354_v58  ;;  %v407_v10 = vsel %vm747_vm2, %v402_v5, %v406_v57 }
  0x27   : > { %v384_v3 = vmax.bf16 %v380_v59, %v355_v62  ;;  %v417_v12 = vsel %vm747_vm2, %v412_v8, %v416_v2 }
  0x28   : > { %v387_v6 = vmax.bf16 %v385_v37, %v383_v0 }
  0x29   : > { %v388_v9 = vmax.bf16 %v386_v38, %v384_v3 }
  0x2a   : > { %v391_v11 = vmax.bf16 %v389_v4, %v387_v6 }
  0x2b   : > { %v392_v13 = vmax.bf16 %v390_v7, %v388_v9 }
  0x2c   : > { %v420_v14 = vmax.bf16 %v407_v10, %v391_v11 }
  0x2d   : > { %v421_v15 = vmax.bf16 %v417_v12, %v392_v13 }
  0x2f   : > { %v588_v16 = vcombine.low %v420_v14, %v421_v15 }
  0x31   : > { %587 = vst [vmem:[%s309_s26] sm:$0xff] %v588_v16  }
  0x32 PF: > { %s13_s16 = sadd.s32 1, %s671_s16   ;;  %s807_s12 = smov %s663_s14 }
  0x33   : > { %p10_p10 = scmp.ge.s32.totalorder %s13_s16, 34   ;;  %s808_s13 = smov %s667_s15 }
  0x34   : > { %s809_s14 = smov %s812_s17  ;;  %s810_s15 = smov %s816_s18 }
  0x35   :  { %12 = sbr.rel (!%p10_p10) target bundleno = 3 (0x3), region = 68 }

// kernel: forward.26
= control target key start
LH: loop header
LB: loop body
LE: loop exit
PB: predicated region body
PF: predicated region fallthrough
CT: control target
= control target key end

     0   :  { %s1225_s12 = smov 0   ;;  %s1227_s13 = smov 0   ;;  %s1362_s0 = inlined_call_operand.vmem [shape: bf16[512,128], index: 0, kind: input, shape index: {}]   ;;  %s1363_s1 = inlined_call_operand.vmem [shape: bf16[128,128], index: 1, kind: input, shape index: {}]   ;;  %s1364_s2 = inlined_call_operand.vmem [shape: f32[1,128], index: 2, kind: input, shape index: {}]   ;;  %s1365_s3 = inlined_call_operand.vmem [shape: bf16[512,128], index: 3, kind: output, shape index: {}]  }
   0x1   :  { %s1229_s14 = smov 0  }
   0x2 LB: > { %s25_s15 = sadd.s32 1, %s1199_s13  ;;  %p854_p0 = scmp.ge.s32.totalorder %s1203_s14, 1  ;;  %s1203_s14 = sphi %s1229_s14, %s13_s14   ;;  %s1199_s13 = sphi %s1227_s13, %s1367_s13   ;;  %s1195_s12 = sphi %s1225_s12, %s1366_s12  }
   0x3   : > { %p27_p1 = scmp.ge.s32.totalorder %s25_s15, 2  ;;  %p169_p2 = scmp.lt.s32.totalorder %s1203_s14, 3 }
   0x5   : > { %s1369_s15 = smov (%p27_p1, %s25_s15), 0  ;;  %p170_p3 = pnand %p854_p0, %p169_p2 }
   0x6   : > { %s855_s18 = sshll.u32 (!%p170_p3), %s1195_s12, 5 }
   0x7   : > { %173 = sbr.rel (%p170_p3) target bundleno = 273 (0x111), region = 32  ;;  %p204_p4 = scmp.lt.s32.totalorder (!%p170_p3), %s855_s18, 63 }
   0xc   : > { %v1157_v0 = vld [vmem:[%s1363_s1 + $0x38] sm:$0xff]   ;;  %v1158_v1 = vld [vmem:[%s1363_s1 + $0x30] sm:$0xff]   ;;  %s1371_s18 = smov (!%p204_p4, %s855_s18), 63  ;;  %v1159_v2 = vld [vmem:[%s1363_s1 + $0x28] sm:$0xff]  }
   0xd   : > { %1069 = vmatprep.subr.bf16.mxu0 %v1157_v0  ;;  %1117 = vmatprep.subr.bf16.mxu1 %v1157_v0  ;;  %s856_s23 = sshll.u32 %s1371_s18, 2  ;;  %v1160_v3 = vld [vmem:[%s1363_s1 + $0x20] sm:$0xff]   ;;  %v1161_v6 = vld [vmem:[%s1363_s1 + $0x18] sm:$0xff]   ;;  %v1162_v7 = vld [vmem:[%s1363_s1 + $0x10] sm:$0xff]  }
   0xe   : > { %1070 = vmatpush3.bf16.msra.mxu0 %v1157_v0  ;;  %1125 = vmatpush3.bf16.msra.mxu1 %v1157_v0  ;;  %s1260_s26 = scalar_lea.vmem %s1362_s0, %s856_s23  ;;  %v1163_v8 = vld [vmem:[%s1363_s1 + $0x8] sm:$0xff]   ;;  %v1164_v9 = vld [vmem:[%s1363_s1] sm:$0xff]   ;;  %s1309_s17 = scalar_lea.vmem %s1365_s3, %s856_s23 }
   0xf   : > { %1071 = vmatprep.subr.bf16.mxu0 %v1158_v1  ;;  %1118 = vmatprep.subr.bf16.mxu1 %v1158_v1  ;;  %v1165_v4 = vld [vmem:[%s1260_s26] sm:$0xff]   ;;  %v1167_v10 = vld [vmem:[%s1260_s26 + $0x8] sm:$0xff]   ;;  %v1169_v12 = vld [vmem:[%s1260_s26 + $0x10] sm:$0xff]  }
  0x10   : > { %v1166_v5 = vld [vmem:[%s1260_s26 + $0x40] sm:$0xff]   ;;  %1085 = vmatprep.mubr.bf16.mxu0 %v1165_v4  ;;  %v1168_v11 = vld [vmem:[%s1260_s26 + $0x48] sm:$0xff]   ;;  %v1170_v13 = vld [vmem:[%s1260_s26 + $0x50] sm:$0xff]  }
  0x11   : > { %1101 = vmatprep.mubr.bf16.mxu1 %v1166_v5  ;;  %v1171_v14 = vld [vmem:[%s1260_s26 + $0x18] sm:$0xff]   ;;  %v1173_v16 = vld [vmem:[%s1260_s26 + $0x20] sm:$0xff]   ;;  %v1175_v18 = vld [vmem:[%s1260_s26 + $0x28] sm:$0xff]  }
  0x12   : > { %1072 = vmatpush3.bf16.msra.mxu0 %v1158_v1  ;;  %1126 = vmatpush3.bf16.msra.mxu1 %v1158_v1  ;;  %v1172_v15 = vld [vmem:[%s1260_s26 + $0x58] sm:$0xff]   ;;  %v1174_v17 = vld [vmem:[%s1260_s26 + $0x60] sm:$0xff]   ;;  %v1176_v19 = vld [vmem:[%s1260_s26 + $0x68] sm:$0xff]  }
  0x13   : > { %1073 = vmatprep.subr.bf16.mxu0 %v1159_v2  ;;  %1119 = vmatprep.subr.bf16.mxu1 %v1159_v2  ;;  %v1177_v20 = vld [vmem:[%s1260_s26 + $0x30] sm:$0xff]   ;;  %v1179_v22 = vld [vmem:[%s1260_s26 + $0x38] sm:$0xff]   ;;  %v1296_v26 = vld [vmem:[%s1364_s2] ss:$0 sm:$0xff] }
  0x14   : > { %v1178_v21 = vld [vmem:[%s1260_s26 + $0x70] sm:$0xff]   ;;  %v1180_v23 = vld [vmem:[%s1260_s26 + $0x78] sm:$0xff]  }
  0x16   : > { %1074 = vmatpush3.bf16.msra.mxu0 %v1159_v2  ;;  %1127 = vmatpush3.bf16.msra.mxu1 %v1159_v2 }
  0x17   : > { %1075 = vmatprep.subr.bf16.mxu0 %v1160_v3  ;;  %1120 = vmatprep.subr.bf16.mxu1 %v1160_v3 }
  0x1a   : > { %1076 = vmatpush3.bf16.msra.mxu0 %v1160_v3  ;;  %1128 = vmatpush3.bf16.msra.mxu1 %v1160_v3 }
  0x1b   : > { %1077 = vmatprep.subr.bf16.mxu0 %v1161_v6  ;;  %1121 = vmatprep.subr.bf16.mxu1 %v1161_v6 }
  0x1e   : > { %1078 = vmatpush3.bf16.msra.mxu0 %v1161_v6  ;;  %1129 = vmatpush3.bf16.msra.mxu1 %v1161_v6 }
  0x1f   : > { %1079 = vmatprep.subr.bf16.mxu0 %v1162_v7  ;;  %1122 = vmatprep.subr.bf16.mxu1 %v1162_v7 }
  0x22   : > { %1080 = vmatpush3.bf16.msra.mxu0 %v1162_v7  ;;  %1130 = vmatpush3.bf16.msra.mxu1 %v1162_v7 }
  0x23   : > { %1081 = vmatprep.subr.bf16.mxu0 %v1163_v8  ;;  %1123 = vmatprep.subr.bf16.mxu1 %v1163_v8 }
  0x26   : > { %1082 = vmatpush3.bf16.msra.mxu0 %v1163_v8  ;;  %1131 = vmatpush3.bf16.msra.mxu1 %v1163_v8 }
  0x27   : > { %1083 = vmatprep.subr.bf16.mxu0 %v1164_v9  ;;  %1124 = vmatprep.subr.bf16.mxu1 %v1164_v9 }
  0x2a   : > { %1084 = vmatpush3.bf16.msra.mxu0 %v1164_v9  ;;  %1132 = vmatpush3.bf16.msra.mxu1 %v1164_v9 }
  0x2d   : > { %1086 = vmatmul.mubr.bf16.vlgmr.msra.gmra.mxu0 %v1167_v10  ;;  %1102 = vmatmul.mubr.bf16.vlgmr.msra.gmra.mxu1 %v1168_v11 }
  0x2e   : > { %1089 = vmatprep.mubr.bf16.mxu0 %v1169_v12  ;;  %1105 = vmatprep.mubr.bf16.mxu1 %v1170_v13 }
  0x35   : > { %1090 = vmatmul.mubr.bf16.gmra.mxu0 %v1171_v14  ;;  %1106 = vmatmul.mubr.bf16.gmra.mxu1 %v1172_v15 }
  0x36   : > { %1093 = vmatprep.mubr.bf16.mxu0 %v1173_v16  ;;  %1109 = vmatprep.mubr.bf16.mxu1 %v1174_v17 }
  0x3d   : > { %1094 = vmatmul.mubr.bf16.gmra.mxu0 %v1175_v18  ;;  %1110 = vmatmul.mubr.bf16.gmra.mxu1 %v1176_v19 }
  0x3e   : > { %1097 = vmatprep.mubr.bf16.mxu0 %v1177_v20  ;;  %1113 = vmatprep.mubr.bf16.mxu1 %v1178_v21 }
  0x45   : > { %1098 = vmatmul.mubr.bf16.gmra.mxu0 %v1179_v22  ;;  %1114 = vmatmul.mubr.bf16.gmra.mxu1 %v1180_v23 }
  0xed   : > { %v1087_v24 = vpop.f32.mrf.mxu0  ;;  %v1103_v25 = vpop.f32.mrf.mxu1 }
  0xee   : > { %v468_v31 = vadd.f32 %v1087_v24, %v1296_v26  ;;  %v532_v32 = vadd.f32 %v1103_v25, %v1296_v26 }
  0xef   : > { %v459_v27 = vpop.f32.mrf.mxu0  ;;  %v523_v28 = vpop.f32.mrf.mxu1 }
  0xf0   : > { %v460_v35 = vadd.f32 %v1296_v26, %v459_v27  ;;  %v524_v36 = vadd.f32 %v1296_v26, %v523_v28 }
  0xf1   : > { %v1088_v29 = vpop.f32.mrf.mxu0  ;;  %v1104_v30 = vpop.f32.mrf.mxu1 }
  0xf2   : > { %v471_v33 = vadd.f32 %v1088_v29, %v1296_v26  ;;  %v535_v34 = vadd.f32 %v1104_v30, %v1296_v26 }
  0xf3   : > { %v462_v37 = vpop.f32.mrf.mxu0  ;;  %v526_v38 = vpop.f32.mrf.mxu1 }
  0xf4   : > { %v958_v39 = vpack.c.bf16 %v471_v33, %v468_v31  ;;  %v998_v40 = vpack.c.bf16 %v535_v34, %v532_v32  ;;  %v463_v41 = vadd.f32 %v1296_v26, %v462_v37  ;;  %v527_v42 = vadd.f32 %v1296_v26, %v526_v38 }
  0xf5   : > { %v1091_v43 = vpop.f32.mrf.mxu0  ;;  %v1107_v44 = vpop.f32.mrf.mxu1 }
  0xf6   : > { %1030 = vst [vmem:[%s1309_s17 + $0x8] sm:$0xff] %v958_v39   ;;  %1038 = vst [vmem:[%s1309_s17 + $0x48] sm:$0xff] %v998_v40   ;;  %v953_v45 = vpack.c.bf16 %v463_v41, %v460_v35  ;;  %v993_v46 = vpack.c.bf16 %v527_v42, %v524_v36  ;;  %v484_v51 = vadd.f32 %v1091_v43, %v1296_v26 }
  0xf7   : > { %v475_v47 = vpop.f32.mrf.mxu0  ;;  %v539_v48 = vpop.f32.mrf.mxu1  ;;  %v548_v52 = vadd.f32 %v1107_v44, %v1296_v26 }
  0xf8   : > { %954 = vst [vmem:[%s1309_s17] sm:$0xff] %v953_v45   ;;  %1037 = vst [vmem:[%s1309_s17 + $0x40] sm:$0xff] %v993_v46   ;;  %v476_v55 = vadd.f32 %v1296_v26, %v475_v47  ;;  %v540_v56 = vadd.f32 %v1296_v26, %v539_v48 }
  0xf9   : > { %v1092_v49 = vpop.f32.mrf.mxu0  ;;  %v1108_v50 = vpop.f32.mrf.mxu1 }
  0xfa   : > { %v487_v53 = vadd.f32 %v1092_v49, %v1296_v26  ;;  %v551_v54 = vadd.f32 %v1108_v50, %v1296_v26 }
  0xfb   : > { %v478_v57 = vpop.f32.mrf.mxu0  ;;  %v542_v58 = vpop.f32.mrf.mxu1 }
  0xfc   : > { %v968_v59 = vpack.c.bf16 %v487_v53, %v484_v51  ;;  %v1008_v60 = vpack.c.bf16 %v551_v54, %v548_v52  ;;  %v479_v61 = vadd.f32 %v1296_v26, %v478_v57  ;;  %v543_v62 = vadd.f32 %v1296_v26, %v542_v58 }
  0xfd   : > { %v1095_v63 = vpop.f32.mrf.mxu0  ;;  %v1111_v0 = vpop.f32.mrf.mxu1 }
  0xfe   : > { %1032 = vst [vmem:[%s1309_s17 + $0x18] sm:$0xff] %v968_v59   ;;  %1040 = vst [vmem:[%s1309_s17 + $0x58] sm:$0xff] %v1008_v60   ;;  %v963_v1 = vpack.c.bf16 %v479_v61, %v476_v55  ;;  %v1003_v2 = vpack.c.bf16 %v543_v62, %v540_v56  ;;  %v500_v7 = vadd.f32 %v1095_v63, %v1296_v26 }
  0xff   : > { %v491_v3 = vpop.f32.mrf.mxu0  ;;  %v555_v4 = vpop.f32.mrf.mxu1  ;;  %v564_v8 = vadd.f32 %v1111_v0, %v1296_v26 }
 0x100   : > { %1031 = vst [vmem:[%s1309_s17 + $0x10] sm:$0xff] %v963_v1   ;;  %1039 = vst [vmem:[%s1309_s17 + $0x50] sm:$0xff] %v1003_v2   ;;  %v492_v11 = vadd.f32 %v1296_v26, %v491_v3  ;;  %v556_v12 = vadd.f32 %v1296_v26, %v555_v4 }
 0x101   : > { %v1096_v5 = vpop.f32.mrf.mxu0  ;;  %v1112_v6 = vpop.f32.mrf.mxu1 }
 0x102   : > { %v503_v9 = vadd.f32 %v1096_v5, %v1296_v26  ;;  %v567_v10 = vadd.f32 %v1112_v6, %v1296_v26 }
 0x103   : > { %v494_v13 = vpop.f32.mrf.mxu0  ;;  %v558_v14 = vpop.f32.mrf.mxu1 }
 0x104   : > { %v978_v15 = vpack.c.bf16 %v503_v9, %v500_v7  ;;  %v1018_v16 = vpack.c.bf16 %v567_v10, %v564_v8  ;;  %v495_v17 = vadd.f32 %v1296_v26, %v494_v13  ;;  %v559_v18 = vadd.f32 %v1296_v26, %v558_v14 }
 0x105   : > { %v1099_v19 = vpop.f32.mrf.mxu0  ;;  %v1115_v20 = vpop.f32.mrf.mxu1 }
 0x106   : > { %1034 = vst [vmem:[%s1309_s17 + $0x28] sm:$0xff] %v978_v15   ;;  %1042 = vst [vmem:[%s1309_s17 + $0x68] sm:$0xff] %v1018_v16   ;;  %v973_v21 = vpack.c.bf16 %v495_v17, %v492_v11  ;;  %v1013_v22 = vpack.c.bf16 %v559_v18, %v556_v12  ;;  %v516_v28 = vadd.f32 %v1099_v19, %v1296_v26 }
 0x107   : > { %v507_v23 = vpop.f32.mrf.mxu0  ;;  %v571_v24 = vpop.f32.mrf.mxu1  ;;  %v580_v29 = vadd.f32 %v1115_v20, %v1296_v26 }
 0x108   : > { %1033 = vst [vmem:[%s1309_s17 + $0x20] sm:$0xff] %v973_v21   ;;  %1041 = vst [vmem:[%s1309_s17 + $0x60] sm:$0xff] %v1013_v22   ;;  %v508_v32 = vadd.f32 %v1296_v26, %v507_v23  ;;  %v572_v33 = vadd.f32 %v1296_v26, %v571_v24 }
 0x109   : > { %v1100_v25 = vpop.f32.mrf.mxu0  ;;  %v1116_v27 = vpop.f32.mrf.mxu1 }
 0x10a   : > { %v519_v30 = vadd.f32 %v1100_v25, %v1296_v26  ;;  %v583_v31 = vadd.f32 %v1116_v27, %v1296_v26 }
 0x10b   : > { %v510_v34 = vpop.f32.mrf.mxu0  ;;  %v574_v35 = vpop.f32.mrf.mxu1 }
 0x10c   : > { %v988_v36 = vpack.c.bf16 %v519_v30, %v516_v28  ;;  %v1028_v37 = vpack.c.bf16 %v583_v31, %v580_v29  ;;  %v511_v38 = vadd.f32 %v1296_v26, %v510_v34  ;;  %v575_v39 = vadd.f32 %v1296_v26, %v574_v35 }
 0x10e   : > { %1036 = vst [vmem:[%s1309_s17 + $0x38] sm:$0xff] %v988_v36   ;;  %1044 = vst [vmem:[%s1309_s17 + $0x78] sm:$0xff] %v1028_v37   ;;  %v983_v40 = vpack.c.bf16 %v511_v38, %v508_v32  ;;  %v1023_v41 = vpack.c.bf16 %v575_v39, %v572_v33 }
 0x110   : > { %1035 = vst [vmem:[%s1309_s17 + $0x30] sm:$0xff] %v983_v40   ;;  %1043 = vst [vmem:[%s1309_s17 + $0x70] sm:$0xff] %v1023_v41  }
 0x111 PF: > { %s13_s14 = sadd.s32 1, %s1203_s14   ;;  %s1366_s12 = smov %s1199_s13 }
 0x112   : > { %p10_p5 = scmp.ge.s32.totalorder %s13_s14, 4   ;;  %s1367_s13 = smov %s1369_s15 }
 0x114   :  { %12 = sbr.rel (!%p10_p5) target bundleno = 2 (0x2), region = 68 }

// kernel: forward.24
= control target key start
LH: loop header
LB: loop body
LE: loop exit
PB: predicated region body
PF: predicated region fallthrough
CT: control target
= control target key end

     0   :  { %s1257_s12 = smov 0   ;;  %s1259_s13 = smov 0   ;;  %s1394_s0 = inlined_call_operand.vmem [shape: bf16[512,128], index: 0, kind: input, shape index: {}]   ;;  %s1395_s1 = inlined_call_operand.vmem [shape: bf16[128,128], index: 1, kind: input, shape index: {}]   ;;  %s1396_s2 = inlined_call_operand.vmem [shape: f32[1,128], index: 2, kind: input, shape index: {}]   ;;  %s1397_s3 = inlined_call_operand.vmem [shape: bf16[512,128], index: 3, kind: output, shape index: {}]  }
   0x1   :  { %s1261_s14 = smov 0  }
   0x2 LB: > { %s25_s15 = sadd.s32 1, %s1231_s13  ;;  %p886_p0 = scmp.ge.s32.totalorder %s1235_s14, 1  ;;  %s1235_s14 = sphi %s1261_s14, %s13_s14   ;;  %s1231_s13 = sphi %s1259_s13, %s1399_s13   ;;  %s1227_s12 = sphi %s1257_s12, %s1398_s12  }
   0x3   : > { %p27_p1 = scmp.ge.s32.totalorder %s25_s15, 2  ;;  %p169_p2 = scmp.lt.s32.totalorder %s1235_s14, 3 }
   0x5   : > { %s1401_s15 = smov (%p27_p1, %s25_s15), 0  ;;  %p170_p3 = pnand %p886_p0, %p169_p2 }
   0x6   : > { %s887_s18 = sshll.u32 (!%p170_p3), %s1227_s12, 5 }
   0x7   : > { %173 = sbr.rel (%p170_p3) target bundleno = 275 (0x113), region = 32  ;;  %p204_p4 = scmp.lt.s32.totalorder (!%p170_p3), %s887_s18, 63 }
   0xc   : > { %v1189_v0 = vld [vmem:[%s1395_s1 + $0x38] sm:$0xff]   ;;  %v1190_v1 = vld [vmem:[%s1395_s1 + $0x30] sm:$0xff]   ;;  %s1403_s18 = smov (!%p204_p4, %s887_s18), 63  ;;  %v1191_v2 = vld [vmem:[%s1395_s1 + $0x28] sm:$0xff]  }
   0xd   : > { %1101 = vmatprep.subr.bf16.mxu0 %v1189_v0  ;;  %1149 = vmatprep.subr.bf16.mxu1 %v1189_v0  ;;  %s888_s23 = sshll.u32 %s1403_s18, 2  ;;  %v1192_v3 = vld [vmem:[%s1395_s1 + $0x20] sm:$0xff]   ;;  %v1193_v6 = vld [vmem:[%s1395_s1 + $0x18] sm:$0xff]   ;;  %v1194_v7 = vld [vmem:[%s1395_s1 + $0x10] sm:$0xff]  }
   0xe   : > { %1102 = vmatpush3.bf16.msra.mxu0 %v1189_v0  ;;  %1157 = vmatpush3.bf16.msra.mxu1 %v1189_v0  ;;  %s1292_s26 = scalar_lea.vmem %s1394_s0, %s888_s23  ;;  %v1195_v8 = vld [vmem:[%s1395_s1 + $0x8] sm:$0xff]   ;;  %v1196_v9 = vld [vmem:[%s1395_s1] sm:$0xff]   ;;  %s1343_s17 = scalar_lea.vmem %s1397_s3, %s888_s23 }
   0xf   : > { %1103 = vmatprep.subr.bf16.mxu0 %v1190_v1  ;;  %1150 = vmatprep.subr.bf16.mxu1 %v1190_v1  ;;  %v1197_v4 = vld [vmem:[%s1292_s26] sm:$0xff]   ;;  %v1199_v10 = vld [vmem:[%s1292_s26 + $0x8] sm:$0xff]   ;;  %v1201_v12 = vld [vmem:[%s1292_s26 + $0x10] sm:$0xff]  }
  0x10   : > { %v1198_v5 = vld [vmem:[%s1292_s26 + $0x40] sm:$0xff]   ;;  %1117 = vmatprep.mubr.bf16.mxu0 %v1197_v4  ;;  %v1200_v11 = vld [vmem:[%s1292_s26 + $0x48] sm:$0xff]   ;;  %v1202_v13 = vld [vmem:[%s1292_s26 + $0x50] sm:$0xff]  }
  0x11   : > { %1133 = vmatprep.mubr.bf16.mxu1 %v1198_v5  ;;  %v1203_v14 = vld [vmem:[%s1292_s26 + $0x18] sm:$0xff]   ;;  %v1205_v16 = vld [vmem:[%s1292_s26 + $0x20] sm:$0xff]   ;;  %v1207_v18 = vld [vmem:[%s1292_s26 + $0x28] sm:$0xff]  }
  0x12   : > { %1104 = vmatpush3.bf16.msra.mxu0 %v1190_v1  ;;  %1158 = vmatpush3.bf16.msra.mxu1 %v1190_v1  ;;  %v1204_v15 = vld [vmem:[%s1292_s26 + $0x58] sm:$0xff]   ;;  %v1206_v17 = vld [vmem:[%s1292_s26 + $0x60] sm:$0xff]   ;;  %v1208_v19 = vld [vmem:[%s1292_s26 + $0x68] sm:$0xff]  }
  0x13   : > { %1105 = vmatprep.subr.bf16.mxu0 %v1191_v2  ;;  %1151 = vmatprep.subr.bf16.mxu1 %v1191_v2  ;;  %v1209_v20 = vld [vmem:[%s1292_s26 + $0x30] sm:$0xff]   ;;  %v1211_v22 = vld [vmem:[%s1292_s26 + $0x38] sm:$0xff]   ;;  %v1328_v24 = vld [vmem:[%s1396_s2] ss:$0 sm:$0xff] }
  0x14   : > { %v1210_v21 = vld [vmem:[%s1292_s26 + $0x70] sm:$0xff]   ;;  %v1212_v23 = vld [vmem:[%s1292_s26 + $0x78] sm:$0xff]  }
  0x16   : > { %1106 = vmatpush3.bf16.msra.mxu0 %v1191_v2  ;;  %1159 = vmatpush3.bf16.msra.mxu1 %v1191_v2 }
  0x17   : > { %1107 = vmatprep.subr.bf16.mxu0 %v1192_v3  ;;  %1152 = vmatprep.subr.bf16.mxu1 %v1192_v3 }
  0x1a   : > { %1108 = vmatpush3.bf16.msra.mxu0 %v1192_v3  ;;  %1160 = vmatpush3.bf16.msra.mxu1 %v1192_v3 }
  0x1b   : > { %1109 = vmatprep.subr.bf16.mxu0 %v1193_v6  ;;  %1153 = vmatprep.subr.bf16.mxu1 %v1193_v6 }
  0x1e   : > { %1110 = vmatpush3.bf16.msra.mxu0 %v1193_v6  ;;  %1161 = vmatpush3.bf16.msra.mxu1 %v1193_v6 }
  0x1f   : > { %1111 = vmatprep.subr.bf16.mxu0 %v1194_v7  ;;  %1154 = vmatprep.subr.bf16.mxu1 %v1194_v7 }
  0x22   : > { %1112 = vmatpush3.bf16.msra.mxu0 %v1194_v7  ;;  %1162 = vmatpush3.bf16.msra.mxu1 %v1194_v7 }
  0x23   : > { %1113 = vmatprep.subr.bf16.mxu0 %v1195_v8  ;;  %1155 = vmatprep.subr.bf16.mxu1 %v1195_v8 }
  0x26   : > { %1114 = vmatpush3.bf16.msra.mxu0 %v1195_v8  ;;  %1163 = vmatpush3.bf16.msra.mxu1 %v1195_v8 }
  0x27   : > { %1115 = vmatprep.subr.bf16.mxu0 %v1196_v9  ;;  %1156 = vmatprep.subr.bf16.mxu1 %v1196_v9 }
  0x2a   : > { %1116 = vmatpush3.bf16.msra.mxu0 %v1196_v9  ;;  %1164 = vmatpush3.bf16.msra.mxu1 %v1196_v9 }
  0x2d   : > { %1118 = vmatmul.mubr.bf16.vlgmr.msra.gmra.mxu0 %v1199_v10  ;;  %1134 = vmatmul.mubr.bf16.vlgmr.msra.gmra.mxu1 %v1200_v11 }
  0x2e   : > { %1121 = vmatprep.mubr.bf16.mxu0 %v1201_v12  ;;  %1137 = vmatprep.mubr.bf16.mxu1 %v1202_v13 }
  0x35   : > { %1122 = vmatmul.mubr.bf16.gmra.mxu0 %v1203_v14  ;;  %1138 = vmatmul.mubr.bf16.gmra.mxu1 %v1204_v15 }
  0x36   : > { %1125 = vmatprep.mubr.bf16.mxu0 %v1205_v16  ;;  %1141 = vmatprep.mubr.bf16.mxu1 %v1206_v17 }
  0x3d   : > { %1126 = vmatmul.mubr.bf16.gmra.mxu0 %v1207_v18  ;;  %1142 = vmatmul.mubr.bf16.gmra.mxu1 %v1208_v19 }
  0x3e   : > { %1129 = vmatprep.mubr.bf16.mxu0 %v1209_v20  ;;  %1145 = vmatprep.mubr.bf16.mxu1 %v1210_v21 }
  0x45   : > { %1130 = vmatmul.mubr.bf16.gmra.mxu0 %v1211_v22  ;;  %1146 = vmatmul.mubr.bf16.gmra.mxu1 %v1212_v23 }
  0xed   : > { %v1119_v25 = vpop.f32.mrf.mxu0  ;;  %v1135_v26 = vpop.f32.mrf.mxu1 }
  0xee   : > { %v468_v27 = vadd.f32 %v1119_v25, %v1328_v24  ;;  %v532_v28 = vadd.f32 %v1135_v26, %v1328_v24 }
  0xef   : > { %v459_v29 = vpop.f32.mrf.mxu0  ;;  %v523_v30 = vpop.f32.mrf.mxu1 }
  0xf0   : > { %v460_v31 = vadd.f32 %v1328_v24, %v459_v29  ;;  %v524_v32 = vadd.f32 %v1328_v24, %v523_v30  ;;  %v588_v37 = vmax.f32 %v468_v27, 0.0  ;;  %v604_v38 = vmax.f32 %v532_v28, 0.0 }
  0xf1   : > { %v1120_v33 = vpop.f32.mrf.mxu0  ;;  %v1136_v34 = vpop.f32.mrf.mxu1 }
  0xf2   : > { %v471_v35 = vadd.f32 %v1120_v33, %v1328_v24  ;;  %v535_v36 = vadd.f32 %v1136_v34, %v1328_v24  ;;  %v586_v45 = vmax.f32 %v460_v31, 0.0  ;;  %v602_v46 = vmax.f32 %v524_v32, 0.0 }
  0xf3   : > { %v462_v39 = vpop.f32.mrf.mxu0  ;;  %v526_v40 = vpop.f32.mrf.mxu1 }
  0xf4   : > { %v589_v41 = vmax.f32 %v471_v35, 0.0  ;;  %v605_v42 = vmax.f32 %v535_v36, 0.0  ;;  %v463_v43 = vadd.f32 %v1328_v24, %v462_v39  ;;  %v527_v44 = vadd.f32 %v1328_v24, %v526_v40 }
  0xf5   : > { %v1123_v47 = vpop.f32.mrf.mxu0  ;;  %v1139_v48 = vpop.f32.mrf.mxu1 }
  0xf6   : > { %v990_v49 = vpack.c.bf16 %v589_v41, %v588_v37  ;;  %v1030_v50 = vpack.c.bf16 %v605_v42, %v604_v38  ;;  %v587_v51 = vmax.f32 %v463_v43, 0.0  ;;  %v603_v52 = vmax.f32 %v527_v44, 0.0 }
  0xf7   : > { %v484_v53 = vadd.f32 %v1123_v47, %v1328_v24  ;;  %v548_v54 = vadd.f32 %v1139_v48, %v1328_v24  ;;  %v475_v55 = vpop.f32.mrf.mxu0  ;;  %v539_v56 = vpop.f32.mrf.mxu1 }
  0xf8   : > { %1062 = vst [vmem:[%s1343_s17 + $0x8] sm:$0xff] %v990_v49   ;;  %1070 = vst [vmem:[%s1343_s17 + $0x48] sm:$0xff] %v1030_v50   ;;  %v985_v57 = vpack.c.bf16 %v587_v51, %v586_v45  ;;  %v1025_v58 = vpack.c.bf16 %v603_v52, %v602_v46  ;;  %v476_v59 = vadd.f32 %v1328_v24, %v475_v55 }
  0xf9   : > { %v540_v60 = vadd.f32 %v1328_v24, %v539_v56  ;;  %v1124_v61 = vpop.f32.mrf.mxu0  ;;  %v1140_v62 = vpop.f32.mrf.mxu1  ;;  %v592_v1 = vmax.f32 %v484_v53, 0.0  ;;  %v608_v2 = vmax.f32 %v548_v54, 0.0 }
  0xfa   : > { %986 = vst [vmem:[%s1343_s17] sm:$0xff] %v985_v57   ;;  %1069 = vst [vmem:[%s1343_s17 + $0x40] sm:$0xff] %v1025_v58   ;;  %v487_v63 = vadd.f32 %v1124_v61, %v1328_v24  ;;  %v551_v0 = vadd.f32 %v1140_v62, %v1328_v24  ;;  %v590_v9 = vmax.f32 %v476_v59, 0.0 }
  0xfb   : > { %v478_v3 = vpop.f32.mrf.mxu0  ;;  %v542_v4 = vpop.f32.mrf.mxu1  ;;  %v606_v10 = vmax.f32 %v540_v60, 0.0 }
  0xfc   : > { %v593_v5 = vmax.f32 %v487_v63, 0.0  ;;  %v609_v6 = vmax.f32 %v551_v0, 0.0  ;;  %v479_v7 = vadd.f32 %v1328_v24, %v478_v3  ;;  %v543_v8 = vadd.f32 %v1328_v24, %v542_v4 }
  0xfd   : > { %v1127_v11 = vpop.f32.mrf.mxu0  ;;  %v1143_v12 = vpop.f32.mrf.mxu1 }
  0xfe   : > { %v1000_v13 = vpack.c.bf16 %v593_v5, %v592_v1  ;;  %v1040_v14 = vpack.c.bf16 %v609_v6, %v608_v2  ;;  %v591_v15 = vmax.f32 %v479_v7, 0.0  ;;  %v607_v16 = vmax.f32 %v543_v8, 0.0 }
  0xff   : > { %v500_v17 = vadd.f32 %v1127_v11, %v1328_v24  ;;  %v564_v18 = vadd.f32 %v1143_v12, %v1328_v24  ;;  %v491_v19 = vpop.f32.mrf.mxu0  ;;  %v555_v20 = vpop.f32.mrf.mxu1 }
 0x100   : > { %1064 = vst [vmem:[%s1343_s17 + $0x18] sm:$0xff] %v1000_v13   ;;  %1072 = vst [vmem:[%s1343_s17 + $0x58] sm:$0xff] %v1040_v14   ;;  %v995_v21 = vpack.c.bf16 %v591_v15, %v590_v9  ;;  %v1035_v22 = vpack.c.bf16 %v607_v16, %v606_v10  ;;  %v492_v23 = vadd.f32 %v1328_v24, %v491_v19 }
 0x101   : > { %v556_v25 = vadd.f32 %v1328_v24, %v555_v20  ;;  %v1128_v26 = vpop.f32.mrf.mxu0  ;;  %v1144_v27 = vpop.f32.mrf.mxu1  ;;  %v596_v30 = vmax.f32 %v500_v17, 0.0  ;;  %v612_v31 = vmax.f32 %v564_v18, 0.0 }
 0x102   : > { %1063 = vst [vmem:[%s1343_s17 + $0x10] sm:$0xff] %v995_v21   ;;  %1071 = vst [vmem:[%s1343_s17 + $0x50] sm:$0xff] %v1035_v22   ;;  %v503_v28 = vadd.f32 %v1128_v26, %v1328_v24  ;;  %v567_v29 = vadd.f32 %v1144_v27, %v1328_v24  ;;  %v594_v38 = vmax.f32 %v492_v23, 0.0 }
 0x103   : > { %v494_v32 = vpop.f32.mrf.mxu0  ;;  %v558_v33 = vpop.f32.mrf.mxu1  ;;  %v610_v39 = vmax.f32 %v556_v25, 0.0 }
 0x104   : > { %v597_v34 = vmax.f32 %v503_v28, 0.0  ;;  %v613_v35 = vmax.f32 %v567_v29, 0.0  ;;  %v495_v36 = vadd.f32 %v1328_v24, %v494_v32  ;;  %v559_v37 = vadd.f32 %v1328_v24, %v558_v33 }
 0x105   : > { %v1131_v40 = vpop.f32.mrf.mxu0  ;;  %v1147_v41 = vpop.f32.mrf.mxu1 }
 0x106   : > { %v1010_v42 = vpack.c.bf16 %v597_v34, %v596_v30  ;;  %v1050_v43 = vpack.c.bf16 %v613_v35, %v612_v31  ;;  %v595_v44 = vmax.f32 %v495_v36, 0.0  ;;  %v611_v45 = vmax.f32 %v559_v37, 0.0 }
 0x107   : > { %v516_v46 = vadd.f32 %v1131_v40, %v1328_v24  ;;  %v580_v47 = vadd.f32 %v1147_v41, %v1328_v24  ;;  %v507_v48 = vpop.f32.mrf.mxu0  ;;  %v571_v49 = vpop.f32.mrf.mxu1 }
 0x108   : > { %1066 = vst [vmem:[%s1343_s17 + $0x28] sm:$0xff] %v1010_v42   ;;  %1074 = vst [vmem:[%s1343_s17 + $0x68] sm:$0xff] %v1050_v43   ;;  %v1005_v50 = vpack.c.bf16 %v595_v44, %v594_v38  ;;  %v1045_v51 = vpack.c.bf16 %v611_v45, %v610_v39  ;;  %v508_v52 = vadd.f32 %v1328_v24, %v507_v48 }
 0x109   : > { %v572_v53 = vadd.f32 %v1328_v24, %v571_v49  ;;  %v1132_v54 = vpop.f32.mrf.mxu0  ;;  %v1148_v55 = vpop.f32.mrf.mxu1  ;;  %v600_v58 = vmax.f32 %v516_v46, 0.0  ;;  %v616_v59 = vmax.f32 %v580_v47, 0.0 }
 0x10a   : > { %1065 = vst [vmem:[%s1343_s17 + $0x20] sm:$0xff] %v1005_v50   ;;  %1073 = vst [vmem:[%s1343_s17 + $0x60] sm:$0xff] %v1045_v51   ;;  %v519_v56 = vadd.f32 %v1132_v54, %v1328_v24  ;;  %v583_v57 = vadd.f32 %v1148_v55, %v1328_v24  ;;  %v598_v2 = vmax.f32 %v508_v52, 0.0 }
 0x10b   : > { %v510_v60 = vpop.f32.mrf.mxu0  ;;  %v574_v61 = vpop.f32.mrf.mxu1  ;;  %v614_v3 = vmax.f32 %v572_v53, 0.0 }
 0x10c   : > { %v601_v62 = vmax.f32 %v519_v56, 0.0  ;;  %v617_v63 = vmax.f32 %v583_v57, 0.0  ;;  %v511_v0 = vadd.f32 %v1328_v24, %v510_v60  ;;  %v575_v1 = vadd.f32 %v1328_v24, %v574_v61 }
 0x10e   : > { %v1020_v4 = vpack.c.bf16 %v601_v62, %v600_v58  ;;  %v1060_v5 = vpack.c.bf16 %v617_v63, %v616_v59  ;;  %v599_v6 = vmax.f32 %v511_v0, 0.0  ;;  %v615_v7 = vmax.f32 %v575_v1, 0.0 }
 0x110   : > { %1068 = vst [vmem:[%s1343_s17 + $0x38] sm:$0xff] %v1020_v4   ;;  %1076 = vst [vmem:[%s1343_s17 + $0x78] sm:$0xff] %v1060_v5   ;;  %v1015_v8 = vpack.c.bf16 %v599_v6, %v598_v2  ;;  %v1055_v9 = vpack.c.bf16 %v615_v7, %v614_v3 }
 0x112   : > { %1067 = vst [vmem:[%s1343_s17 + $0x30] sm:$0xff] %v1015_v8   ;;  %1075 = vst [vmem:[%s1343_s17 + $0x70] sm:$0xff] %v1055_v9  }
 0x113 PF: > { %s13_s14 = sadd.s32 1, %s1235_s14   ;;  %s1398_s12 = smov %s1231_s13 }
 0x114   : > { %p10_p5 = scmp.ge.s32.totalorder %s13_s14, 4   ;;  %s1399_s13 = smov %s1401_s15 }
 0x116   :  { %12 = sbr.rel (!%p10_p5) target bundleno = 2 (0x2), region = 68 }

// kernel: forward.27
= control target key start
LH: loop header
LB: loop body
LE: loop exit
PB: predicated region body
PF: predicated region fallthrough
CT: control target
= control target key end

     0   :  { %s1514_s15 = smov 0   ;;  %s1516_s16 = smov 0   ;;  %s1754_s0 = inlined_call_operand.vmem [shape: bf16[512,128], index: 0, kind: input, shape index: {}]   ;;  %s1755_s1 = inlined_call_operand.vmem [shape: bf16[128,128], index: 1, kind: input, shape index: {}]   ;;  %s1756_s2 = inlined_call_operand.vmem [shape: f32[1,128], index: 2, kind: input, shape index: {}]   ;;  %s1757_s3 = inlined_call_operand.vmem [shape: bf16[512,128], index: 3, kind: input, shape index: {}]   ;;  %s1758_s4 = inlined_call_operand.vmem [shape: bf16[512,128], index: 4, kind: output, shape index: {}]  }
   0x1   :  { %s1518_s17 = smov 0  }
   0x2 LB: > { %s26_s18 = sadd.s32 1, %s1483_s16  ;;  %p1057_p0 = scmp.ge.s32.totalorder %s1487_s17, 1  ;;  %s1487_s17 = sphi %s1518_s17, %s14_s17   ;;  %s1483_s16 = sphi %s1516_s16, %s1760_s16   ;;  %s1479_s15 = sphi %s1514_s15, %s1759_s15  }
   0x3   : > { %p28_p1 = scmp.ge.s32.totalorder %s26_s18, 2  ;;  %p210_p2 = scmp.lt.s32.totalorder %s1487_s17, 3 }
   0x5   : > { %s1762_s18 = smov (%p28_p1, %s26_s18), 0  ;;  %p211_p3 = pnand %p1057_p0, %p210_p2 }
   0x6   : > { %s1058_s21 = sshll.u32 (!%p211_p3), %s1479_s15, 5 }
   0x7   : > { %214 = sbr.rel (%p211_p3) target bundleno = 277 (0x115), region = 36  ;;  %p255_p4 = scmp.lt.s32.totalorder (!%p211_p3), %s1058_s21, 63 }
   0xc   : > { %v1441_v0 = vld [vmem:[%s1755_s1 + $0x38] sm:$0xff]   ;;  %v1442_v1 = vld [vmem:[%s1755_s1 + $0x30] sm:$0xff]   ;;  %s1764_s21 = smov (!%p255_p4, %s1058_s21), 63  ;;  %v1443_v2 = vld [vmem:[%s1755_s1 + $0x28] sm:$0xff]  }
   0xd   : > { %1353 = vmatprep.subr.bf16.mxu0 %v1441_v0  ;;  %1401 = vmatprep.subr.bf16.mxu1 %v1441_v0  ;;  %s1541_s26 = sshll.u32 %s1764_s21, 2  ;;  %v1444_v3 = vld [vmem:[%s1755_s1 + $0x20] sm:$0xff]   ;;  %v1445_v6 = vld [vmem:[%s1755_s1 + $0x18] sm:$0xff]   ;;  %v1446_v7 = vld [vmem:[%s1755_s1 + $0x10] sm:$0xff]  }
   0xe   : > { %1354 = vmatpush3.bf16.msra.mxu0 %v1441_v0  ;;  %1409 = vmatpush3.bf16.msra.mxu1 %v1441_v0  ;;  %s1547_s29 = scalar_lea.vmem %s1754_s0, %s1541_s26  ;;  %v1447_v8 = vld [vmem:[%s1755_s1 + $0x8] sm:$0xff]   ;;  %v1448_v9 = vld [vmem:[%s1755_s1] sm:$0xff]   ;;  %s1584_s19 = scalar_lea.vmem %s1757_s3, %s1541_s26 }
   0xf   : > { %1355 = vmatprep.subr.bf16.mxu0 %v1442_v1  ;;  %1402 = vmatprep.subr.bf16.mxu1 %v1442_v1  ;;  %v1449_v4 = vld [vmem:[%s1547_s29] sm:$0xff]   ;;  %v1451_v10 = vld [vmem:[%s1547_s29 + $0x8] sm:$0xff]   ;;  %v1453_v12 = vld [vmem:[%s1547_s29 + $0x10] sm:$0xff]   ;;  %s1647_s24 = scalar_lea.vmem %s1758_s4, %s1541_s26 }
  0x10   : > { %v1450_v5 = vld [vmem:[%s1547_s29 + $0x40] sm:$0xff]   ;;  %1369 = vmatprep.mubr.bf16.mxu0 %v1449_v4  ;;  %v1452_v11 = vld [vmem:[%s1547_s29 + $0x48] sm:$0xff]   ;;  %v1454_v13 = vld [vmem:[%s1547_s29 + $0x50] sm:$0xff]  }
  0x11   : > { %1385 = vmatprep.mubr.bf16.mxu1 %v1450_v5  ;;  %v1455_v14 = vld [vmem:[%s1547_s29 + $0x18] sm:$0xff]   ;;  %v1457_v16 = vld [vmem:[%s1547_s29 + $0x20] sm:$0xff]   ;;  %v1459_v18 = vld [vmem:[%s1547_s29 + $0x28] sm:$0xff]  }
  0x12   : > { %1356 = vmatpush3.bf16.msra.mxu0 %v1442_v1  ;;  %1410 = vmatpush3.bf16.msra.mxu1 %v1442_v1  ;;  %v1456_v15 = vld [vmem:[%s1547_s29 + $0x58] sm:$0xff]   ;;  %v1458_v17 = vld [vmem:[%s1547_s29 + $0x60] sm:$0xff]   ;;  %v1460_v19 = vld [vmem:[%s1547_s29 + $0x68] sm:$0xff]  }
  0x13   : > { %1357 = vmatprep.subr.bf16.mxu0 %v1443_v2  ;;  %1403 = vmatprep.subr.bf16.mxu1 %v1443_v2  ;;  %v1461_v20 = vld [vmem:[%s1547_s29 + $0x30] sm:$0xff]   ;;  %v1463_v22 = vld [vmem:[%s1547_s29 + $0x38] sm:$0xff]   ;;  %v1299_v24 = vld [vmem:[%s1584_s19 + $0x8] sm:$0xff]  }
  0x14   : > { %v1462_v21 = vld [vmem:[%s1547_s29 + $0x70] sm:$0xff]   ;;  %v1464_v23 = vld [vmem:[%s1547_s29 + $0x78] sm:$0xff]   ;;  %v1307_v25 = vld [vmem:[%s1584_s19 + $0x48] sm:$0xff]   ;;  %v1161_v32 = vunpack.c.l.bf16 %v1299_v24  ;;  %v1162_v41 = vunpack.c.h.bf16 %v1299_v24 }
  0x15   : > { %v1156_v26 = vld [vmem:[%s1584_s19] sm:$0xff]   ;;  %v1596_v29 = vld [vmem:[%s1584_s19 + $0x18] sm:$0xff]   ;;  %v1193_v34 = vunpack.c.l.bf16 %v1307_v25  ;;  %v1602_v37 = vld [vmem:[%s1584_s19 + $0x10] sm:$0xff]   ;;  %v1194_v42 = vunpack.c.h.bf16 %v1307_v25 }
  0x16   : > { %1358 = vmatpush3.bf16.msra.mxu0 %v1443_v2  ;;  %1411 = vmatpush3.bf16.msra.mxu1 %v1443_v2  ;;  %v1306_v27 = vld [vmem:[%s1584_s19 + $0x40] sm:$0xff]   ;;  %v1599_v30 = vld [vmem:[%s1584_s19 + $0x58] sm:$0xff]   ;;  %v1157_v35 = vunpack.c.l.bf16 %v1156_v26  ;;  %v1605_v38 = vld [vmem:[%s1584_s19 + $0x50] sm:$0xff]   ;;  %v1158_v45 = vunpack.c.h.bf16 %v1156_v26  ;;  %v1169_v47 = vunpack.c.l.bf16 %v1596_v29  ;;  %v1165_v53 = vunpack.c.l.bf16 %v1602_v37 }
  0x17   : > { %1359 = vmatprep.subr.bf16.mxu0 %v1444_v3  ;;  %1404 = vmatprep.subr.bf16.mxu1 %v1444_v3  ;;  %v1593_v28 = vld [vmem:[%s1756_s2] ss:$0 sm:$0xff]  ;;  %v1189_v36 = vunpack.c.l.bf16 %v1306_v27  ;;  %v1190_v46 = vunpack.c.h.bf16 %v1306_v27  ;;  %v1201_v48 = vunpack.c.l.bf16 %v1599_v30  ;;  %v1612_v49 = vld [vmem:[%s1584_s19 + $0x28] sm:$0xff]   ;;  %v1197_v54 = vunpack.c.l.bf16 %v1605_v38 }
  0x18   : > { %v1615_v50 = vld [vmem:[%s1584_s19 + $0x68] sm:$0xff]   ;;  %v1622_v55 = vld [vmem:[%s1584_s19 + $0x20] sm:$0xff]   ;;  %v1170_v59 = vunpack.c.h.bf16 %v1596_v29  ;;  %v1202_v60 = vunpack.c.h.bf16 %v1599_v30  ;;  %v1166_v61 = vunpack.c.h.bf16 %v1602_v37  ;;  %v1198_v62 = vunpack.c.h.bf16 %v1605_v38  ;;  %v1691_v38 = vld [vmem:[%s1584_s19 + $0x70] sm:$0xff]  }
  0x19   : > { %v1625_v56 = vld [vmem:[%s1584_s19 + $0x60] sm:$0xff]   ;;  %v1177_v1 = vunpack.c.l.bf16 %v1612_v49  ;;  %v1209_v2 = vunpack.c.l.bf16 %v1615_v50 }
  0x1a   : > { %1360 = vmatpush3.bf16.msra.mxu0 %v1444_v3  ;;  %1412 = vmatpush3.bf16.msra.mxu1 %v1444_v3 }
  0x1b   : > { %1361 = vmatprep.subr.bf16.mxu0 %v1445_v6  ;;  %1405 = vmatprep.subr.bf16.mxu1 %v1445_v6 }
  0x1e   : > { %1362 = vmatpush3.bf16.msra.mxu0 %v1445_v6  ;;  %1413 = vmatpush3.bf16.msra.mxu1 %v1445_v6 }
  0x1f   : > { %1363 = vmatprep.subr.bf16.mxu0 %v1446_v7  ;;  %1406 = vmatprep.subr.bf16.mxu1 %v1446_v7 }
  0x22   : > { %1364 = vmatpush3.bf16.msra.mxu0 %v1446_v7  ;;  %1414 = vmatpush3.bf16.msra.mxu1 %v1446_v7  ;;  %v1173_v7 = vunpack.c.l.bf16 %v1622_v55 }
  0x23   : > { %1365 = vmatprep.subr.bf16.mxu0 %v1447_v8  ;;  %1407 = vmatprep.subr.bf16.mxu1 %v1447_v8 }
  0x26   : > { %1366 = vmatpush3.bf16.msra.mxu0 %v1447_v8  ;;  %1415 = vmatpush3.bf16.msra.mxu1 %v1447_v8  ;;  %v1205_v8 = vunpack.c.l.bf16 %v1625_v56 }
  0x27   : > { %1367 = vmatprep.subr.bf16.mxu0 %v1448_v9  ;;  %1408 = vmatprep.subr.bf16.mxu1 %v1448_v9 }
  0x2a   : > { %1368 = vmatpush3.bf16.msra.mxu0 %v1448_v9  ;;  %1416 = vmatpush3.bf16.msra.mxu1 %v1448_v9 }
  0x2d   : > { %1370 = vmatmul.mubr.bf16.vlgmr.msra.gmra.mxu0 %v1451_v10  ;;  %1386 = vmatmul.mubr.bf16.vlgmr.msra.gmra.mxu1 %v1452_v11 }
  0x2e   : > { %1373 = vmatprep.mubr.bf16.mxu0 %v1453_v12  ;;  %1389 = vmatprep.mubr.bf16.mxu1 %v1454_v13 }
  0x35   : > { %1374 = vmatmul.mubr.bf16.gmra.mxu0 %v1455_v14  ;;  %1390 = vmatmul.mubr.bf16.gmra.mxu1 %v1456_v15 }
  0x36   : > { %1377 = vmatprep.mubr.bf16.mxu0 %v1457_v16  ;;  %1393 = vmatprep.mubr.bf16.mxu1 %v1458_v17  ;;  %v1178_v17 = vunpack.c.h.bf16 %v1612_v49 }
  0x3d   : > { %1378 = vmatmul.mubr.bf16.gmra.mxu0 %v1459_v18  ;;  %1394 = vmatmul.mubr.bf16.gmra.mxu1 %v1460_v19  ;;  %v1210_v18 = vunpack.c.h.bf16 %v1615_v50 }
  0x3e   : > { %1381 = vmatprep.mubr.bf16.mxu0 %v1461_v20  ;;  %1397 = vmatprep.mubr.bf16.mxu1 %v1462_v21 }
  0x45   : > { %1382 = vmatmul.mubr.bf16.gmra.mxu0 %v1463_v22  ;;  %1398 = vmatmul.mubr.bf16.gmra.mxu1 %v1464_v23 }
  0xed   : > { %v1371_v31 = vpop.f32.mrf.mxu0  ;;  %v1387_v33 = vpop.f32.mrf.mxu1 }
  0xee   : > { %v528_v39 = vadd.f32 %v1371_v31, %v1593_v28  ;;  %v592_v40 = vadd.f32 %v1387_v33, %v1593_v28 }
  0xef   : > { %v519_v43 = vpop.f32.mrf.mxu0  ;;  %v583_v44 = vpop.f32.mrf.mxu1 }
  0xf0   : > { %v520_v51 = vadd.f32 %v1593_v28, %v519_v43  ;;  %v584_v52 = vadd.f32 %v1593_v28, %v583_v44  ;;  %v712_v63 = vadd.f32 %v1161_v32, %v528_v39  ;;  %v728_v0 = vadd.f32 %v1193_v34, %v592_v40 }
  0xf1   : > { %v1372_v57 = vpop.f32.mrf.mxu0  ;;  %v1388_v58 = vpop.f32.mrf.mxu1 }
  0xf2   : > { %v531_v3 = vadd.f32 %v1372_v57, %v1593_v28  ;;  %v595_v4 = vadd.f32 %v1388_v58, %v1593_v28  ;;  %v710_v9 = vadd.f32 %v1157_v35, %v520_v51  ;;  %v726_v10 = vadd.f32 %v1189_v36, %v584_v52  ;;  %v1654_v52 = vld [vmem:[%s1584_s19 + $0x38] sm:$0xff]  }
  0xf3   : > { %v522_v5 = vpop.f32.mrf.mxu0  ;;  %v586_v6 = vpop.f32.mrf.mxu1  ;;  %v744_v19 = vmax.f32 %v712_v63, 0.0  ;;  %v760_v20 = vmax.f32 %v728_v0, 0.0  ;;  %v1206_v51 = vunpack.c.h.bf16 %v1625_v56  ;;  %v1657_v57 = vld [vmem:[%s1584_s19 + $0x78] sm:$0xff]  }
  0xf4   : > { %v523_v11 = vadd.f32 %v1593_v28, %v522_v5  ;;  %v587_v12 = vadd.f32 %v1593_v28, %v586_v6  ;;  %v713_v13 = vadd.f32 %v1162_v41, %v531_v3  ;;  %v729_v14 = vadd.f32 %v1194_v42, %v595_v4 }
  0xf5   : > { %v1375_v15 = vpop.f32.mrf.mxu0  ;;  %v1391_v16 = vpop.f32.mrf.mxu1  ;;  %v742_v32 = vmax.f32 %v710_v9, 0.0  ;;  %v758_v33 = vmax.f32 %v726_v10, 0.0 }
  0xf6   : > { %v711_v21 = vadd.f32 %v1158_v45, %v523_v11  ;;  %v727_v22 = vadd.f32 %v1190_v46, %v587_v12  ;;  %v745_v23 = vmax.f32 %v713_v13, 0.0  ;;  %v761_v24 = vmax.f32 %v729_v14, 0.0 }
  0xf7   : > { %v544_v25 = vadd.f32 %v1375_v15, %v1593_v28  ;;  %v608_v26 = vadd.f32 %v1391_v16, %v1593_v28  ;;  %v535_v27 = vpop.f32.mrf.mxu0  ;;  %v599_v31 = vpop.f32.mrf.mxu1  ;;  %v1174_v46 = vunpack.c.h.bf16 %v1622_v55  ;;  %v1185_v14 = vunpack.c.l.bf16 %v1654_v52 }
  0xf8   : > { %v743_v34 = vmax.f32 %v711_v21, 0.0  ;;  %v759_v35 = vmax.f32 %v727_v22, 0.0  ;;  %v1227_v36 = vpack.c.bf16 %v745_v23, %v744_v19  ;;  %v1267_v39 = vpack.c.bf16 %v761_v24, %v760_v20 }
  0xf9   : > { %v536_v40 = vadd.f32 %v1593_v28, %v535_v27  ;;  %v600_v41 = vadd.f32 %v1593_v28, %v599_v31  ;;  %v1376_v42 = vpop.f32.mrf.mxu0  ;;  %v1392_v43 = vpop.f32.mrf.mxu1  ;;  %v716_v58 = vadd.f32 %v1169_v47, %v544_v25  ;;  %v732_v63 = vadd.f32 %v1201_v48, %v608_v26 }
  0xfa   : > { %v1222_v44 = vpack.c.bf16 %v743_v34, %v742_v32  ;;  %v1262_v45 = vpack.c.bf16 %v759_v35, %v758_v33  ;;  %1314 = vst [vmem:[%s1647_s24 + $0x8] sm:$0xff] %v1227_v36   ;;  %1322 = vst [vmem:[%s1647_s24 + $0x48] sm:$0xff] %v1267_v39   ;;  %v547_v0 = vadd.f32 %v1376_v42, %v1593_v28 }
  0xfb   : > { %v611_v3 = vadd.f32 %v1392_v43, %v1593_v28  ;;  %v538_v4 = vpop.f32.mrf.mxu0  ;;  %v602_v5 = vpop.f32.mrf.mxu1  ;;  %v714_v6 = vadd.f32 %v1165_v53, %v536_v40  ;;  %v730_v9 = vadd.f32 %v1197_v54, %v600_v41  ;;  %v1217_v53 = vunpack.c.l.bf16 %v1657_v57 }
  0xfc   : > { %1223 = vst [vmem:[%s1647_s24] sm:$0xff] %v1222_v44   ;;  %1321 = vst [vmem:[%s1647_s24 + $0x40] sm:$0xff] %v1262_v45   ;;  %v539_v10 = vadd.f32 %v1593_v28, %v538_v4  ;;  %v603_v47 = vadd.f32 %v1593_v28, %v602_v5  ;;  %v717_v48 = vadd.f32 %v1170_v59, %v547_v0  ;;  %v748_v30 = vmax.f32 %v716_v58, 0.0 }
  0xfd   : > { %v733_v11 = vadd.f32 %v1202_v60, %v611_v3  ;;  %v1379_v12 = vpop.f32.mrf.mxu0  ;;  %v1395_v13 = vpop.f32.mrf.mxu1  ;;  %v764_v60 = vmax.f32 %v732_v63, 0.0  ;;  %v746_v22 = vmax.f32 %v714_v6, 0.0  ;;  %v762_v23 = vmax.f32 %v730_v9, 0.0 }
  0xfe   : > { %v715_v54 = vadd.f32 %v1166_v61, %v539_v10  ;;  %v731_v15 = vadd.f32 %v1198_v62, %v603_v47  ;;  %v560_v29 = vadd.f32 %v1379_v12, %v1593_v28  ;;  %v624_v59 = vadd.f32 %v1395_v13, %v1593_v28  ;;  %v1688_v61 = vld [vmem:[%s1584_s19 + $0x30] sm:$0xff]  }
  0xff   : > { %v749_v16 = vmax.f32 %v717_v48, 0.0  ;;  %v765_v19 = vmax.f32 %v733_v11, 0.0  ;;  %v551_v20 = vpop.f32.mrf.mxu0  ;;  %v615_v21 = vpop.f32.mrf.mxu1  ;;  %v1181_v43 = vunpack.c.l.bf16 %v1688_v61  ;;  %v1213_v44 = vunpack.c.l.bf16 %v1691_v38 }
 0x100   : > { %v747_v37 = vmax.f32 %v715_v54, 0.0  ;;  %v763_v24 = vmax.f32 %v731_v15, 0.0  ;;  %v552_v26 = vadd.f32 %v1593_v28, %v551_v20  ;;  %v616_v27 = vadd.f32 %v1593_v28, %v615_v21 }
 0x101   : > { %v1237_v62 = vpack.c.bf16 %v749_v16, %v748_v30  ;;  %v1277_v25 = vpack.c.bf16 %v765_v19, %v764_v60  ;;  %v1380_v31 = vpop.f32.mrf.mxu0  ;;  %v1396_v32 = vpop.f32.mrf.mxu1  ;;  %v720_v35 = vadd.f32 %v1177_v1, %v560_v29  ;;  %v736_v36 = vadd.f32 %v1209_v2, %v624_v59 }
 0x102   : > { %v1232_v33 = vpack.c.bf16 %v747_v37, %v746_v22  ;;  %v1272_v34 = vpack.c.bf16 %v763_v24, %v762_v23  ;;  %v563_v39 = vadd.f32 %v1380_v31, %v1593_v28  ;;  %v627_v40 = vadd.f32 %v1396_v32, %v1593_v28 }
 0x103   : > { %1316 = vst [vmem:[%s1647_s24 + $0x18] sm:$0xff] %v1237_v62   ;;  %1324 = vst [vmem:[%s1647_s24 + $0x58] sm:$0xff] %v1277_v25   ;;  %v554_v41 = vpop.f32.mrf.mxu0  ;;  %v618_v42 = vpop.f32.mrf.mxu1  ;;  %v718_v1 = vadd.f32 %v1173_v7, %v552_v26  ;;  %v734_v2 = vadd.f32 %v1205_v8, %v616_v27  ;;  %v1186_v5 = vunpack.c.h.bf16 %v1654_v52  ;;  %v1218_v6 = vunpack.c.h.bf16 %v1657_v57 }
 0x104   : > { %1315 = vst [vmem:[%s1647_s24 + $0x10] sm:$0xff] %v1232_v33   ;;  %1323 = vst [vmem:[%s1647_s24 + $0x50] sm:$0xff] %v1272_v34   ;;  %v555_v45 = vadd.f32 %v1593_v28, %v554_v41  ;;  %v619_v58 = vadd.f32 %v1593_v28, %v618_v42  ;;  %v721_v63 = vadd.f32 %v1178_v17, %v563_v39  ;;  %v752_v7 = vmax.f32 %v720_v35, 0.0 }
 0x105   : > { %v737_v0 = vadd.f32 %v1210_v18, %v627_v40  ;;  %v1383_v3 = vpop.f32.mrf.mxu0  ;;  %v1399_v4 = vpop.f32.mrf.mxu1  ;;  %v768_v9 = vmax.f32 %v736_v36, 0.0  ;;  %v750_v11 = vmax.f32 %v718_v1, 0.0  ;;  %v766_v12 = vmax.f32 %v734_v2, 0.0 }
 0x106   : > { %v719_v8 = vadd.f32 %v1174_v46, %v555_v45  ;;  %v735_v10 = vadd.f32 %v1206_v51, %v619_v58  ;;  %v753_v47 = vmax.f32 %v721_v63, 0.0  ;;  %v576_v17 = vadd.f32 %v1383_v3, %v1593_v28 }
 0x107   : > { %v769_v49 = vmax.f32 %v737_v0, 0.0  ;;  %v640_v50 = vadd.f32 %v1399_v4, %v1593_v28  ;;  %v567_v18 = vpop.f32.mrf.mxu0  ;;  %v631_v48 = vpop.f32.mrf.mxu1  ;;  %v1182_v60 = vunpack.c.h.bf16 %v1688_v61  ;;  %v1214_v16 = vunpack.c.h.bf16 %v1691_v38 }
 0x108   : > { %v751_v13 = vmax.f32 %v719_v8, 0.0  ;;  %v767_v54 = vmax.f32 %v735_v10, 0.0  ;;  %v1247_v15 = vpack.c.bf16 %v753_v47, %v752_v7  ;;  %v568_v46 = vadd.f32 %v1593_v28, %v567_v18 }
 0x109   : > { %v1287_v55 = vpack.c.bf16 %v769_v49, %v768_v9  ;;  %v632_v56 = vadd.f32 %v1593_v28, %v631_v48  ;;  %v1384_v51 = vpop.f32.mrf.mxu0  ;;  %v1400_v29 = vpop.f32.mrf.mxu1  ;;  %v724_v19 = vadd.f32 %v1185_v14, %v576_v17  ;;  %v740_v20 = vadd.f32 %v1217_v53, %v640_v50 }
 0x10a   : > { %v1242_v59 = vpack.c.bf16 %v751_v13, %v750_v11  ;;  %v1282_v30 = vpack.c.bf16 %v767_v54, %v766_v12  ;;  %1318 = vst [vmem:[%s1647_s24 + $0x28] sm:$0xff] %v1247_v15   ;;  %v579_v21 = vadd.f32 %v1384_v51, %v1593_v28  ;;  %v643_v22 = vadd.f32 %v1400_v29, %v1593_v28 }
 0x10b   : > { %1326 = vst [vmem:[%s1647_s24 + $0x68] sm:$0xff] %v1287_v55   ;;  %v570_v23 = vpop.f32.mrf.mxu0  ;;  %v634_v37 = vpop.f32.mrf.mxu1  ;;  %v722_v24 = vadd.f32 %v1181_v43, %v568_v46  ;;  %v738_v61 = vadd.f32 %v1213_v44, %v632_v56  ;;  %v756_v53 = vmax.f32 %v724_v19, 0.0  ;;  %v772_v26 = vmax.f32 %v740_v20, 0.0 }
 0x10c   : > { %1317 = vst [vmem:[%s1647_s24 + $0x20] sm:$0xff] %v1242_v59   ;;  %1325 = vst [vmem:[%s1647_s24 + $0x60] sm:$0xff] %v1282_v30   ;;  %v571_v38 = vadd.f32 %v1593_v28, %v570_v23  ;;  %v635_v62 = vadd.f32 %v1593_v28, %v634_v37  ;;  %v725_v25 = vadd.f32 %v1186_v5, %v579_v21 }
 0x10d   : > { %v741_v52 = vadd.f32 %v1218_v6, %v643_v22  ;;  %v754_v32 = vmax.f32 %v722_v24, 0.0  ;;  %v770_v33 = vmax.f32 %v738_v61, 0.0 }
 0x10e   : > { %v723_v57 = vadd.f32 %v1182_v60, %v571_v38  ;;  %v739_v14 = vadd.f32 %v1214_v16, %v635_v62  ;;  %v757_v27 = vmax.f32 %v725_v25, 0.0 }
 0x10f   : > { %v773_v31 = vmax.f32 %v741_v52, 0.0 }
 0x110   : > { %v755_v34 = vmax.f32 %v723_v57, 0.0  ;;  %v771_v35 = vmax.f32 %v739_v14, 0.0  ;;  %v1257_v36 = vpack.c.bf16 %v757_v27, %v756_v53 }
 0x111   : > { %v1297_v39 = vpack.c.bf16 %v773_v31, %v772_v26 }
 0x112   : > { %v1252_v40 = vpack.c.bf16 %v755_v34, %v754_v32  ;;  %v1292_v28 = vpack.c.bf16 %v771_v35, %v770_v33  ;;  %1320 = vst [vmem:[%s1647_s24 + $0x38] sm:$0xff] %v1257_v36  }
 0x113   : > { %1328 = vst [vmem:[%s1647_s24 + $0x78] sm:$0xff] %v1297_v39  }
 0x114   : > { %1319 = vst [vmem:[%s1647_s24 + $0x30] sm:$0xff] %v1252_v40   ;;  %1327 = vst [vmem:[%s1647_s24 + $0x70] sm:$0xff] %v1292_v28  }
 0x115 PF: > { %s14_s17 = sadd.s32 1, %s1487_s17   ;;  %s1759_s15 = smov %s1483_s16 }
 0x116   : > { %p11_p5 = scmp.ge.s32.totalorder %s14_s17, 4   ;;  %s1760_s16 = smov %s1762_s18 }
 0x118   :  { %13 = sbr.rel (!%p11_p5) target bundleno = 2 (0x2), region = 75 }

// kernel: forward.25
= control target key start
LH: loop header
LB: loop body
LE: loop exit
PB: predicated region body
PF: predicated region fallthrough
CT: control target
= control target key end

     0   :  { %s2369_s18 = smov 0   ;;  %s2371_s19 = smov 0   ;;  %s2801_s0 = inlined_call_operand.vmem [shape: bf16[2,18,18,128], index: 0, kind: input, shape index: {}, may-alias: {0,1,2}]   ;;  %s2802_s1 = inlined_call_operand.vmem [shape: bf16[2,18,18,128], index: 1, kind: input, shape index: {}, may-alias: {0,1,2}]   ;;  %s2803_s2 = inlined_call_operand.vmem [shape: bf16[2,18,18,128], index: 2, kind: input, shape index: {}, may-alias: {0,1,2}]   ;;  %s2804_s3 = inlined_call_operand.vmem [shape: bf16[9,128,128], index: 3, kind: input, shape index: {}]   ;;  %s2805_s4 = inlined_call_operand.vmem [shape: f32[1,128], index: 4, kind: input, shape index: {}]   ;;  %s2806_s5 = inlined_call_operand.vmem [shape: bf16[2,16,16,128], index: 5, kind: output, shape index: {}]  }
   0x1   :  { %s2373_s20 = smov 0   ;;  %s2375_s21 = smov 0  }
   0x2   :  { %s2377_s22 = smov 0  }
   0x3 LB: > { %s30_s23 = sadd.s32 1, %s2327_s20  ;;  %s34_s24 = sadd.s32 1, %s2331_s21  ;;  %s2335_s22 = sphi %s2377_s22, %s15_s22   ;;  %s2331_s21 = sphi %s2375_s21, %s2810_s21   ;;  %s2327_s20 = sphi %s2373_s20, %s2809_s20   ;;  %s2323_s19 = sphi %s2371_s19, %s2808_s19   ;;  %s2319_s18 = sphi %s2369_s18, %s2807_s18  }
   0x4   : > { %p32_p0 = scmp.ge.s32.totalorder %s30_s23, 16  ;;  %p1677_p1 = scmp.ge.s32.totalorder %s2335_s22, 1 }
   0x5   : > { %p273_p2 = scmp.lt.s32.totalorder %s2335_s22, 33 }
   0x6   : > { %s2812_s23 = smov (%p32_p0, %s30_s23), 0  ;;  %s2814_s24 = smov (!%p32_p0, %s34_s24), %s2331_s21 }
   0x7   : > { %p274_p3 = pnand %p1677_p1, %p273_p2  ;;  %p36_p4 = scmp.ge.s32.totalorder %s2814_s24, 2 }
   0x8   : > { %p339_p5 = scmp.lt.s32.totalorder (!%p274_p3), %s2323_s19, 1  ;;  %p341_p6 = scmp.lt.s32.totalorder (!%p274_p3), %s2319_s18, 17 }
   0x9   : > { %s2816_s24 = smov (%p36_p4, %s2814_s24), 0  ;;  %277 = sbr.rel (%p274_p3) target bundleno = 381 (0x17d), region = 40 }
   0xa   : > { %s348_s28 = sadd.s32 (!%p274_p3), 1, %s2319_s18  ;;  %p379_p9 = scmp.lt.s32.totalorder (!%p274_p3), %s2319_s18, 15 }
   0xb   : > { %p351_p7 = scmp.lt.s32.totalorder (!%p274_p3), %s348_s28, 17 }
   0xe   : > { %v2214_v0 = vld [vmem:[%s2804_s3 + $0x78] sm:$0xff]   ;;  %v2337_v1 = vmov 0.0   ;;  %v2216_v3 = vld [vmem:[%s2804_s3 + $0x70] sm:$0xff]   ;;  %vm2338_vm0 = vmmov 0   ;;  %s2818_s19 = smov (!%p339_p5, %s2323_s19), 1  ;;  %v2218_v5 = vld [vmem:[%s2804_s3 + $0x68] sm:$0xff]  }
   0xf   : > { %1988 = vmatprep.subr.bf16.mxu0 %v2337_v1  ;;  %2008 = vmatprep.subr.bf16.mxu1 %v2337_v1  ;;  %v2215_v2 = vld [vmem:[%s2804_s3 + $0x38] sm:$0xff]   ;;  %v2217_v4 = vld [vmem:[%s2804_s3 + $0x30] sm:$0xff]   ;;  %s342_s8 = scalar_select %p341_p6, %s2319_s18, 17  ;;  %v2219_v6 = vld [vmem:[%s2804_s3 + $0x28] sm:$0xff]   ;;  %vm434_vm1 = vsmask.f32 7424 }
  0x10   : > { %1989 = vmatpush3.bf16.msra.mxu0 %v2214_v0  ;;  %2004 = vmatprep.mubr.msk.bf16.mxu0 %vm2338_vm0, %v2337_v1  ;;  %s2433_s11 = smul.u32 54, %s2818_s19  ;;  %v2220_v7 = vld [vmem:[%s2804_s3 + $0x60] sm:$0xff]   ;;  %v2222_v9 = vld [vmem:[%s2804_s3 + $0x58] sm:$0xff]   ;;  %v2224_v13 = vld [vmem:[%s2804_s3 + $0x50] sm:$0xff]   ;;  %s2820_s28 = smov (!%p351_p7, %s348_s28), 17  ;;  %vm648_vm2 = vcmask 1046528  }
  0x11   : > { %2009 = vmatpush3.bf16.msra.mxu1 %v2215_v2  ;;  %1990 = vmatprep.subr.bf16.mxu0 %v2337_v1  ;;  %s2168_s14 = smul.u32 3, %s342_s8  ;;  %v2221_v8 = vld [vmem:[%s2804_s3 + $0x20] sm:$0xff]   ;;  %v2223_v10 = vld [vmem:[%s2804_s3 + $0x18] sm:$0xff]   ;;  %v2225_v16 = vld [vmem:[%s2804_s3 + $0x10] sm:$0xff]   ;;  %s1682_s16 = sshll.u32 %s2818_s19, 5 }
  0x12   : > { %2010 = vmatprep.subr.bf16.mxu1 %v2337_v1  ;;  %2024 = vmatprep.mubr.msk.bf16.mxu1 %vm2338_vm0, %v2337_v1  ;;  %v2226_v18 = vld [vmem:[%s2804_s3 + $0x48] sm:$0xff]   ;;  %s2170_s27 = smul.u32 3, %s2820_s28  ;;  %v2228_v23 = vld [vmem:[%s2804_s3 + $0x40] sm:$0xff]   ;;  %v2232_v28 = vld [vmem:[%s2804_s3 + $0xb8] sm:$0xff]  }
  0x13   : > { %s345_s15 = sadd.s32 %s2433_s11, %s2168_s14  ;;  %v2227_v22 = vld [vmem:[%s2804_s3 + $0x8] sm:$0xff]   ;;  %v2229_v24 = vld [vmem:[%s2804_s3] sm:$0xff]   ;;  %v2233_v29 = vld [vmem:[%s2804_s3 + $0xf8] sm:$0xff]  }
  0x14   : > { %1991 = vmatpush3.bf16.msra.mxu0 %v2216_v3  ;;  %s1678_s25 = sshll.u32 %s345_s15, 2  ;;  %s355_s9 = sadd.s32 %s2170_s27, %s2433_s11  ;;  %v2234_v30 = vld [vmem:[%s2804_s3 + $0xb0] sm:$0xff]   ;;  %v2236_v32 = vld [vmem:[%s2804_s3 + $0xa8] sm:$0xff]   ;;  %v2238_v34 = vld [vmem:[%s2804_s3 + $0xa0] sm:$0xff]  }
  0x15   : > { %2011 = vmatpush3.bf16.msra.mxu1 %v2217_v4  ;;  %1992 = vmatprep.subr.bf16.mxu0 %v2337_v1  ;;  %s2453_s6 = scalar_lea.vmem %s2801_s0, %s1678_s25  ;;  %s1679_s14 = sshll.u32 %s355_s9, 2  ;;  %v2235_v31 = vld [vmem:[%s2804_s3 + $0xf0] sm:$0xff]   ;;  %v2237_v33 = vld [vmem:[%s2804_s3 + $0xe8] sm:$0xff]   ;;  %v2239_v35 = vld [vmem:[%s2804_s3 + $0xe0] sm:$0xff]  }
  0x16   : > { %2012 = vmatprep.subr.bf16.mxu1 %v2337_v1  ;;  %v390_v11 = vld [vmem:[%s2453_s6] sm:$0xf]  ;;  %v2465_v12 = vld [vmem:[%s2453_s6 + $0x4] sm:$0xf]  ;;  %s2512_s26 = scalar_lea.vmem %s2802_s1, %s1679_s14  ;;  %v2240_v36 = vld [vmem:[%s2804_s3 + $0x98] sm:$0xff]   ;;  %s359_s25 = sadd.s32 2, %s2319_s18 }
  0x17   : > { %v1700_v14 = vcombine.low %v390_v11, %v2465_v12  ;;  %v2472_v15 = vld [vmem:[%s2453_s6 + $0x8] ss:$0 sps:$4 sm:$0x11]   ;;  %v2241_v37 = vld [vmem:[%s2804_s3 + $0xd8] sm:$0xff]   ;;  %v2242_v38 = vld [vmem:[%s2804_s3 + $0x90] sm:$0xff]   ;;  %p362_p8 = scmp.lt.s32.totalorder %s359_s25, 17 }
  0x18   : > { %1993 = vmatpush3.bf16.msra.mxu0 %v2218_v5  ;;  %v443_v21 = vshll.u32 %v2472_v15, 16  ;;  %v2243_v39 = vld [vmem:[%s2804_s3 + $0xd0] sm:$0xff]   ;;  %v627_v40 = vld [vmem:[%s2453_s6] sm:$0xe]  ;;  %v2244_v41 = vld [vmem:[%s2804_s3 + $0x88] sm:$0xff]   ;;  %v650_v44 = vrot.slane %v2472_v15, 1 }
  0x19   : > { %2013 = vmatpush3.bf16.msra.mxu1 %v2219_v6  ;;  %1994 = vmatprep.subr.bf16.mxu0 %v2337_v1  ;;  %v438_v17 = vshll.u32 %v1700_v14, 16  ;;  %v436_v19 = vshrl.u32 %v1700_v14, 16  ;;  %v1734_v42 = vcombine.low %v627_v40, %v2465_v12  ;;  %v2245_v43 = vld [vmem:[%s2804_s3 + $0xc8] sm:$0xff]   ;;  %s2822_s25 = smov (!%p362_p8, %s359_s25), 17  ;;  %v2246_v45 = vld [vmem:[%s2804_s3 + $0x80] sm:$0xff]   ;;  %v2249_v48 = vld [vmem:[%s2804_s3 + $0x138] sm:$0xff]  }
  0x1a   : > { %2014 = vmatprep.subr.bf16.mxu1 %v2337_v1  ;;  %v445_v26 = vrot.slane %v443_v21, 1  ;;  %v2247_v47 = vld [vmem:[%s2804_s3 + $0xc0] sm:$0xff]   ;;  %s2171_s15 = smul.u32 3, %s2822_s25  ;;  %v2251_v51 = vld [vmem:[%s2804_s3 + $0x178] sm:$0xff]   ;;  %v2252_v52 = vld [vmem:[%s2804_s3 + $0x130] sm:$0xff]   ;;  %s2824_s18 = smov (!%p379_p9, %s2319_s18), 15 }
  0x1b   : > { %v440_v20 = vrot.slane %v438_v17, 1  ;;  %v649_v46 = vrot.slane %v1734_v42, 1  ;;  %v2250_v50 = vld [vmem:[%s2512_s26] sm:$0xff]   ;;  %v2253_v53 = vld [vmem:[%s2804_s3 + $0x170] sm:$0xff]   ;;  %v2254_v54 = vld [vmem:[%s2804_s3 + $0x128] sm:$0xff]  }
  0x1c   : > { %1995 = vmatpush3.bf16.msra.mxu0 %v2220_v7  ;;  %s366_s30 = sadd.s32 %s2171_s15, %s2433_s11  ;;  %v2255_v55 = vld [vmem:[%s2804_s3 + $0x168] sm:$0xff]   ;;  %v2256_v56 = vld [vmem:[%s2804_s3 + $0x120] sm:$0xff]   ;;  %v2258_v60 = vld [vmem:[%s2804_s3 + $0x118] sm:$0xff]  }
  0x1d   : > { %2015 = vmatpush3.bf16.msra.mxu1 %v2221_v8  ;;  %1996 = vmatprep.subr.bf16.mxu0 %v2337_v1  ;;  %v441_v25 = vor.u32 %v440_v20, %v436_v19  ;;  %v651_v49 = vsel %vm648_vm2, %v649_v46, %v650_v44  ;;  %s1680_s8 = sshll.u32 %s366_s30, 2  ;;  %v2257_v57 = vld [vmem:[%s2804_s3 + $0x160] sm:$0xff]   ;;  %v2259_v63 = vld [vmem:[%s2804_s3 + $0x158] sm:$0xff]   ;;  %v2260_v5 = vld [vmem:[%s2804_s3 + $0x110] sm:$0xff]  }
  0x1e   : > { %2016 = vmatprep.subr.bf16.mxu1 %v2337_v1  ;;  %s2601_s6 = scalar_lea.vmem %s2803_s2, %s1680_s8  ;;  %v860_v58 = vld [vmem:[%s2512_s26] sm:$0xf]  ;;  %v861_v59 = vld [vmem:[%s2512_s26 + $0x4] sm:$0xf]  ;;  %v2261_v8 = vld [vmem:[%s2804_s3 + $0x150] sm:$0xff]  }
  0x1f   : > { %v446_v27 = vsel %vm434_vm1, %v441_v25, %v445_v26  ;;  %v2625_v61 = vld [vmem:[%s2601_s6 + $0x8] ss:$0 sps:$4 sm:$0x11]   ;;  %v1784_v62 = vcombine.low %v860_v58, %v861_v59  ;;  %v2633_v0 = vld [vmem:[%s2601_s6 + $0x4] sm:$0xf]  ;;  %v2268_v25 = vld [vmem:[%s2804_s3 + $0x1b8] sm:$0xff]  }
  0x20   : > { %1997 = vmatpush3.bf16.msra.mxu0 %v2222_v9  ;;  %v1356_v2 = vld [vmem:[%s2601_s6] sm:$0xe]  ;;  %v1378_v4 = vrot.slane %v2625_v61, 1  ;;  %v2267_v6 = vld [vmem:[%s2512_s26 + $0x8] ss:$0 sps:$4 sm:$0x11]  }
  0x21   : > { %2017 = vmatpush3.bf16.msra.mxu1 %v2223_v10  ;;  %1998 = vmatprep.subr.bf16.mxu0 %v2337_v1  ;;  %v1886_v3 = vcombine.low %v1356_v2, %v2633_v0  ;;  %v891_v7 = vshll.u32 %v1784_v62, 16  ;;  %v992_v10 = vld [vmem:[%s2512_s26] sm:$0xe]  ;;  %v2262_v12 = vld [vmem:[%s2804_s3 + $0x108] sm:$0xff]   ;;  %v896_v15 = vshll.u32 %v2267_v6, 16  ;;  %s1681_s26 = sshll.u32 %s2824_s18, 1 }
  0x22   : > { %2018 = vmatprep.subr.bf16.mxu1 %v2337_v1  ;;  %v1810_v17 = vcombine.low %v992_v10, %v861_v59  ;;  %v2265_v21 = vld [vmem:[%s2804_s3 + $0x140] sm:$0xff]   ;;  %v2282_v42 = vld [vmem:[%s2804_s3 + $0x1c8] sm:$0xff]   ;;  %s386_s29 = sadd.s32 %s1682_s16, %s1681_s26 }
  0x23   : > { %v1377_v9 = vrot.slane %v1886_v3, 1  ;;  %v898_v20 = vrot.slane %v896_v15, 1  ;;  %v2283_v46 = vld [vmem:[%s2804_s3 + $0x180] sm:$0xff]   ;;  %v2294_v58 = vld [vmem:[%s2804_s3 + $0x208] sm:$0xff]   ;;  %s1683_s30 = sshll.u32 %s386_s29, 2 }
  0x24   : > { %1999 = vmatpush3.bf16.msra.mxu0 %v2224_v13  ;;  %v889_v13 = vshrl.u32 %v1784_v62, 16  ;;  %v2295_v59 = vld [vmem:[%s2804_s3 + $0x200] sm:$0xff]   ;;  %s388_s18 = scalar_lea.vmem %s2806_s5, %s1683_s30 }
  0x25   : > { %2019 = vmatpush3.bf16.msra.mxu1 %v2225_v16  ;;  %2000 = vmatprep.subr.bf16.mxu0 %v2337_v1  ;;  %v2649_v11 = vsel %vm648_vm2, %v1377_v9, %v1378_v4  ;;  %v2263_v16 = vld [vmem:[%s2804_s3 + $0x148] sm:$0xff]  }
  0x26   : > { %2020 = vmatprep.subr.bf16.mxu1 %v2337_v1 }
  0x28   : > { %2001 = vmatpush3.bf16.msra.mxu0 %v2226_v18  ;;  %v2264_v18 = vld [vmem:[%s2804_s3 + $0x100] sm:$0xff]  }
  0x29   : > { %2021 = vmatpush3.bf16.msra.mxu1 %v2227_v22  ;;  %2002 = vmatprep.subr.bf16.mxu0 %v2337_v1  ;;  %v1013_v22 = vrot.slane %v1810_v17, 1 }
  0x2a   : > { %2022 = vmatprep.subr.bf16.mxu1 %v2337_v1 }
  0x2c   : > { %2003 = vmatpush3.bf16.msra.mxu0 %v2228_v23  ;;  %v1014_v23 = vrot.slane %v2267_v6, 1 }
  0x2d   : > { %2023 = vmatpush3.bf16.msra.mxu1 %v2229_v24  ;;  %2028 = vmatprep.subr.bf16.mxu0 %v2337_v1 }
  0x2e   : > { %2048 = vmatprep.subr.bf16.mxu1 %v2337_v1  ;;  %v1015_v26 = vsel %vm648_vm2, %v1013_v22, %v1014_v23 }
  0x2f   : > { %2005 = vmatmul.mubr.bf16.vlgmr.msra.gmra.mxu0 %v446_v27  ;;  %v2270_v27 = vld [vmem:[%s2804_s3 + $0x1f8] sm:$0xff]  }
  0x30   : > { %2025 = vmatmul.mubr.bf16.vlgmr.msra.gmra.mxu1 %v1700_v14  ;;  %2029 = vmatpush3.bf16.msra.mxu0 %v2232_v28  ;;  %v893_v14 = vrot.slane %v891_v7, 1  ;;  %v2271_v28 = vld [vmem:[%s2804_s3 + $0x1b0] sm:$0xff]  }
  0x31   : > { %2049 = vmatpush3.bf16.msra.mxu1 %v2233_v29  ;;  %2030 = vmatprep.subr.bf16.mxu0 %v2337_v1  ;;  %v2272_v29 = vld [vmem:[%s2804_s3 + $0x1f0] sm:$0xff]  }
  0x32   : > { %2050 = vmatprep.subr.bf16.mxu1 %v2337_v1  ;;  %2044 = vmatprep.mubr.msk.bf16.mxu0 %vm2338_vm0, %v2337_v1  ;;  %v894_v19 = vor.u32 %v893_v14, %v889_v13 }
  0x33   : > { %2064 = vmatprep.mubr.msk.bf16.mxu1 %vm2338_vm0, %v2337_v1 }
  0x34   : > { %2031 = vmatpush3.bf16.msra.mxu0 %v2234_v30  ;;  %v899_v24 = vsel %vm434_vm1, %v894_v19, %v898_v20  ;;  %v2273_v30 = vld [vmem:[%s2804_s3 + $0x1a8] sm:$0xff]  }
  0x35   : > { %2051 = vmatpush3.bf16.msra.mxu1 %v2235_v31  ;;  %2032 = vmatprep.subr.bf16.mxu0 %v2337_v1  ;;  %v2274_v31 = vld [vmem:[%s2804_s3 + $0x1e8] sm:$0xff]  }
  0x36   : > { %2052 = vmatprep.subr.bf16.mxu1 %v2337_v1 }
  0x38   : > { %2033 = vmatpush3.bf16.msra.mxu0 %v2236_v32  ;;  %v2275_v32 = vld [vmem:[%s2804_s3 + $0x1a0] sm:$0xff]  }
  0x39   : > { %2053 = vmatpush3.bf16.msra.mxu1 %v2237_v33  ;;  %2034 = vmatprep.subr.bf16.mxu0 %v2337_v1  ;;  %v2276_v33 = vld [vmem:[%s2804_s3 + $0x1e0] sm:$0xff]  }
  0x3a   : > { %2054 = vmatprep.subr.bf16.mxu1 %v2337_v1 }
  0x3c   : > { %2035 = vmatpush3.bf16.msra.mxu0 %v2238_v34  ;;  %v1224_v34 = vld [vmem:[%s2601_s6] sm:$0xf] }
  0x3d   : > { %2055 = vmatpush3.bf16.msra.mxu1 %v2239_v35  ;;  %2036 = vmatprep.subr.bf16.mxu0 %v2337_v1  ;;  %v2277_v35 = vld [vmem:[%s2804_s3 + $0x198] sm:$0xff]  }
  0x3e   : > { %2056 = vmatprep.subr.bf16.mxu1 %v2337_v1 }
  0x40   : > { %2037 = vmatpush3.bf16.msra.mxu0 %v2240_v36  ;;  %v2278_v36 = vld [vmem:[%s2804_s3 + $0x1d8] sm:$0xff]  }
  0x41   : > { %2057 = vmatpush3.bf16.msra.mxu1 %v2241_v37  ;;  %2038 = vmatprep.subr.bf16.mxu0 %v2337_v1  ;;  %v1860_v37 = vcombine.low %v1224_v34, %v2633_v0 }
  0x42   : > { %2058 = vmatprep.subr.bf16.mxu1 %v2337_v1 }
  0x43   : > { %v1255_v40 = vshll.u32 %v1860_v37, 16 }
  0x44   : > { %2039 = vmatpush3.bf16.msra.mxu0 %v2242_v38  ;;  %v2279_v38 = vld [vmem:[%s2804_s3 + $0x190] sm:$0xff]  }
  0x45   : > { %2059 = vmatpush3.bf16.msra.mxu1 %v2243_v39  ;;  %2040 = vmatprep.subr.bf16.mxu0 %v2337_v1  ;;  %v2280_v39 = vld [vmem:[%s2804_s3 + $0x1d0] sm:$0xff]   ;;  %v1257_v44 = vrot.slane %v1255_v40, 1 }
  0x46   : > { %2060 = vmatprep.subr.bf16.mxu1 %v2337_v1 }
  0x48   : > { %2041 = vmatpush3.bf16.msra.mxu0 %v2244_v41  ;;  %v2281_v41 = vld [vmem:[%s2804_s3 + $0x188] sm:$0xff]  }
  0x49   : > { %2061 = vmatpush3.bf16.msra.mxu1 %v2245_v43  ;;  %2042 = vmatprep.subr.bf16.mxu0 %v2337_v1  ;;  %v1253_v43 = vshrl.u32 %v1860_v37, 16 }
  0x4a   : > { %2062 = vmatprep.subr.bf16.mxu1 %v2337_v1 }
  0x4c   : > { %2043 = vmatpush3.bf16.msra.mxu0 %v2246_v45  ;;  %v1260_v45 = vshll.u32 %v2625_v61, 16 }
  0x4d   : > { %2063 = vmatpush3.bf16.msra.mxu1 %v2247_v47  ;;  %2068 = vmatprep.subr.bf16.mxu0 %v2337_v1  ;;  %v2284_v47 = vld [vmem:[%s2804_s3 + $0x1c0] sm:$0xff]  }
  0x4e   : > { %2088 = vmatprep.subr.bf16.mxu1 %v2337_v1 }
  0x4f   : > { %2045 = vmatmul.mubr.bf16.vlgmr.msra.gmra.mxu0 %v651_v49  ;;  %v1262_v49 = vrot.slane %v1260_v45, 1 }
  0x50   : > { %2069 = vmatpush3.bf16.msra.mxu0 %v2249_v48  ;;  %2065 = vmatmul.mubr.bf16.vlgmr.msra.gmra.mxu1 %v2250_v50  ;;  %v1258_v48 = vor.u32 %v1257_v44, %v1253_v43  ;;  %v2285_v50 = vld [vmem:[%s2601_s6] sm:$0xff]  }
  0x51   : > { %2089 = vmatpush3.bf16.msra.mxu1 %v2251_v51  ;;  %2070 = vmatprep.subr.bf16.mxu0 %v2337_v1  ;;  %v2286_v51 = vld [vmem:[%s2804_s3 + $0x238] sm:$0xff]   ;;  %v1895_v43 = vld [vmem:[%s2805_s4] ss:$0 sm:$0xff] }
  0x52   : > { %2090 = vmatprep.subr.bf16.mxu1 %v2337_v1  ;;  %2084 = vmatprep.mubr.msk.bf16.mxu0 %vm2338_vm0, %v2337_v1 }
  0x53   : > { %2104 = vmatprep.mubr.msk.bf16.mxu1 %vm2338_vm0, %v2337_v1 }
  0x54   : > { %2071 = vmatpush3.bf16.msra.mxu0 %v2252_v52  ;;  %v1263_v52 = vsel %vm434_vm1, %v1258_v48, %v1262_v49 }
  0x55   : > { %2091 = vmatpush3.bf16.msra.mxu1 %v2253_v53  ;;  %2072 = vmatprep.subr.bf16.mxu0 %v2337_v1  ;;  %v2289_v53 = vld [vmem:[%s2804_s3 + $0x230] sm:$0xff]  }
  0x56   : > { %2092 = vmatprep.subr.bf16.mxu1 %v2337_v1 }
  0x58   : > { %2073 = vmatpush3.bf16.msra.mxu0 %v2254_v54  ;;  %v2290_v54 = vld [vmem:[%s2804_s3 + $0x228] sm:$0xff]  }
  0x59   : > { %2093 = vmatpush3.bf16.msra.mxu1 %v2255_v55  ;;  %2074 = vmatprep.subr.bf16.mxu0 %v2337_v1  ;;  %v2291_v55 = vld [vmem:[%s2804_s3 + $0x220] sm:$0xff]  }
  0x5a   : > { %2094 = vmatprep.subr.bf16.mxu1 %v2337_v1 }
  0x5c   : > { %2075 = vmatpush3.bf16.msra.mxu0 %v2256_v56  ;;  %v2292_v56 = vld [vmem:[%s2804_s3 + $0x218] sm:$0xff]  }
  0x5d   : > { %2095 = vmatpush3.bf16.msra.mxu1 %v2257_v57  ;;  %2076 = vmatprep.subr.bf16.mxu0 %v2337_v1  ;;  %v2293_v57 = vld [vmem:[%s2804_s3 + $0x210] sm:$0xff]  }
  0x5e   : > { %2096 = vmatprep.subr.bf16.mxu1 %v2337_v1 }
  0x60   : > { %2077 = vmatpush3.bf16.msra.mxu0 %v2258_v60 }
  0x61   : > { %2097 = vmatpush3.bf16.msra.mxu1 %v2259_v63  ;;  %2078 = vmatprep.subr.bf16.mxu0 %v2337_v1 }
  0x62   : > { %2098 = vmatprep.subr.bf16.mxu1 %v2337_v1 }
  0x64   : > { %2079 = vmatpush3.bf16.msra.mxu0 %v2260_v5 }
  0x65   : > { %2099 = vmatpush3.bf16.msra.mxu1 %v2261_v8  ;;  %2080 = vmatprep.subr.bf16.mxu0 %v2337_v1 }
  0x66   : > { %2100 = vmatprep.subr.bf16.mxu1 %v2337_v1 }
  0x68   : > { %2081 = vmatpush3.bf16.msra.mxu0 %v2262_v12 }
  0x69   : > { %2101 = vmatpush3.bf16.msra.mxu1 %v2263_v16  ;;  %2082 = vmatprep.subr.bf16.mxu0 %v2337_v1 }
  0x6a   : > { %2102 = vmatprep.subr.bf16.mxu1 %v2337_v1 }
  0x6c   : > { %2083 = vmatpush3.bf16.msra.mxu0 %v2264_v18 }
  0x6d   : > { %2103 = vmatpush3.bf16.msra.mxu1 %v2265_v21  ;;  %2108 = vmatprep.subr.bf16.mxu0 %v2337_v1 }
  0x6e   : > { %2128 = vmatprep.subr.bf16.mxu1 %v2337_v1 }
  0x6f   : > { %2085 = vmatmul.mubr.bf16.vlgmr.msra.gmra.mxu0 %v899_v24 }
  0x70   : > { %2109 = vmatpush3.bf16.msra.mxu0 %v2268_v25  ;;  %2105 = vmatmul.mubr.bf16.vlgmr.msra.gmra.mxu1 %v1015_v26 }
  0x71   : > { %2129 = vmatpush3.bf16.msra.mxu1 %v2270_v27  ;;  %2110 = vmatprep.subr.bf16.mxu0 %v2337_v1 }
  0x72   : > { %2130 = vmatprep.subr.bf16.mxu1 %v2337_v1  ;;  %2124 = vmatprep.mubr.msk.bf16.mxu0 %vm2338_vm0, %v2337_v1 }
  0x73   : > { %2144 = vmatprep.mubr.msk.bf16.mxu1 %vm2338_vm0, %v2337_v1 }
  0x74   : > { %2111 = vmatpush3.bf16.msra.mxu0 %v2271_v28 }
  0x75   : > { %2131 = vmatpush3.bf16.msra.mxu1 %v2272_v29  ;;  %2112 = vmatprep.subr.bf16.mxu0 %v2337_v1 }
  0x76   : > { %2132 = vmatprep.subr.bf16.mxu1 %v2337_v1 }
  0x78   : > { %2113 = vmatpush3.bf16.msra.mxu0 %v2273_v30 }
  0x79   : > { %2133 = vmatpush3.bf16.msra.mxu1 %v2274_v31  ;;  %2114 = vmatprep.subr.bf16.mxu0 %v2337_v1 }
  0x7a   : > { %2134 = vmatprep.subr.bf16.mxu1 %v2337_v1 }
  0x7c   : > { %2115 = vmatpush3.bf16.msra.mxu0 %v2275_v32 }
  0x7d   : > { %2135 = vmatpush3.bf16.msra.mxu1 %v2276_v33  ;;  %2116 = vmatprep.subr.bf16.mxu0 %v2337_v1 }
  0x7e   : > { %2136 = vmatprep.subr.bf16.mxu1 %v2337_v1 }
  0x80   : > { %2117 = vmatpush3.bf16.msra.mxu0 %v2277_v35 }
  0x81   : > { %2137 = vmatpush3.bf16.msra.mxu1 %v2278_v36  ;;  %2118 = vmatprep.subr.bf16.mxu0 %v2337_v1 }
  0x82   : > { %2138 = vmatprep.subr.bf16.mxu1 %v2337_v1 }
  0x84   : > { %2119 = vmatpush3.bf16.msra.mxu0 %v2279_v38 }
  0x85   : > { %2139 = vmatpush3.bf16.msra.mxu1 %v2280_v39  ;;  %2120 = vmatprep.subr.bf16.mxu0 %v2337_v1 }
  0x86   : > { %2140 = vmatprep.subr.bf16.mxu1 %v2337_v1 }
  0x88   : > { %2121 = vmatpush3.bf16.msra.mxu0 %v2281_v41 }
  0x89   : > { %2141 = vmatpush3.bf16.msra.mxu1 %v2282_v42  ;;  %2122 = vmatprep.subr.bf16.mxu0 %v2337_v1 }
  0x8a   : > { %2142 = vmatprep.subr.bf16.mxu1 %v2337_v1 }
  0x8c   : > { %2123 = vmatpush3.bf16.msra.mxu0 %v2283_v46 }
  0x8d   : > { %2143 = vmatpush3.bf16.msra.mxu1 %v2284_v47  ;;  %2148 = vmatprep.subr.bf16.mxu0 %v2337_v1 }
  0x8f   : > { %2125 = vmatmul.mubr.bf16.vlgmr.msra.gmra.mxu0 %v2285_v50 }
  0x90   : > { %2149 = vmatpush3.bf16.msra.mxu0 %v2286_v51  ;;  %2145 = vmatmul.mubr.bf16.vlgmr.msra.gmra.mxu1 %v1263_v52 }
  0x91   : > { %2150 = vmatprep.subr.bf16.mxu0 %v2337_v1  ;;  %2164 = vmatprep.mubr.msk.bf16.mxu0 %vm2338_vm0, %v2337_v1 }
  0x94   : > { %2151 = vmatpush3.bf16.msra.mxu0 %v2289_v53 }
  0x95   : > { %2152 = vmatprep.subr.bf16.mxu0 %v2337_v1 }
  0x98   : > { %2153 = vmatpush3.bf16.msra.mxu0 %v2290_v54 }
  0x99   : > { %2154 = vmatprep.subr.bf16.mxu0 %v2337_v1 }
  0x9c   : > { %2155 = vmatpush3.bf16.msra.mxu0 %v2291_v55 }
  0x9d   : > { %2156 = vmatprep.subr.bf16.mxu0 %v2337_v1 }
  0xa0   : > { %2157 = vmatpush3.bf16.msra.mxu0 %v2292_v56 }
  0xa1   : > { %2158 = vmatprep.subr.bf16.mxu0 %v2337_v1 }
  0xa4   : > { %2159 = vmatpush3.bf16.msra.mxu0 %v2293_v57 }
  0xa5   : > { %2160 = vmatprep.subr.bf16.mxu0 %v2337_v1 }
  0xa8   : > { %2161 = vmatpush3.bf16.msra.mxu0 %v2294_v58 }
  0xa9   : > { %2162 = vmatprep.subr.bf16.mxu0 %v2337_v1 }
  0xac   : > { %2163 = vmatpush3.bf16.msra.mxu0 %v2295_v59 }
  0xaf   : > { %2165 = vmatmul.mubr.bf16.vlgmr.msra.gmra.mxu0 %v2649_v11 }
  0xef   : > { %v530_v60 = vpop.f32.mrf.mxu0 }
  0xf0   : > { %v620_v61 = vpop.f32.mrf.mxu1 }
  0xf1   : > { %v621_v62 = vadd.f32 %v620_v61, %v530_v60  ;;  %v2006_v63 = vpop.f32.mrf.mxu0 }
  0xf2   : > { %v2026_v0 = vpop.f32.mrf.mxu1 }
  0xf3   : > { %v533_v2 = vpop.f32.mrf.mxu0 }
  0xf4   : > { %v623_v3 = vpop.f32.mrf.mxu1 }
  0xf5   : > { %v624_v4 = vadd.f32 %v623_v3, %v533_v2  ;;  %v2007_v5 = vpop.f32.mrf.mxu0 }
  0xf6   : > { %v2027_v6 = vpop.f32.mrf.mxu1 }
 0x10f   : > { %v735_v7 = vpop.f32.mrf.mxu0 }
 0x110   : > { %v742_v8 = vadd.f32 %v735_v7, %v621_v62  ;;  %v851_v9 = vpop.f32.mrf.mxu1 }
 0x111   : > { %v2046_v10 = vpop.f32.mrf.mxu0 }
 0x112   : > { %v858_v12 = vadd.f32 %v851_v9, %v742_v8  ;;  %v2066_v13 = vpop.f32.mrf.mxu1 }
 0x113   : > { %v738_v1 = vpop.f32.mrf.mxu0 }
 0x114   : > { %v743_v14 = vadd.f32 %v738_v1, %v624_v4  ;;  %v854_v15 = vpop.f32.mrf.mxu1 }
 0x115   : > { %v2047_v11 = vpop.f32.mrf.mxu0 }
 0x116   : > { %v859_v16 = vadd.f32 %v854_v15, %v743_v14  ;;  %v2067_v17 = vpop.f32.mrf.mxu1 }
 0x12f   : > { %v983_v18 = vpop.f32.mrf.mxu0 }
 0x130   : > { %v1099_v19 = vpop.f32.mrf.mxu1  ;;  %v990_v34 = vadd.f32 %v983_v18, %v858_v12 }
 0x131   : > { %v2086_v20 = vpop.f32.mrf.mxu0 }
 0x132   : > { %v2106_v21 = vpop.f32.mrf.mxu1  ;;  %v1106_v35 = vadd.f32 %v1099_v19, %v990_v34 }
 0x133   : > { %v986_v22 = vpop.f32.mrf.mxu0 }
 0x134   : > { %v1102_v23 = vpop.f32.mrf.mxu1  ;;  %v991_v36 = vadd.f32 %v986_v22, %v859_v16 }
 0x135   : > { %v2087_v24 = vpop.f32.mrf.mxu0 }
 0x136   : > { %v2107_v25 = vpop.f32.mrf.mxu1  ;;  %v1107_v38 = vadd.f32 %v1102_v23, %v991_v36 }
 0x14f   : > { %v1215_v26 = vpop.f32.mrf.mxu0 }
 0x150   : > { %v1347_v27 = vpop.f32.mrf.mxu1  ;;  %v1222_v37 = vadd.f32 %v1215_v26, %v1106_v35 }
 0x151   : > { %v2126_v28 = vpop.f32.mrf.mxu0 }
 0x152   : > { %v2146_v29 = vpop.f32.mrf.mxu1  ;;  %v1354_v39 = vadd.f32 %v1347_v27, %v1222_v37 }
 0x153   : > { %v1218_v30 = vpop.f32.mrf.mxu0 }
 0x154   : > { %v1350_v31 = vpop.f32.mrf.mxu1  ;;  %v1223_v40 = vadd.f32 %v1218_v30, %v1107_v38 }
 0x155   : > { %v2127_v32 = vpop.f32.mrf.mxu0 }
 0x156   : > { %v2147_v33 = vpop.f32.mrf.mxu1  ;;  %v1355_v45 = vadd.f32 %v1350_v31, %v1223_v40 }
 0x16f   : > { %v1463_v41 = vpop.f32.mrf.mxu0 }
 0x170   : > { %v1470_v42 = vadd.f32 %v1463_v41, %v1354_v39 }
 0x171   : > { %v2166_v44 = vpop.f32.mrf.mxu0 }
 0x172   : > { %v1479_v47 = vadd.f32 %v1895_v43, %v1470_v42 }
 0x173   : > { %v1466_v46 = vpop.f32.mrf.mxu0 }
 0x174   : > { %v1471_v48 = vadd.f32 %v1466_v46, %v1355_v45  ;;  %v1481_v51 = vmax.f32 %v1479_v47, 0.0 }
 0x175   : > { %v2167_v49 = vpop.f32.mrf.mxu0 }
 0x176   : > { %v1480_v50 = vadd.f32 %v1895_v43, %v1471_v48 }
 0x178   : > { %v1482_v52 = vmax.f32 %v1480_v50, 0.0 }
 0x17a   : > { %v1905_v53 = vpack.c.bf16 %v1482_v52, %v1481_v51 }
 0x17c   : > { %1906 = vst [vmem:[%s388_s18] sm:$0xff] %v1905_v53  }
 0x17d PF: > { %s15_s22 = sadd.s32 1, %s2335_s22   ;;  %s2807_s18 = smov %s2327_s20 }
 0x17e   : > { %p12_p10 = scmp.ge.s32.totalorder %s15_s22, 34   ;;  %s2808_s19 = smov %s2331_s21 }
 0x17f   : > { %s2809_s20 = smov %s2812_s23  ;;  %s2810_s21 = smov %s2816_s24 }
 0x180   :  { %14 = sbr.rel (!%p12_p10) target bundleno = 3 (0x3), region = 90 }

// kernel: forward.30
= control target key start
LH: loop header
LB: loop body
LE: loop exit
PB: predicated region body
PF: predicated region fallthrough
CT: control target
= control target key end

     0   :  { %s733_s12 = smov 0   ;;  %s735_s13 = smov 0   ;;  %s806_s0 = inlined_call_operand.vmem [shape: bf16[128,128], index: 0, kind: input, shape index: {}]   ;;  %s807_s1 = inlined_call_operand.vmem [shape: bf16[128,128], index: 1, kind: input, shape index: {}]   ;;  %s808_s2 = inlined_call_operand.vmem [shape: f32[1,128], index: 2, kind: input, shape index: {}]   ;;  %s809_s3 = inlined_call_operand.vmem [shape: bf16[128,128], index: 3, kind: output, shape index: {}]  }
   0x1   :  { %s737_s14 = smov 0  }
   0x2 LB: > { %s25_s15 = sadd.s32 1, %s707_s13  ;;  %p542_p0 = scmp.ge.s32.totalorder %s711_s14, 1  ;;  %s711_s14 = sphi %s737_s14, %s13_s14   ;;  %s707_s13 = sphi %s735_s13, %s811_s13   ;;  %s703_s12 = sphi %s733_s12, %s810_s12  }
   0x3   : > { %p27_p1 = scmp.ge.s32.totalorder %s25_s15, 2  ;;  %p169_p2 = scmp.lt.s32.totalorder %s711_s14, 3 }
   0x5   : > { %s813_s15 = smov (%p27_p1, %s25_s15), 0  ;;  %p170_p3 = pnand %p542_p0, %p169_p2 }
   0x6   : > { %s543_s18 = sshll.u32 (!%p170_p3), %s703_s12, 3 }
   0x7   : > { %173 = sbr.rel (%p170_p3) target bundleno = 249 (0xf9), region = 32  ;;  %p204_p4 = scmp.lt.s32.totalorder (!%p170_p3), %s543_s18, 15 }
   0xc   : > { %v677_v0 = vld [vmem:[%s807_s1 + $0x38] sm:$0xff]   ;;  %v678_v1 = vld [vmem:[%s807_s1 + $0x30] sm:$0xff]   ;;  %s815_s18 = smov (!%p204_p4, %s543_s18), 15  ;;  %v679_v2 = vld [vmem:[%s807_s1 + $0x28] sm:$0xff]  }
   0xd   : > { %613 = vmatprep.subr.bf16.mxu0 %v677_v0  ;;  %637 = vmatprep.subr.bf16.mxu1 %v677_v0  ;;  %s544_s23 = sshll.u32 %s815_s18, 2  ;;  %v680_v3 = vld [vmem:[%s807_s1 + $0x20] sm:$0xff]   ;;  %v681_v6 = vld [vmem:[%s807_s1 + $0x18] sm:$0xff]   ;;  %v682_v7 = vld [vmem:[%s807_s1 + $0x10] sm:$0xff]  }
   0xe   : > { %614 = vmatpush3.bf16.msra.mxu0 %v677_v0  ;;  %645 = vmatpush3.bf16.msra.mxu1 %v677_v0  ;;  %s768_s26 = scalar_lea.vmem %s806_s0, %s544_s23  ;;  %v683_v8 = vld [vmem:[%s807_s1 + $0x8] sm:$0xff]   ;;  %v684_v9 = vld [vmem:[%s807_s1] sm:$0xff]   ;;  %s223_s17 = scalar_lea.vmem %s809_s3, %s544_s23 }
   0xf   : > { %615 = vmatprep.subr.bf16.mxu0 %v678_v1  ;;  %638 = vmatprep.subr.bf16.mxu1 %v678_v1  ;;  %v685_v4 = vld [vmem:[%s768_s26] sm:$0xff]   ;;  %v686_v5 = vld [vmem:[%s768_s26 + $0x10] sm:$0xff]   ;;  %v687_v10 = vld [vmem:[%s768_s26 + $0x8] sm:$0xff]  }
  0x10   : > { %629 = vmatprep.mubr.bf16.mxu0 %v685_v4  ;;  %633 = vmatprep.mubr.bf16.mxu1 %v686_v5  ;;  %v688_v11 = vld [vmem:[%s768_s26 + $0x18] sm:$0xff]   ;;  %v547_v14 = vld [vmem:[%s808_s2] ss:$0 sm:$0xff] }
  0x12   : > { %616 = vmatpush3.bf16.msra.mxu0 %v678_v1  ;;  %646 = vmatpush3.bf16.msra.mxu1 %v678_v1 }
  0x13   : > { %617 = vmatprep.subr.bf16.mxu0 %v679_v2  ;;  %639 = vmatprep.subr.bf16.mxu1 %v679_v2 }
  0x16   : > { %618 = vmatpush3.bf16.msra.mxu0 %v679_v2  ;;  %647 = vmatpush3.bf16.msra.mxu1 %v679_v2 }
  0x17   : > { %619 = vmatprep.subr.bf16.mxu0 %v680_v3  ;;  %640 = vmatprep.subr.bf16.mxu1 %v680_v3 }
  0x1a   : > { %620 = vmatpush3.bf16.msra.mxu0 %v680_v3  ;;  %648 = vmatpush3.bf16.msra.mxu1 %v680_v3 }
  0x1b   : > { %621 = vmatprep.subr.bf16.mxu0 %v681_v6  ;;  %641 = vmatprep.subr.bf16.mxu1 %v681_v6 }
  0x1e   : > { %622 = vmatpush3.bf16.msra.mxu0 %v681_v6  ;;  %649 = vmatpush3.bf16.msra.mxu1 %v681_v6 }
  0x1f   : > { %623 = vmatprep.subr.bf16.mxu0 %v682_v7  ;;  %642 = vmatprep.subr.bf16.mxu1 %v682_v7 }
  0x22   : > { %624 = vmatpush3.bf16.msra.mxu0 %v682_v7  ;;  %650 = vmatpush3.bf16.msra.mxu1 %v682_v7 }
  0x23   : > { %625 = vmatprep.subr.bf16.mxu0 %v683_v8  ;;  %643 = vmatprep.subr.bf16.mxu1 %v683_v8 }
  0x26   : > { %626 = vmatpush3.bf16.msra.mxu0 %v683_v8  ;;  %651 = vmatpush3.bf16.msra.mxu1 %v683_v8 }
  0x27   : > { %627 = vmatprep.subr.bf16.mxu0 %v684_v9  ;;  %644 = vmatprep.subr.bf16.mxu1 %v684_v9 }
  0x2a   : > { %628 = vmatpush3.bf16.msra.mxu0 %v684_v9  ;;  %652 = vmatpush3.bf16.msra.mxu1 %v684_v9 }
  0x2d   : > { %630 = vmatmul.mubr.bf16.vlgmr.msra.gmra.mxu0 %v687_v10  ;;  %634 = vmatmul.mubr.bf16.vlgmr.msra.gmra.mxu1 %v688_v11 }
  0xed   : > { %v631_v12 = vpop.f32.mrf.mxu0  ;;  %v635_v13 = vpop.f32.mrf.mxu1 }
  0xee   : > { %v372_v19 = vadd.f32 %v631_v12, %v547_v14  ;;  %v388_v20 = vadd.f32 %v635_v13, %v547_v14 }
  0xef   : > { %v363_v15 = vpop.f32.mrf.mxu0  ;;  %v379_v16 = vpop.f32.mrf.mxu1 }
  0xf0   : > { %v364_v23 = vadd.f32 %v547_v14, %v363_v15  ;;  %v380_v24 = vadd.f32 %v547_v14, %v379_v16 }
  0xf1   : > { %v632_v17 = vpop.f32.mrf.mxu0  ;;  %v636_v18 = vpop.f32.mrf.mxu1 }
  0xf2   : > { %v375_v21 = vadd.f32 %v632_v17, %v547_v14  ;;  %v391_v22 = vadd.f32 %v636_v18, %v547_v14 }
  0xf3   : > { %v366_v25 = vpop.f32.mrf.mxu0  ;;  %v382_v26 = vpop.f32.mrf.mxu1 }
  0xf4   : > { %v586_v27 = vpack.c.bf16 %v375_v21, %v372_v19  ;;  %v596_v28 = vpack.c.bf16 %v391_v22, %v388_v20  ;;  %v367_v29 = vadd.f32 %v547_v14, %v366_v25  ;;  %v383_v30 = vadd.f32 %v547_v14, %v382_v26 }
  0xf6   : > { %598 = vst [vmem:[%s223_s17 + $0x8] sm:$0xff] %v586_v27   ;;  %600 = vst [vmem:[%s223_s17 + $0x18] sm:$0xff] %v596_v28   ;;  %v581_v31 = vpack.c.bf16 %v367_v29, %v364_v23  ;;  %v591_v32 = vpack.c.bf16 %v383_v30, %v380_v24 }
  0xf8   : > { %582 = vst [vmem:[%s223_s17] sm:$0xff] %v581_v31   ;;  %599 = vst [vmem:[%s223_s17 + $0x10] sm:$0xff] %v591_v32  }
  0xf9 PF: > { %s13_s14 = sadd.s32 1, %s711_s14   ;;  %s810_s12 = smov %s707_s13 }
  0xfa   : > { %p10_p5 = scmp.ge.s32.totalorder %s13_s14, 4   ;;  %s811_s13 = smov %s813_s15 }
  0xfc   :  { %12 = sbr.rel (!%p10_p5) target bundleno = 2 (0x2), region = 68 }

// kernel: forward.31
= control target key start
LH: loop header
LB: loop body
LE: loop exit
PB: predicated region body
PF: predicated region fallthrough
CT: control target
= control target key end

     0   :  { %s866_s15 = smov 0   ;;  %s868_s16 = smov 0   ;;  %s940_s0 = inlined_call_operand.vmem [shape: bf16[128,128], index: 0, kind: input, shape index: {}]   ;;  %s941_s1 = inlined_call_operand.vmem [shape: bf16[128,128], index: 1, kind: input, shape index: {}]   ;;  %s942_s2 = inlined_call_operand.vmem [shape: f32[1,128], index: 2, kind: input, shape index: {}]   ;;  %s943_s3 = inlined_call_operand.vmem [shape: bf16[128,128], index: 3, kind: input, shape index: {}]   ;;  %s944_s4 = inlined_call_operand.vmem [shape: bf16[128,128], index: 4, kind: output, shape index: {}]  }
   0x1   :  { %s870_s17 = smov 0  }
   0x2 LB: > { %s26_s18 = sadd.s32 1, %s835_s16  ;;  %p649_p0 = scmp.ge.s32.totalorder %s839_s17, 1  ;;  %s839_s17 = sphi %s870_s17, %s14_s17   ;;  %s835_s16 = sphi %s868_s16, %s946_s16   ;;  %s831_s15 = sphi %s866_s15, %s945_s15  }
   0x3   : > { %p28_p1 = scmp.ge.s32.totalorder %s26_s18, 2  ;;  %p210_p2 = scmp.lt.s32.totalorder %s839_s17, 3 }
   0x5   : > { %s948_s18 = smov (%p28_p1, %s26_s18), 0  ;;  %p211_p3 = pnand %p649_p0, %p210_p2 }
   0x6   : > { %s650_s21 = sshll.u32 (!%p211_p3), %s831_s15, 3 }
   0x7   : > { %214 = sbr.rel (%p211_p3) target bundleno = 253 (0xfd), region = 36  ;;  %p255_p4 = scmp.lt.s32.totalorder (!%p211_p3), %s650_s21, 15 }
   0xc   : > { %v805_v0 = vld [vmem:[%s941_s1 + $0x38] sm:$0xff]   ;;  %v806_v1 = vld [vmem:[%s941_s1 + $0x30] sm:$0xff]   ;;  %s950_s21 = smov (!%p255_p4, %s650_s21), 15  ;;  %v807_v2 = vld [vmem:[%s941_s1 + $0x28] sm:$0xff]  }
   0xd   : > { %741 = vmatprep.subr.bf16.mxu0 %v805_v0  ;;  %765 = vmatprep.subr.bf16.mxu1 %v805_v0  ;;  %s893_s26 = sshll.u32 %s950_s21, 2  ;;  %v808_v3 = vld [vmem:[%s941_s1 + $0x20] sm:$0xff]   ;;  %v809_v6 = vld [vmem:[%s941_s1 + $0x18] sm:$0xff]   ;;  %v810_v7 = vld [vmem:[%s941_s1 + $0x10] sm:$0xff]  }
   0xe   : > { %742 = vmatpush3.bf16.msra.mxu0 %v805_v0  ;;  %773 = vmatpush3.bf16.msra.mxu1 %v805_v0  ;;  %s899_s29 = scalar_lea.vmem %s940_s0, %s893_s26  ;;  %v811_v8 = vld [vmem:[%s941_s1 + $0x8] sm:$0xff]   ;;  %v812_v9 = vld [vmem:[%s941_s1] sm:$0xff]   ;;  %s274_s19 = scalar_lea.vmem %s943_s3, %s893_s26 }
   0xf   : > { %743 = vmatprep.subr.bf16.mxu0 %v806_v1  ;;  %766 = vmatprep.subr.bf16.mxu1 %v806_v1  ;;  %v813_v4 = vld [vmem:[%s899_s29] sm:$0xff]   ;;  %v814_v5 = vld [vmem:[%s899_s29 + $0x10] sm:$0xff]   ;;  %v815_v10 = vld [vmem:[%s899_s29 + $0x8] sm:$0xff]   ;;  %s283_s24 = scalar_lea.vmem %s944_s4, %s893_s26 }
  0x10   : > { %757 = vmatprep.mubr.bf16.mxu0 %v813_v4  ;;  %761 = vmatprep.mubr.bf16.mxu1 %v814_v5  ;;  %v816_v11 = vld [vmem:[%s899_s29 + $0x18] sm:$0xff]   ;;  %v656_v12 = vld [vmem:[%s942_s2] ss:$0 sm:$0xff]  ;;  %v723_v13 = vld [vmem:[%s274_s19 + $0x8] sm:$0xff]  }
  0x11   : > { %v725_v14 = vld [vmem:[%s274_s19 + $0x18] sm:$0xff]   ;;  %v688_v17 = vld [vmem:[%s274_s19] sm:$0xff]   ;;  %v724_v18 = vld [vmem:[%s274_s19 + $0x10] sm:$0xff]   ;;  %v693_v20 = vunpack.c.l.bf16 %v723_v13  ;;  %v694_v30 = vunpack.c.h.bf16 %v723_v13 }
  0x12   : > { %744 = vmatpush3.bf16.msra.mxu0 %v806_v1  ;;  %774 = vmatpush3.bf16.msra.mxu1 %v806_v1  ;;  %v701_v22 = vunpack.c.l.bf16 %v725_v14  ;;  %v689_v26 = vunpack.c.l.bf16 %v688_v17  ;;  %v697_v28 = vunpack.c.l.bf16 %v724_v18  ;;  %v702_v32 = vunpack.c.h.bf16 %v725_v14 }
  0x13   : > { %745 = vmatprep.subr.bf16.mxu0 %v807_v2  ;;  %767 = vmatprep.subr.bf16.mxu1 %v807_v2  ;;  %v690_v33 = vunpack.c.h.bf16 %v688_v17  ;;  %v698_v34 = vunpack.c.h.bf16 %v724_v18 }
  0x16   : > { %746 = vmatpush3.bf16.msra.mxu0 %v807_v2  ;;  %775 = vmatpush3.bf16.msra.mxu1 %v807_v2 }
  0x17   : > { %747 = vmatprep.subr.bf16.mxu0 %v808_v3  ;;  %768 = vmatprep.subr.bf16.mxu1 %v808_v3 }
  0x1a   : > { %748 = vmatpush3.bf16.msra.mxu0 %v808_v3  ;;  %776 = vmatpush3.bf16.msra.mxu1 %v808_v3 }
  0x1b   : > { %749 = vmatprep.subr.bf16.mxu0 %v809_v6  ;;  %769 = vmatprep.subr.bf16.mxu1 %v809_v6 }
  0x1e   : > { %750 = vmatpush3.bf16.msra.mxu0 %v809_v6  ;;  %777 = vmatpush3.bf16.msra.mxu1 %v809_v6 }
  0x1f   : > { %751 = vmatprep.subr.bf16.mxu0 %v810_v7  ;;  %770 = vmatprep.subr.bf16.mxu1 %v810_v7 }
  0x22   : > { %752 = vmatpush3.bf16.msra.mxu0 %v810_v7  ;;  %778 = vmatpush3.bf16.msra.mxu1 %v810_v7 }
  0x23   : > { %753 = vmatprep.subr.bf16.mxu0 %v811_v8  ;;  %771 = vmatprep.subr.bf16.mxu1 %v811_v8 }
  0x26   : > { %754 = vmatpush3.bf16.msra.mxu0 %v811_v8  ;;  %779 = vmatpush3.bf16.msra.mxu1 %v811_v8 }
  0x27   : > { %755 = vmatprep.subr.bf16.mxu0 %v812_v9  ;;  %772 = vmatprep.subr.bf16.mxu1 %v812_v9 }
  0x2a   : > { %756 = vmatpush3.bf16.msra.mxu0 %v812_v9  ;;  %780 = vmatpush3.bf16.msra.mxu1 %v812_v9 }
  0x2d   : > { %758 = vmatmul.mubr.bf16.vlgmr.msra.gmra.mxu0 %v815_v10  ;;  %762 = vmatmul.mubr.bf16.vlgmr.msra.gmra.mxu1 %v816_v11 }
  0xed   : > { %v759_v15 = vpop.f32.mrf.mxu0  ;;  %v763_v16 = vpop.f32.mrf.mxu1 }
  0xee   : > { %v432_v19 = vadd.f32 %v759_v15, %v656_v12  ;;  %v448_v21 = vadd.f32 %v763_v16, %v656_v12 }
  0xef   : > { %v423_v23 = vpop.f32.mrf.mxu0  ;;  %v439_v24 = vpop.f32.mrf.mxu1 }
  0xf0   : > { %v424_v25 = vadd.f32 %v656_v12, %v423_v23  ;;  %v440_v27 = vadd.f32 %v656_v12, %v439_v24  ;;  %v472_v35 = vadd.f32 %v693_v20, %v432_v19  ;;  %v476_v36 = vadd.f32 %v701_v22, %v448_v21 }
  0xf1   : > { %v760_v29 = vpop.f32.mrf.mxu0  ;;  %v764_v31 = vpop.f32.mrf.mxu1 }
  0xf2   : > { %v435_v37 = vadd.f32 %v760_v29, %v656_v12  ;;  %v451_v38 = vadd.f32 %v764_v31, %v656_v12  ;;  %v470_v41 = vadd.f32 %v689_v26, %v424_v25  ;;  %v474_v42 = vadd.f32 %v697_v28, %v440_v27 }
  0xf3   : > { %v426_v39 = vpop.f32.mrf.mxu0  ;;  %v442_v40 = vpop.f32.mrf.mxu1  ;;  %v480_v49 = vmax.f32 %v472_v35, 0.0  ;;  %v484_v50 = vmax.f32 %v476_v36, 0.0 }
  0xf4   : > { %v427_v43 = vadd.f32 %v656_v12, %v426_v39  ;;  %v443_v44 = vadd.f32 %v656_v12, %v442_v40  ;;  %v473_v45 = vadd.f32 %v694_v30, %v435_v37  ;;  %v477_v46 = vadd.f32 %v702_v32, %v451_v38 }
  0xf5   : > { %v478_v53 = vmax.f32 %v470_v41, 0.0  ;;  %v482_v54 = vmax.f32 %v474_v42, 0.0 }
  0xf6   : > { %v471_v47 = vadd.f32 %v690_v33, %v427_v43  ;;  %v475_v48 = vadd.f32 %v698_v34, %v443_v44  ;;  %v481_v51 = vmax.f32 %v473_v45, 0.0  ;;  %v485_v52 = vmax.f32 %v477_v46, 0.0 }
  0xf8   : > { %v479_v55 = vmax.f32 %v471_v47, 0.0  ;;  %v483_v56 = vmax.f32 %v475_v48, 0.0  ;;  %v711_v57 = vpack.c.bf16 %v481_v51, %v480_v49  ;;  %v721_v58 = vpack.c.bf16 %v485_v52, %v484_v50 }
  0xfa   : > { %v706_v59 = vpack.c.bf16 %v479_v55, %v478_v53  ;;  %v716_v60 = vpack.c.bf16 %v483_v56, %v482_v54  ;;  %726 = vst [vmem:[%s283_s24 + $0x8] sm:$0xff] %v711_v57   ;;  %728 = vst [vmem:[%s283_s24 + $0x18] sm:$0xff] %v721_v58  }
  0xfc   : > { %707 = vst [vmem:[%s283_s24] sm:$0xff] %v706_v59   ;;  %727 = vst [vmem:[%s283_s24 + $0x10] sm:$0xff] %v716_v60  }
  0xfd PF: > { %s14_s17 = sadd.s32 1, %s839_s17   ;;  %s945_s15 = smov %s835_s16 }
  0xfe   : > { %p11_p5 = scmp.ge.s32.totalorder %s14_s17, 4   ;;  %s946_s16 = smov %s948_s18 }
 0x100   :  { %13 = sbr.rel (!%p11_p5) target bundleno = 2 (0x2), region = 75 }

// kernel: forward.29
= control target key start
LH: loop header
LB: loop body
LE: loop exit
PB: predicated region body
PF: predicated region fallthrough
CT: control target
= control target key end

     0   :  { %s2275_s18 = smov 0   ;;  %s2277_s19 = smov 0   ;;  %s2680_s0 = inlined_call_operand.vmem [shape: bf16[2,18,9,256], index: 0, kind: input, shape index: {}, may-alias: {0,1,2}]   ;;  %s2681_s1 = inlined_call_operand.vmem [shape: bf16[2,18,9,256], index: 1, kind: input, shape index: {}, may-alias: {0,1,2}]   ;;  %s2682_s2 = inlined_call_operand.vmem [shape: bf16[2,18,9,256], index: 2, kind: input, shape index: {}, may-alias: {0,1,2}]   ;;  %s2683_s3 = inlined_call_operand.vmem [shape: bf16[9,128,128], index: 3, kind: input, shape index: {}]   ;;  %s2684_s4 = inlined_call_operand.vmem [shape: f32[1,128], index: 4, kind: input, shape index: {}]   ;;  %s2685_s5 = inlined_call_operand.vmem [shape: bf16[2,8,8,128], index: 5, kind: output, shape index: {}]  }
   0x1   :  { %s2279_s20 = smov 0   ;;  %s2281_s21 = smov 0  }
   0x2   :  { %s2283_s22 = smov 0  }
   0x3 LB: > { %s30_s23 = sadd.s32 1, %s2233_s20  ;;  %s34_s24 = sadd.s32 1, %s2237_s21  ;;  %s2241_s22 = sphi %s2283_s22, %s15_s22   ;;  %s2237_s21 = sphi %s2281_s21, %s2689_s21   ;;  %s2233_s20 = sphi %s2279_s20, %s2688_s20   ;;  %s2229_s19 = sphi %s2277_s19, %s2687_s19   ;;  %s2225_s18 = sphi %s2275_s18, %s2686_s18  }
   0x4   : > { %p32_p0 = scmp.ge.s32.totalorder %s30_s23, 8  ;;  %p1606_p1 = scmp.ge.s32.totalorder %s2241_s22, 1 }
   0x5   : > { %p285_p2 = scmp.lt.s32.totalorder %s2241_s22, 17 }
   0x6   : > { %s2691_s23 = smov (%p32_p0, %s30_s23), 0  ;;  %s2693_s24 = smov (!%p32_p0, %s34_s24), %s2237_s21 }
   0x7   : > { %p286_p3 = pnand %p1606_p1, %p285_p2  ;;  %p36_p4 = scmp.ge.s32.totalorder %s2693_s24, 2 }
   0x8   : > { %s2323_s6 = sshll.u32 (!%p286_p3), %s2225_s18, 1  ;;  %p354_p5 = scmp.lt.s32.totalorder (!%p286_p3), %s2229_s19, 1 }
   0x9   : > { %s2695_s24 = smov (%p36_p4, %s2693_s24), 0  ;;  %289 = sbr.rel (%p286_p3) target bundleno = 377 (0x179), region = 40 }
   0xa   : > { %p356_p6 = scmp.lt.s32.totalorder (!%p286_p3), %s2323_s6, 17  ;;  %s365_s7 = sadd.s32 (!%p286_p3), 1, %s2323_s6 }
   0xb   : > { %p368_p7 = scmp.lt.s32.totalorder (!%p286_p3), %s365_s7, 17  ;;  %s378_s25 = sadd.s32 (!%p286_p3), 2, %s2323_s6 }
   0xc   : > { %p381_p8 = scmp.lt.s32.totalorder (!%p286_p3), %s378_s25, 17  ;;  %p399_p9 = scmp.lt.s32.totalorder (!%p286_p3), %s2225_s18, 7 }
   0xe   : > { %v2128_v0 = vld [vmem:[%s2683_s3 + $0x78] sm:$0xff]   ;;  %v2243_v1 = vmov 0.0   ;;  %v2130_v3 = vld [vmem:[%s2683_s3 + $0x70] sm:$0xff]   ;;  %vm2244_vm0 = vmmov 0   ;;  %s2697_s19 = smov (!%p354_p5, %s2229_s19), 1  ;;  %v2132_v5 = vld [vmem:[%s2683_s3 + $0x68] sm:$0xff]  }
   0xf   : > { %1905 = vmatprep.subr.bf16.mxu0 %v2243_v1  ;;  %1925 = vmatprep.subr.bf16.mxu1 %v2243_v1  ;;  %v2129_v2 = vld [vmem:[%s2683_s3 + $0x38] sm:$0xff]   ;;  %v2131_v4 = vld [vmem:[%s2683_s3 + $0x30] sm:$0xff]   ;;  %s357_s11 = scalar_select %p356_p6, %s2323_s6, 17  ;;  %v2133_v6 = vld [vmem:[%s2683_s3 + $0x28] sm:$0xff]  }
  0x10   : > { %1906 = vmatpush3.bf16.msra.mxu0 %v2128_v0  ;;  %1921 = vmatprep.mubr.msk.bf16.mxu0 %vm2244_vm0, %v2243_v1  ;;  %s2346_s14 = smul.u32 72, %s2697_s19  ;;  %v2134_v7 = vld [vmem:[%s2683_s3 + $0x60] sm:$0xff]   ;;  %v2136_v9 = vld [vmem:[%s2683_s3 + $0x58] sm:$0xff]   ;;  %v2138_v11 = vld [vmem:[%s2683_s3 + $0x50] sm:$0xff]   ;;  %s2699_s7 = smov (!%p368_p7, %s365_s7), 17 }
  0x11   : > { %1926 = vmatpush3.bf16.msra.mxu1 %v2129_v2  ;;  %1907 = vmatprep.subr.bf16.mxu0 %v2243_v1  ;;  %s1608_s15 = sshll.u32 %s357_s11, 2  ;;  %v2135_v8 = vld [vmem:[%s2683_s3 + $0x20] sm:$0xff]   ;;  %v2137_v10 = vld [vmem:[%s2683_s3 + $0x18] sm:$0xff]   ;;  %v2139_v12 = vld [vmem:[%s2683_s3 + $0x10] sm:$0xff]   ;;  %s1611_s29 = sshll.u32 %s2699_s7, 2 }
  0x12   : > { %1927 = vmatprep.subr.bf16.mxu1 %v2243_v1  ;;  %1941 = vmatprep.mubr.msk.bf16.mxu1 %vm2244_vm0, %v2243_v1  ;;  %s360_s16 = sadd.s32 %s2346_s14, %s1608_s15  ;;  %v2140_v13 = vld [vmem:[%s2683_s3 + $0x48] sm:$0xff]   ;;  %v2142_v15 = vld [vmem:[%s2683_s3 + $0x40] sm:$0xff]   ;;  %s372_s11 = sadd.s32 %s2346_s14, %s1611_s29  ;;  %v2145_v19 = vld [vmem:[%s2683_s3 + $0xb8] sm:$0xff]  }
  0x13   : > { %s1609_s28 = sshll.u32 %s360_s16, 2  ;;  %v2141_v14 = vld [vmem:[%s2683_s3 + $0x8] sm:$0xff]   ;;  %v2143_v16 = vld [vmem:[%s2683_s3] sm:$0xff]   ;;  %v2146_v20 = vld [vmem:[%s2683_s3 + $0xf8] sm:$0xff]   ;;  %s1612_s17 = sshll.u32 %s372_s11, 2 }
  0x14   : > { %1908 = vmatpush3.bf16.msra.mxu0 %v2130_v3  ;;  %s2369_s12 = scalar_lea.vmem %s2680_s0, %s1609_s28  ;;  %v2147_v21 = vld [vmem:[%s2683_s3 + $0xb0] sm:$0xff]   ;;  %s2416_s8 = scalar_lea.vmem %s2681_s1, %s1612_s17  ;;  %v2149_v23 = vld [vmem:[%s2683_s3 + $0xa8] sm:$0xff]   ;;  %v2151_v25 = vld [vmem:[%s2683_s3 + $0xa0] sm:$0xff]  }
  0x15   : > { %1928 = vmatpush3.bf16.msra.mxu1 %v2131_v4  ;;  %1909 = vmatprep.subr.bf16.mxu0 %v2243_v1  ;;  %v426_v17 = vld [vmem:[%s2369_s12 + $0x4] sm:$0xf]  ;;  %v409_v18 = vld [vmem:[%s2369_s12] sm:$0xf]  ;;  %v2148_v22 = vld [vmem:[%s2683_s3 + $0xf0] sm:$0xff]   ;;  %s2701_s25 = smov (!%p381_p8, %s378_s25), 17 }
  0x16   : > { %1929 = vmatprep.subr.bf16.mxu1 %v2243_v1  ;;  %v2150_v24 = vld [vmem:[%s2683_s3 + $0xe8] sm:$0xff]   ;;  %v2152_v26 = vld [vmem:[%s2683_s3 + $0xe0] sm:$0xff]   ;;  %v2153_v28 = vld [vmem:[%s2683_s3 + $0x98] sm:$0xff]   ;;  %s1614_s15 = sshll.u32 %s2701_s25, 2  ;;  %s2703_s18 = smov (!%p399_p9, %s2225_s18), 7 }
  0x17   : > { %v2144_v27 = vld [vmem:[%s2369_s12] ss:$8 sps:$4 sm:$0x1f]   ;;  %v2154_v29 = vld [vmem:[%s2683_s3 + $0xd8] sm:$0xff]   ;;  %v2155_v30 = vld [vmem:[%s2683_s3 + $0x90] sm:$0xff]   ;;  %s385_s28 = sadd.s32 %s2346_s14, %s1614_s15 }
  0x18   : > { %1910 = vmatpush3.bf16.msra.mxu0 %v2132_v5  ;;  %v2156_v31 = vld [vmem:[%s2683_s3 + $0xd0] sm:$0xff]   ;;  %v647_v32 = vshll.u32 %v2144_v27, 16  ;;  %v2157_v33 = vld [vmem:[%s2683_s3 + $0x88] sm:$0xff]   ;;  %v645_v35 = vshrl.u32 %v2144_v27, 16  ;;  %v2159_v37 = vld [vmem:[%s2683_s3 + $0x80] sm:$0xff]   ;;  %s1615_s6 = sshll.u32 %s385_s28, 2 }
  0x19   : > { %1930 = vmatpush3.bf16.msra.mxu1 %v2133_v6  ;;  %1911 = vmatprep.subr.bf16.mxu0 %v2243_v1  ;;  %v2158_v34 = vld [vmem:[%s2683_s3 + $0xc8] sm:$0xff]   ;;  %v2160_v38 = vld [vmem:[%s2683_s3 + $0xc0] sm:$0xff]   ;;  %v2161_v40 = vld [vmem:[%s2683_s3 + $0x138] sm:$0xff]   ;;  %s2490_s13 = scalar_lea.vmem %s2682_s2, %s1615_s6  ;;  %s1616_s28 = sshll.u32 %s2697_s19, 3 }
  0x1a   : > { %1931 = vmatprep.subr.bf16.mxu1 %v2243_v1  ;;  %v649_v36 = vrot.slane %v647_v32, 1  ;;  %v741_v41 = vld [vmem:[%s2416_s8] sm:$0xf]  ;;  %v2162_v42 = vld [vmem:[%s2683_s3 + $0x178] sm:$0xff]   ;;  %v2163_v43 = vld [vmem:[%s2683_s3 + $0x130] sm:$0xff]   ;;  %s405_s29 = sadd.s32 %s1616_s28, %s2703_s18 }
  0x1b   : > { %v2164_v44 = vld [vmem:[%s2683_s3 + $0x170] sm:$0xff]   ;;  %v2165_v45 = vld [vmem:[%s2683_s3 + $0x128] sm:$0xff]   ;;  %v2167_v47 = vld [vmem:[%s2683_s3 + $0x120] sm:$0xff]   ;;  %s1617_s9 = sshll.u32 %s405_s29, 2 }
  0x1c   : > { %1912 = vmatpush3.bf16.msra.mxu0 %v2134_v7  ;;  %v650_v39 = vor.u32 %v649_v36, %v645_v35  ;;  %v2166_v46 = vld [vmem:[%s2683_s3 + $0x168] sm:$0xff]   ;;  %v2168_v48 = vld [vmem:[%s2683_s3 + $0x160] sm:$0xff]   ;;  %v2169_v49 = vld [vmem:[%s2683_s3 + $0x118] sm:$0xff]   ;;  %s407_s12 = scalar_lea.vmem %s2685_s5, %s1617_s9 }
  0x1d   : > { %1932 = vmatpush3.bf16.msra.mxu1 %v2135_v8  ;;  %1913 = vmatprep.subr.bf16.mxu0 %v2243_v1  ;;  %v2170_v50 = vld [vmem:[%s2683_s3 + $0x158] sm:$0xff]   ;;  %v2171_v51 = vld [vmem:[%s2683_s3 + $0x110] sm:$0xff]   ;;  %v2178_v52 = vld [vmem:[%s2416_s8] ss:$8 sps:$4 sm:$0x1f]  }
  0x1e   : > { %1933 = vmatprep.subr.bf16.mxu1 %v2243_v1  ;;  %v2172_v53 = vld [vmem:[%s2683_s3 + $0x150] sm:$0xff]   ;;  %v2173_v54 = vld [vmem:[%s2683_s3 + $0x108] sm:$0xff]   ;;  %v982_v55 = vshll.u32 %v2178_v52, 16  ;;  %v2175_v57 = vld [vmem:[%s2683_s3 + $0x100] sm:$0xff]   ;;  %v980_v58 = vshrl.u32 %v2178_v52, 16 }
  0x1f   : > { %v2174_v56 = vld [vmem:[%s2683_s3 + $0x148] sm:$0xff]   ;;  %v2176_v60 = vld [vmem:[%s2683_s3 + $0x140] sm:$0xff]   ;;  %v2177_v62 = vld [vmem:[%s2683_s3 + $0x1b8] sm:$0xff]  }
  0x20   : > { %1914 = vmatpush3.bf16.msra.mxu0 %v2136_v9  ;;  %v984_v59 = vrot.slane %v982_v55, 1  ;;  %v848_v61 = vld [vmem:[%s2416_s8 + $0x4] sm:$0xf]  ;;  %v2179_v0 = vld [vmem:[%s2683_s3 + $0x1f8] sm:$0xff]   ;;  %v2180_v2 = vld [vmem:[%s2683_s3 + $0x1b0] sm:$0xff]  }
  0x21   : > { %1934 = vmatpush3.bf16.msra.mxu1 %v2137_v10  ;;  %1915 = vmatprep.subr.bf16.mxu0 %v2243_v1  ;;  %v2181_v3 = vld [vmem:[%s2683_s3 + $0x1f0] sm:$0xff]   ;;  %v2182_v4 = vld [vmem:[%s2683_s3 + $0x1a8] sm:$0xff]   ;;  %v2184_v6 = vld [vmem:[%s2683_s3 + $0x1a0] sm:$0xff]  }
  0x22   : > { %1935 = vmatprep.subr.bf16.mxu1 %v2243_v1  ;;  %v985_v63 = vor.u32 %v984_v59, %v980_v58  ;;  %v2183_v5 = vld [vmem:[%s2683_s3 + $0x1e8] sm:$0xff]   ;;  %v2185_v7 = vld [vmem:[%s2683_s3 + $0x1e0] sm:$0xff]   ;;  %v2186_v8 = vld [vmem:[%s2683_s3 + $0x198] sm:$0xff]  }
  0x23   : > { %v2187_v9 = vld [vmem:[%s2683_s3 + $0x1d8] sm:$0xff]   ;;  %v2188_v10 = vld [vmem:[%s2683_s3 + $0x190] sm:$0xff]  }
  0x24   : > { %1916 = vmatpush3.bf16.msra.mxu0 %v2138_v11  ;;  %v2189_v11 = vld [vmem:[%s2683_s3 + $0x1d0] sm:$0xff]  }
  0x25   : > { %1936 = vmatpush3.bf16.msra.mxu1 %v2139_v12  ;;  %1917 = vmatprep.subr.bf16.mxu0 %v2243_v1  ;;  %v2190_v12 = vld [vmem:[%s2683_s3 + $0x188] sm:$0xff]  }
  0x26   : > { %1937 = vmatprep.subr.bf16.mxu1 %v2243_v1 }
  0x28   : > { %1918 = vmatpush3.bf16.msra.mxu0 %v2140_v13  ;;  %v2191_v13 = vld [vmem:[%s2683_s3 + $0x1c8] sm:$0xff]  }
  0x29   : > { %1938 = vmatpush3.bf16.msra.mxu1 %v2141_v14  ;;  %1919 = vmatprep.subr.bf16.mxu0 %v2243_v1  ;;  %v2192_v14 = vld [vmem:[%s2683_s3 + $0x180] sm:$0xff]  }
  0x2a   : > { %1939 = vmatprep.subr.bf16.mxu1 %v2243_v1 }
  0x2c   : > { %1920 = vmatpush3.bf16.msra.mxu0 %v2142_v15  ;;  %v2193_v15 = vld [vmem:[%s2683_s3 + $0x1c0] sm:$0xff]  }
  0x2d   : > { %1940 = vmatpush3.bf16.msra.mxu1 %v2143_v16  ;;  %1945 = vmatprep.subr.bf16.mxu0 %v2243_v1  ;;  %v1076_v16 = vld [vmem:[%s2490_s13] sm:$0xf] }
  0x2e   : > { %1965 = vmatprep.subr.bf16.mxu1 %v2243_v1 }
  0x2f   : > { %1922 = vmatmul.mubr.bf16.vlgmr.msra.gmra.mxu0 %v426_v17  ;;  %v2194_v17 = vld [vmem:[%s2683_s3 + $0x238] sm:$0xff]  }
  0x30   : > { %1942 = vmatmul.mubr.bf16.vlgmr.msra.gmra.mxu1 %v409_v18  ;;  %1946 = vmatpush3.bf16.msra.mxu0 %v2145_v19  ;;  %v1183_v18 = vld [vmem:[%s2490_s13 + $0x4] sm:$0xf]  ;;  %v2195_v19 = vld [vmem:[%s2683_s3 + $0x230] sm:$0xff]  }
  0x31   : > { %1966 = vmatpush3.bf16.msra.mxu1 %v2146_v20  ;;  %1947 = vmatprep.subr.bf16.mxu0 %v2243_v1  ;;  %v2196_v20 = vld [vmem:[%s2683_s3 + $0x228] sm:$0xff]  }
  0x32   : > { %1967 = vmatprep.subr.bf16.mxu1 %v2243_v1  ;;  %1961 = vmatprep.mubr.msk.bf16.mxu0 %vm2244_vm0, %v2243_v1 }
  0x33   : > { %1981 = vmatprep.mubr.msk.bf16.mxu1 %vm2244_vm0, %v2243_v1 }
  0x34   : > { %1948 = vmatpush3.bf16.msra.mxu0 %v2147_v21  ;;  %v2197_v21 = vld [vmem:[%s2683_s3 + $0x220] sm:$0xff]  }
  0x35   : > { %1968 = vmatpush3.bf16.msra.mxu1 %v2148_v22  ;;  %1949 = vmatprep.subr.bf16.mxu0 %v2243_v1  ;;  %v2198_v22 = vld [vmem:[%s2683_s3 + $0x218] sm:$0xff]  }
  0x36   : > { %1969 = vmatprep.subr.bf16.mxu1 %v2243_v1 }
  0x38   : > { %1950 = vmatpush3.bf16.msra.mxu0 %v2149_v23  ;;  %v2202_v23 = vld [vmem:[%s2490_s13] ss:$8 sps:$4 sm:$0x1f]  }
  0x39   : > { %1970 = vmatpush3.bf16.msra.mxu1 %v2150_v24  ;;  %1951 = vmatprep.subr.bf16.mxu0 %v2243_v1  ;;  %v2199_v24 = vld [vmem:[%s2683_s3 + $0x210] sm:$0xff]   ;;  %v1315_v27 = vshrl.u32 %v2202_v23, 16 }
  0x3a   : > { %1971 = vmatprep.subr.bf16.mxu1 %v2243_v1 }
  0x3c   : > { %1952 = vmatpush3.bf16.msra.mxu0 %v2151_v25  ;;  %v1317_v25 = vshll.u32 %v2202_v23, 16 }
  0x3d   : > { %1972 = vmatpush3.bf16.msra.mxu1 %v2152_v26  ;;  %1953 = vmatprep.subr.bf16.mxu0 %v2243_v1  ;;  %v2200_v26 = vld [vmem:[%s2683_s3 + $0x208] sm:$0xff]  }
  0x3e   : > { %1973 = vmatprep.subr.bf16.mxu1 %v2243_v1 }
  0x40   : > { %1954 = vmatpush3.bf16.msra.mxu0 %v2153_v28  ;;  %v1319_v28 = vrot.slane %v1317_v25, 1 }
  0x41   : > { %1974 = vmatpush3.bf16.msra.mxu1 %v2154_v29  ;;  %1955 = vmatprep.subr.bf16.mxu0 %v2243_v1  ;;  %v2201_v29 = vld [vmem:[%s2683_s3 + $0x200] sm:$0xff]  }
  0x42   : > { %1975 = vmatprep.subr.bf16.mxu1 %v2243_v1 }
  0x44   : > { %1956 = vmatpush3.bf16.msra.mxu0 %v2155_v30  ;;  %v1320_v30 = vor.u32 %v1319_v28, %v1315_v27 }
  0x45   : > { %1976 = vmatpush3.bf16.msra.mxu1 %v2156_v31  ;;  %1957 = vmatprep.subr.bf16.mxu0 %v2243_v1 }
  0x46   : > { %1977 = vmatprep.subr.bf16.mxu1 %v2243_v1 }
  0x48   : > { %1958 = vmatpush3.bf16.msra.mxu0 %v2157_v33 }
  0x49   : > { %1978 = vmatpush3.bf16.msra.mxu1 %v2158_v34  ;;  %1959 = vmatprep.subr.bf16.mxu0 %v2243_v1 }
  0x4a   : > { %1979 = vmatprep.subr.bf16.mxu1 %v2243_v1 }
  0x4c   : > { %1960 = vmatpush3.bf16.msra.mxu0 %v2159_v37 }
  0x4d   : > { %1980 = vmatpush3.bf16.msra.mxu1 %v2160_v38  ;;  %1985 = vmatprep.subr.bf16.mxu0 %v2243_v1 }
  0x4e   : > { %2005 = vmatprep.subr.bf16.mxu1 %v2243_v1 }
  0x4f   : > { %1962 = vmatmul.mubr.bf16.vlgmr.msra.gmra.mxu0 %v650_v39 }
  0x50   : > { %1986 = vmatpush3.bf16.msra.mxu0 %v2161_v40  ;;  %1982 = vmatmul.mubr.bf16.vlgmr.msra.gmra.mxu1 %v741_v41 }
  0x51   : > { %2006 = vmatpush3.bf16.msra.mxu1 %v2162_v42  ;;  %1987 = vmatprep.subr.bf16.mxu0 %v2243_v1 }
  0x52   : > { %2007 = vmatprep.subr.bf16.mxu1 %v2243_v1  ;;  %2001 = vmatprep.mubr.msk.bf16.mxu0 %vm2244_vm0, %v2243_v1 }
  0x53   : > { %2021 = vmatprep.mubr.msk.bf16.mxu1 %vm2244_vm0, %v2243_v1 }
  0x54   : > { %1988 = vmatpush3.bf16.msra.mxu0 %v2163_v43 }
  0x55   : > { %2008 = vmatpush3.bf16.msra.mxu1 %v2164_v44  ;;  %1989 = vmatprep.subr.bf16.mxu0 %v2243_v1 }
  0x56   : > { %2009 = vmatprep.subr.bf16.mxu1 %v2243_v1 }
  0x58   : > { %1990 = vmatpush3.bf16.msra.mxu0 %v2165_v45 }
  0x59   : > { %2010 = vmatpush3.bf16.msra.mxu1 %v2166_v46  ;;  %1991 = vmatprep.subr.bf16.mxu0 %v2243_v1 }
  0x5a   : > { %2011 = vmatprep.subr.bf16.mxu1 %v2243_v1 }
  0x5c   : > { %1992 = vmatpush3.bf16.msra.mxu0 %v2167_v47 }
  0x5d   : > { %2012 = vmatpush3.bf16.msra.mxu1 %v2168_v48  ;;  %1993 = vmatprep.subr.bf16.mxu0 %v2243_v1 }
  0x5e   : > { %2013 = vmatprep.subr.bf16.mxu1 %v2243_v1 }
  0x60   : > { %1994 = vmatpush3.bf16.msra.mxu0 %v2169_v49 }
  0x61   : > { %2014 = vmatpush3.bf16.msra.mxu1 %v2170_v50  ;;  %1995 = vmatprep.subr.bf16.mxu0 %v2243_v1 }
  0x62   : > { %2015 = vmatprep.subr.bf16.mxu1 %v2243_v1 }
  0x64   : > { %1996 = vmatpush3.bf16.msra.mxu0 %v2171_v51 }
  0x65   : > { %2016 = vmatpush3.bf16.msra.mxu1 %v2172_v53  ;;  %1997 = vmatprep.subr.bf16.mxu0 %v2243_v1 }
  0x66   : > { %2017 = vmatprep.subr.bf16.mxu1 %v2243_v1 }
  0x68   : > { %1998 = vmatpush3.bf16.msra.mxu0 %v2173_v54 }
  0x69   : > { %2018 = vmatpush3.bf16.msra.mxu1 %v2174_v56  ;;  %1999 = vmatprep.subr.bf16.mxu0 %v2243_v1 }
  0x6a   : > { %2019 = vmatprep.subr.bf16.mxu1 %v2243_v1 }
  0x6c   : > { %2000 = vmatpush3.bf16.msra.mxu0 %v2175_v57 }
  0x6d   : > { %2020 = vmatpush3.bf16.msra.mxu1 %v2176_v60  ;;  %2025 = vmatprep.subr.bf16.mxu0 %v2243_v1 }
  0x6e   : > { %2045 = vmatprep.subr.bf16.mxu1 %v2243_v1 }
  0x6f   : > { %2002 = vmatmul.mubr.bf16.vlgmr.msra.gmra.mxu0 %v848_v61 }
  0x70   : > { %2026 = vmatpush3.bf16.msra.mxu0 %v2177_v62  ;;  %2022 = vmatmul.mubr.bf16.vlgmr.msra.gmra.mxu1 %v985_v63 }
  0x71   : > { %2046 = vmatpush3.bf16.msra.mxu1 %v2179_v0  ;;  %2027 = vmatprep.subr.bf16.mxu0 %v2243_v1 }
  0x72   : > { %2047 = vmatprep.subr.bf16.mxu1 %v2243_v1  ;;  %2041 = vmatprep.mubr.msk.bf16.mxu0 %vm2244_vm0, %v2243_v1 }
  0x73   : > { %2061 = vmatprep.mubr.msk.bf16.mxu1 %vm2244_vm0, %v2243_v1 }
  0x74   : > { %2028 = vmatpush3.bf16.msra.mxu0 %v2180_v2 }
  0x75   : > { %2048 = vmatpush3.bf16.msra.mxu1 %v2181_v3  ;;  %2029 = vmatprep.subr.bf16.mxu0 %v2243_v1 }
  0x76   : > { %2049 = vmatprep.subr.bf16.mxu1 %v2243_v1 }
  0x78   : > { %2030 = vmatpush3.bf16.msra.mxu0 %v2182_v4 }
  0x79   : > { %2050 = vmatpush3.bf16.msra.mxu1 %v2183_v5  ;;  %2031 = vmatprep.subr.bf16.mxu0 %v2243_v1 }
  0x7a   : > { %2051 = vmatprep.subr.bf16.mxu1 %v2243_v1 }
  0x7c   : > { %2032 = vmatpush3.bf16.msra.mxu0 %v2184_v6 }
  0x7d   : > { %2052 = vmatpush3.bf16.msra.mxu1 %v2185_v7  ;;  %2033 = vmatprep.subr.bf16.mxu0 %v2243_v1  ;;  %v1821_v7 = vld [vmem:[%s2684_s4] ss:$0 sm:$0xff] }
  0x7e   : > { %2053 = vmatprep.subr.bf16.mxu1 %v2243_v1 }
  0x80   : > { %2034 = vmatpush3.bf16.msra.mxu0 %v2186_v8 }
  0x81   : > { %2054 = vmatpush3.bf16.msra.mxu1 %v2187_v9  ;;  %2035 = vmatprep.subr.bf16.mxu0 %v2243_v1 }
  0x82   : > { %2055 = vmatprep.subr.bf16.mxu1 %v2243_v1 }
  0x84   : > { %2036 = vmatpush3.bf16.msra.mxu0 %v2188_v10 }
  0x85   : > { %2056 = vmatpush3.bf16.msra.mxu1 %v2189_v11  ;;  %2037 = vmatprep.subr.bf16.mxu0 %v2243_v1 }
  0x86   : > { %2057 = vmatprep.subr.bf16.mxu1 %v2243_v1 }
  0x88   : > { %2038 = vmatpush3.bf16.msra.mxu0 %v2190_v12 }
  0x89   : > { %2058 = vmatpush3.bf16.msra.mxu1 %v2191_v13  ;;  %2039 = vmatprep.subr.bf16.mxu0 %v2243_v1 }
  0x8a   : > { %2059 = vmatprep.subr.bf16.mxu1 %v2243_v1 }
  0x8c   : > { %2040 = vmatpush3.bf16.msra.mxu0 %v2192_v14 }
  0x8d   : > { %2060 = vmatpush3.bf16.msra.mxu1 %v2193_v15  ;;  %2065 = vmatprep.subr.bf16.mxu0 %v2243_v1 }
  0x8f   : > { %2042 = vmatmul.mubr.bf16.vlgmr.msra.gmra.mxu0 %v1076_v16 }
  0x90   : > { %2066 = vmatpush3.bf16.msra.mxu0 %v2194_v17  ;;  %2062 = vmatmul.mubr.bf16.vlgmr.msra.gmra.mxu1 %v1183_v18 }
  0x91   : > { %2067 = vmatprep.subr.bf16.mxu0 %v2243_v1  ;;  %2081 = vmatprep.mubr.msk.bf16.mxu0 %vm2244_vm0, %v2243_v1 }
  0x94   : > { %2068 = vmatpush3.bf16.msra.mxu0 %v2195_v19 }
  0x95   : > { %2069 = vmatprep.subr.bf16.mxu0 %v2243_v1 }
  0x98   : > { %2070 = vmatpush3.bf16.msra.mxu0 %v2196_v20 }
  0x99   : > { %2071 = vmatprep.subr.bf16.mxu0 %v2243_v1 }
  0x9c   : > { %2072 = vmatpush3.bf16.msra.mxu0 %v2197_v21 }
  0x9d   : > { %2073 = vmatprep.subr.bf16.mxu0 %v2243_v1 }
  0xa0   : > { %2074 = vmatpush3.bf16.msra.mxu0 %v2198_v22 }
  0xa1   : > { %2075 = vmatprep.subr.bf16.mxu0 %v2243_v1 }
  0xa4   : > { %2076 = vmatpush3.bf16.msra.mxu0 %v2199_v24 }
  0xa5   : > { %2077 = vmatprep.subr.bf16.mxu0 %v2243_v1 }
  0xa8   : > { %2078 = vmatpush3.bf16.msra.mxu0 %v2200_v26 }
  0xa9   : > { %2079 = vmatprep.subr.bf16.mxu0 %v2243_v1 }
  0xac   : > { %2080 = vmatpush3.bf16.msra.mxu0 %v2201_v29 }
  0xaf   : > { %2082 = vmatmul.mubr.bf16.vlgmr.msra.gmra.mxu0 %v1320_v30 }
  0xef   : > { %v526_v31 = vpop.f32.mrf.mxu0 }
  0xf0   : > { %v614_v32 = vpop.f32.mrf.mxu1 }
  0xf1   : > { %v615_v33 = vadd.f32 %v614_v32, %v526_v31  ;;  %v1923_v34 = vpop.f32.mrf.mxu0 }
  0xf2   : > { %v1943_v35 = vpop.f32.mrf.mxu1 }
  0xf3   : > { %v529_v36 = vpop.f32.mrf.mxu0 }
  0xf4   : > { %v617_v37 = vpop.f32.mrf.mxu1 }
  0xf5   : > { %v1924_v38 = vpop.f32.mrf.mxu0 }
  0xf6   : > { %v1944_v39 = vpop.f32.mrf.mxu1 }
 0x10f   : > { %v734_v40 = vpop.f32.mrf.mxu0 }
 0x110   : > { %v740_v41 = vadd.f32 %v734_v40, %v615_v33  ;;  %v841_v42 = vpop.f32.mrf.mxu1 }
 0x111   : > { %v1963_v43 = vpop.f32.mrf.mxu0 }
 0x112   : > { %v847_v44 = vadd.f32 %v841_v42, %v740_v41  ;;  %v1983_v45 = vpop.f32.mrf.mxu1 }
 0x113   : > { %v737_v46 = vpop.f32.mrf.mxu0 }
 0x114   : > { %v844_v1 = vpop.f32.mrf.mxu1 }
 0x115   : > { %v1964_v47 = vpop.f32.mrf.mxu0 }
 0x116   : > { %v1984_v48 = vpop.f32.mrf.mxu1 }
 0x12f   : > { %v948_v49 = vpop.f32.mrf.mxu0 }
 0x130   : > { %v1069_v50 = vpop.f32.mrf.mxu1  ;;  %v954_v2 = vadd.f32 %v948_v49, %v847_v44 }
 0x131   : > { %v2003_v51 = vpop.f32.mrf.mxu0 }
 0x132   : > { %v2023_v52 = vpop.f32.mrf.mxu1  ;;  %v1075_v3 = vadd.f32 %v1069_v50, %v954_v2 }
 0x133   : > { %v951_v53 = vpop.f32.mrf.mxu0 }
 0x134   : > { %v1072_v54 = vpop.f32.mrf.mxu1 }
 0x135   : > { %v2004_v55 = vpop.f32.mrf.mxu0 }
 0x136   : > { %v2024_v56 = vpop.f32.mrf.mxu1 }
 0x14f   : > { %v1176_v57 = vpop.f32.mrf.mxu0 }
 0x150   : > { %v1283_v58 = vpop.f32.mrf.mxu1  ;;  %v1182_v4 = vadd.f32 %v1176_v57, %v1075_v3 }
 0x151   : > { %v2043_v59 = vpop.f32.mrf.mxu0 }
 0x152   : > { %v2063_v60 = vpop.f32.mrf.mxu1  ;;  %v1289_v5 = vadd.f32 %v1283_v58, %v1182_v4 }
 0x153   : > { %v1179_v61 = vpop.f32.mrf.mxu0 }
 0x154   : > { %v1286_v62 = vpop.f32.mrf.mxu1 }
 0x155   : > { %v2044_v63 = vpop.f32.mrf.mxu0 }
 0x156   : > { %v2064_v0 = vpop.f32.mrf.mxu1 }
 0x16f   : > { %v1404_v6 = vpop.f32.mrf.mxu0 }
 0x170   : > { %v1410_v8 = vadd.f32 %v1404_v6, %v1289_v5 }
 0x171   : > { %v2083_v9 = vpop.f32.mrf.mxu0 }
 0x172   : > { %v1418_v10 = vadd.f32 %v1821_v7, %v1410_v8 }
 0x173   : > { %v1407_v11 = vpop.f32.mrf.mxu0 }
 0x174   : > { %v1419_v12 = vmax.f32 %v1418_v10, 0.0 }
 0x175   : > { %v2084_v13 = vpop.f32.mrf.mxu0 }
 0x176   : > { %v1420_v14 = vpack.c.bf16 %v1419_v12, %v1419_v12 }
 0x178   : > { %1421 = vst [vmem:[%s407_s12] sm:$0xf] %v1420_v14 }
 0x179 PF: > { %s15_s22 = sadd.s32 1, %s2241_s22   ;;  %s2686_s18 = smov %s2233_s20 }
 0x17a   : > { %p12_p10 = scmp.ge.s32.totalorder %s15_s22, 18   ;;  %s2687_s19 = smov %s2237_s21 }
 0x17b   : > { %s2688_s20 = smov %s2691_s23  ;;  %s2689_s21 = smov %s2695_s24 }
 0x17c   :  { %14 = sbr.rel (!%p12_p10) target bundleno = 3 (0x3), region = 90 }

// kernel: forward.34
= control target key start
LH: loop header
LB: loop body
LE: loop exit
PB: predicated region body
PF: predicated region fallthrough
CT: control target
= control target key end

     0   :  { %s816_s12 = smov 0   ;;  %s818_s13 = smov 0   ;;  %s921_s0 = inlined_call_operand.vmem [shape: bf16[32,128], index: 0, kind: input, shape index: {}]   ;;  %s922_s1 = inlined_call_operand.vmem [shape: bf16[128,256], index: 1, kind: input, shape index: {}]   ;;  %s923_s2 = inlined_call_operand.vmem [shape: f32[1,256], index: 2, kind: input, shape index: {}]   ;;  %s924_s3 = inlined_call_operand.vmem [shape: bf16[32,256], index: 3, kind: output, shape index: {}]  }
   0x1   :  { %s820_s14 = smov 0   ;;  %s822_s15 = smov 0  }
   0x2   :  { %s824_s16 = smov 0  }
   0x3 LB: > { %s22_s17 = sadd.s32 1, %s790_s15  ;;  %s632_s18 = sadd.s32 4294967295, %s794_s16   ;;  %s794_s16 = sphi %s824_s16, %s13_s16   ;;  %s790_s15 = sphi %s822_s15, %s929_s15   ;;  %s786_s14 = sphi %s820_s14, %s928_s14   ;;  %s782_s13 = sphi %s818_s13, %s927_s13   ;;  %s778_s12 = sphi %s816_s12, %s926_s12  }
   0x4   : > { %p23_p0 = scmp.ge.s32.totalorder %s22_s17, 2  ;;  %p65_p1 = scmp.ne.s32.totalorder %s782_s13, %s778_s12 }
   0x5   : > { %p66_p2 = scmp.eq.s32.totalorder %s794_s16, 0  ;;  %p123_p4 = scmp.eq.s32.totalorder %s632_s18, 1 }
   0x6   : > { %s931_s17 = smov (%p23_p0, %s22_s17), 0  ;;  %s58_s20 = sadd.s32 1, %s782_s13 }
   0x7   : > { %p67_p3 = por %p66_p2, %p65_p1  ;;  %s55_s19 = ssub.s32 %s790_s15, %s931_s17 }
   0x8   : > { %p56_p5 = scmp.eq.s32.totalorder %s55_s19, 0  ;;  %p851_p6 = por %p123_p4, %p65_p1 }
   0x9   : > { %p636_p7 = scmp.ge.s32.totalorder %s794_s16, 2 }
   0xa   : > { %s856_s22 = scalar_select %p56_p5, %s782_s13, %s58_s20  }
   0xb   : > { %154 = sbr.rel (%p636_p7) target bundleno = 30 (0x1e), region = 20 }
  0x10   : > { %157 = sbr.rel (!%p67_p3) target bundleno = 30 (0x1e), region = 24  ;;  %s159_s23 = sand.u32 (%p67_p3), 1, %s782_s13  }
  0x11   : > { %s638_s24 = sshll.u32 (%p67_p3), %s790_s15, 2  ;;  %s637_s25 = sshll.u32 (%p67_p3), %s159_s23, 6 }
  0x12   : > { %s864_s28 = scalar_lea.vmem (%p67_p3), %s922_s1, %s638_s24  ;;  %s161_s29 = scalar_lea.vmem (%p67_p3), [#allocation2], %s637_s25 }
  0x13   : > { %v180_v0 = vld [vmem:[%s864_s28] sm:$0xf] (%p67_p3)  ;;  %v182_v1 = vld [vmem:[%s864_s28 + $0x8] sm:$0xf] (%p67_p3)  ;;  %v184_v2 = vld [vmem:[%s864_s28 + $0x10] sm:$0xf] (%p67_p3) }
  0x14   : > { %181 = vst [vmem:[%s161_s29] sm:$0xf] (%p67_p3), %v180_v0  ;;  %183 = vst [vmem:[%s161_s29 + $0x4] sm:$0xf] (%p67_p3), %v182_v1  ;;  %v186_v3 = vld [vmem:[%s864_s28 + $0x18] sm:$0xf] (%p67_p3) }
  0x15   : > { %v188_v4 = vld [vmem:[%s864_s28 + $0x20] sm:$0xf]  ;;  %185 = vst [vmem:[%s161_s29 + $0x8] sm:$0xf] %v184_v2  ;;  %187 = vst [vmem:[%s161_s29 + $0xc] sm:$0xf] %v186_v3 }
  0x16   : > { %189 = vst [vmem:[%s161_s29 + $0x10] sm:$0xf] %v188_v4  ;;  %v190_v5 = vld [vmem:[%s864_s28 + $0x28] sm:$0xf]  ;;  %v192_v6 = vld [vmem:[%s864_s28 + $0x30] sm:$0xf] }
  0x17   : > { %v194_v7 = vld [vmem:[%s864_s28 + $0x38] sm:$0xf]  ;;  %191 = vst [vmem:[%s161_s29 + $0x14] sm:$0xf] %v190_v5  ;;  %193 = vst [vmem:[%s161_s29 + $0x18] sm:$0xf] %v192_v6 }
  0x18   : > { %195 = vst [vmem:[%s161_s29 + $0x1c] sm:$0xf] %v194_v7  ;;  %v196_v8 = vld [vmem:[%s864_s28 + $0x40] sm:$0xf]  ;;  %v198_v9 = vld [vmem:[%s864_s28 + $0x48] sm:$0xf] }
  0x19   : > { %v200_v10 = vld [vmem:[%s864_s28 + $0x50] sm:$0xf]  ;;  %197 = vst [vmem:[%s161_s29 + $0x20] sm:$0xf] %v196_v8  ;;  %199 = vst [vmem:[%s161_s29 + $0x24] sm:$0xf] %v198_v9 }
  0x1a   : > { %201 = vst [vmem:[%s161_s29 + $0x28] sm:$0xf] %v200_v10  ;;  %v202_v11 = vld [vmem:[%s864_s28 + $0x58] sm:$0xf]  ;;  %v204_v12 = vld [vmem:[%s864_s28 + $0x60] sm:$0xf] }
  0x1b   : > { %v206_v13 = vld [vmem:[%s864_s28 + $0x68] sm:$0xf]  ;;  %203 = vst [vmem:[%s161_s29 + $0x2c] sm:$0xf] %v202_v11  ;;  %205 = vst [vmem:[%s161_s29 + $0x30] sm:$0xf] %v204_v12 }
  0x1c   : > { %207 = vst [vmem:[%s161_s29 + $0x34] sm:$0xf] %v206_v13  ;;  %v208_v14 = vld [vmem:[%s864_s28 + $0x70] sm:$0xf]  ;;  %v210_v15 = vld [vmem:[%s864_s28 + $0x78] sm:$0xf] }
  0x1d   : > { %209 = vst [vmem:[%s161_s29 + $0x38] sm:$0xf] %v208_v14  ;;  %211 = vst [vmem:[%s161_s29 + $0x3c] sm:$0xf] %v210_v15 }
  0x1e PF: > { %p639_p8 = scmp.ge.s32.totalorder %s794_s16, 1  ;;  %p272_p9 = scmp.lt.s32.totalorder %s794_s16, 3 }
  0x20   : > { %p273_p10 = pnand %p639_p8, %p272_p9 }
  0x21   : > { %s279_s30 = sand.u32 (!%p273_p10), 1, %s778_s12   ;;  %p315_p11 = scmp.lt.s32.totalorder (!%p273_p10), %s786_s14, 1 }
  0x22   : > { %276 = sbr.rel (%p273_p10) target bundleno = 284 (0x11c), region = 69  ;;  %s640_s6 = sshll.u32 (!%p273_p10), %s279_s30, 6 }
  0x23   : > { %s281_s7 = scalar_lea.vmem (!%p273_p10), [#allocation2], %s640_s6  ;;  %s641_s20 = sshll.u32 (!%p273_p10), %s279_s30, 4 }
  0x24   : > { %s308_s23 = scalar_lea.vmem (!%p273_p10), [#allocation3], %s641_s20 }
  0x27   : > { %v754_v16 = vld [vmem:[%s921_s0] sm:$0xff]   ;;  %v746_v17 = vld [vmem:[%s281_s7 + $0x38] sm:$0xff]   ;;  %v747_v18 = vld [vmem:[%s281_s7 + $0x30] sm:$0xff]   ;;  %s316_s10 = scalar_select %p315_p11, %s786_s14, 1 }
  0x28   : > { %702 = vmatprep.mubr.bf16.mxu0 %v754_v16  ;;  %686 = vmatprep.subr.bf16.mxu0 %v746_v17  ;;  %v748_v19 = vld [vmem:[%s281_s7 + $0x28] sm:$0xff]   ;;  %v749_v20 = vld [vmem:[%s281_s7 + $0x20] sm:$0xff]   ;;  %v750_v21 = vld [vmem:[%s281_s7 + $0x18] sm:$0xff]   ;;  %s658_s24 = sshll.u32 (%p851_p6), %s786_s14, 2 }
  0x29   : > { %687 = vmatpush3.bf16.msra.mxu0 %v746_v17  ;;  %v751_v22 = vld [vmem:[%s281_s7 + $0x10] sm:$0xff]   ;;  %v752_v23 = vld [vmem:[%s281_s7 + $0x8] sm:$0xff]   ;;  %v753_v24 = vld [vmem:[%s281_s7] sm:$0xff]   ;;  %s317_s19 = scalar_lea.vmem %s923_s2, %s316_s10  ;;  %s487_s26 = scalar_lea.vmem (%p851_p6), %s924_s3, %s658_s24 }
  0x2a   : > { %688 = vmatprep.subr.bf16.mxu0 %v747_v18  ;;  %v755_v25 = vld [vmem:[%s921_s0 + $0x8] sm:$0xff]   ;;  %v642_v27 = vld [vmem:[%s317_s19] ss:$0 sm:$0xff] }
  0x2d   : > { %689 = vmatpush3.bf16.msra.mxu0 %v747_v18 }
  0x2e   : > { %690 = vmatprep.subr.bf16.mxu0 %v748_v19 }
  0x31   : > { %691 = vmatpush3.bf16.msra.mxu0 %v748_v19 }
  0x32   : > { %692 = vmatprep.subr.bf16.mxu0 %v749_v20 }
  0x35   : > { %693 = vmatpush3.bf16.msra.mxu0 %v749_v20 }
  0x36   : > { %694 = vmatprep.subr.bf16.mxu0 %v750_v21 }
  0x39   : > { %695 = vmatpush3.bf16.msra.mxu0 %v750_v21 }
  0x3a   : > { %696 = vmatprep.subr.bf16.mxu0 %v751_v22 }
  0x3d   : > { %697 = vmatpush3.bf16.msra.mxu0 %v751_v22 }
  0x3e   : > { %698 = vmatprep.subr.bf16.mxu0 %v752_v23 }
  0x41   : > { %699 = vmatpush3.bf16.msra.mxu0 %v752_v23 }
  0x42   : > { %700 = vmatprep.subr.bf16.mxu0 %v753_v24 }
  0x45   : > { %701 = vmatpush3.bf16.msra.mxu0 %v753_v24 }
  0x48   : > { %703 = vmatmul.mubr.bf16.vlgmr.msra.gmra.mxu0 %v755_v25 }
 0x108   : > { %v704_v26 = vpop.f32.mrf.mxu0 }
 0x109   : > { %v450_v30 = vadd.f32 %v704_v26, %v642_v27 }
 0x10a   : > { %v441_v28 = vpop.f32.mrf.mxu0 }
 0x10b   : > { %v442_v33 = vadd.f32 %v642_v27, %v441_v28 }
 0x10c   : > { %v705_v29 = vpop.f32.mrf.mxu0 }
 0x10d   : > { %v453_v31 = vadd.f32 %v705_v29, %v642_v27 }
 0x10e   : > { %v444_v32 = vpop.f32.mrf.mxu0 }
 0x10f   : > { %v673_v34 = vpack.c.bf16 %v453_v31, %v450_v30  ;;  %v445_v35 = vadd.f32 %v642_v27, %v444_v32  ;;  %482 = sbr.rel (!%p851_p6) target bundleno = 284 (0x11c), region = 77 }
 0x111   : > { %675 = vst [vmem:[%s308_s23 + $0x8] sm:$0xff] %v673_v34   ;;  %v668_v36 = vpack.c.bf16 %v445_v35, %v442_v33 }
 0x113   : > { %669 = vst [vmem:[%s308_s23] sm:$0xff] %v668_v36  }
 0x118   : > { %v508_v39 = vld [vmem:[%s308_s23 + $0x8] sm:$0xf]  ;;  %v510_v40 = vld [vmem:[%s308_s23 + $0xc] sm:$0xf] }
 0x119   : > { %509 = vst [vmem:[%s487_s26 + $0x10] sm:$0xf] %v508_v39  ;;  %511 = vst [vmem:[%s487_s26 + $0x18] sm:$0xf] %v510_v40 }
 0x11a   : > { %v504_v37 = vld [vmem:[%s308_s23] sm:$0xf]  ;;  %v506_v38 = vld [vmem:[%s308_s23 + $0x4] sm:$0xf] }
 0x11b   : > { %505 = vst [vmem:[%s487_s26] sm:$0xf] %v504_v37  ;;  %507 = vst [vmem:[%s487_s26 + $0x8] sm:$0xf] %v506_v38 }
 0x11c PF: > { %s13_s16 = sadd.s32 1, %s794_s16   ;;  %s926_s12 = smov %s782_s13 }
 0x11d   : > { %p10_p12 = scmp.ge.s32.totalorder %s13_s16, 4   ;;  %s927_s13 = smov %s856_s22 }
 0x11e   : > { %s928_s14 = smov %s790_s15  ;;  %s929_s15 = smov %s931_s17 }
 0x11f   :  { %12 = sbr.rel (!%p10_p12) target bundleno = 3 (0x3), region = 155 }

// kernel: forward.32
= control target key start
LH: loop header
LB: loop body
LE: loop exit
PB: predicated region body
PF: predicated region fallthrough
CT: control target
= control target key end

     0   :  { %s741_s12 = smov 0   ;;  %s743_s13 = smov 0   ;;  %s814_s0 = inlined_call_operand.vmem [shape: bf16[128,128], index: 0, kind: input, shape index: {}]   ;;  %s815_s1 = inlined_call_operand.vmem [shape: bf16[128,128], index: 1, kind: input, shape index: {}]   ;;  %s816_s2 = inlined_call_operand.vmem [shape: f32[1,128], index: 2, kind: input, shape index: {}]   ;;  %s817_s3 = inlined_call_operand.vmem [shape: bf16[128,128], index: 3, kind: output, shape index: {}]  }
   0x1   :  { %s745_s14 = smov 0  }
   0x2 LB: > { %s25_s15 = sadd.s32 1, %s715_s13  ;;  %p550_p0 = scmp.ge.s32.totalorder %s719_s14, 1  ;;  %s719_s14 = sphi %s745_s14, %s13_s14   ;;  %s715_s13 = sphi %s743_s13, %s819_s13   ;;  %s711_s12 = sphi %s741_s12, %s818_s12  }
   0x3   : > { %p27_p1 = scmp.ge.s32.totalorder %s25_s15, 2  ;;  %p169_p2 = scmp.lt.s32.totalorder %s719_s14, 3 }
   0x5   : > { %s821_s15 = smov (%p27_p1, %s25_s15), 0  ;;  %p170_p3 = pnand %p550_p0, %p169_p2 }
   0x6   : > { %s551_s18 = sshll.u32 (!%p170_p3), %s711_s12, 3 }
   0x7   : > { %173 = sbr.rel (%p170_p3) target bundleno = 251 (0xfb), region = 32  ;;  %p204_p4 = scmp.lt.s32.totalorder (!%p170_p3), %s551_s18, 15 }
   0xc   : > { %v685_v0 = vld [vmem:[%s815_s1 + $0x38] sm:$0xff]   ;;  %v686_v1 = vld [vmem:[%s815_s1 + $0x30] sm:$0xff]   ;;  %s823_s18 = smov (!%p204_p4, %s551_s18), 15  ;;  %v687_v2 = vld [vmem:[%s815_s1 + $0x28] sm:$0xff]  }
   0xd   : > { %621 = vmatprep.subr.bf16.mxu0 %v685_v0  ;;  %645 = vmatprep.subr.bf16.mxu1 %v685_v0  ;;  %s552_s23 = sshll.u32 %s823_s18, 2  ;;  %v688_v3 = vld [vmem:[%s815_s1 + $0x20] sm:$0xff]   ;;  %v689_v6 = vld [vmem:[%s815_s1 + $0x18] sm:$0xff]   ;;  %v690_v7 = vld [vmem:[%s815_s1 + $0x10] sm:$0xff]  }
   0xe   : > { %622 = vmatpush3.bf16.msra.mxu0 %v685_v0  ;;  %653 = vmatpush3.bf16.msra.mxu1 %v685_v0  ;;  %s776_s26 = scalar_lea.vmem %s814_s0, %s552_s23  ;;  %v691_v8 = vld [vmem:[%s815_s1 + $0x8] sm:$0xff]   ;;  %v692_v9 = vld [vmem:[%s815_s1] sm:$0xff]   ;;  %s223_s17 = scalar_lea.vmem %s817_s3, %s552_s23 }
   0xf   : > { %623 = vmatprep.subr.bf16.mxu0 %v686_v1  ;;  %646 = vmatprep.subr.bf16.mxu1 %v686_v1  ;;  %v693_v4 = vld [vmem:[%s776_s26] sm:$0xff]   ;;  %v694_v5 = vld [vmem:[%s776_s26 + $0x10] sm:$0xff]   ;;  %v695_v10 = vld [vmem:[%s776_s26 + $0x8] sm:$0xff]  }
  0x10   : > { %637 = vmatprep.mubr.bf16.mxu0 %v693_v4  ;;  %641 = vmatprep.mubr.bf16.mxu1 %v694_v5  ;;  %v696_v11 = vld [vmem:[%s776_s26 + $0x18] sm:$0xff]   ;;  %v555_v12 = vld [vmem:[%s816_s2] ss:$0 sm:$0xff] }
  0x12   : > { %624 = vmatpush3.bf16.msra.mxu0 %v686_v1  ;;  %654 = vmatpush3.bf16.msra.mxu1 %v686_v1 }
  0x13   : > { %625 = vmatprep.subr.bf16.mxu0 %v687_v2  ;;  %647 = vmatprep.subr.bf16.mxu1 %v687_v2 }
  0x16   : > { %626 = vmatpush3.bf16.msra.mxu0 %v687_v2  ;;  %655 = vmatpush3.bf16.msra.mxu1 %v687_v2 }
  0x17   : > { %627 = vmatprep.subr.bf16.mxu0 %v688_v3  ;;  %648 = vmatprep.subr.bf16.mxu1 %v688_v3 }
  0x1a   : > { %628 = vmatpush3.bf16.msra.mxu0 %v688_v3  ;;  %656 = vmatpush3.bf16.msra.mxu1 %v688_v3 }
  0x1b   : > { %629 = vmatprep.subr.bf16.mxu0 %v689_v6  ;;  %649 = vmatprep.subr.bf16.mxu1 %v689_v6 }
  0x1e   : > { %630 = vmatpush3.bf16.msra.mxu0 %v689_v6  ;;  %657 = vmatpush3.bf16.msra.mxu1 %v689_v6 }
  0x1f   : > { %631 = vmatprep.subr.bf16.mxu0 %v690_v7  ;;  %650 = vmatprep.subr.bf16.mxu1 %v690_v7 }
  0x22   : > { %632 = vmatpush3.bf16.msra.mxu0 %v690_v7  ;;  %658 = vmatpush3.bf16.msra.mxu1 %v690_v7 }
  0x23   : > { %633 = vmatprep.subr.bf16.mxu0 %v691_v8  ;;  %651 = vmatprep.subr.bf16.mxu1 %v691_v8 }
  0x26   : > { %634 = vmatpush3.bf16.msra.mxu0 %v691_v8  ;;  %659 = vmatpush3.bf16.msra.mxu1 %v691_v8 }
  0x27   : > { %635 = vmatprep.subr.bf16.mxu0 %v692_v9  ;;  %652 = vmatprep.subr.bf16.mxu1 %v692_v9 }
  0x2a   : > { %636 = vmatpush3.bf16.msra.mxu0 %v692_v9  ;;  %660 = vmatpush3.bf16.msra.mxu1 %v692_v9 }
  0x2d   : > { %638 = vmatmul.mubr.bf16.vlgmr.msra.gmra.mxu0 %v695_v10  ;;  %642 = vmatmul.mubr.bf16.vlgmr.msra.gmra.mxu1 %v696_v11 }
  0xed   : > { %v639_v13 = vpop.f32.mrf.mxu0  ;;  %v643_v14 = vpop.f32.mrf.mxu1 }
  0xee   : > { %v372_v15 = vadd.f32 %v639_v13, %v555_v12  ;;  %v388_v16 = vadd.f32 %v643_v14, %v555_v12 }
  0xef   : > { %v363_v17 = vpop.f32.mrf.mxu0  ;;  %v379_v18 = vpop.f32.mrf.mxu1 }
  0xf0   : > { %v364_v19 = vadd.f32 %v555_v12, %v363_v17  ;;  %v380_v20 = vadd.f32 %v555_v12, %v379_v18  ;;  %v396_v25 = vmax.f32 %v372_v15, 0.0  ;;  %v400_v26 = vmax.f32 %v388_v16, 0.0 }
  0xf1   : > { %v640_v21 = vpop.f32.mrf.mxu0  ;;  %v644_v22 = vpop.f32.mrf.mxu1 }
  0xf2   : > { %v375_v23 = vadd.f32 %v640_v21, %v555_v12  ;;  %v391_v24 = vadd.f32 %v644_v22, %v555_v12  ;;  %v394_v33 = vmax.f32 %v364_v19, 0.0  ;;  %v398_v34 = vmax.f32 %v380_v20, 0.0 }
  0xf3   : > { %v366_v27 = vpop.f32.mrf.mxu0  ;;  %v382_v28 = vpop.f32.mrf.mxu1 }
  0xf4   : > { %v397_v29 = vmax.f32 %v375_v23, 0.0  ;;  %v401_v30 = vmax.f32 %v391_v24, 0.0  ;;  %v367_v31 = vadd.f32 %v555_v12, %v366_v27  ;;  %v383_v32 = vadd.f32 %v555_v12, %v382_v28 }
  0xf6   : > { %v594_v35 = vpack.c.bf16 %v397_v29, %v396_v25  ;;  %v604_v36 = vpack.c.bf16 %v401_v30, %v400_v26  ;;  %v395_v37 = vmax.f32 %v367_v31, 0.0  ;;  %v399_v38 = vmax.f32 %v383_v32, 0.0 }
  0xf8   : > { %606 = vst [vmem:[%s223_s17 + $0x8] sm:$0xff] %v594_v35   ;;  %608 = vst [vmem:[%s223_s17 + $0x18] sm:$0xff] %v604_v36   ;;  %v589_v39 = vpack.c.bf16 %v395_v37, %v394_v33  ;;  %v599_v40 = vpack.c.bf16 %v399_v38, %v398_v34 }
  0xfa   : > { %590 = vst [vmem:[%s223_s17] sm:$0xff] %v589_v39   ;;  %607 = vst [vmem:[%s223_s17 + $0x10] sm:$0xff] %v599_v40  }
  0xfb PF: > { %s13_s14 = sadd.s32 1, %s719_s14   ;;  %s818_s12 = smov %s715_s13 }
  0xfc   : > { %p10_p5 = scmp.ge.s32.totalorder %s13_s14, 4   ;;  %s819_s13 = smov %s821_s15 }
  0xfe   :  { %12 = sbr.rel (!%p10_p5) target bundleno = 2 (0x2), region = 68 }

// kernel: forward.36
= control target key start
LH: loop header
LB: loop body
LE: loop exit
PB: predicated region body
PF: predicated region fallthrough
CT: control target
= control target key end

     0   :  { %s683_s12 = smov 0   ;;  %s685_s13 = smov 0   ;;  %s771_s0 = inlined_call_operand.vmem [shape: bf16[32,256], index: 0, kind: input, shape index: {}]   ;;  %s772_s1 = inlined_call_operand.vmem [shape: bf16[256,128], index: 1, kind: input, shape index: {}]   ;;  %s773_s2 = inlined_call_operand.vmem [shape: f32[1,128], index: 2, kind: input, shape index: {}]   ;;  %s774_s3 = inlined_call_operand.vmem [shape: bf16[32,128], index: 3, kind: output, shape index: {}]  }
   0x1   :  { %s687_s14 = smov 0  }
   0x2 LB: > { %s25_s15 = sadd.s32 1, %s657_s13  ;;  %p537_p0 = scmp.ge.s32.totalorder %s661_s14, 1  ;;  %s661_s14 = sphi %s687_s14, %s13_s14   ;;  %s657_s13 = sphi %s685_s13, %s776_s13   ;;  %s653_s12 = sphi %s683_s12, %s775_s12  }
   0x3   : > { %p27_p1 = scmp.ge.s32.totalorder %s25_s15, 2  ;;  %p170_p2 = scmp.lt.s32.totalorder %s661_s14, 3 }
   0x5   : > { %s778_s15 = smov (%p27_p1, %s25_s15), 0  ;;  %p171_p3 = pnand %p537_p0, %p170_p2 }
   0x6   : > { %s538_s18 = sshll.u32 (!%p171_p3), %s653_s12, 1 }
   0x7   : > { %174 = sbr.rel (%p171_p3) target bundleno = 253 (0xfd), region = 32  ;;  %p206_p4 = scmp.lt.s32.totalorder (!%p171_p3), %s538_s18, 3 }
   0xc   : > { %v620_v0 = vld [vmem:[%s772_s1 + $0x78] sm:$0xff]   ;;  %v622_v2 = vld [vmem:[%s772_s1 + $0x70] sm:$0xff]   ;;  %v624_v4 = vld [vmem:[%s772_s1 + $0x68] sm:$0xff]   ;;  %s780_s18 = smov (!%p206_p4, %s538_s18), 3 }
   0xd   : > { %v621_v1 = vld [vmem:[%s772_s1 + $0x38] sm:$0xff]   ;;  %574 = vmatprep.subr.bf16.mxu0 %v620_v0  ;;  %v623_v3 = vld [vmem:[%s772_s1 + $0x30] sm:$0xff]   ;;  %v625_v5 = vld [vmem:[%s772_s1 + $0x28] sm:$0xff]   ;;  %s566_s6 = sshll.u32 %s780_s18, 3  ;;  %s542_s5 = sshll.u32 %s780_s18, 2 }
   0xe   : > { %575 = vmatpush3.bf16.msra.mxu0 %v621_v1  ;;  %v626_v6 = vld [vmem:[%s772_s1 + $0x60] sm:$0xff]   ;;  %v628_v8 = vld [vmem:[%s772_s1 + $0x58] sm:$0xff]   ;;  %s210_s11 = scalar_lea.vmem %s771_s0, %s566_s6  ;;  %v630_v10 = vld [vmem:[%s772_s1 + $0x50] sm:$0xff]   ;;  %s226_s8 = scalar_lea.vmem %s774_s3, %s542_s5 }
   0xf   : > { %576 = vmatprep.subr.bf16.mxu0 %v622_v2  ;;  %v627_v7 = vld [vmem:[%s772_s1 + $0x20] sm:$0xff]   ;;  %v629_v9 = vld [vmem:[%s772_s1 + $0x18] sm:$0xff]   ;;  %v631_v12 = vld [vmem:[%s772_s1 + $0x10] sm:$0xff]  }
  0x10   : > { %v638_v11 = vld [vmem:[%s210_s11 + $0x4] ss:$8 sps:$4 sm:$0xff]   ;;  %v636_v17 = vld [vmem:[%s210_s11] ss:$8 sps:$4 sm:$0xff]  }
  0x11   : > { %408 = vmatprep.mubr.bf16.mxu0 %v638_v11  ;;  %v632_v13 = vld [vmem:[%s772_s1 + $0x48] sm:$0xff]   ;;  %v634_v15 = vld [vmem:[%s772_s1 + $0x40] sm:$0xff]  }
  0x12   : > { %577 = vmatpush3.bf16.msra.mxu0 %v623_v3  ;;  %v633_v14 = vld [vmem:[%s772_s1 + $0x8] sm:$0xff]   ;;  %v635_v16 = vld [vmem:[%s772_s1] sm:$0xff]  }
  0x13   : > { %578 = vmatprep.subr.bf16.mxu0 %v624_v4  ;;  %v543_v21 = vld [vmem:[%s773_s2] ss:$0 sm:$0xff] }
  0x16   : > { %579 = vmatpush3.bf16.msra.mxu0 %v625_v5 }
  0x17   : > { %580 = vmatprep.subr.bf16.mxu0 %v626_v6 }
  0x1a   : > { %581 = vmatpush3.bf16.msra.mxu0 %v627_v7 }
  0x1b   : > { %582 = vmatprep.subr.bf16.mxu0 %v628_v8 }
  0x1e   : > { %583 = vmatpush3.bf16.msra.mxu0 %v629_v9 }
  0x1f   : > { %584 = vmatprep.subr.bf16.mxu0 %v630_v10 }
  0x22   : > { %585 = vmatpush3.bf16.msra.mxu0 %v631_v12 }
  0x23   : > { %586 = vmatprep.subr.bf16.mxu0 %v632_v13 }
  0x26   : > { %587 = vmatpush3.bf16.msra.mxu0 %v633_v14 }
  0x27   : > { %588 = vmatprep.subr.bf16.mxu0 %v634_v15 }
  0x2a   : > { %589 = vmatpush3.bf16.msra.mxu0 %v635_v16 }
  0x2d   : > { %409 = vmatmul.mubr.bf16.vlgmr.msra.gmra.mxu0 %v636_v17 }
  0xed   : > { %v590_v18 = vpop.f32.mrf.mxu0 }
  0xef   : > { %v591_v19 = vpop.f32.mrf.mxu0 }
  0xf0   : > { %v592_v20 = vadd.f32 %v591_v19, %v590_v18 }
  0xf1   : > { %v593_v22 = vpop.f32.mrf.mxu0 }
  0xf2   : > { %v411_v24 = vadd.f32 %v592_v20, %v543_v21 }
  0xf3   : > { %v594_v23 = vpop.f32.mrf.mxu0 }
  0xf4   : > { %v595_v25 = vadd.f32 %v594_v23, %v593_v22  ;;  %v417_v27 = vmax.f32 %v411_v24, 0.0 }
  0xf6   : > { %v414_v26 = vadd.f32 %v595_v25, %v543_v21 }
  0xf8   : > { %v418_v28 = vmax.f32 %v414_v26, 0.0 }
  0xfa   : > { %v572_v29 = vpack.c.bf16 %v418_v28, %v417_v27 }
  0xfc   : > { %573 = vst [vmem:[%s226_s8] sm:$0xff] %v572_v29  }
  0xfd PF: > { %s13_s14 = sadd.s32 1, %s661_s14   ;;  %s775_s12 = smov %s657_s13 }
  0xfe   : > { %p10_p5 = scmp.ge.s32.totalorder %s13_s14, 4   ;;  %s776_s13 = smov %s778_s15 }
 0x100   :  { %12 = sbr.rel (!%p10_p5) target bundleno = 2 (0x2), region = 68 }

// kernel: forward.35
= control target key start
LH: loop header
LB: loop body
LE: loop exit
PB: predicated region body
PF: predicated region fallthrough
CT: control target
= control target key end

     0   :  { %s977_s15 = smov 0   ;;  %s979_s16 = smov 0   ;;  %s1095_s0 = inlined_call_operand.vmem [shape: bf16[32,128], index: 0, kind: input, shape index: {}]   ;;  %s1096_s1 = inlined_call_operand.vmem [shape: bf16[128,256], index: 1, kind: input, shape index: {}]   ;;  %s1097_s2 = inlined_call_operand.vmem [shape: f32[1,256], index: 2, kind: input, shape index: {}]   ;;  %s1098_s3 = inlined_call_operand.vmem [shape: bf16[32,256], index: 3, kind: input, shape index: {}]   ;;  %s1099_s4 = inlined_call_operand.vmem [shape: bf16[32,256], index: 4, kind: output, shape index: {}]  }
   0x1   :  { %s981_s17 = smov 0   ;;  %s983_s18 = smov 0  }
   0x2   :  { %s985_s19 = smov 0  }
   0x3 LB: > { %s23_s20 = sadd.s32 1, %s946_s18  ;;  %s776_s21 = sadd.s32 4294967295, %s950_s19   ;;  %s950_s19 = sphi %s985_s19, %s14_s19   ;;  %s946_s18 = sphi %s983_s18, %s1105_s18   ;;  %s942_s17 = sphi %s981_s17, %s1104_s17   ;;  %s938_s16 = sphi %s979_s16, %s1103_s16   ;;  %s934_s15 = sphi %s977_s15, %s1102_s15  }
   0x4   : > { %p24_p0 = scmp.ge.s32.totalorder %s23_s20, 2  ;;  %p66_p1 = scmp.ne.s32.totalorder %s938_s16, %s934_s15 }
   0x5   : > { %p67_p2 = scmp.eq.s32.totalorder %s950_s19, 0  ;;  %p152_p4 = scmp.eq.s32.totalorder %s776_s21, 1 }
   0x6   : > { %s1107_s20 = smov (%p24_p0, %s23_s20), 0  ;;  %s59_s24 = sadd.s32 1, %s938_s16 }
   0x7   : > { %p1009_p3 = por %p67_p2, %p66_p1  ;;  %s56_s23 = ssub.s32 %s946_s18, %s1107_s20 }
   0x8   : > { %p57_p5 = scmp.eq.s32.totalorder %s56_s23, 0  ;;  %p1016_p6 = por %p152_p4, %p66_p1 }
   0x9   : > { %p780_p7 = scmp.ge.s32.totalorder %s950_s19, 2 }
   0xa   : > { %s1021_s26 = scalar_select %p57_p5, %s938_s16, %s59_s24  }
   0xb   : > { %183 = sbr.rel (%p780_p7) target bundleno = 36 (0x24), region = 20 }
  0x10   : > { %186 = sbr.rel (!%p1009_p3) target bundleno = 30 (0x1e), region = 24  ;;  %s188_s27 = sand.u32 (%p1009_p3), 1, %s938_s16  }
  0x11   : > { %s782_s28 = sshll.u32 (%p1009_p3), %s946_s18, 2  ;;  %s781_s29 = sshll.u32 (%p1009_p3), %s188_s27, 6 }
  0x12   : > { %s1031_s6 = scalar_lea.vmem (%p1009_p3), %s1096_s1, %s782_s28  ;;  %s190_s7 = scalar_lea.vmem (%p1009_p3), [#allocation2], %s781_s29 }
  0x13   : > { %v209_v0 = vld [vmem:[%s1031_s6] sm:$0xf] (%p1009_p3)  ;;  %v211_v1 = vld [vmem:[%s1031_s6 + $0x8] sm:$0xf] (%p1009_p3)  ;;  %v213_v2 = vld [vmem:[%s1031_s6 + $0x10] sm:$0xf] (%p1009_p3) }
  0x14   : > { %210 = vst [vmem:[%s190_s7] sm:$0xf] (%p1009_p3), %v209_v0  ;;  %212 = vst [vmem:[%s190_s7 + $0x4] sm:$0xf] (%p1009_p3), %v211_v1  ;;  %v215_v3 = vld [vmem:[%s1031_s6 + $0x18] sm:$0xf] (%p1009_p3) }
  0x15   : > { %v217_v4 = vld [vmem:[%s1031_s6 + $0x20] sm:$0xf]  ;;  %214 = vst [vmem:[%s190_s7 + $0x8] sm:$0xf] %v213_v2  ;;  %216 = vst [vmem:[%s190_s7 + $0xc] sm:$0xf] %v215_v3 }
  0x16   : > { %218 = vst [vmem:[%s190_s7 + $0x10] sm:$0xf] %v217_v4  ;;  %v219_v5 = vld [vmem:[%s1031_s6 + $0x28] sm:$0xf]  ;;  %v221_v6 = vld [vmem:[%s1031_s6 + $0x30] sm:$0xf] }
  0x17   : > { %v223_v7 = vld [vmem:[%s1031_s6 + $0x38] sm:$0xf]  ;;  %220 = vst [vmem:[%s190_s7 + $0x14] sm:$0xf] %v219_v5  ;;  %222 = vst [vmem:[%s190_s7 + $0x18] sm:$0xf] %v221_v6 }
  0x18   : > { %224 = vst [vmem:[%s190_s7 + $0x1c] sm:$0xf] %v223_v7  ;;  %v225_v8 = vld [vmem:[%s1031_s6 + $0x40] sm:$0xf]  ;;  %v227_v9 = vld [vmem:[%s1031_s6 + $0x48] sm:$0xf] }
  0x19   : > { %v229_v10 = vld [vmem:[%s1031_s6 + $0x50] sm:$0xf]  ;;  %226 = vst [vmem:[%s190_s7 + $0x20] sm:$0xf] %v225_v8  ;;  %228 = vst [vmem:[%s190_s7 + $0x24] sm:$0xf] %v227_v9 }
  0x1a   : > { %230 = vst [vmem:[%s190_s7 + $0x28] sm:$0xf] %v229_v10  ;;  %v231_v11 = vld [vmem:[%s1031_s6 + $0x58] sm:$0xf]  ;;  %v233_v12 = vld [vmem:[%s1031_s6 + $0x60] sm:$0xf] }
  0x1b   : > { %v235_v13 = vld [vmem:[%s1031_s6 + $0x68] sm:$0xf]  ;;  %232 = vst [vmem:[%s190_s7 + $0x2c] sm:$0xf] %v231_v11  ;;  %234 = vst [vmem:[%s190_s7 + $0x30] sm:$0xf] %v233_v12 }
  0x1c   : > { %236 = vst [vmem:[%s190_s7 + $0x34] sm:$0xf] %v235_v13  ;;  %v237_v14 = vld [vmem:[%s1031_s6 + $0x70] sm:$0xf]  ;;  %v239_v15 = vld [vmem:[%s1031_s6 + $0x78] sm:$0xf] }
  0x1d   : > { %238 = vst [vmem:[%s190_s7 + $0x38] sm:$0xf] %v237_v14  ;;  %240 = vst [vmem:[%s190_s7 + $0x3c] sm:$0xf] %v239_v15 }
  0x1e PF: > { %302 = sbr.rel (!%p1009_p3) target bundleno = 36 (0x24), region = 69  ;;  %s304_s8 = sand.u32 (%p1009_p3), 1, %s938_s16  }
  0x1f   : > { %s784_s9 = sshll.u32 (%p1009_p3), %s946_s18, 2  ;;  %s783_s10 = sshll.u32 (%p1009_p3), %s304_s8, 4 }
  0x20   : > { %s311_s13 = scalar_lea.vmem (%p1009_p3), %s1098_s3, %s784_s9  ;;  %s306_s14 = scalar_lea.vmem (%p1009_p3), [#allocation3], %s783_s10 }
  0x21   : > { %v328_v16 = vld [vmem:[%s311_s13] sm:$0xf] (%p1009_p3)  ;;  %v330_v17 = vld [vmem:[%s311_s13 + $0x8] sm:$0xf] (%p1009_p3)  ;;  %v332_v18 = vld [vmem:[%s311_s13 + $0x10] sm:$0xf] (%p1009_p3) }
  0x22   : > { %329 = vst [vmem:[%s306_s14] sm:$0xf] (%p1009_p3), %v328_v16  ;;  %331 = vst [vmem:[%s306_s14 + $0x4] sm:$0xf] (%p1009_p3), %v330_v17  ;;  %v334_v19 = vld [vmem:[%s311_s13 + $0x18] sm:$0xf] (%p1009_p3) }
  0x23   : > { %333 = vst [vmem:[%s306_s14 + $0x8] sm:$0xf] %v332_v18  ;;  %335 = vst [vmem:[%s306_s14 + $0xc] sm:$0xf] %v334_v19 }
  0x24 PF: > { %p785_p8 = scmp.ge.s32.totalorder %s950_s19, 1  ;;  %p366_p9 = scmp.lt.s32.totalorder %s950_s19, 3 }
  0x26   : > { %p367_p10 = pnand %p785_p8, %p366_p9 }
  0x27   : > { %s373_s21 = sand.u32 (!%p367_p10), 1, %s934_s15   ;;  %p422_p11 = scmp.lt.s32.totalorder (!%p367_p10), %s942_s17, 1 }
  0x28   : > { %370 = sbr.rel (%p367_p10) target bundleno = 294 (0x126), region = 110  ;;  %s786_s24 = sshll.u32 (!%p367_p10), %s373_s21, 6 }
  0x29   : > { %s375_s27 = scalar_lea.vmem (!%p367_p10), [#allocation2], %s786_s24  ;;  %s787_s5 = sshll.u32 (!%p367_p10), %s373_s21, 4 }
  0x2a   : > { %s382_s9 = scalar_lea.vmem (!%p367_p10), [#allocation3], %s787_s5  ;;  %s415_s15 = scalar_lea.vmem (!%p367_p10), [#allocation4], %s787_s5 }
  0x2d   : > { %v910_v20 = vld [vmem:[%s1095_s0] sm:$0xff]   ;;  %v902_v21 = vld [vmem:[%s375_s27 + $0x38] sm:$0xff]   ;;  %v903_v22 = vld [vmem:[%s375_s27 + $0x30] sm:$0xff]   ;;  %s423_s30 = scalar_select %p422_p11, %s942_s17, 1 }
  0x2e   : > { %858 = vmatprep.mubr.bf16.mxu0 %v910_v20  ;;  %842 = vmatprep.subr.bf16.mxu0 %v902_v21  ;;  %v904_v23 = vld [vmem:[%s375_s27 + $0x28] sm:$0xff]   ;;  %v905_v24 = vld [vmem:[%s375_s27 + $0x20] sm:$0xff]   ;;  %v906_v25 = vld [vmem:[%s375_s27 + $0x18] sm:$0xff]   ;;  %s805_s10 = sshll.u32 (%p1016_p6), %s942_s17, 2 }
  0x2f   : > { %843 = vmatpush3.bf16.msra.mxu0 %v902_v21  ;;  %v907_v26 = vld [vmem:[%s375_s27 + $0x10] sm:$0xff]   ;;  %v908_v27 = vld [vmem:[%s375_s27 + $0x8] sm:$0xff]   ;;  %v909_v28 = vld [vmem:[%s375_s27] sm:$0xff]   ;;  %s424_s8 = scalar_lea.vmem %s1097_s2, %s423_s30  ;;  %s611_s13 = scalar_lea.vmem (%p1016_p6), %s1099_s4, %s805_s10 }
  0x30   : > { %844 = vmatprep.subr.bf16.mxu0 %v903_v22  ;;  %v911_v29 = vld [vmem:[%s1095_s0 + $0x8] sm:$0xff]   ;;  %v789_v30 = vld [vmem:[%s424_s8] ss:$0 sm:$0xff] }
  0x31   : > { %v830_v31 = vld [vmem:[%s382_s9 + $0x8] sm:$0xff]   ;;  %v813_v33 = vld [vmem:[%s382_s9] sm:$0xff]  }
  0x32   : > { %v818_v35 = vunpack.c.l.bf16 %v830_v31  ;;  %v814_v38 = vunpack.c.l.bf16 %v813_v33  ;;  %v819_v39 = vunpack.c.h.bf16 %v830_v31  ;;  %v815_v43 = vunpack.c.h.bf16 %v813_v33 }
  0x33   : > { %845 = vmatpush3.bf16.msra.mxu0 %v903_v22 }
  0x34   : > { %846 = vmatprep.subr.bf16.mxu0 %v904_v23 }
  0x37   : > { %847 = vmatpush3.bf16.msra.mxu0 %v904_v23 }
  0x38   : > { %848 = vmatprep.subr.bf16.mxu0 %v905_v24 }
  0x3b   : > { %849 = vmatpush3.bf16.msra.mxu0 %v905_v24 }
  0x3c   : > { %850 = vmatprep.subr.bf16.mxu0 %v906_v25 }
  0x3f   : > { %851 = vmatpush3.bf16.msra.mxu0 %v906_v25 }
  0x40   : > { %852 = vmatprep.subr.bf16.mxu0 %v907_v26 }
  0x43   : > { %853 = vmatpush3.bf16.msra.mxu0 %v907_v26 }
  0x44   : > { %854 = vmatprep.subr.bf16.mxu0 %v908_v27 }
  0x47   : > { %855 = vmatpush3.bf16.msra.mxu0 %v908_v27 }
  0x48   : > { %856 = vmatprep.subr.bf16.mxu0 %v909_v28 }
  0x4b   : > { %857 = vmatpush3.bf16.msra.mxu0 %v909_v28 }
  0x4e   : > { %859 = vmatmul.mubr.bf16.vlgmr.msra.gmra.mxu0 %v911_v29 }
 0x10e   : > { %v860_v32 = vpop.f32.mrf.mxu0 }
 0x10f   : > { %v558_v34 = vadd.f32 %v860_v32, %v789_v30 }
 0x110   : > { %v549_v36 = vpop.f32.mrf.mxu0 }
 0x111   : > { %v550_v37 = vadd.f32 %v789_v30, %v549_v36  ;;  %v574_v41 = vadd.f32 %v818_v35, %v558_v34 }
 0x112   : > { %v861_v40 = vpop.f32.mrf.mxu0 }
 0x113   : > { %v561_v42 = vadd.f32 %v861_v40, %v789_v30  ;;  %v572_v45 = vadd.f32 %v814_v38, %v550_v37  ;;  %v578_v48 = vmax.f32 %v574_v41, 0.0 }
 0x114   : > { %v552_v44 = vpop.f32.mrf.mxu0 }
 0x115   : > { %v575_v46 = vadd.f32 %v819_v39, %v561_v42  ;;  %v553_v47 = vadd.f32 %v789_v30, %v552_v44  ;;  %v576_v51 = vmax.f32 %v572_v45, 0.0 }
 0x117   : > { %v579_v49 = vmax.f32 %v575_v46, 0.0  ;;  %v573_v50 = vadd.f32 %v815_v43, %v553_v47 }
 0x119   : > { %v828_v52 = vpack.c.bf16 %v579_v49, %v578_v48  ;;  %v577_v53 = vmax.f32 %v573_v50, 0.0  ;;  %606 = sbr.rel (!%p1016_p6) target bundleno = 294 (0x126), region = 122 }
 0x11b   : > { %831 = vst [vmem:[%s415_s15 + $0x8] sm:$0xff] %v828_v52   ;;  %v823_v54 = vpack.c.bf16 %v577_v53, %v576_v51 }
 0x11d   : > { %824 = vst [vmem:[%s415_s15] sm:$0xff] %v823_v54  }
 0x122   : > { %v632_v57 = vld [vmem:[%s415_s15 + $0x8] sm:$0xf]  ;;  %v634_v58 = vld [vmem:[%s415_s15 + $0xc] sm:$0xf] }
 0x123   : > { %633 = vst [vmem:[%s611_s13 + $0x10] sm:$0xf] %v632_v57  ;;  %635 = vst [vmem:[%s611_s13 + $0x18] sm:$0xf] %v634_v58 }
 0x124   : > { %v628_v55 = vld [vmem:[%s415_s15] sm:$0xf]  ;;  %v630_v56 = vld [vmem:[%s415_s15 + $0x4] sm:$0xf] }
 0x125   : > { %629 = vst [vmem:[%s611_s13] sm:$0xf] %v628_v55  ;;  %631 = vst [vmem:[%s611_s13 + $0x8] sm:$0xf] %v630_v56 }
 0x126 PF: > { %s14_s19 = sadd.s32 1, %s950_s19   ;;  %s1102_s15 = smov %s938_s16 }
 0x127   : > { %p11_p12 = scmp.ge.s32.totalorder %s14_s19, 4   ;;  %s1103_s16 = smov %s1021_s26 }
 0x128   : > { %s1104_s17 = smov %s946_s18  ;;  %s1105_s18 = smov %s1107_s20 }
 0x129   :  { %13 = sbr.rel (!%p11_p12) target bundleno = 3 (0x3), region = 208 }

// kernel: forward.38
= control target key start
LH: loop header
LB: loop body
LE: loop exit
PB: predicated region body
PF: predicated region fallthrough
CT: control target
= control target key end

     0   :  { %s969_s12 = smov 0   ;;  %s971_s13 = smov 0   ;;  %s1148_s0 = inlined_call_operand.vmem [shape: bf16[8,256], index: 0, kind: input, shape index: {}]   ;;  %s1149_s1 = inlined_call_operand.vmem [shape: bf16[256,512], index: 1, kind: input, shape index: {}]   ;;  %s1150_s2 = inlined_call_operand.vmem [shape: f32[1,512], index: 2, kind: input, shape index: {}]   ;;  %s1151_s3 = inlined_call_operand.vmem [shape: bf16[8,512], index: 3, kind: output, shape index: {}]  }
   0x1   :  { %s973_s14 = smov 0   ;;  %s975_s15 = smov 0  }
   0x2   :  { %s977_s16 = smov 0  }
   0x3 LB: > { %s22_s17 = sadd.s32 1, %s943_s15  ;;  %p65_p1 = scmp.ne.s32.totalorder %s935_s13, %s931_s12  ;;  %s947_s16 = sphi %s977_s16, %s13_s16   ;;  %s943_s15 = sphi %s975_s15, %s1155_s15   ;;  %s939_s14 = sphi %s973_s14, %s1154_s14   ;;  %s935_s13 = sphi %s971_s13, %s1153_s13   ;;  %s931_s12 = sphi %s969_s12, %s1152_s12  }
   0x4   : > { %p23_p0 = scmp.ge.s32.totalorder %s22_s17, 2  ;;  %p66_p2 = scmp.eq.s32.totalorder %s947_s16, 0 }
   0x5   : > { %s58_s19 = sadd.s32 1, %s935_s13  ;;  %p771_p5 = scmp.ge.s32.totalorder %s947_s16, 2 }
   0x6   : > { %s1157_s17 = smov (%p23_p0, %s22_s17), 0  ;;  %p67_p3 = por %p66_p2, %p65_p1 }
   0x7   : > { %s55_s18 = ssub.s32 %s943_s15, %s1157_s17  ;;  %153 = sbr.rel (%p771_p5) target bundleno = 32 (0x20), region = 20 }
   0x8   : > { %p56_p4 = scmp.eq.s32.totalorder %s55_s18, 0 }
   0xa   : > { %s1004_s20 = scalar_select %p56_p4, %s935_s13, %s58_s19  }
   0xc   : > { %156 = sbr.rel (!%p67_p3) target bundleno = 32 (0x20), region = 24  ;;  %s158_s21 = sand.u32 (%p67_p3), 1, %s935_s13  }
   0xd   : > { %s817_s22 = sshll.u32 (%p67_p3), %s943_s15, 3  ;;  %s772_s23 = sshll.u32 (%p67_p3), %s158_s21, 8 }
   0xe   : > { %s1012_s26 = scalar_lea.vmem (%p67_p3), %s1149_s1, %s817_s22  ;;  %s1017_s27 = scalar_lea.vmem (%p67_p3), [#allocation2], %s772_s23 }
   0xf   : > { %v254_v0 = vld [vmem:[%s1012_s26] sm:$0xff] (%p67_p3)  ;;  %v256_v1 = vld [vmem:[%s1012_s26 + $0x10] sm:$0xff] (%p67_p3) }
  0x10   : > { %v258_v2 = vld [vmem:[%s1012_s26 + $0x20] sm:$0xff] (%p67_p3)  ;;  %255 = vst [vmem:[%s1017_s27] sm:$0xff] (%p67_p3), %v254_v0  ;;  %257 = vst [vmem:[%s1017_s27 + $0x8] sm:$0xff] (%p67_p3), %v256_v1  ;;  %v260_v3 = vld [vmem:[%s1012_s26 + $0x30] sm:$0xff] (%p67_p3) }
  0x11   : > { %259 = vst [vmem:[%s1017_s27 + $0x10] sm:$0xff] %v258_v2  ;;  %v262_v4 = vld [vmem:[%s1012_s26 + $0x40] sm:$0xff]  ;;  %v264_v5 = vld [vmem:[%s1012_s26 + $0x50] sm:$0xff]  ;;  %261 = vst [vmem:[%s1017_s27 + $0x18] sm:$0xff] %v260_v3 }
  0x12   : > { %263 = vst [vmem:[%s1017_s27 + $0x20] sm:$0xff] %v262_v4  ;;  %265 = vst [vmem:[%s1017_s27 + $0x28] sm:$0xff] %v264_v5  ;;  %v266_v6 = vld [vmem:[%s1012_s26 + $0x60] sm:$0xff]  ;;  %v268_v7 = vld [vmem:[%s1012_s26 + $0x70] sm:$0xff] }
  0x13   : > { %v270_v8 = vld [vmem:[%s1012_s26 + $0x80] sm:$0xff]  ;;  %267 = vst [vmem:[%s1017_s27 + $0x30] sm:$0xff] %v266_v6  ;;  %269 = vst [vmem:[%s1017_s27 + $0x38] sm:$0xff] %v268_v7  ;;  %v272_v9 = vld [vmem:[%s1012_s26 + $0x90] sm:$0xff] }
  0x14   : > { %271 = vst [vmem:[%s1017_s27 + $0x40] sm:$0xff] %v270_v8  ;;  %v274_v10 = vld [vmem:[%s1012_s26 + $0xa0] sm:$0xff]  ;;  %v276_v11 = vld [vmem:[%s1012_s26 + $0xb0] sm:$0xff]  ;;  %273 = vst [vmem:[%s1017_s27 + $0x48] sm:$0xff] %v272_v9 }
  0x15   : > { %275 = vst [vmem:[%s1017_s27 + $0x50] sm:$0xff] %v274_v10  ;;  %277 = vst [vmem:[%s1017_s27 + $0x58] sm:$0xff] %v276_v11  ;;  %v278_v12 = vld [vmem:[%s1012_s26 + $0xc0] sm:$0xff]  ;;  %v280_v13 = vld [vmem:[%s1012_s26 + $0xd0] sm:$0xff] }
  0x16   : > { %v282_v14 = vld [vmem:[%s1012_s26 + $0xe0] sm:$0xff]  ;;  %279 = vst [vmem:[%s1017_s27 + $0x60] sm:$0xff] %v278_v12  ;;  %281 = vst [vmem:[%s1017_s27 + $0x68] sm:$0xff] %v280_v13  ;;  %v284_v15 = vld [vmem:[%s1012_s26 + $0xf0] sm:$0xff] }
  0x17   : > { %283 = vst [vmem:[%s1017_s27 + $0x70] sm:$0xff] %v282_v14  ;;  %v286_v16 = vld [vmem:[%s1012_s26 + $0x100] sm:$0xff]  ;;  %v288_v17 = vld [vmem:[%s1012_s26 + $0x110] sm:$0xff]  ;;  %285 = vst [vmem:[%s1017_s27 + $0x78] sm:$0xff] %v284_v15 }
  0x18   : > { %287 = vst [vmem:[%s1017_s27 + $0x80] sm:$0xff] %v286_v16  ;;  %289 = vst [vmem:[%s1017_s27 + $0x88] sm:$0xff] %v288_v17  ;;  %v290_v18 = vld [vmem:[%s1012_s26 + $0x120] sm:$0xff]  ;;  %v292_v19 = vld [vmem:[%s1012_s26 + $0x130] sm:$0xff] }
  0x19   : > { %v294_v20 = vld [vmem:[%s1012_s26 + $0x140] sm:$0xff]  ;;  %291 = vst [vmem:[%s1017_s27 + $0x90] sm:$0xff] %v290_v18  ;;  %293 = vst [vmem:[%s1017_s27 + $0x98] sm:$0xff] %v292_v19  ;;  %v296_v21 = vld [vmem:[%s1012_s26 + $0x150] sm:$0xff] }
  0x1a   : > { %295 = vst [vmem:[%s1017_s27 + $0xa0] sm:$0xff] %v294_v20  ;;  %v298_v22 = vld [vmem:[%s1012_s26 + $0x160] sm:$0xff]  ;;  %v300_v23 = vld [vmem:[%s1012_s26 + $0x170] sm:$0xff]  ;;  %297 = vst [vmem:[%s1017_s27 + $0xa8] sm:$0xff] %v296_v21 }
  0x1b   : > { %299 = vst [vmem:[%s1017_s27 + $0xb0] sm:$0xff] %v298_v22  ;;  %301 = vst [vmem:[%s1017_s27 + $0xb8] sm:$0xff] %v300_v23  ;;  %v302_v24 = vld [vmem:[%s1012_s26 + $0x180] sm:$0xff]  ;;  %v304_v25 = vld [vmem:[%s1012_s26 + $0x190] sm:$0xff] }
  0x1c   : > { %v306_v26 = vld [vmem:[%s1012_s26 + $0x1a0] sm:$0xff]  ;;  %303 = vst [vmem:[%s1017_s27 + $0xc0] sm:$0xff] %v302_v24  ;;  %305 = vst [vmem:[%s1017_s27 + $0xc8] sm:$0xff] %v304_v25  ;;  %v308_v27 = vld [vmem:[%s1012_s26 + $0x1b0] sm:$0xff] }
  0x1d   : > { %307 = vst [vmem:[%s1017_s27 + $0xd0] sm:$0xff] %v306_v26  ;;  %v310_v28 = vld [vmem:[%s1012_s26 + $0x1c0] sm:$0xff]  ;;  %v312_v29 = vld [vmem:[%s1012_s26 + $0x1d0] sm:$0xff]  ;;  %309 = vst [vmem:[%s1017_s27 + $0xd8] sm:$0xff] %v308_v27 }
  0x1e   : > { %311 = vst [vmem:[%s1017_s27 + $0xe0] sm:$0xff] %v310_v28  ;;  %313 = vst [vmem:[%s1017_s27 + $0xe8] sm:$0xff] %v312_v29  ;;  %v314_v30 = vld [vmem:[%s1012_s26 + $0x1e0] sm:$0xff]  ;;  %v316_v31 = vld [vmem:[%s1012_s26 + $0x1f0] sm:$0xff] }
  0x1f   : > { %315 = vst [vmem:[%s1017_s27 + $0xf0] sm:$0xff] %v314_v30  ;;  %317 = vst [vmem:[%s1017_s27 + $0xf8] sm:$0xff] %v316_v31 }
  0x20 PF: > { %p775_p6 = scmp.ge.s32.totalorder %s947_s16, 1  ;;  %p330_p7 = scmp.lt.s32.totalorder %s947_s16, 3 }
  0x22   : > { %p331_p8 = pnand %p775_p6, %p330_p7 }
  0x23   : > { %s337_s28 = sand.u32 (!%p331_p8), 1, %s931_s12   ;;  %s777_s6 = sshll.u32 (!%p331_p8), %s939_s14, 1 }
  0x24   : > { %334 = sbr.rel (%p331_p8) target bundleno = 306 (0x132), region = 66  ;;  %s776_s4 = sshll.u32 (!%p331_p8), %s337_s28, 8 }
  0x25   : > { %s1090_s5 = scalar_lea.vmem (!%p331_p8), [#allocation2], %s776_s4  ;;  %p380_p9 = scmp.lt.s32.totalorder (!%p331_p8), %s777_s6, 3 }
  0x29   : > { %v1086_v32 = vld [vmem:[%s1148_s0] sm:$0xff]  ;;  %v859_v34 = vld [vmem:[%s1090_s5 + $0x74] ss:$8 sps:$4 sm:$0xff]   ;;  %v861_v35 = vld [vmem:[%s1090_s5 + $0x70] ss:$8 sps:$4 sm:$0xff]   ;;  %v429_v3 = vlaneseq  ;;  %s1159_s6 = smov (!%p380_p9, %s777_s6), 3 }
  0x2a   : > { %v781_v33 = vcombine.high %v1086_v32, %v1086_v32  ;;  %606 = vmatprep.subr.bf16.mxu0 %v859_v34  ;;  %v862_v36 = vld [vmem:[%s1090_s5 + $0x64] ss:$8 sps:$4 sm:$0xff]   ;;  %v864_v37 = vld [vmem:[%s1090_s5 + $0x60] ss:$8 sps:$4 sm:$0xff]   ;;  %v865_v38 = vld [vmem:[%s1090_s5 + $0x54] ss:$8 sps:$4 sm:$0xff]   ;;  %v780_v2 = vcombine.low %v1086_v32, %v1086_v32  ;;  %s382_s9 = scalar_lea.vmem %s1150_s2, %s1159_s6 }
  0x2b   : > { %607 = vmatpush1.bf16.msra.mxu0 %v861_v35  ;;  %v867_v39 = vld [vmem:[%s1090_s5 + $0x50] ss:$8 sps:$4 sm:$0xff]   ;;  %v868_v40 = vld [vmem:[%s1090_s5 + $0x44] ss:$8 sps:$4 sm:$0xff]   ;;  %v870_v41 = vld [vmem:[%s1090_s5 + $0x40] ss:$8 sps:$4 sm:$0xff]  }
  0x2c   : > { %638 = vmatprep.mubr.bf16.mxu0 %v781_v33  ;;  %608 = vmatprep.subr.bf16.mxu0 %v862_v36  ;;  %v871_v42 = vld [vmem:[%s1090_s5 + $0x34] ss:$8 sps:$4 sm:$0xff]   ;;  %v873_v43 = vld [vmem:[%s1090_s5 + $0x30] ss:$8 sps:$4 sm:$0xff]   ;;  %v874_v44 = vld [vmem:[%s1090_s5 + $0x24] ss:$8 sps:$4 sm:$0xff]  }
  0x2d   : > { %v876_v45 = vld [vmem:[%s1090_s5 + $0x20] ss:$8 sps:$4 sm:$0xff]   ;;  %v877_v46 = vld [vmem:[%s1090_s5 + $0x14] ss:$8 sps:$4 sm:$0xff]   ;;  %v879_v47 = vld [vmem:[%s1090_s5 + $0x10] ss:$8 sps:$4 sm:$0xff]  }
  0x2e   : > { %v880_v48 = vld [vmem:[%s1090_s5 + $0x4] ss:$8 sps:$4 sm:$0xff]   ;;  %v882_v49 = vld [vmem:[%s1090_s5] ss:$8 sps:$4 sm:$0xff]   ;;  %v883_v50 = vld [vmem:[%s1090_s5 + $0xf4] ss:$8 sps:$4 sm:$0xff]  }
  0x2f   : > { %609 = vmatpush1.bf16.msra.mxu0 %v864_v37  ;;  %v885_v51 = vld [vmem:[%s1090_s5 + $0xf0] ss:$8 sps:$4 sm:$0xff]   ;;  %v886_v52 = vld [vmem:[%s1090_s5 + $0xe4] ss:$8 sps:$4 sm:$0xff]   ;;  %v888_v53 = vld [vmem:[%s1090_s5 + $0xe0] ss:$8 sps:$4 sm:$0xff]  }
  0x30   : > { %610 = vmatprep.subr.bf16.mxu0 %v865_v38  ;;  %v889_v54 = vld [vmem:[%s1090_s5 + $0xd4] ss:$8 sps:$4 sm:$0xff]   ;;  %v891_v55 = vld [vmem:[%s1090_s5 + $0xd0] ss:$8 sps:$4 sm:$0xff]   ;;  %v892_v56 = vld [vmem:[%s1090_s5 + $0xc4] ss:$8 sps:$4 sm:$0xff]  }
  0x31   : > { %v894_v57 = vld [vmem:[%s1090_s5 + $0xc0] ss:$8 sps:$4 sm:$0xff]   ;;  %v895_v58 = vld [vmem:[%s1090_s5 + $0xb4] ss:$8 sps:$4 sm:$0xff]   ;;  %v897_v59 = vld [vmem:[%s1090_s5 + $0xb0] ss:$8 sps:$4 sm:$0xff]  }
  0x32   : > { %v898_v60 = vld [vmem:[%s1090_s5 + $0xa4] ss:$8 sps:$4 sm:$0xff]   ;;  %v900_v61 = vld [vmem:[%s1090_s5 + $0xa0] ss:$8 sps:$4 sm:$0xff]   ;;  %v901_v62 = vld [vmem:[%s1090_s5 + $0x94] ss:$8 sps:$4 sm:$0xff]  }
  0x33   : > { %611 = vmatpush1.bf16.msra.mxu0 %v867_v39  ;;  %v903_v63 = vld [vmem:[%s1090_s5 + $0x90] ss:$8 sps:$4 sm:$0xff]   ;;  %v904_v0 = vld [vmem:[%s1090_s5 + $0x84] ss:$8 sps:$4 sm:$0xff]   ;;  %v906_v1 = vld [vmem:[%s1090_s5 + $0x80] ss:$8 sps:$4 sm:$0xff]  }
  0x34   : > { %612 = vmatprep.subr.bf16.mxu0 %v868_v40  ;;  %v430_v4 = vshrl.u32 %v429_v3, 7  ;;  %v427_v7 = vld [vmem:[%s382_s9] sm:$0x3]  ;;  %s779_s10 = sshll.u32 %s1159_s6, 2 }
  0x35   : > { %s392_s14 = scalar_lea.vmem %s1151_s3, %s779_s10 }
  0x36   : > { %v431_v5 = vsub.s32 0, %v430_v4  ;;  %v435_v6 = vsub.s32 1, %v430_v4 }
  0x37   : > { %613 = vmatpush1.bf16.msra.mxu0 %v870_v41 }
  0x38   : > { %614 = vmatprep.subr.bf16.mxu0 %v871_v42  ;;  %v432_v8 = vrot.slane %v427_v7, %v431_v5  ;;  %v436_v9 = vrot.slane %v427_v7, %v435_v6 }
  0x3b   : > { %615 = vmatpush1.bf16.msra.mxu0 %v873_v43 }
  0x3c   : > { %616 = vmatprep.subr.bf16.mxu0 %v874_v44 }
  0x3f   : > { %617 = vmatpush1.bf16.msra.mxu0 %v876_v45 }
  0x40   : > { %618 = vmatprep.subr.bf16.mxu0 %v877_v46 }
  0x43   : > { %619 = vmatpush1.bf16.msra.mxu0 %v879_v47 }
  0x44   : > { %620 = vmatprep.subr.bf16.mxu0 %v880_v48 }
  0x47   : > { %621 = vmatpush1.bf16.msra.mxu0 %v882_v49 }
  0x48   : > { %622 = vmatprep.subr.bf16.mxu0 %v883_v50 }
  0x4b   : > { %623 = vmatpush2.bf16.msra.mxu0 %v885_v51 }
  0x4c   : > { %624 = vmatprep.subr.bf16.mxu0 %v886_v52 }
  0x4f   : > { %625 = vmatpush2.bf16.msra.mxu0 %v888_v53 }
  0x50   : > { %626 = vmatprep.subr.bf16.mxu0 %v889_v54 }
  0x53   : > { %627 = vmatpush2.bf16.msra.mxu0 %v891_v55 }
  0x54   : > { %628 = vmatprep.subr.bf16.mxu0 %v892_v56 }
  0x57   : > { %629 = vmatpush2.bf16.msra.mxu0 %v894_v57 }
  0x58   : > { %630 = vmatprep.subr.bf16.mxu0 %v895_v58 }
  0x5b   : > { %631 = vmatpush2.bf16.msra.mxu0 %v897_v59 }
  0x5c   : > { %632 = vmatprep.subr.bf16.mxu0 %v898_v60 }
  0x5f   : > { %633 = vmatpush2.bf16.msra.mxu0 %v900_v61 }
  0x60   : > { %634 = vmatprep.subr.bf16.mxu0 %v901_v62 }
  0x63   : > { %635 = vmatpush2.bf16.msra.mxu0 %v903_v63 }
  0x64   : > { %636 = vmatprep.subr.bf16.mxu0 %v904_v0 }
  0x67   : > { %637 = vmatpush2.bf16.msra.mxu0 %v906_v1 }
  0x6a   : > { %639 = vmatmul.mubr.bf16.vlgmr.msra.gmra.mxu0 %v780_v2 }
 0x12a   : > { %v640_v10 = vpop.f32.mrf.mxu0 }
 0x12b   : > { %v641_v12 = vadd.f32 %v640_v10, %v432_v8 }
 0x12c   : > { %v642_v11 = vpop.f32.mrf.mxu0 }
 0x12d   : > { %v643_v13 = vadd.f32 %v642_v11, %v436_v9 }
 0x12e   : > { %v644_v14 = vpop.f32.mrf.mxu0 }
 0x12f   : > { %v818_v15 = vpack.c.bf16 %v643_v13, %v641_v12 }
 0x130   : > { %v645_v16 = vpop.f32.mrf.mxu0 }
 0x131   : > { %655 = vst [vmem:[%s392_s14] sm:$0xff] %v818_v15 }
 0x132 PF: > { %s13_s16 = sadd.s32 1, %s947_s16   ;;  %s1152_s12 = smov %s935_s13 }
 0x133   : > { %p10_p10 = scmp.ge.s32.totalorder %s13_s16, 4   ;;  %s1153_s13 = smov %s1004_s20 }
 0x134   : > { %s1154_s14 = smov %s943_s15  ;;  %s1155_s15 = smov %s1157_s17 }
 0x135   :  { %12 = sbr.rel (!%p10_p10) target bundleno = 3 (0x3), region = 111 }

// kernel: forward.33
= control target key start
LH: loop header
LB: loop body
LE: loop exit
PB: predicated region body
PF: predicated region fallthrough
CT: control target
= control target key end

     0   :  { %s2266_s18 = smov 0   ;;  %s2268_s19 = smov 0   ;;  %s2671_s0 = inlined_call_operand.vmem [shape: bf16[2,10,5,256], index: 0, kind: input, shape index: {}, may-alias: {0,1,2}]   ;;  %s2672_s1 = inlined_call_operand.vmem [shape: bf16[2,10,5,256], index: 1, kind: input, shape index: {}, may-alias: {0,1,2}]   ;;  %s2673_s2 = inlined_call_operand.vmem [shape: bf16[2,10,5,256], index: 2, kind: input, shape index: {}, may-alias: {0,1,2}]   ;;  %s2674_s3 = inlined_call_operand.vmem [shape: bf16[9,128,128], index: 3, kind: input, shape index: {}]   ;;  %s2675_s4 = inlined_call_operand.vmem [shape: f32[1,128], index: 4, kind: input, shape index: {}]   ;;  %s2676_s5 = inlined_call_operand.vmem [shape: bf16[2,4,4,128], index: 5, kind: output, shape index: {}]  }
   0x1   :  { %s2270_s20 = smov 0   ;;  %s2272_s21 = smov 0  }
   0x2   :  { %s2274_s22 = smov 0  }
   0x3 LB: > { %s30_s23 = sadd.s32 1, %s2224_s20  ;;  %s34_s24 = sadd.s32 1, %s2228_s21  ;;  %s2232_s22 = sphi %s2274_s22, %s15_s22   ;;  %s2228_s21 = sphi %s2272_s21, %s2680_s21   ;;  %s2224_s20 = sphi %s2270_s20, %s2679_s20   ;;  %s2220_s19 = sphi %s2268_s19, %s2678_s19   ;;  %s2216_s18 = sphi %s2266_s18, %s2677_s18  }
   0x4   : > { %p32_p0 = scmp.ge.s32.totalorder %s30_s23, 4  ;;  %p1597_p1 = scmp.ge.s32.totalorder %s2232_s22, 1 }
   0x5   : > { %p285_p2 = scmp.lt.s32.totalorder %s2232_s22, 9 }
   0x6   : > { %s2682_s23 = smov (%p32_p0, %s30_s23), 0  ;;  %s2684_s24 = smov (!%p32_p0, %s34_s24), %s2228_s21 }
   0x7   : > { %p286_p3 = pnand %p1597_p1, %p285_p2  ;;  %p36_p4 = scmp.ge.s32.totalorder %s2684_s24, 2 }
   0x8   : > { %s2314_s6 = sshll.u32 (!%p286_p3), %s2216_s18, 1  ;;  %p354_p5 = scmp.lt.s32.totalorder (!%p286_p3), %s2220_s19, 1 }
   0x9   : > { %s2686_s24 = smov (%p36_p4, %s2684_s24), 0  ;;  %289 = sbr.rel (%p286_p3) target bundleno = 377 (0x179), region = 40 }
   0xa   : > { %p356_p6 = scmp.lt.s32.totalorder (!%p286_p3), %s2314_s6, 9  ;;  %s365_s29 = sadd.s32 (!%p286_p3), 1, %s2314_s6 }
   0xb   : > { %p368_p7 = scmp.lt.s32.totalorder (!%p286_p3), %s365_s29, 9  ;;  %p399_p9 = scmp.lt.s32.totalorder (!%p286_p3), %s2216_s18, 3 }
   0xe   : > { %v2119_v0 = vld [vmem:[%s2674_s3 + $0x78] sm:$0xff]   ;;  %v2234_v1 = vmov 0.0   ;;  %v2121_v3 = vld [vmem:[%s2674_s3 + $0x70] sm:$0xff]   ;;  %vm2235_vm0 = vmmov 0   ;;  %s2688_s19 = smov (!%p354_p5, %s2220_s19), 1  ;;  %v2123_v5 = vld [vmem:[%s2674_s3 + $0x68] sm:$0xff]  }
   0xf   : > { %1896 = vmatprep.subr.bf16.mxu0 %v2234_v1  ;;  %1916 = vmatprep.subr.bf16.mxu1 %v2234_v1  ;;  %v2120_v2 = vld [vmem:[%s2674_s3 + $0x38] sm:$0xff]   ;;  %v2122_v4 = vld [vmem:[%s2674_s3 + $0x30] sm:$0xff]   ;;  %s357_s11 = scalar_select %p356_p6, %s2314_s6, 9  ;;  %v2124_v6 = vld [vmem:[%s2674_s3 + $0x28] sm:$0xff]  }
  0x10   : > { %1897 = vmatpush3.bf16.msra.mxu0 %v2119_v0  ;;  %1912 = vmatprep.mubr.msk.bf16.mxu0 %vm2235_vm0, %v2234_v1  ;;  %s2337_s14 = smul.u32 20, %s2688_s19  ;;  %v2125_v7 = vld [vmem:[%s2674_s3 + $0x60] sm:$0xff]   ;;  %v2127_v9 = vld [vmem:[%s2674_s3 + $0x58] sm:$0xff]   ;;  %v2129_v11 = vld [vmem:[%s2674_s3 + $0x50] sm:$0xff]   ;;  %s2690_s29 = smov (!%p368_p7, %s365_s29), 9 }
  0x11   : > { %1917 = vmatpush3.bf16.msra.mxu1 %v2120_v2  ;;  %1898 = vmatprep.subr.bf16.mxu0 %v2234_v1  ;;  %s1599_s15 = sshll.u32 %s357_s11, 1  ;;  %v2126_v8 = vld [vmem:[%s2674_s3 + $0x20] sm:$0xff]   ;;  %v2128_v10 = vld [vmem:[%s2674_s3 + $0x18] sm:$0xff]   ;;  %v2130_v12 = vld [vmem:[%s2674_s3 + $0x10] sm:$0xff]   ;;  %s1602_s30 = sshll.u32 %s2690_s29, 1 }
  0x12   : > { %1918 = vmatprep.subr.bf16.mxu1 %v2234_v1  ;;  %1932 = vmatprep.mubr.msk.bf16.mxu1 %vm2235_vm0, %v2234_v1  ;;  %s360_s16 = sadd.s32 %s2337_s14, %s1599_s15  ;;  %v2131_v13 = vld [vmem:[%s2674_s3 + $0x48] sm:$0xff]   ;;  %v2133_v15 = vld [vmem:[%s2674_s3 + $0x40] sm:$0xff]   ;;  %s372_s11 = sadd.s32 %s2337_s14, %s1602_s30  ;;  %v2136_v19 = vld [vmem:[%s2674_s3 + $0xb8] sm:$0xff]  }
  0x13   : > { %s1600_s28 = sshll.u32 %s360_s16, 2  ;;  %v2132_v14 = vld [vmem:[%s2674_s3 + $0x8] sm:$0xff]   ;;  %v2134_v16 = vld [vmem:[%s2674_s3] sm:$0xff]   ;;  %s1603_s15 = sshll.u32 %s372_s11, 2  ;;  %v2137_v20 = vld [vmem:[%s2674_s3 + $0xf8] sm:$0xff]  }
  0x14   : > { %1899 = vmatpush3.bf16.msra.mxu0 %v2121_v3  ;;  %s2360_s12 = scalar_lea.vmem %s2671_s0, %s1600_s28  ;;  %s2401_s27 = scalar_lea.vmem %s2672_s1, %s1603_s15  ;;  %v2138_v21 = vld [vmem:[%s2674_s3 + $0xb0] sm:$0xff]   ;;  %v2140_v23 = vld [vmem:[%s2674_s3 + $0xa8] sm:$0xff]   ;;  %v2142_v25 = vld [vmem:[%s2674_s3 + $0xa0] sm:$0xff]  }
  0x15   : > { %1919 = vmatpush3.bf16.msra.mxu1 %v2122_v4  ;;  %1900 = vmatprep.subr.bf16.mxu0 %v2234_v1  ;;  %v426_v17 = vld [vmem:[%s2360_s12 + $0x4] sm:$0x3]  ;;  %v409_v18 = vld [vmem:[%s2360_s12] sm:$0x3]  ;;  %v2139_v22 = vld [vmem:[%s2674_s3 + $0xf0] sm:$0xff]   ;;  %s378_s28 = sadd.s32 2, %s2314_s6 }
  0x16   : > { %1920 = vmatprep.subr.bf16.mxu1 %v2234_v1  ;;  %v2141_v24 = vld [vmem:[%s2674_s3 + $0xe8] sm:$0xff]   ;;  %v2143_v26 = vld [vmem:[%s2674_s3 + $0xe0] sm:$0xff]   ;;  %v2144_v27 = vld [vmem:[%s2674_s3 + $0x98] sm:$0xff]   ;;  %p381_p8 = scmp.lt.s32.totalorder %s378_s28, 9  ;;  %s2694_s18 = smov (!%p399_p9, %s2216_s18), 3 }
  0x17   : > { %v2135_v28 = vld [vmem:[%s2360_s12] ss:$0 sps:$4 sm:$0x77]   ;;  %v2145_v29 = vld [vmem:[%s2674_s3 + $0xd8] sm:$0xff]   ;;  %v2146_v30 = vld [vmem:[%s2674_s3 + $0x90] sm:$0xff]  }
  0x18   : > { %1901 = vmatpush3.bf16.msra.mxu0 %v2123_v5  ;;  %v2147_v31 = vld [vmem:[%s2674_s3 + $0xd0] sm:$0xff]   ;;  %v644_v32 = vshll.u32 %v2135_v28, 16  ;;  %s2692_s28 = smov (!%p381_p8, %s378_s28), 9  ;;  %v2148_v33 = vld [vmem:[%s2674_s3 + $0x88] sm:$0xff]   ;;  %v642_v35 = vshrl.u32 %v2135_v28, 16  ;;  %v2150_v37 = vld [vmem:[%s2674_s3 + $0x80] sm:$0xff]  }
  0x19   : > { %1921 = vmatpush3.bf16.msra.mxu1 %v2124_v6  ;;  %1902 = vmatprep.subr.bf16.mxu0 %v2234_v1  ;;  %v2149_v34 = vld [vmem:[%s2674_s3 + $0xc8] sm:$0xff]   ;;  %s1605_s15 = sshll.u32 %s2692_s28, 1  ;;  %v2151_v38 = vld [vmem:[%s2674_s3 + $0xc0] sm:$0xff]   ;;  %v2152_v40 = vld [vmem:[%s2674_s3 + $0x138] sm:$0xff]  }
  0x1a   : > { %1922 = vmatprep.subr.bf16.mxu1 %v2234_v1  ;;  %v646_v36 = vrot.slane %v644_v32, 1  ;;  %s385_s30 = sadd.s32 %s2337_s14, %s1605_s15  ;;  %v738_v41 = vld [vmem:[%s2401_s27] sm:$0x3]  ;;  %v2154_v42 = vld [vmem:[%s2674_s3 + $0x178] sm:$0xff]   ;;  %v2155_v43 = vld [vmem:[%s2674_s3 + $0x130] sm:$0xff]  }
  0x1b   : > { %s1606_s6 = sshll.u32 %s385_s30, 2  ;;  %v2156_v44 = vld [vmem:[%s2674_s3 + $0x170] sm:$0xff]   ;;  %v2157_v45 = vld [vmem:[%s2674_s3 + $0x128] sm:$0xff]   ;;  %v2159_v47 = vld [vmem:[%s2674_s3 + $0x120] sm:$0xff]   ;;  %s1607_s30 = sshll.u32 %s2688_s19, 2 }
  0x1c   : > { %1903 = vmatpush3.bf16.msra.mxu0 %v2125_v7  ;;  %v647_v39 = vor.u32 %v646_v36, %v642_v35  ;;  %s2481_s13 = scalar_lea.vmem %s2673_s2, %s1606_s6  ;;  %v2158_v46 = vld [vmem:[%s2674_s3 + $0x168] sm:$0xff]   ;;  %v2160_v48 = vld [vmem:[%s2674_s3 + $0x160] sm:$0xff]   ;;  %v2161_v49 = vld [vmem:[%s2674_s3 + $0x118] sm:$0xff]   ;;  %s405_s7 = sadd.s32 %s1607_s30, %s2694_s18 }
  0x1d   : > { %1923 = vmatpush3.bf16.msra.mxu1 %v2126_v8  ;;  %1904 = vmatprep.subr.bf16.mxu0 %v2234_v1  ;;  %v2162_v50 = vld [vmem:[%s2674_s3 + $0x158] sm:$0xff]   ;;  %v2153_v51 = vld [vmem:[%s2401_s27] ss:$0 sps:$4 sm:$0x77]   ;;  %v2163_v52 = vld [vmem:[%s2674_s3 + $0x110] sm:$0xff]   ;;  %s1608_s9 = sshll.u32 %s405_s7, 1 }
  0x1e   : > { %1924 = vmatprep.subr.bf16.mxu1 %v2234_v1  ;;  %v2164_v53 = vld [vmem:[%s2674_s3 + $0x150] sm:$0xff]   ;;  %v2165_v54 = vld [vmem:[%s2674_s3 + $0x108] sm:$0xff]   ;;  %v976_v55 = vshll.u32 %v2153_v51, 16  ;;  %v2167_v57 = vld [vmem:[%s2674_s3 + $0x100] sm:$0xff]   ;;  %v974_v58 = vshrl.u32 %v2153_v51, 16  ;;  %s407_s12 = scalar_lea.vmem %s2676_s5, %s1608_s9 }
  0x1f   : > { %v2166_v56 = vld [vmem:[%s2674_s3 + $0x148] sm:$0xff]   ;;  %v2168_v60 = vld [vmem:[%s2674_s3 + $0x140] sm:$0xff]   ;;  %v2169_v62 = vld [vmem:[%s2674_s3 + $0x1b8] sm:$0xff]  }
  0x20   : > { %1905 = vmatpush3.bf16.msra.mxu0 %v2127_v9  ;;  %v978_v59 = vrot.slane %v976_v55, 1  ;;  %v845_v61 = vld [vmem:[%s2401_s27 + $0x4] sm:$0x3]  ;;  %v2170_v0 = vld [vmem:[%s2674_s3 + $0x1f8] sm:$0xff]   ;;  %v2171_v2 = vld [vmem:[%s2674_s3 + $0x1b0] sm:$0xff]  }
  0x21   : > { %1925 = vmatpush3.bf16.msra.mxu1 %v2128_v10  ;;  %1906 = vmatprep.subr.bf16.mxu0 %v2234_v1  ;;  %v2172_v3 = vld [vmem:[%s2674_s3 + $0x1f0] sm:$0xff]   ;;  %v2173_v4 = vld [vmem:[%s2674_s3 + $0x1a8] sm:$0xff]   ;;  %v2175_v6 = vld [vmem:[%s2674_s3 + $0x1a0] sm:$0xff]  }
  0x22   : > { %1926 = vmatprep.subr.bf16.mxu1 %v2234_v1  ;;  %v979_v63 = vor.u32 %v978_v59, %v974_v58  ;;  %v2174_v5 = vld [vmem:[%s2674_s3 + $0x1e8] sm:$0xff]   ;;  %v2176_v7 = vld [vmem:[%s2674_s3 + $0x1e0] sm:$0xff]   ;;  %v2177_v8 = vld [vmem:[%s2674_s3 + $0x198] sm:$0xff]  }
  0x23   : > { %v2178_v9 = vld [vmem:[%s2674_s3 + $0x1d8] sm:$0xff]   ;;  %v2179_v10 = vld [vmem:[%s2674_s3 + $0x190] sm:$0xff]  }
  0x24   : > { %1907 = vmatpush3.bf16.msra.mxu0 %v2129_v11  ;;  %v2180_v11 = vld [vmem:[%s2674_s3 + $0x1d0] sm:$0xff]  }
  0x25   : > { %1927 = vmatpush3.bf16.msra.mxu1 %v2130_v12  ;;  %1908 = vmatprep.subr.bf16.mxu0 %v2234_v1  ;;  %v2181_v12 = vld [vmem:[%s2674_s3 + $0x188] sm:$0xff]  }
  0x26   : > { %1928 = vmatprep.subr.bf16.mxu1 %v2234_v1 }
  0x28   : > { %1909 = vmatpush3.bf16.msra.mxu0 %v2131_v13  ;;  %v2182_v13 = vld [vmem:[%s2674_s3 + $0x1c8] sm:$0xff]  }
  0x29   : > { %1929 = vmatpush3.bf16.msra.mxu1 %v2132_v14  ;;  %1910 = vmatprep.subr.bf16.mxu0 %v2234_v1  ;;  %v2183_v14 = vld [vmem:[%s2674_s3 + $0x180] sm:$0xff]  }
  0x2a   : > { %1930 = vmatprep.subr.bf16.mxu1 %v2234_v1 }
  0x2c   : > { %1911 = vmatpush3.bf16.msra.mxu0 %v2133_v15  ;;  %v2184_v15 = vld [vmem:[%s2674_s3 + $0x1c0] sm:$0xff]  }
  0x2d   : > { %1931 = vmatpush3.bf16.msra.mxu1 %v2134_v16  ;;  %1936 = vmatprep.subr.bf16.mxu0 %v2234_v1  ;;  %v1070_v16 = vld [vmem:[%s2481_s13] sm:$0x3] }
  0x2e   : > { %1956 = vmatprep.subr.bf16.mxu1 %v2234_v1 }
  0x2f   : > { %1913 = vmatmul.mubr.bf16.vlgmr.msra.gmra.mxu0 %v426_v17  ;;  %v2186_v17 = vld [vmem:[%s2674_s3 + $0x238] sm:$0xff]  }
  0x30   : > { %1933 = vmatmul.mubr.bf16.vlgmr.msra.gmra.mxu1 %v409_v18  ;;  %1937 = vmatpush3.bf16.msra.mxu0 %v2136_v19  ;;  %v1177_v18 = vld [vmem:[%s2481_s13 + $0x4] sm:$0x3]  ;;  %v2187_v19 = vld [vmem:[%s2674_s3 + $0x230] sm:$0xff]  }
  0x31   : > { %1957 = vmatpush3.bf16.msra.mxu1 %v2137_v20  ;;  %1938 = vmatprep.subr.bf16.mxu0 %v2234_v1  ;;  %v2188_v20 = vld [vmem:[%s2674_s3 + $0x228] sm:$0xff]  }
  0x32   : > { %1958 = vmatprep.subr.bf16.mxu1 %v2234_v1  ;;  %1952 = vmatprep.mubr.msk.bf16.mxu0 %vm2235_vm0, %v2234_v1 }
  0x33   : > { %1972 = vmatprep.mubr.msk.bf16.mxu1 %vm2235_vm0, %v2234_v1 }
  0x34   : > { %1939 = vmatpush3.bf16.msra.mxu0 %v2138_v21  ;;  %v2189_v21 = vld [vmem:[%s2674_s3 + $0x220] sm:$0xff]  }
  0x35   : > { %1959 = vmatpush3.bf16.msra.mxu1 %v2139_v22  ;;  %1940 = vmatprep.subr.bf16.mxu0 %v2234_v1  ;;  %v2190_v22 = vld [vmem:[%s2674_s3 + $0x218] sm:$0xff]  }
  0x36   : > { %1960 = vmatprep.subr.bf16.mxu1 %v2234_v1 }
  0x38   : > { %1941 = vmatpush3.bf16.msra.mxu0 %v2140_v23  ;;  %v2185_v23 = vld [vmem:[%s2481_s13] ss:$0 sps:$4 sm:$0x77]  }
  0x39   : > { %1961 = vmatpush3.bf16.msra.mxu1 %v2141_v24  ;;  %1942 = vmatprep.subr.bf16.mxu0 %v2234_v1  ;;  %v2191_v24 = vld [vmem:[%s2674_s3 + $0x210] sm:$0xff]  }
  0x3a   : > { %1962 = vmatprep.subr.bf16.mxu1 %v2234_v1 }
  0x3c   : > { %1943 = vmatpush3.bf16.msra.mxu0 %v2142_v25  ;;  %v1308_v25 = vshll.u32 %v2185_v23, 16 }
  0x3d   : > { %1963 = vmatpush3.bf16.msra.mxu1 %v2143_v26  ;;  %1944 = vmatprep.subr.bf16.mxu0 %v2234_v1  ;;  %v2192_v26 = vld [vmem:[%s2674_s3 + $0x208] sm:$0xff]  }
  0x3e   : > { %1964 = vmatprep.subr.bf16.mxu1 %v2234_v1  ;;  %v1310_v28 = vrot.slane %v1308_v25, 1 }
  0x40   : > { %1945 = vmatpush3.bf16.msra.mxu0 %v2144_v27  ;;  %v1306_v27 = vshrl.u32 %v2185_v23, 16 }
  0x41   : > { %1965 = vmatpush3.bf16.msra.mxu1 %v2145_v29  ;;  %1946 = vmatprep.subr.bf16.mxu0 %v2234_v1  ;;  %v2193_v29 = vld [vmem:[%s2674_s3 + $0x200] sm:$0xff]  }
  0x42   : > { %1966 = vmatprep.subr.bf16.mxu1 %v2234_v1 }
  0x44   : > { %1947 = vmatpush3.bf16.msra.mxu0 %v2146_v30  ;;  %v1311_v30 = vor.u32 %v1310_v28, %v1306_v27 }
  0x45   : > { %1967 = vmatpush3.bf16.msra.mxu1 %v2147_v31  ;;  %1948 = vmatprep.subr.bf16.mxu0 %v2234_v1 }
  0x46   : > { %1968 = vmatprep.subr.bf16.mxu1 %v2234_v1 }
  0x48   : > { %1949 = vmatpush3.bf16.msra.mxu0 %v2148_v33 }
  0x49   : > { %1969 = vmatpush3.bf16.msra.mxu1 %v2149_v34  ;;  %1950 = vmatprep.subr.bf16.mxu0 %v2234_v1 }
  0x4a   : > { %1970 = vmatprep.subr.bf16.mxu1 %v2234_v1 }
  0x4c   : > { %1951 = vmatpush3.bf16.msra.mxu0 %v2150_v37 }
  0x4d   : > { %1971 = vmatpush3.bf16.msra.mxu1 %v2151_v38  ;;  %1976 = vmatprep.subr.bf16.mxu0 %v2234_v1 }
  0x4e   : > { %1996 = vmatprep.subr.bf16.mxu1 %v2234_v1 }
  0x4f   : > { %1953 = vmatmul.mubr.bf16.vlgmr.msra.gmra.mxu0 %v647_v39 }
  0x50   : > { %1977 = vmatpush3.bf16.msra.mxu0 %v2152_v40  ;;  %1973 = vmatmul.mubr.bf16.vlgmr.msra.gmra.mxu1 %v738_v41 }
  0x51   : > { %1997 = vmatpush3.bf16.msra.mxu1 %v2154_v42  ;;  %1978 = vmatprep.subr.bf16.mxu0 %v2234_v1 }
  0x52   : > { %1998 = vmatprep.subr.bf16.mxu1 %v2234_v1  ;;  %1992 = vmatprep.mubr.msk.bf16.mxu0 %vm2235_vm0, %v2234_v1 }
  0x53   : > { %2012 = vmatprep.mubr.msk.bf16.mxu1 %vm2235_vm0, %v2234_v1 }
  0x54   : > { %1979 = vmatpush3.bf16.msra.mxu0 %v2155_v43 }
  0x55   : > { %1999 = vmatpush3.bf16.msra.mxu1 %v2156_v44  ;;  %1980 = vmatprep.subr.bf16.mxu0 %v2234_v1 }
  0x56   : > { %2000 = vmatprep.subr.bf16.mxu1 %v2234_v1 }
  0x58   : > { %1981 = vmatpush3.bf16.msra.mxu0 %v2157_v45 }
  0x59   : > { %2001 = vmatpush3.bf16.msra.mxu1 %v2158_v46  ;;  %1982 = vmatprep.subr.bf16.mxu0 %v2234_v1 }
  0x5a   : > { %2002 = vmatprep.subr.bf16.mxu1 %v2234_v1 }
  0x5c   : > { %1983 = vmatpush3.bf16.msra.mxu0 %v2159_v47 }
  0x5d   : > { %2003 = vmatpush3.bf16.msra.mxu1 %v2160_v48  ;;  %1984 = vmatprep.subr.bf16.mxu0 %v2234_v1 }
  0x5e   : > { %2004 = vmatprep.subr.bf16.mxu1 %v2234_v1 }
  0x60   : > { %1985 = vmatpush3.bf16.msra.mxu0 %v2161_v49 }
  0x61   : > { %2005 = vmatpush3.bf16.msra.mxu1 %v2162_v50  ;;  %1986 = vmatprep.subr.bf16.mxu0 %v2234_v1 }
  0x62   : > { %2006 = vmatprep.subr.bf16.mxu1 %v2234_v1 }
  0x64   : > { %1987 = vmatpush3.bf16.msra.mxu0 %v2163_v52 }
  0x65   : > { %2007 = vmatpush3.bf16.msra.mxu1 %v2164_v53  ;;  %1988 = vmatprep.subr.bf16.mxu0 %v2234_v1 }
  0x66   : > { %2008 = vmatprep.subr.bf16.mxu1 %v2234_v1 }
  0x68   : > { %1989 = vmatpush3.bf16.msra.mxu0 %v2165_v54 }
  0x69   : > { %2009 = vmatpush3.bf16.msra.mxu1 %v2166_v56  ;;  %1990 = vmatprep.subr.bf16.mxu0 %v2234_v1 }
  0x6a   : > { %2010 = vmatprep.subr.bf16.mxu1 %v2234_v1 }
  0x6c   : > { %1991 = vmatpush3.bf16.msra.mxu0 %v2167_v57 }
  0x6d   : > { %2011 = vmatpush3.bf16.msra.mxu1 %v2168_v60  ;;  %2016 = vmatprep.subr.bf16.mxu0 %v2234_v1 }
  0x6e   : > { %2036 = vmatprep.subr.bf16.mxu1 %v2234_v1 }
  0x6f   : > { %1993 = vmatmul.mubr.bf16.vlgmr.msra.gmra.mxu0 %v845_v61 }
  0x70   : > { %2017 = vmatpush3.bf16.msra.mxu0 %v2169_v62  ;;  %2013 = vmatmul.mubr.bf16.vlgmr.msra.gmra.mxu1 %v979_v63 }
  0x71   : > { %2037 = vmatpush3.bf16.msra.mxu1 %v2170_v0  ;;  %2018 = vmatprep.subr.bf16.mxu0 %v2234_v1 }
  0x72   : > { %2038 = vmatprep.subr.bf16.mxu1 %v2234_v1  ;;  %2032 = vmatprep.mubr.msk.bf16.mxu0 %vm2235_vm0, %v2234_v1 }
  0x73   : > { %2052 = vmatprep.mubr.msk.bf16.mxu1 %vm2235_vm0, %v2234_v1 }
  0x74   : > { %2019 = vmatpush3.bf16.msra.mxu0 %v2171_v2 }
  0x75   : > { %2039 = vmatpush3.bf16.msra.mxu1 %v2172_v3  ;;  %2020 = vmatprep.subr.bf16.mxu0 %v2234_v1 }
  0x76   : > { %2040 = vmatprep.subr.bf16.mxu1 %v2234_v1 }
  0x78   : > { %2021 = vmatpush3.bf16.msra.mxu0 %v2173_v4 }
  0x79   : > { %2041 = vmatpush3.bf16.msra.mxu1 %v2174_v5  ;;  %2022 = vmatprep.subr.bf16.mxu0 %v2234_v1 }
  0x7a   : > { %2042 = vmatprep.subr.bf16.mxu1 %v2234_v1 }
  0x7c   : > { %2023 = vmatpush3.bf16.msra.mxu0 %v2175_v6 }
  0x7d   : > { %2043 = vmatpush3.bf16.msra.mxu1 %v2176_v7  ;;  %2024 = vmatprep.subr.bf16.mxu0 %v2234_v1  ;;  %v1812_v7 = vld [vmem:[%s2675_s4] ss:$0 sm:$0xff] }
  0x7e   : > { %2044 = vmatprep.subr.bf16.mxu1 %v2234_v1 }
  0x80   : > { %2025 = vmatpush3.bf16.msra.mxu0 %v2177_v8 }
  0x81   : > { %2045 = vmatpush3.bf16.msra.mxu1 %v2178_v9  ;;  %2026 = vmatprep.subr.bf16.mxu0 %v2234_v1 }
  0x82   : > { %2046 = vmatprep.subr.bf16.mxu1 %v2234_v1 }
  0x84   : > { %2027 = vmatpush3.bf16.msra.mxu0 %v2179_v10 }
  0x85   : > { %2047 = vmatpush3.bf16.msra.mxu1 %v2180_v11  ;;  %2028 = vmatprep.subr.bf16.mxu0 %v2234_v1 }
  0x86   : > { %2048 = vmatprep.subr.bf16.mxu1 %v2234_v1 }
  0x88   : > { %2029 = vmatpush3.bf16.msra.mxu0 %v2181_v12 }
  0x89   : > { %2049 = vmatpush3.bf16.msra.mxu1 %v2182_v13  ;;  %2030 = vmatprep.subr.bf16.mxu0 %v2234_v1 }
  0x8a   : > { %2050 = vmatprep.subr.bf16.mxu1 %v2234_v1 }
  0x8c   : > { %2031 = vmatpush3.bf16.msra.mxu0 %v2183_v14 }
  0x8d   : > { %2051 = vmatpush3.bf16.msra.mxu1 %v2184_v15  ;;  %2056 = vmatprep.subr.bf16.mxu0 %v2234_v1 }
  0x8f   : > { %2033 = vmatmul.mubr.bf16.vlgmr.msra.gmra.mxu0 %v1070_v16 }
  0x90   : > { %2057 = vmatpush3.bf16.msra.mxu0 %v2186_v17  ;;  %2053 = vmatmul.mubr.bf16.vlgmr.msra.gmra.mxu1 %v1177_v18 }
  0x91   : > { %2058 = vmatprep.subr.bf16.mxu0 %v2234_v1  ;;  %2072 = vmatprep.mubr.msk.bf16.mxu0 %vm2235_vm0, %v2234_v1 }
  0x94   : > { %2059 = vmatpush3.bf16.msra.mxu0 %v2187_v19 }
  0x95   : > { %2060 = vmatprep.subr.bf16.mxu0 %v2234_v1 }
  0x98   : > { %2061 = vmatpush3.bf16.msra.mxu0 %v2188_v20 }
  0x99   : > { %2062 = vmatprep.subr.bf16.mxu0 %v2234_v1 }
  0x9c   : > { %2063 = vmatpush3.bf16.msra.mxu0 %v2189_v21 }
  0x9d   : > { %2064 = vmatprep.subr.bf16.mxu0 %v2234_v1 }
  0xa0   : > { %2065 = vmatpush3.bf16.msra.mxu0 %v2190_v22 }
  0xa1   : > { %2066 = vmatprep.subr.bf16.mxu0 %v2234_v1 }
  0xa4   : > { %2067 = vmatpush3.bf16.msra.mxu0 %v2191_v24 }
  0xa5   : > { %2068 = vmatprep.subr.bf16.mxu0 %v2234_v1 }
  0xa8   : > { %2069 = vmatpush3.bf16.msra.mxu0 %v2192_v26 }
  0xa9   : > { %2070 = vmatprep.subr.bf16.mxu0 %v2234_v1 }
  0xac   : > { %2071 = vmatpush3.bf16.msra.mxu0 %v2193_v29 }
  0xaf   : > { %2073 = vmatmul.mubr.bf16.vlgmr.msra.gmra.mxu0 %v1311_v30 }
  0xef   : > { %v526_v31 = vpop.f32.mrf.mxu0 }
  0xf0   : > { %v614_v32 = vpop.f32.mrf.mxu1 }
  0xf1   : > { %v615_v33 = vadd.f32 %v614_v32, %v526_v31  ;;  %v1914_v34 = vpop.f32.mrf.mxu0 }
  0xf2   : > { %v1934_v35 = vpop.f32.mrf.mxu1 }
  0xf3   : > { %v529_v36 = vpop.f32.mrf.mxu0 }
  0xf4   : > { %v617_v37 = vpop.f32.mrf.mxu1 }
  0xf5   : > { %v1915_v38 = vpop.f32.mrf.mxu0 }
  0xf6   : > { %v1935_v39 = vpop.f32.mrf.mxu1 }
 0x10f   : > { %v731_v40 = vpop.f32.mrf.mxu0 }
 0x110   : > { %v737_v41 = vadd.f32 %v731_v40, %v615_v33  ;;  %v838_v42 = vpop.f32.mrf.mxu1 }
 0x111   : > { %v1954_v43 = vpop.f32.mrf.mxu0 }
 0x112   : > { %v844_v44 = vadd.f32 %v838_v42, %v737_v41  ;;  %v1974_v45 = vpop.f32.mrf.mxu1 }
 0x113   : > { %v734_v46 = vpop.f32.mrf.mxu0 }
 0x114   : > { %v841_v1 = vpop.f32.mrf.mxu1 }
 0x115   : > { %v1955_v47 = vpop.f32.mrf.mxu0 }
 0x116   : > { %v1975_v48 = vpop.f32.mrf.mxu1 }
 0x12f   : > { %v945_v49 = vpop.f32.mrf.mxu0 }
 0x130   : > { %v1063_v50 = vpop.f32.mrf.mxu1  ;;  %v951_v2 = vadd.f32 %v945_v49, %v844_v44 }
 0x131   : > { %v1994_v51 = vpop.f32.mrf.mxu0 }
 0x132   : > { %v2014_v52 = vpop.f32.mrf.mxu1  ;;  %v1069_v3 = vadd.f32 %v1063_v50, %v951_v2 }
 0x133   : > { %v948_v53 = vpop.f32.mrf.mxu0 }
 0x134   : > { %v1066_v54 = vpop.f32.mrf.mxu1 }
 0x135   : > { %v1995_v55 = vpop.f32.mrf.mxu0 }
 0x136   : > { %v2015_v56 = vpop.f32.mrf.mxu1 }
 0x14f   : > { %v1170_v57 = vpop.f32.mrf.mxu0 }
 0x150   : > { %v1277_v58 = vpop.f32.mrf.mxu1  ;;  %v1176_v4 = vadd.f32 %v1170_v57, %v1069_v3 }
 0x151   : > { %v2034_v59 = vpop.f32.mrf.mxu0 }
 0x152   : > { %v2054_v60 = vpop.f32.mrf.mxu1  ;;  %v1283_v5 = vadd.f32 %v1277_v58, %v1176_v4 }
 0x153   : > { %v1173_v61 = vpop.f32.mrf.mxu0 }
 0x154   : > { %v1280_v62 = vpop.f32.mrf.mxu1 }
 0x155   : > { %v2035_v63 = vpop.f32.mrf.mxu0 }
 0x156   : > { %v2055_v0 = vpop.f32.mrf.mxu1 }
 0x16f   : > { %v1395_v6 = vpop.f32.mrf.mxu0 }
 0x170   : > { %v1401_v8 = vadd.f32 %v1395_v6, %v1283_v5 }
 0x171   : > { %v2074_v9 = vpop.f32.mrf.mxu0 }
 0x172   : > { %v1409_v10 = vadd.f32 %v1812_v7, %v1401_v8 }
 0x173   : > { %v1398_v11 = vpop.f32.mrf.mxu0 }
 0x174   : > { %v1410_v12 = vmax.f32 %v1409_v10, 0.0 }
 0x175   : > { %v2075_v13 = vpop.f32.mrf.mxu0 }
 0x176   : > { %v1411_v14 = vpack.c.bf16 %v1410_v12, %v1410_v12 }
 0x178   : > { %1412 = vst [vmem:[%s407_s12] sm:$0x3] %v1411_v14 }
 0x179 PF: > { %s15_s22 = sadd.s32 1, %s2232_s22   ;;  %s2677_s18 = smov %s2224_s20 }
 0x17a   : > { %p12_p10 = scmp.ge.s32.totalorder %s15_s22, 10   ;;  %s2678_s19 = smov %s2228_s21 }
 0x17b   : > { %s2679_s20 = smov %s2682_s23  ;;  %s2680_s21 = smov %s2686_s24 }
 0x17c   :  { %14 = sbr.rel (!%p12_p10) target bundleno = 3 (0x3), region = 90 }

// kernel: forward.39
= control target key start
LH: loop header
LB: loop body
LE: loop exit
PB: predicated region body
PF: predicated region fallthrough
CT: control target
= control target key end

     0   :  { %s853_s15 = smov 0   ;;  %s855_s16 = smov 0   ;;  %s945_s0 = inlined_call_operand.vmem [shape: bf16[8,128], index: 0, kind: input, shape index: {}]   ;;  %s946_s1 = inlined_call_operand.vmem [shape: bf16[128,512], index: 1, kind: input, shape index: {}]   ;;  %s947_s2 = inlined_call_operand.vmem [shape: f32[1,512], index: 2, kind: input, shape index: {}]   ;;  %s948_s3 = inlined_call_operand.vmem [shape: bf16[8,512], index: 3, kind: input, shape index: {}]   ;;  %s949_s4 = inlined_call_operand.vmem [shape: bf16[8,512], index: 4, kind: output, shape index: {}]  }
   0x1   :  { %s857_s17 = smov 0   ;;  %s859_s18 = smov 0  }
   0x2   :  { %s861_s19 = smov 0  }
   0x3 LB: > { %s23_s20 = sadd.s32 1, %s821_s18  ;;  %p66_p1 = scmp.ne.s32.totalorder %s813_s16, %s809_s15  ;;  %s825_s19 = sphi %s861_s19, %s14_s19   ;;  %s821_s18 = sphi %s859_s18, %s953_s18   ;;  %s817_s17 = sphi %s857_s17, %s952_s17   ;;  %s813_s16 = sphi %s855_s16, %s951_s16   ;;  %s809_s15 = sphi %s853_s15, %s950_s15  }
   0x4   : > { %p24_p0 = scmp.ge.s32.totalorder %s23_s20, 2  ;;  %p67_p2 = scmp.eq.s32.totalorder %s825_s19, 0 }
   0x5   : > { %s59_s22 = sadd.s32 1, %s813_s16  ;;  %p690_p5 = scmp.ge.s32.totalorder %s825_s19, 2 }
   0x6   : > { %s955_s20 = smov (%p24_p0, %s23_s20), 0  ;;  %p68_p3 = por %p67_p2, %p66_p1 }
   0x7   : > { %s56_s21 = ssub.s32 %s821_s18, %s955_s20  ;;  %181 = sbr.rel (%p690_p5) target bundleno = 24 (0x18), region = 20 }
   0x8   : > { %p57_p4 = scmp.eq.s32.totalorder %s56_s21, 0 }
   0xa   : > { %s888_s23 = scalar_select %p57_p4, %s813_s16, %s59_s22  }
   0xc   : > { %184 = sbr.rel (!%p68_p3) target bundleno = 24 (0x18), region = 24  ;;  %s186_s24 = sand.u32 (%p68_p3), 1, %s813_s16  }
   0xd   : > { %s720_s25 = sshll.u32 (%p68_p3), %s821_s18, 3  ;;  %s691_s26 = sshll.u32 (%p68_p3), %s186_s24, 7 }
   0xe   : > { %s896_s29 = scalar_lea.vmem (%p68_p3), %s946_s1, %s720_s25  ;;  %s188_s30 = scalar_lea.vmem (%p68_p3), [#allocation2], %s691_s26 }
   0xf   : > { %v250_v0 = vld [vmem:[%s896_s29] sm:$0xff] (%p68_p3)  ;;  %v252_v1 = vld [vmem:[%s896_s29 + $0x10] sm:$0xff] (%p68_p3) }
  0x10   : > { %v254_v2 = vld [vmem:[%s896_s29 + $0x20] sm:$0xff] (%p68_p3)  ;;  %251 = vst [vmem:[%s188_s30] sm:$0xff] (%p68_p3), %v250_v0  ;;  %253 = vst [vmem:[%s188_s30 + $0x8] sm:$0xff] (%p68_p3), %v252_v1  ;;  %v256_v3 = vld [vmem:[%s896_s29 + $0x30] sm:$0xff] (%p68_p3) }
  0x11   : > { %255 = vst [vmem:[%s188_s30 + $0x10] sm:$0xff] %v254_v2  ;;  %v258_v4 = vld [vmem:[%s896_s29 + $0x40] sm:$0xff]  ;;  %v260_v5 = vld [vmem:[%s896_s29 + $0x50] sm:$0xff]  ;;  %257 = vst [vmem:[%s188_s30 + $0x18] sm:$0xff] %v256_v3 }
  0x12   : > { %259 = vst [vmem:[%s188_s30 + $0x20] sm:$0xff] %v258_v4  ;;  %261 = vst [vmem:[%s188_s30 + $0x28] sm:$0xff] %v260_v5  ;;  %v262_v6 = vld [vmem:[%s896_s29 + $0x60] sm:$0xff]  ;;  %v264_v7 = vld [vmem:[%s896_s29 + $0x70] sm:$0xff] }
  0x13   : > { %v266_v8 = vld [vmem:[%s896_s29 + $0x80] sm:$0xff]  ;;  %263 = vst [vmem:[%s188_s30 + $0x30] sm:$0xff] %v262_v6  ;;  %265 = vst [vmem:[%s188_s30 + $0x38] sm:$0xff] %v264_v7  ;;  %v268_v9 = vld [vmem:[%s896_s29 + $0x90] sm:$0xff] }
  0x14   : > { %267 = vst [vmem:[%s188_s30 + $0x40] sm:$0xff] %v266_v8  ;;  %v270_v10 = vld [vmem:[%s896_s29 + $0xa0] sm:$0xff]  ;;  %v272_v11 = vld [vmem:[%s896_s29 + $0xb0] sm:$0xff]  ;;  %269 = vst [vmem:[%s188_s30 + $0x48] sm:$0xff] %v268_v9 }
  0x15   : > { %271 = vst [vmem:[%s188_s30 + $0x50] sm:$0xff] %v270_v10  ;;  %273 = vst [vmem:[%s188_s30 + $0x58] sm:$0xff] %v272_v11  ;;  %v274_v12 = vld [vmem:[%s896_s29 + $0xc0] sm:$0xff]  ;;  %v276_v13 = vld [vmem:[%s896_s29 + $0xd0] sm:$0xff] }
  0x16   : > { %v278_v14 = vld [vmem:[%s896_s29 + $0xe0] sm:$0xff]  ;;  %275 = vst [vmem:[%s188_s30 + $0x60] sm:$0xff] %v274_v12  ;;  %277 = vst [vmem:[%s188_s30 + $0x68] sm:$0xff] %v276_v13  ;;  %v280_v15 = vld [vmem:[%s896_s29 + $0xf0] sm:$0xff] }
  0x17   : > { %279 = vst [vmem:[%s188_s30 + $0x70] sm:$0xff] %v278_v14  ;;  %281 = vst [vmem:[%s188_s30 + $0x78] sm:$0xff] %v280_v15 }
  0x18 PF: > { %p694_p6 = scmp.ge.s32.totalorder %s825_s19, 1  ;;  %p307_p7 = scmp.lt.s32.totalorder %s825_s19, 3 }
  0x1a   : > { %p308_p8 = pnand %p694_p6, %p307_p7 }
  0x1b   : > { %s314_s5 = sand.u32 (!%p308_p8), 1, %s809_s15   ;;  %s696_s10 = sshll.u32 (!%p308_p8), %s817_s17, 1 }
  0x1c   : > { %311 = sbr.rel (%p308_p8) target bundleno = 270 (0x10e), region = 70  ;;  %s695_s6 = sshll.u32 (!%p308_p8), %s314_s5, 7 }
  0x1d   : > { %s316_s7 = scalar_lea.vmem (!%p308_p8), [#allocation2], %s695_s6  ;;  %p366_p9 = scmp.lt.s32.totalorder (!%p308_p8), %s696_s10, 3 }
  0x21   : > { %v827_v16 = vmov 0   ;;  %v763_v17 = vld [vmem:[%s316_s7 + $0x74] ss:$8 sps:$4 sm:$0xff]   ;;  %v765_v18 = vld [vmem:[%s316_s7 + $0x70] ss:$8 sps:$4 sm:$0xff]   ;;  %v410_v34 = vlaneseq  ;;  %s957_s10 = smov (!%p366_p9, %s696_s10), 3 }
  0x22   : > { %532 = vmatprep.mubr.bf16.mxu0 %v827_v16  ;;  %500 = vmatprep.subr.bf16.mxu0 %v763_v17  ;;  %v766_v19 = vld [vmem:[%s316_s7 + $0x64] ss:$8 sps:$4 sm:$0xff]   ;;  %v768_v20 = vld [vmem:[%s316_s7 + $0x60] ss:$8 sps:$4 sm:$0xff]   ;;  %v769_v21 = vld [vmem:[%s316_s7 + $0x54] ss:$8 sps:$4 sm:$0xff]   ;;  %s368_s14 = scalar_lea.vmem %s947_s2, %s957_s10 }
  0x23   : > { %501 = vmatpush1.bf16.msra.mxu0 %v765_v18  ;;  %v771_v22 = vld [vmem:[%s316_s7 + $0x50] ss:$8 sps:$4 sm:$0xff]   ;;  %v772_v23 = vld [vmem:[%s316_s7 + $0x44] ss:$8 sps:$4 sm:$0xff]   ;;  %v774_v24 = vld [vmem:[%s316_s7 + $0x40] ss:$8 sps:$4 sm:$0xff]  }
  0x24   : > { %502 = vmatprep.subr.bf16.mxu0 %v766_v19  ;;  %v775_v25 = vld [vmem:[%s316_s7 + $0x34] ss:$8 sps:$4 sm:$0xff]   ;;  %v777_v26 = vld [vmem:[%s316_s7 + $0x30] ss:$8 sps:$4 sm:$0xff]   ;;  %v778_v27 = vld [vmem:[%s316_s7 + $0x24] ss:$8 sps:$4 sm:$0xff]  }
  0x25   : > { %v780_v28 = vld [vmem:[%s316_s7 + $0x20] ss:$8 sps:$4 sm:$0xff]   ;;  %v781_v29 = vld [vmem:[%s316_s7 + $0x14] ss:$8 sps:$4 sm:$0xff]   ;;  %v783_v30 = vld [vmem:[%s316_s7 + $0x10] ss:$8 sps:$4 sm:$0xff]  }
  0x26   : > { %v784_v31 = vld [vmem:[%s316_s7 + $0x4] ss:$8 sps:$4 sm:$0xff]   ;;  %v786_v32 = vld [vmem:[%s316_s7] ss:$8 sps:$4 sm:$0xff]   ;;  %v411_v35 = vshrl.u32 %v410_v34, 7  ;;  %s698_s11 = sshll.u32 %s957_s10, 2 }
  0x27   : > { %503 = vmatpush1.bf16.msra.mxu0 %v768_v20  ;;  %v391_v33 = vld [vmem:[%s945_s0] sm:$0xf]  ;;  %s378_s22 = scalar_lea.vmem %s948_s3, %s698_s11  ;;  %s388_s25 = scalar_lea.vmem %s949_s4, %s698_s11 }
  0x28   : > { %504 = vmatprep.subr.bf16.mxu0 %v769_v21  ;;  %v412_v36 = vsub.s32 0, %v411_v35  ;;  %v408_v37 = vld [vmem:[%s368_s14] sm:$0x3]  ;;  %v416_v38 = vsub.s32 1, %v411_v35 }
  0x29   : > { %v541_v39 = vld [vmem:[%s378_s22] sm:$0xff] }
  0x2a   : > { %v413_v40 = vrot.slane %v408_v37, %v412_v36  ;;  %v542_v41 = vunpack.c.l.bf16 %v541_v39  ;;  %v417_v42 = vrot.slane %v408_v37, %v416_v38  ;;  %v543_v45 = vunpack.c.h.bf16 %v541_v39 }
  0x2b   : > { %505 = vmatpush1.bf16.msra.mxu0 %v771_v22 }
  0x2c   : > { %506 = vmatprep.subr.bf16.mxu0 %v772_v23 }
  0x2f   : > { %507 = vmatpush1.bf16.msra.mxu0 %v774_v24 }
  0x30   : > { %508 = vmatprep.subr.bf16.mxu0 %v775_v25 }
  0x33   : > { %509 = vmatpush1.bf16.msra.mxu0 %v777_v26 }
  0x34   : > { %510 = vmatprep.subr.bf16.mxu0 %v778_v27 }
  0x37   : > { %511 = vmatpush1.bf16.msra.mxu0 %v780_v28 }
  0x38   : > { %512 = vmatprep.subr.bf16.mxu0 %v781_v29 }
  0x3b   : > { %513 = vmatpush1.bf16.msra.mxu0 %v783_v30 }
  0x3c   : > { %514 = vmatprep.subr.bf16.mxu0 %v784_v31 }
  0x3f   : > { %515 = vmatpush1.bf16.msra.mxu0 %v786_v32 }
  0x42   : > { %533 = vmatmul.mubr.bf16.vlgmr.msra.gmra.mxu0 %v391_v33 }
 0x102   : > { %v534_v43 = vpop.f32.mrf.mxu0 }
 0x103   : > { %v535_v44 = vadd.f32 %v534_v43, %v413_v40 }
 0x104   : > { %v536_v46 = vpop.f32.mrf.mxu0 }
 0x105   : > { %v544_v47 = vadd.f32 %v542_v41, %v535_v44  ;;  %v537_v48 = vadd.f32 %v536_v46, %v417_v42 }
 0x106   : > { %v538_v49 = vpop.f32.mrf.mxu0 }
 0x107   : > { %v545_v50 = vadd.f32 %v543_v45, %v537_v48  ;;  %v546_v52 = vmax.f32 %v544_v47, 0.0 }
 0x108   : > { %v539_v51 = vpop.f32.mrf.mxu0 }
 0x109   : > { %v547_v53 = vmax.f32 %v545_v50, 0.0 }
 0x10b   : > { %v721_v54 = vpack.c.bf16 %v547_v53, %v546_v52 }
 0x10d   : > { %556 = vst [vmem:[%s388_s25] sm:$0xff] %v721_v54 }
 0x10e PF: > { %s14_s19 = sadd.s32 1, %s825_s19   ;;  %s950_s15 = smov %s813_s16 }
 0x10f   : > { %p11_p10 = scmp.ge.s32.totalorder %s14_s19, 4   ;;  %s951_s16 = smov %s888_s23 }
 0x110   : > { %s952_s17 = smov %s821_s18  ;;  %s953_s18 = smov %s955_s20 }
 0x111   :  { %13 = sbr.rel (!%p11_p10) target bundleno = 3 (0x3), region = 118 }

// kernel: forward.37
= control target key start
LH: loop header
LB: loop body
LE: loop exit
PB: predicated region body
PF: predicated region fallthrough
CT: control target
= control target key end

     0   :  { %s2269_s18 = smov 0   ;;  %s2271_s19 = smov 0   ;;  %s2672_s0 = inlined_call_operand.vmem [shape: bf16[2,6,3,256], index: 0, kind: input, shape index: {}, may-alias: {0,1,2}]   ;;  %s2673_s1 = inlined_call_operand.vmem [shape: bf16[2,6,3,256], index: 1, kind: input, shape index: {}, may-alias: {0,1,2}]   ;;  %s2674_s2 = inlined_call_operand.vmem [shape: bf16[2,6,3,256], index: 2, kind: input, shape index: {}, may-alias: {0,1,2}]   ;;  %s2675_s3 = inlined_call_operand.vmem [shape: bf16[9,128,128], index: 3, kind: input, shape index: {}]   ;;  %s2676_s4 = inlined_call_operand.vmem [shape: f32[1,128], index: 4, kind: input, shape index: {}]   ;;  %s2677_s5 = inlined_call_operand.vmem [shape: bf16[2,2,2,128], index: 5, kind: output, shape index: {}]  }
   0x1   :  { %s2273_s20 = smov 0   ;;  %s2275_s21 = smov 0  }
   0x2   :  { %s2277_s22 = smov 0  }
   0x3 LB: > { %s30_s23 = sadd.s32 1, %s2227_s20  ;;  %s34_s24 = sadd.s32 1, %s2231_s21  ;;  %s2235_s22 = sphi %s2277_s22, %s15_s22   ;;  %s2231_s21 = sphi %s2275_s21, %s2681_s21   ;;  %s2227_s20 = sphi %s2273_s20, %s2680_s20   ;;  %s2223_s19 = sphi %s2271_s19, %s2679_s19   ;;  %s2219_s18 = sphi %s2269_s18, %s2678_s18  }
   0x4   : > { %p32_p0 = scmp.ge.s32.totalorder %s30_s23, 2  ;;  %p1604_p1 = scmp.ge.s32.totalorder %s2235_s22, 1 }
   0x5   : > { %p285_p2 = scmp.lt.s32.totalorder %s2235_s22, 5 }
   0x6   : > { %s2683_s23 = smov (%p32_p0, %s30_s23), 0  ;;  %s2685_s24 = smov (!%p32_p0, %s34_s24), %s2231_s21 }
   0x7   : > { %p286_p3 = pnand %p1604_p1, %p285_p2  ;;  %p36_p4 = scmp.ge.s32.totalorder %s2685_s24, 2 }
   0x8   : > { %s2322_s8 = sshll.u32 (!%p286_p3), %s2219_s18, 1  ;;  %p353_p5 = scmp.lt.s32.totalorder (!%p286_p3), %s2223_s19, 1 }
   0x9   : > { %s2687_s24 = smov (%p36_p4, %s2685_s24), 0  ;;  %289 = sbr.rel (%p286_p3) target bundleno = 377 (0x179), region = 40 }
   0xa   : > { %p355_p6 = scmp.lt.s32.totalorder (!%p286_p3), %s2322_s8, 5  ;;  %s377_s25 = sadd.s32 (!%p286_p3), 2, %s2322_s8 }
   0xb   : > { %p380_p7 = scmp.lt.s32.totalorder (!%p286_p3), %s377_s25, 5  ;;  %s364_s9 = sadd.s32 (!%p286_p3), 1, %s2322_s8 }
   0xc   : > { %p367_p8 = scmp.lt.s32.totalorder (!%p286_p3), %s364_s9, 5  ;;  %p398_p9 = scmp.lt.s32.totalorder (!%p286_p3), %s2219_s18, 1 }
   0xe   : > { %v2125_v0 = vld [vmem:[%s2675_s3 + $0x78] sm:$0xff]   ;;  %v2237_v1 = vmov 0.0   ;;  %v2127_v3 = vld [vmem:[%s2675_s3 + $0x70] sm:$0xff]   ;;  %vm2238_vm0 = vmmov 0   ;;  %v2129_v5 = vld [vmem:[%s2675_s3 + $0x68] sm:$0xff]   ;;  %s2689_s19 = smov (!%p353_p5, %s2223_s19), 1 }
   0xf   : > { %1902 = vmatprep.subr.bf16.mxu0 %v2237_v1  ;;  %1922 = vmatprep.subr.bf16.mxu1 %v2237_v1  ;;  %v2126_v2 = vld [vmem:[%s2675_s3 + $0x38] sm:$0xff]   ;;  %v2128_v4 = vld [vmem:[%s2675_s3 + $0x30] sm:$0xff]   ;;  %v2130_v6 = vld [vmem:[%s2675_s3 + $0x28] sm:$0xff]   ;;  %s356_s17 = scalar_select %p355_p6, %s2322_s8, 5 }
  0x10   : > { %1903 = vmatpush3.bf16.msra.mxu0 %v2125_v0  ;;  %1918 = vmatprep.mubr.msk.bf16.mxu0 %vm2238_vm0, %v2237_v1  ;;  %v2131_v7 = vld [vmem:[%s2675_s3 + $0x60] sm:$0xff]   ;;  %v2133_v9 = vld [vmem:[%s2675_s3 + $0x58] sm:$0xff]   ;;  %s2353_s28 = smul.u32 12, %s2689_s19  ;;  %v2135_v11 = vld [vmem:[%s2675_s3 + $0x50] sm:$0xff]   ;;  %s2691_s25 = smov (!%p380_p7, %s377_s25), 5 }
  0x11   : > { %1923 = vmatpush3.bf16.msra.mxu1 %v2126_v2  ;;  %1904 = vmatprep.subr.bf16.mxu0 %v2237_v1  ;;  %v2132_v8 = vld [vmem:[%s2675_s3 + $0x20] sm:$0xff]   ;;  %v2134_v10 = vld [vmem:[%s2675_s3 + $0x18] sm:$0xff]   ;;  %s1606_s6 = sshll.u32 %s356_s17, 1  ;;  %v2136_v12 = vld [vmem:[%s2675_s3 + $0x10] sm:$0xff]   ;;  %s1612_s16 = sshll.u32 %s2691_s25, 1 }
  0x12   : > { %1924 = vmatprep.subr.bf16.mxu1 %v2237_v1  ;;  %1938 = vmatprep.mubr.msk.bf16.mxu1 %vm2238_vm0, %v2237_v1  ;;  %s359_s10 = sadd.s32 %s2353_s28, %s1606_s6  ;;  %v2137_v13 = vld [vmem:[%s2675_s3 + $0x48] sm:$0xff]   ;;  %s2377_s27 = sadd.s32 %s2353_s28, %s1612_s16  ;;  %v2139_v15 = vld [vmem:[%s2675_s3 + $0x40] sm:$0xff]   ;;  %v2141_v19 = vld [vmem:[%s2675_s3 + $0xb8] sm:$0xff]  }
  0x13   : > { %s1607_s13 = sshll.u32 %s359_s10, 1  ;;  %v2138_v14 = vld [vmem:[%s2675_s3 + $0x8] sm:$0xff]   ;;  %v2140_v16 = vld [vmem:[%s2675_s3] sm:$0xff]   ;;  %v2142_v20 = vld [vmem:[%s2675_s3 + $0xf8] sm:$0xff]   ;;  %s2693_s9 = smov (!%p367_p8, %s364_s9), 5 }
  0x14   : > { %1905 = vmatpush3.bf16.msra.mxu0 %v2127_v3  ;;  %s2383_s6 = scalar_lea.vmem %s2672_s0, %s1607_s13  ;;  %v2143_v21 = vld [vmem:[%s2675_s3 + $0xb0] sm:$0xff]   ;;  %v2145_v23 = vld [vmem:[%s2675_s3 + $0xa8] sm:$0xff]   ;;  %v2147_v25 = vld [vmem:[%s2675_s3 + $0xa0] sm:$0xff]   ;;  %s1609_s29 = sshll.u32 %s2693_s9, 1 }
  0x15   : > { %1925 = vmatpush3.bf16.msra.mxu1 %v2128_v4  ;;  %1906 = vmatprep.subr.bf16.mxu0 %v2237_v1  ;;  %v424_v17 = vld [vmem:[%s2383_s6 + $0x2] sm:$0x1]  ;;  %v407_v18 = vld [vmem:[%s2383_s6] sm:$0x1]  ;;  %v2144_v22 = vld [vmem:[%s2675_s3 + $0xf0] sm:$0xff]   ;;  %s371_s7 = sadd.s32 %s2353_s28, %s1609_s29  ;;  %s1613_s13 = sshll.u32 %s2377_s27, 1 }
  0x16   : > { %1926 = vmatprep.subr.bf16.mxu1 %v2237_v1  ;;  %v2146_v24 = vld [vmem:[%s2675_s3 + $0xe8] sm:$0xff]   ;;  %v2148_v26 = vld [vmem:[%s2675_s3 + $0xe0] sm:$0xff]   ;;  %v2149_v27 = vld [vmem:[%s2675_s3 + $0x98] sm:$0xff]   ;;  %s1610_s12 = sshll.u32 %s371_s7, 1  ;;  %s386_s29 = scalar_lea.vmem %s2674_s2, %s1613_s13 }
  0x17   : > { %v2150_v28 = vld [vmem:[%s2675_s3 + $0xd8] sm:$0xff]   ;;  %v1663_v29 = vld.sshfl [vmem:[%s2383_s6] sm:$0x3 pattern:$0x76325410]  ;;  %v2151_v30 = vld [vmem:[%s2675_s3 + $0x90] sm:$0xff]   ;;  %s2468_s17 = scalar_lea.vmem %s2673_s1, %s1610_s12 }
  0x18   : > { %1907 = vmatpush3.bf16.msra.mxu0 %v2129_v5  ;;  %v2152_v31 = vld [vmem:[%s2675_s3 + $0xd0] sm:$0xff]   ;;  %v647_v32 = vshll.u32 %v1663_v29, 16  ;;  %v2153_v33 = vld [vmem:[%s2675_s3 + $0x88] sm:$0xff]   ;;  %v645_v35 = vshrl.u32 %v1663_v29, 16  ;;  %v2155_v37 = vld [vmem:[%s2675_s3 + $0x80] sm:$0xff]   ;;  %s2695_s18 = smov (!%p398_p9, %s2219_s18), 1 }
  0x19   : > { %1927 = vmatpush3.bf16.msra.mxu1 %v2130_v6  ;;  %1908 = vmatprep.subr.bf16.mxu0 %v2237_v1  ;;  %v2154_v34 = vld [vmem:[%s2675_s3 + $0xc8] sm:$0xff]   ;;  %v2156_v38 = vld [vmem:[%s2675_s3 + $0xc0] sm:$0xff]   ;;  %v2157_v40 = vld [vmem:[%s2675_s3 + $0x138] sm:$0xff]   ;;  %s1614_s26 = sshll.u32 %s2689_s19, 1 }
  0x1a   : > { %1928 = vmatprep.subr.bf16.mxu1 %v2237_v1  ;;  %v649_v36 = vrot.slane %v647_v32, 1  ;;  %v741_v41 = vld [vmem:[%s2468_s17] sm:$0x1]  ;;  %v2158_v42 = vld [vmem:[%s2675_s3 + $0x178] sm:$0xff]   ;;  %v2159_v43 = vld [vmem:[%s2675_s3 + $0x130] sm:$0xff]   ;;  %s404_s30 = sadd.s32 %s1614_s26, %s2695_s18 }
  0x1b   : > { %v2160_v44 = vld [vmem:[%s2675_s3 + $0x170] sm:$0xff]   ;;  %v2161_v45 = vld [vmem:[%s2675_s3 + $0x128] sm:$0xff]   ;;  %v2163_v47 = vld [vmem:[%s2675_s3 + $0x120] sm:$0xff]   ;;  %s405_s6 = scalar_lea.vmem %s2677_s5, %s404_s30 }
  0x1c   : > { %1909 = vmatpush3.bf16.msra.mxu0 %v2131_v7  ;;  %v650_v39 = vor.u32 %v649_v36, %v645_v35  ;;  %v2162_v46 = vld [vmem:[%s2675_s3 + $0x168] sm:$0xff]   ;;  %v2164_v48 = vld [vmem:[%s2675_s3 + $0x160] sm:$0xff]   ;;  %v2165_v49 = vld [vmem:[%s2675_s3 + $0x118] sm:$0xff]  }
  0x1d   : > { %1929 = vmatpush3.bf16.msra.mxu1 %v2132_v8  ;;  %1910 = vmatprep.subr.bf16.mxu0 %v2237_v1  ;;  %v2166_v50 = vld [vmem:[%s2675_s3 + $0x158] sm:$0xff]   ;;  %v2167_v51 = vld [vmem:[%s2675_s3 + $0x110] sm:$0xff]   ;;  %v1736_v52 = vld.sshfl [vmem:[%s2468_s17] sm:$0x3 pattern:$0x76325410] }
  0x1e   : > { %1930 = vmatprep.subr.bf16.mxu1 %v2237_v1  ;;  %v2168_v53 = vld [vmem:[%s2675_s3 + $0x150] sm:$0xff]   ;;  %v984_v54 = vshll.u32 %v1736_v52, 16  ;;  %v2169_v55 = vld [vmem:[%s2675_s3 + $0x108] sm:$0xff]   ;;  %v982_v57 = vshrl.u32 %v1736_v52, 16  ;;  %v2171_v58 = vld [vmem:[%s2675_s3 + $0x100] sm:$0xff]  }
  0x1f   : > { %v2170_v56 = vld [vmem:[%s2675_s3 + $0x148] sm:$0xff]   ;;  %v2172_v60 = vld [vmem:[%s2675_s3 + $0x140] sm:$0xff]   ;;  %v2173_v62 = vld [vmem:[%s2675_s3 + $0x1b8] sm:$0xff]  }
  0x20   : > { %1911 = vmatpush3.bf16.msra.mxu0 %v2133_v9  ;;  %v986_v59 = vrot.slane %v984_v54, 1  ;;  %v848_v61 = vld [vmem:[%s2468_s17 + $0x2] sm:$0x1]  ;;  %v2174_v0 = vld [vmem:[%s2675_s3 + $0x1f8] sm:$0xff]   ;;  %v2175_v2 = vld [vmem:[%s2675_s3 + $0x1b0] sm:$0xff]  }
  0x21   : > { %1931 = vmatpush3.bf16.msra.mxu1 %v2134_v10  ;;  %1912 = vmatprep.subr.bf16.mxu0 %v2237_v1  ;;  %v2176_v3 = vld [vmem:[%s2675_s3 + $0x1f0] sm:$0xff]   ;;  %v2177_v4 = vld [vmem:[%s2675_s3 + $0x1a8] sm:$0xff]   ;;  %v2179_v6 = vld [vmem:[%s2675_s3 + $0x1a0] sm:$0xff]  }
  0x22   : > { %1932 = vmatprep.subr.bf16.mxu1 %v2237_v1  ;;  %v987_v63 = vor.u32 %v986_v59, %v982_v57  ;;  %v2178_v5 = vld [vmem:[%s2675_s3 + $0x1e8] sm:$0xff]   ;;  %v2180_v7 = vld [vmem:[%s2675_s3 + $0x1e0] sm:$0xff]   ;;  %v2181_v8 = vld [vmem:[%s2675_s3 + $0x198] sm:$0xff]  }
  0x23   : > { %v2182_v9 = vld [vmem:[%s2675_s3 + $0x1d8] sm:$0xff]   ;;  %v2183_v10 = vld [vmem:[%s2675_s3 + $0x190] sm:$0xff]   ;;  %v2196_v29 = vld [vmem:[%s2675_s3 + $0x200] sm:$0xff]  }
  0x24   : > { %1913 = vmatpush3.bf16.msra.mxu0 %v2135_v11  ;;  %v2184_v11 = vld [vmem:[%s2675_s3 + $0x1d0] sm:$0xff]  }
  0x25   : > { %1933 = vmatpush3.bf16.msra.mxu1 %v2136_v12  ;;  %1914 = vmatprep.subr.bf16.mxu0 %v2237_v1  ;;  %v2185_v12 = vld [vmem:[%s2675_s3 + $0x188] sm:$0xff]  }
  0x26   : > { %1934 = vmatprep.subr.bf16.mxu1 %v2237_v1 }
  0x28   : > { %1915 = vmatpush3.bf16.msra.mxu0 %v2137_v13  ;;  %v2186_v13 = vld [vmem:[%s2675_s3 + $0x1c8] sm:$0xff]  }
  0x29   : > { %1935 = vmatpush3.bf16.msra.mxu1 %v2138_v14  ;;  %1916 = vmatprep.subr.bf16.mxu0 %v2237_v1  ;;  %v2187_v14 = vld [vmem:[%s2675_s3 + $0x180] sm:$0xff]  }
  0x2a   : > { %1936 = vmatprep.subr.bf16.mxu1 %v2237_v1 }
  0x2c   : > { %1917 = vmatpush3.bf16.msra.mxu0 %v2139_v15  ;;  %v2188_v15 = vld [vmem:[%s2675_s3 + $0x1c0] sm:$0xff]  }
  0x2d   : > { %1937 = vmatpush3.bf16.msra.mxu1 %v2140_v16  ;;  %1942 = vmatprep.subr.bf16.mxu0 %v2237_v1  ;;  %v1078_v16 = vld [vmem:[%s386_s29] sm:$0x1] }
  0x2e   : > { %1962 = vmatprep.subr.bf16.mxu1 %v2237_v1 }
  0x2f   : > { %1919 = vmatmul.mubr.bf16.vlgmr.msra.gmra.mxu0 %v424_v17  ;;  %v2189_v17 = vld [vmem:[%s2675_s3 + $0x238] sm:$0xff]  }
  0x30   : > { %1939 = vmatmul.mubr.bf16.vlgmr.msra.gmra.mxu1 %v407_v18  ;;  %1943 = vmatpush3.bf16.msra.mxu0 %v2141_v19  ;;  %v1185_v18 = vld [vmem:[%s386_s29 + $0x2] sm:$0x1]  ;;  %v2190_v19 = vld [vmem:[%s2675_s3 + $0x230] sm:$0xff]  }
  0x31   : > { %1963 = vmatpush3.bf16.msra.mxu1 %v2142_v20  ;;  %1944 = vmatprep.subr.bf16.mxu0 %v2237_v1  ;;  %v2191_v20 = vld [vmem:[%s2675_s3 + $0x228] sm:$0xff]  }
  0x32   : > { %1964 = vmatprep.subr.bf16.mxu1 %v2237_v1  ;;  %1958 = vmatprep.mubr.msk.bf16.mxu0 %vm2238_vm0, %v2237_v1 }
  0x33   : > { %1978 = vmatprep.mubr.msk.bf16.mxu1 %vm2238_vm0, %v2237_v1 }
  0x34   : > { %1945 = vmatpush3.bf16.msra.mxu0 %v2143_v21  ;;  %v2192_v21 = vld [vmem:[%s2675_s3 + $0x220] sm:$0xff]  }
  0x35   : > { %1965 = vmatpush3.bf16.msra.mxu1 %v2144_v22  ;;  %1946 = vmatprep.subr.bf16.mxu0 %v2237_v1  ;;  %v2193_v22 = vld [vmem:[%s2675_s3 + $0x218] sm:$0xff]  }
  0x36   : > { %1966 = vmatprep.subr.bf16.mxu1 %v2237_v1 }
  0x38   : > { %1947 = vmatpush3.bf16.msra.mxu0 %v2145_v23  ;;  %v1809_v23 = vld.sshfl [vmem:[%s386_s29] sm:$0x3 pattern:$0x76325410] }
  0x39   : > { %1967 = vmatpush3.bf16.msra.mxu1 %v2146_v24  ;;  %1948 = vmatprep.subr.bf16.mxu0 %v2237_v1  ;;  %v2194_v24 = vld [vmem:[%s2675_s3 + $0x210] sm:$0xff]  }
  0x3a   : > { %1968 = vmatprep.subr.bf16.mxu1 %v2237_v1 }
  0x3c   : > { %1949 = vmatpush3.bf16.msra.mxu0 %v2147_v25  ;;  %v1321_v25 = vshll.u32 %v1809_v23, 16 }
  0x3d   : > { %1969 = vmatpush3.bf16.msra.mxu1 %v2148_v26  ;;  %1950 = vmatprep.subr.bf16.mxu0 %v2237_v1  ;;  %v2195_v26 = vld [vmem:[%s2675_s3 + $0x208] sm:$0xff]  }
  0x3e   : > { %1970 = vmatprep.subr.bf16.mxu1 %v2237_v1 }
  0x40   : > { %1951 = vmatpush3.bf16.msra.mxu0 %v2149_v27  ;;  %v1319_v27 = vshrl.u32 %v1809_v23, 16 }
  0x41   : > { %1971 = vmatpush3.bf16.msra.mxu1 %v2150_v28  ;;  %1952 = vmatprep.subr.bf16.mxu0 %v2237_v1  ;;  %v1323_v28 = vrot.slane %v1321_v25, 1 }
  0x42   : > { %1972 = vmatprep.subr.bf16.mxu1 %v2237_v1 }
  0x44   : > { %1953 = vmatpush3.bf16.msra.mxu0 %v2151_v30  ;;  %v1324_v30 = vor.u32 %v1323_v28, %v1319_v27 }
  0x45   : > { %1973 = vmatpush3.bf16.msra.mxu1 %v2152_v31  ;;  %1954 = vmatprep.subr.bf16.mxu0 %v2237_v1 }
  0x46   : > { %1974 = vmatprep.subr.bf16.mxu1 %v2237_v1 }
  0x48   : > { %1955 = vmatpush3.bf16.msra.mxu0 %v2153_v33 }
  0x49   : > { %1975 = vmatpush3.bf16.msra.mxu1 %v2154_v34  ;;  %1956 = vmatprep.subr.bf16.mxu0 %v2237_v1 }
  0x4a   : > { %1976 = vmatprep.subr.bf16.mxu1 %v2237_v1 }
  0x4c   : > { %1957 = vmatpush3.bf16.msra.mxu0 %v2155_v37 }
  0x4d   : > { %1977 = vmatpush3.bf16.msra.mxu1 %v2156_v38  ;;  %1982 = vmatprep.subr.bf16.mxu0 %v2237_v1 }
  0x4e   : > { %2002 = vmatprep.subr.bf16.mxu1 %v2237_v1 }
  0x4f   : > { %1959 = vmatmul.mubr.bf16.vlgmr.msra.gmra.mxu0 %v650_v39 }
  0x50   : > { %1983 = vmatpush3.bf16.msra.mxu0 %v2157_v40  ;;  %1979 = vmatmul.mubr.bf16.vlgmr.msra.gmra.mxu1 %v741_v41 }
  0x51   : > { %2003 = vmatpush3.bf16.msra.mxu1 %v2158_v42  ;;  %1984 = vmatprep.subr.bf16.mxu0 %v2237_v1 }
  0x52   : > { %2004 = vmatprep.subr.bf16.mxu1 %v2237_v1  ;;  %1998 = vmatprep.mubr.msk.bf16.mxu0 %vm2238_vm0, %v2237_v1 }
  0x53   : > { %2018 = vmatprep.mubr.msk.bf16.mxu1 %vm2238_vm0, %v2237_v1 }
  0x54   : > { %1985 = vmatpush3.bf16.msra.mxu0 %v2159_v43 }
  0x55   : > { %2005 = vmatpush3.bf16.msra.mxu1 %v2160_v44  ;;  %1986 = vmatprep.subr.bf16.mxu0 %v2237_v1 }
  0x56   : > { %2006 = vmatprep.subr.bf16.mxu1 %v2237_v1 }
  0x58   : > { %1987 = vmatpush3.bf16.msra.mxu0 %v2161_v45 }
  0x59   : > { %2007 = vmatpush3.bf16.msra.mxu1 %v2162_v46  ;;  %1988 = vmatprep.subr.bf16.mxu0 %v2237_v1 }
  0x5a   : > { %2008 = vmatprep.subr.bf16.mxu1 %v2237_v1 }
  0x5c   : > { %1989 = vmatpush3.bf16.msra.mxu0 %v2163_v47 }
  0x5d   : > { %2009 = vmatpush3.bf16.msra.mxu1 %v2164_v48  ;;  %1990 = vmatprep.subr.bf16.mxu0 %v2237_v1 }
  0x5e   : > { %2010 = vmatprep.subr.bf16.mxu1 %v2237_v1 }
  0x60   : > { %1991 = vmatpush3.bf16.msra.mxu0 %v2165_v49 }
  0x61   : > { %2011 = vmatpush3.bf16.msra.mxu1 %v2166_v50  ;;  %1992 = vmatprep.subr.bf16.mxu0 %v2237_v1 }
  0x62   : > { %2012 = vmatprep.subr.bf16.mxu1 %v2237_v1 }
  0x64   : > { %1993 = vmatpush3.bf16.msra.mxu0 %v2167_v51 }
  0x65   : > { %2013 = vmatpush3.bf16.msra.mxu1 %v2168_v53  ;;  %1994 = vmatprep.subr.bf16.mxu0 %v2237_v1 }
  0x66   : > { %2014 = vmatprep.subr.bf16.mxu1 %v2237_v1 }
  0x68   : > { %1995 = vmatpush3.bf16.msra.mxu0 %v2169_v55 }
  0x69   : > { %2015 = vmatpush3.bf16.msra.mxu1 %v2170_v56  ;;  %1996 = vmatprep.subr.bf16.mxu0 %v2237_v1 }
  0x6a   : > { %2016 = vmatprep.subr.bf16.mxu1 %v2237_v1 }
  0x6c   : > { %1997 = vmatpush3.bf16.msra.mxu0 %v2171_v58 }
  0x6d   : > { %2017 = vmatpush3.bf16.msra.mxu1 %v2172_v60  ;;  %2022 = vmatprep.subr.bf16.mxu0 %v2237_v1 }
  0x6e   : > { %2042 = vmatprep.subr.bf16.mxu1 %v2237_v1 }
  0x6f   : > { %1999 = vmatmul.mubr.bf16.vlgmr.msra.gmra.mxu0 %v848_v61 }
  0x70   : > { %2023 = vmatpush3.bf16.msra.mxu0 %v2173_v62  ;;  %2019 = vmatmul.mubr.bf16.vlgmr.msra.gmra.mxu1 %v987_v63 }
  0x71   : > { %2043 = vmatpush3.bf16.msra.mxu1 %v2174_v0  ;;  %2024 = vmatprep.subr.bf16.mxu0 %v2237_v1 }
  0x72   : > { %2044 = vmatprep.subr.bf16.mxu1 %v2237_v1  ;;  %2038 = vmatprep.mubr.msk.bf16.mxu0 %vm2238_vm0, %v2237_v1 }
  0x73   : > { %2058 = vmatprep.mubr.msk.bf16.mxu1 %vm2238_vm0, %v2237_v1 }
  0x74   : > { %2025 = vmatpush3.bf16.msra.mxu0 %v2175_v2 }
  0x75   : > { %2045 = vmatpush3.bf16.msra.mxu1 %v2176_v3  ;;  %2026 = vmatprep.subr.bf16.mxu0 %v2237_v1 }
  0x76   : > { %2046 = vmatprep.subr.bf16.mxu1 %v2237_v1 }
  0x78   : > { %2027 = vmatpush3.bf16.msra.mxu0 %v2177_v4 }
  0x79   : > { %2047 = vmatpush3.bf16.msra.mxu1 %v2178_v5  ;;  %2028 = vmatprep.subr.bf16.mxu0 %v2237_v1 }
  0x7a   : > { %2048 = vmatprep.subr.bf16.mxu1 %v2237_v1 }
  0x7c   : > { %2029 = vmatpush3.bf16.msra.mxu0 %v2179_v6 }
  0x7d   : > { %2049 = vmatpush3.bf16.msra.mxu1 %v2180_v7  ;;  %2030 = vmatprep.subr.bf16.mxu0 %v2237_v1  ;;  %v1818_v7 = vld [vmem:[%s2676_s4] ss:$0 sm:$0xff] }
  0x7e   : > { %2050 = vmatprep.subr.bf16.mxu1 %v2237_v1 }
  0x80   : > { %2031 = vmatpush3.bf16.msra.mxu0 %v2181_v8 }
  0x81   : > { %2051 = vmatpush3.bf16.msra.mxu1 %v2182_v9  ;;  %2032 = vmatprep.subr.bf16.mxu0 %v2237_v1 }
  0x82   : > { %2052 = vmatprep.subr.bf16.mxu1 %v2237_v1 }
  0x84   : > { %2033 = vmatpush3.bf16.msra.mxu0 %v2183_v10 }
  0x85   : > { %2053 = vmatpush3.bf16.msra.mxu1 %v2184_v11  ;;  %2034 = vmatprep.subr.bf16.mxu0 %v2237_v1 }
  0x86   : > { %2054 = vmatprep.subr.bf16.mxu1 %v2237_v1 }
  0x88   : > { %2035 = vmatpush3.bf16.msra.mxu0 %v2185_v12 }
  0x89   : > { %2055 = vmatpush3.bf16.msra.mxu1 %v2186_v13  ;;  %2036 = vmatprep.subr.bf16.mxu0 %v2237_v1 }
  0x8a   : > { %2056 = vmatprep.subr.bf16.mxu1 %v2237_v1 }
  0x8c   : > { %2037 = vmatpush3.bf16.msra.mxu0 %v2187_v14 }
  0x8d   : > { %2057 = vmatpush3.bf16.msra.mxu1 %v2188_v15  ;;  %2062 = vmatprep.subr.bf16.mxu0 %v2237_v1 }
  0x8f   : > { %2039 = vmatmul.mubr.bf16.vlgmr.msra.gmra.mxu0 %v1078_v16 }
  0x90   : > { %2063 = vmatpush3.bf16.msra.mxu0 %v2189_v17  ;;  %2059 = vmatmul.mubr.bf16.vlgmr.msra.gmra.mxu1 %v1185_v18 }
  0x91   : > { %2064 = vmatprep.subr.bf16.mxu0 %v2237_v1  ;;  %2078 = vmatprep.mubr.msk.bf16.mxu0 %vm2238_vm0, %v2237_v1 }
  0x94   : > { %2065 = vmatpush3.bf16.msra.mxu0 %v2190_v19 }
  0x95   : > { %2066 = vmatprep.subr.bf16.mxu0 %v2237_v1 }
  0x98   : > { %2067 = vmatpush3.bf16.msra.mxu0 %v2191_v20 }
  0x99   : > { %2068 = vmatprep.subr.bf16.mxu0 %v2237_v1 }
  0x9c   : > { %2069 = vmatpush3.bf16.msra.mxu0 %v2192_v21 }
  0x9d   : > { %2070 = vmatprep.subr.bf16.mxu0 %v2237_v1 }
  0xa0   : > { %2071 = vmatpush3.bf16.msra.mxu0 %v2193_v22 }
  0xa1   : > { %2072 = vmatprep.subr.bf16.mxu0 %v2237_v1 }
  0xa4   : > { %2073 = vmatpush3.bf16.msra.mxu0 %v2194_v24 }
  0xa5   : > { %2074 = vmatprep.subr.bf16.mxu0 %v2237_v1 }
  0xa8   : > { %2075 = vmatpush3.bf16.msra.mxu0 %v2195_v26 }
  0xa9   : > { %2076 = vmatprep.subr.bf16.mxu0 %v2237_v1 }
  0xac   : > { %2077 = vmatpush3.bf16.msra.mxu0 %v2196_v29 }
  0xaf   : > { %2079 = vmatmul.mubr.bf16.vlgmr.msra.gmra.mxu0 %v1324_v30 }
  0xef   : > { %v524_v31 = vpop.f32.mrf.mxu0 }
  0xf0   : > { %v612_v32 = vpop.f32.mrf.mxu1 }
  0xf1   : > { %v613_v33 = vadd.f32 %v612_v32, %v524_v31  ;;  %v1920_v34 = vpop.f32.mrf.mxu0 }
  0xf2   : > { %v1940_v35 = vpop.f32.mrf.mxu1 }
  0xf3   : > { %v527_v36 = vpop.f32.mrf.mxu0 }
  0xf4   : > { %v615_v37 = vpop.f32.mrf.mxu1 }
  0xf5   : > { %v1921_v38 = vpop.f32.mrf.mxu0 }
  0xf6   : > { %v1941_v39 = vpop.f32.mrf.mxu1 }
 0x10f   : > { %v734_v40 = vpop.f32.mrf.mxu0 }
 0x110   : > { %v740_v41 = vadd.f32 %v734_v40, %v613_v33  ;;  %v841_v42 = vpop.f32.mrf.mxu1 }
 0x111   : > { %v1960_v43 = vpop.f32.mrf.mxu0 }
 0x112   : > { %v847_v44 = vadd.f32 %v841_v42, %v740_v41  ;;  %v1980_v45 = vpop.f32.mrf.mxu1 }
 0x113   : > { %v737_v46 = vpop.f32.mrf.mxu0 }
 0x114   : > { %v844_v1 = vpop.f32.mrf.mxu1 }
 0x115   : > { %v1961_v47 = vpop.f32.mrf.mxu0 }
 0x116   : > { %v1981_v48 = vpop.f32.mrf.mxu1 }
 0x12f   : > { %v948_v49 = vpop.f32.mrf.mxu0 }
 0x130   : > { %v1071_v50 = vpop.f32.mrf.mxu1  ;;  %v954_v2 = vadd.f32 %v948_v49, %v847_v44 }
 0x131   : > { %v2000_v51 = vpop.f32.mrf.mxu0 }
 0x132   : > { %v2020_v52 = vpop.f32.mrf.mxu1  ;;  %v1077_v3 = vadd.f32 %v1071_v50, %v954_v2 }
 0x133   : > { %v951_v53 = vpop.f32.mrf.mxu0 }
 0x134   : > { %v1074_v54 = vpop.f32.mrf.mxu1 }
 0x135   : > { %v2001_v55 = vpop.f32.mrf.mxu0 }
 0x136   : > { %v2021_v56 = vpop.f32.mrf.mxu1 }
 0x14f   : > { %v1178_v57 = vpop.f32.mrf.mxu0 }
 0x150   : > { %v1285_v58 = vpop.f32.mrf.mxu1  ;;  %v1184_v4 = vadd.f32 %v1178_v57, %v1077_v3 }
 0x151   : > { %v2040_v59 = vpop.f32.mrf.mxu0 }
 0x152   : > { %v2060_v60 = vpop.f32.mrf.mxu1  ;;  %v1291_v5 = vadd.f32 %v1285_v58, %v1184_v4 }
 0x153   : > { %v1181_v61 = vpop.f32.mrf.mxu0 }
 0x154   : > { %v1288_v62 = vpop.f32.mrf.mxu1 }
 0x155   : > { %v2041_v63 = vpop.f32.mrf.mxu0 }
 0x156   : > { %v2061_v0 = vpop.f32.mrf.mxu1 }
 0x16f   : > { %v1408_v6 = vpop.f32.mrf.mxu0 }
 0x170   : > { %v1414_v8 = vadd.f32 %v1408_v6, %v1291_v5 }
 0x171   : > { %v2080_v9 = vpop.f32.mrf.mxu0 }
 0x172   : > { %v1422_v10 = vadd.f32 %v1818_v7, %v1414_v8 }
 0x173   : > { %v1411_v11 = vpop.f32.mrf.mxu0 }
 0x174   : > { %v1423_v12 = vmax.f32 %v1422_v10, 0.0 }
 0x175   : > { %v2081_v13 = vpop.f32.mrf.mxu0 }
 0x176   : > { %v1424_v14 = vpack.c.bf16 %v1423_v12, %v1423_v12 }
 0x178   : > { %1425 = vst [vmem:[%s405_s6] sm:$0x1] %v1424_v14 }
 0x179 PF: > { %s15_s22 = sadd.s32 1, %s2235_s22   ;;  %s2678_s18 = smov %s2227_s20 }
 0x17a   : > { %p12_p10 = scmp.ge.s32.totalorder %s15_s22, 6   ;;  %s2679_s19 = smov %s2231_s21 }
 0x17b   : > { %s2680_s20 = smov %s2683_s23  ;;  %s2681_s21 = smov %s2687_s24 }
 0x17c   :  { %14 = sbr.rel (!%p12_p10) target bundleno = 3 (0x3), region = 90 }

// kernel: forward.40
= control target key start
LH: loop header
LB: loop body
LE: loop exit
PB: predicated region body
PF: predicated region fallthrough
CT: control target
= control target key end

     0   :  { %v26_v0 = vlaneseq  ;;  %v167_v2 = vmov 1983009808   ;;  %vm106_vm0 = vcmask 1041408   ;;  %s232_s0 = inlined_call_operand.vmem [shape: bf16[2,2048], index: 0, kind: input, shape index: {}]   ;;  %s233_s1 = inlined_call_operand.vmem [shape: f32[2,2048], index: 1, kind: output, shape index: {}]  }
   0x1   :  { %v8_v1 = vld [vmem:[%s232_s0] sm:$0xff]  ;;  %v24_v3 = vunpack.c.l.s4 %v167_v2  ;;  %v9_v11 = vld [vmem:[%s232_s0 + $0x8] sm:$0xff] }
   0x2   :  { %v182_v4 = vunpack.c.l.bf16 %v8_v1  ;;  %v184_v5 = vunpack.c.h.bf16 %v8_v1  ;;  %v186_v7 = vshrl.u32 %v26_v0, 7  ;;  %v196_v15 = vunpack.c.l.bf16 %v9_v11 }
   0x3   :  { %v25_v6 = vunpack.c.0.s8 %v24_v3  ;;  %v13_v30 = vunpack.c.h.bf16 %v9_v11 }
   0x4   :  { %v14_v8 = vmul.f32 %v182_v4, %v182_v4  ;;  %v15_v9 = vmul.f32 %v184_v5, %v184_v5  ;;  %v16_v24 = vmul.f32 %v196_v15, %v196_v15 }
   0x5   :  { %v28_v10 = vsub.s32 %v25_v6, %v186_v7  ;;  %v17_v39 = vmul.f32 %v13_v30, %v13_v30 }
   0x6   :  { %v22_v12 = vcombine.high %v14_v8, %v14_v8  ;;  %v39_v17 = vcombine.high %v15_v9, %v15_v9  ;;  %v56_v33 = vcombine.high %v16_v24, %v16_v24 }
   0x7   :  { %v29_v13 = vrot.slane %v14_v8, %v28_v10  ;;  %v46_v18 = vrot.slane %v15_v9, %v28_v10  ;;  %v63_v34 = vrot.slane %v16_v24, %v28_v10  ;;  %v73_v47 = vcombine.high %v17_v39, %v17_v39 }
   0x8   :  { %v36_v14 = vrot.slane %v22_v12, %v28_v10  ;;  %v53_v25 = vrot.slane %v39_v17, %v28_v10  ;;  %v70_v40 = vrot.slane %v56_v33, %v28_v10  ;;  %v80_v48 = vrot.slane %v17_v39, %v28_v10 }
   0x9   :  { %v37_v16 = vcombine.high %v29_v13, %v29_v13  ;;  %v107_v20 = vsel %vm106_vm0, %v29_v13, 0.0  ;;  %v54_v26 = vcombine.high %v46_v18, %v46_v18  ;;  %v114_v29 = vsel %vm106_vm0, %v46_v18, 0.0 }
   0xa   :  { %v38_v19 = vcombine.high %v36_v14, %v36_v14  ;;  %v110_v22 = vsel %vm106_vm0, %v36_v14, 0.0  ;;  %v55_v32 = vcombine.high %v53_v25, %v53_v25  ;;  %v118_v37 = vsel %vm106_vm0, %v53_v25, 0.0 }
   0xb   :  { %v108_v21 = vsel %vm106_vm0, %v37_v16, 0.0  ;;  %v116_v35 = vsel %vm106_vm0, %v54_v26, 0.0  ;;  %v71_v41 = vcombine.high %v63_v34, %v63_v34  ;;  %v122_v44 = vsel %vm106_vm0, %v63_v34, 0.0 }
   0xc   :  { %v109_v23 = vadd.f32 %v108_v21, %v107_v20  ;;  %v112_v27 = vsel %vm106_vm0, %v38_v19, 0.0  ;;  %v120_v42 = vsel %vm106_vm0, %v55_v32, 0.0  ;;  %v72_v46 = vcombine.high %v70_v40, %v70_v40 }
   0xd   :  { %v124_v49 = vsel %vm106_vm0, %v71_v41, 0.0  ;;  %v126_v51 = vsel %vm106_vm0, %v70_v40, 0.0  ;;  %v87_v53 = vrot.slane %v73_v47, %v28_v10  ;;  %v88_v54 = vcombine.high %v80_v48, %v80_v48 }
   0xe   :  { %v111_v28 = vadd.f32 %v110_v22, %v109_v23  ;;  %v128_v55 = vsel %vm106_vm0, %v72_v46, 0.0  ;;  %v130_v57 = vsel %vm106_vm0, %v80_v48, 0.0  ;;  %v168_v8 = vmov 269488144  }
   0xf   :  { %v89_v59 = vcombine.high %v87_v53, %v87_v53  ;;  %v132_v60 = vsel %vm106_vm0, %v88_v54, 0.0  ;;  %v134_v62 = vsel %vm106_vm0, %v87_v53, 0.0  ;;  %v144_v9 = vunpack.c.l.s4 %v168_v8 }
  0x10   :  { %v113_v31 = vadd.f32 %v112_v27, %v111_v28 }
  0x11   :  { %v136_v0 = vsel %vm106_vm0, %v89_v59, 0.0  ;;  %v145_v10 = vunpack.c.0.s8 %v144_v9 }
  0x12   :  { %v115_v36 = vadd.f32 %v114_v29, %v113_v31 }
  0x13   :  { %v148_v11 = vsub.s32 %v145_v10, %v186_v7 }
  0x14   :  { %v117_v38 = vadd.f32 %v116_v35, %v115_v36 }
  0x16   :  { %v119_v43 = vadd.f32 %v118_v37, %v117_v38 }
  0x18   :  { %v121_v45 = vadd.f32 %v120_v42, %v119_v43 }
  0x1a   :  { %v123_v50 = vadd.f32 %v122_v44, %v121_v45 }
  0x1c   :  { %v125_v52 = vadd.f32 %v124_v49, %v123_v50 }
  0x1e   :  { %v127_v56 = vadd.f32 %v126_v51, %v125_v52 }
  0x20   :  { %v129_v58 = vadd.f32 %v128_v55, %v127_v56 }
  0x22   :  { %v131_v61 = vadd.f32 %v130_v57, %v129_v58 }
  0x24   :  { %v133_v63 = vadd.f32 %v132_v60, %v131_v61 }
  0x26   :  { %v135_v1 = vadd.f32 %v134_v62, %v133_v63 }
  0x28   :  { %v137_v2 = vadd.f32 %v136_v0, %v135_v1 }
  0x2a   :  { %138 = vadd.xlane.f32.xlu0 %v137_v2 }
  0xb3   :  { %v139_v3 = vpop.xlane.xlu0 %138 }
  0xb4   :  { %v140_v6 = vadd.f32 1e-24, %v139_v3 }
  0xb6   :  { %165 = vrsqrt.f32 %v140_v6 }
  0xc3   :  { %v166_v12 = vpop.eup %165 }
  0xc4   :  { %v149_v13 = vrot.slane %v166_v12, %v148_v11 }
  0xc6   :  { %v151_v14 = vmul.f32 %v149_v13, %v182_v4  ;;  %v152_v16 = vmul.f32 %v149_v13, %v184_v5  ;;  %v153_v17 = vmul.f32 %v149_v13, %v196_v15  ;;  %v154_v18 = vmul.f32 %v149_v13, %v13_v30 }
  0xc8   :  { %155 = vst [vmem:[%s233_s1] sm:$0xff] %v151_v14  ;;  %156 = vst [vmem:[%s233_s1 + $0x8] sm:$0xff] %v152_v16 }
  0xc9   :  { %157 = vst [vmem:[%s233_s1 + $0x10] sm:$0xff] %v153_v17  ;;  %158 = vst [vmem:[%s233_s1 + $0x18] sm:$0xff] %v154_v18 }

// kernel: forward.42
= control target key start
LH: loop header
LB: loop body
LE: loop exit
PB: predicated region body
PF: predicated region fallthrough
CT: control target
= control target key end

     0   :  { %v16_v0 = vlaneseq  ;;  %v64_v2 = vmov 1983009808   ;;  %vm33_vm0 = vcmask 1041408   ;;  %v65_v23 = vmov 269488144   ;;  %s82_s0 = inlined_call_operand.vmem [shape: bf16[2,512], index: 0, kind: input, shape index: {}]   ;;  %s83_s1 = inlined_call_operand.vmem [shape: f32[2,512], index: 1, kind: output, shape index: {}]  }
   0x1   :  { %v8_v1 = vld [vmem:[%s82_s0] sm:$0xf]  ;;  %v14_v3 = vunpack.c.l.s4 %v64_v2  ;;  %v47_v24 = vunpack.c.l.s4 %v65_v23 }
   0x2   :  { %v9_v4 = vunpack.c.l.bf16 %v8_v1  ;;  %v17_v5 = vshrl.u32 %v16_v0, 7 }
   0x3   :  { %v15_v6 = vunpack.c.0.s8 %v14_v3  ;;  %v48_v25 = vunpack.c.0.s8 %v47_v24 }
   0x4   :  { %v10_v7 = vmul.f32 %v9_v4, %v9_v4 }
   0x5   :  { %v18_v8 = vsub.s32 %v15_v6, %v17_v5  ;;  %v51_v26 = vsub.s32 %v48_v25, %v17_v5 }
   0x6   :  { %v12_v9 = vcombine.high %v10_v7, %v10_v7 }
   0x7   :  { %v19_v10 = vrot.slane %v10_v7, %v18_v8 }
   0x8   :  { %v26_v11 = vrot.slane %v12_v9, %v18_v8 }
   0x9   :  { %v27_v12 = vcombine.high %v19_v10, %v19_v10  ;;  %v34_v13 = vsel %vm33_vm0, %v19_v10, 0.0 }
   0xa   :  { %v28_v14 = vcombine.high %v26_v11, %v26_v11  ;;  %v37_v16 = vsel %vm33_vm0, %v26_v11, 0.0 }
   0xb   :  { %v35_v15 = vsel %vm33_vm0, %v27_v12, 0.0 }
   0xc   :  { %v36_v17 = vadd.f32 %v35_v15, %v34_v13  ;;  %v39_v18 = vsel %vm33_vm0, %v28_v14, 0.0 }
   0xe   :  { %v38_v19 = vadd.f32 %v37_v16, %v36_v17 }
  0x10   :  { %v40_v20 = vadd.f32 %v39_v18, %v38_v19 }
  0x12   :  { %41 = vadd.xlane.f32.xlu0 %v40_v20 }
  0x9b   :  { %v42_v21 = vpop.xlane.xlu0 %41 }
  0x9c   :  { %v43_v22 = vadd.f32 1e-24, %v42_v21 }
  0x9e   :  { %62 = vrsqrt.f32 %v43_v22 }
  0xab   :  { %v63_v27 = vpop.eup %62 }
  0xac   :  { %v52_v28 = vrot.slane %v63_v27, %v51_v26 }
  0xae   :  { %v54_v29 = vmul.f32 %v52_v28, %v9_v4 }
  0xb0   :  { %55 = vst [vmem:[%s83_s1] sm:$0xff] %v54_v29 }

// kernel: forward.43
= control target key start
LH: loop header
LB: loop body
LE: loop exit
PB: predicated region body
PF: predicated region fallthrough
CT: control target
= control target key end

     0   :  { %s624_s1 = inlined_call_operand.vmem [shape: bf16[512,128], index: 1, kind: input, shape index: {}]   ;;  %s625_s0 = inlined_call_operand.vmem [shape: bf16[8,512], index: 0, kind: input, shape index: {}]   ;;  %s626_s2 = inlined_call_operand.vmem [shape: f32[1,128], index: 2, kind: input, shape index: {}]   ;;  %s627_s3 = inlined_call_operand.vmem [shape: f32[8,128], index: 3, kind: output, shape index: {}]  }
   0x1   :  { %v460_v0 = vld [vmem:[%s624_s1 + $0x78] sm:$0xff]   ;;  %v464_v4 = vld [vmem:[%s624_s1 + $0x70] sm:$0xff]   ;;  %v468_v8 = vld [vmem:[%s624_s1 + $0x68] sm:$0xff]  }
   0x2   :  { %v461_v1 = vld [vmem:[%s624_s1 + $0xf8] sm:$0xff]   ;;  %416 = vmatprep.subr.bf16.mxu0 %v460_v0  ;;  %v465_v5 = vld [vmem:[%s624_s1 + $0xf0] sm:$0xff]   ;;  %v469_v9 = vld [vmem:[%s624_s1 + $0xe8] sm:$0xff]  }
   0x3   :  { %v462_v2 = vld [vmem:[%s624_s1 + $0x38] sm:$0xff]   ;;  %438 = vmatprep.subr.bf16.mxu1 %v461_v1  ;;  %v466_v6 = vld [vmem:[%s624_s1 + $0x30] sm:$0xff]   ;;  %v470_v10 = vld [vmem:[%s624_s1 + $0x28] sm:$0xff]  }
   0x4   :  { %v463_v3 = vld [vmem:[%s624_s1 + $0xb8] sm:$0xff]   ;;  %417 = vmatpush3.bf16.msra.mxu0 %v462_v2  ;;  %v467_v7 = vld [vmem:[%s624_s1 + $0xb0] sm:$0xff]   ;;  %v471_v11 = vld [vmem:[%s624_s1 + $0xa8] sm:$0xff]  }
   0x5   :  { %439 = vmatpush3.bf16.msra.mxu1 %v463_v3  ;;  %418 = vmatprep.subr.bf16.mxu0 %v464_v4  ;;  %v472_v12 = vld [vmem:[%s624_s1 + $0x60] sm:$0xff]   ;;  %v476_v16 = vld [vmem:[%s624_s1 + $0x58] sm:$0xff]   ;;  %v480_v20 = vld [vmem:[%s624_s1 + $0x50] sm:$0xff]  }
   0x6   :  { %440 = vmatprep.subr.bf16.mxu1 %v465_v5  ;;  %v473_v13 = vld [vmem:[%s624_s1 + $0xe0] sm:$0xff]   ;;  %v477_v17 = vld [vmem:[%s624_s1 + $0xd8] sm:$0xff]   ;;  %v481_v21 = vld [vmem:[%s624_s1 + $0xd0] sm:$0xff]  }
   0x7   :  { %v474_v14 = vld [vmem:[%s624_s1 + $0x20] sm:$0xff]   ;;  %v478_v18 = vld [vmem:[%s624_s1 + $0x18] sm:$0xff]   ;;  %v482_v22 = vld [vmem:[%s624_s1 + $0x10] sm:$0xff]  }
   0x8   :  { %419 = vmatpush3.bf16.msra.mxu0 %v466_v6  ;;  %v475_v15 = vld [vmem:[%s624_s1 + $0xa0] sm:$0xff]   ;;  %v479_v19 = vld [vmem:[%s624_s1 + $0x98] sm:$0xff]   ;;  %v483_v23 = vld [vmem:[%s624_s1 + $0x90] sm:$0xff]  }
   0x9   :  { %441 = vmatpush3.bf16.msra.mxu1 %v467_v7  ;;  %420 = vmatprep.subr.bf16.mxu0 %v468_v8  ;;  %v484_v24 = vld [vmem:[%s624_s1 + $0x48] sm:$0xff]   ;;  %v488_v28 = vld [vmem:[%s624_s1 + $0x40] sm:$0xff]  }
   0xa   :  { %442 = vmatprep.subr.bf16.mxu1 %v469_v9  ;;  %v485_v25 = vld [vmem:[%s624_s1 + $0xc8] sm:$0xff]   ;;  %v489_v29 = vld [vmem:[%s624_s1 + $0xc0] sm:$0xff]  }
   0xb   :  { %v486_v26 = vld [vmem:[%s624_s1 + $0x8] sm:$0xff]   ;;  %v490_v30 = vld [vmem:[%s624_s1] sm:$0xff]  }
   0xc   :  { %421 = vmatpush3.bf16.msra.mxu0 %v470_v10  ;;  %v487_v27 = vld [vmem:[%s624_s1 + $0x88] sm:$0xff]   ;;  %v491_v31 = vld [vmem:[%s624_s1 + $0x80] sm:$0xff]  }
   0xd   :  { %443 = vmatpush3.bf16.msra.mxu1 %v471_v11  ;;  %422 = vmatprep.subr.bf16.mxu0 %v472_v12  ;;  %v15_v32 = vld [vmem:[%s625_s0] sm:$0xff]  ;;  %v16_v33 = vld [vmem:[%s625_s0 + $0x8] sm:$0xff] }
   0xe   :  { %444 = vmatprep.subr.bf16.mxu1 %v473_v13  ;;  %v380_v34 = vcombine.low %v15_v32, %v15_v32  ;;  %v381_v35 = vcombine.high %v15_v32, %v15_v32  ;;  %v382_v36 = vcombine.low %v16_v33, %v16_v33  ;;  %v383_v37 = vcombine.high %v16_v33, %v16_v33  ;;  %v379_v40 = vld [vmem:[%s626_s2] ss:$0 sm:$0xff] }
  0x10   :  { %423 = vmatpush3.bf16.msra.mxu0 %v474_v14  ;;  %326 = vmatprep.mubr.bf16.mxu0 %v381_v35 }
  0x11   :  { %445 = vmatpush3.bf16.msra.mxu1 %v475_v15  ;;  %424 = vmatprep.subr.bf16.mxu0 %v476_v16 }
  0x12   :  { %446 = vmatprep.subr.bf16.mxu1 %v477_v17  ;;  %366 = vmatprep.mubr.bf16.mxu1 %v383_v37 }
  0x14   :  { %425 = vmatpush3.bf16.msra.mxu0 %v478_v18 }
  0x15   :  { %447 = vmatpush3.bf16.msra.mxu1 %v479_v19  ;;  %426 = vmatprep.subr.bf16.mxu0 %v480_v20 }
  0x16   :  { %448 = vmatprep.subr.bf16.mxu1 %v481_v21 }
  0x18   :  { %427 = vmatpush3.bf16.msra.mxu0 %v482_v22 }
  0x19   :  { %449 = vmatpush3.bf16.msra.mxu1 %v483_v23  ;;  %428 = vmatprep.subr.bf16.mxu0 %v484_v24 }
  0x1a   :  { %450 = vmatprep.subr.bf16.mxu1 %v485_v25 }
  0x1c   :  { %429 = vmatpush3.bf16.msra.mxu0 %v486_v26 }
  0x1d   :  { %451 = vmatpush3.bf16.msra.mxu1 %v487_v27  ;;  %430 = vmatprep.subr.bf16.mxu0 %v488_v28 }
  0x1e   :  { %452 = vmatprep.subr.bf16.mxu1 %v489_v29 }
  0x20   :  { %431 = vmatpush3.bf16.msra.mxu0 %v490_v30 }
  0x21   :  { %453 = vmatpush3.bf16.msra.mxu1 %v491_v31 }
  0x23   :  { %327 = vmatmul.mubr.bf16.vlgmr.msra.gmra.mxu0 %v380_v34 }
  0x24   :  { %367 = vmatmul.mubr.bf16.vlgmr.msra.gmra.mxu1 %v382_v36 }
  0xe3   :  { %v432_v38 = vpop.f32.mrf.mxu0 }
  0xe4   :  { %v454_v39 = vpop.f32.mrf.mxu1 }
  0xe5   :  { %v433_v41 = vpop.f32.mrf.mxu0 }
  0xe6   :  { %v455_v42 = vpop.f32.mrf.mxu1  ;;  %v434_v43 = vadd.f32 %v433_v41, %v432_v38 }
  0xe7   :  { %v435_v44 = vpop.f32.mrf.mxu0  ;;  %v456_v47 = vadd.f32 %v455_v42, %v454_v39 }
  0xe8   :  { %v457_v45 = vpop.f32.mrf.mxu1  ;;  %v329_v46 = vadd.f32 %v434_v43, %v379_v40 }
  0xe9   :  { %v436_v48 = vpop.f32.mrf.mxu0 }
  0xea   :  { %v458_v49 = vpop.f32.mrf.mxu1  ;;  %v369_v50 = vadd.f32 %v456_v47, %v329_v46 }
  0xec   :  { %374 = vst [vmem:[%s627_s3] sm:$0xff] %v369_v50 }

// kernel: forward.41
= control target key start
LH: loop header
LB: loop body
LE: loop exit
PB: predicated region body
PF: predicated region fallthrough
CT: control target
= control target key end

     0   :  { %s4140_s12 = smov 0   ;;  %s4142_s13 = smov 0   ;;  %s5058_s0 = inlined_call_operand.vmem [shape: bf16[8,2048], index: 0, kind: input, shape index: {}]   ;;  %s5059_s1 = inlined_call_operand.vmem [shape: bf16[2048,512], index: 1, kind: input, shape index: {}]   ;;  %s5060_s2 = inlined_call_operand.vmem [shape: f32[1,512], index: 2, kind: input, shape index: {}]   ;;  %s5061_s3 = inlined_call_operand.vmem [shape: bf16[8,512], index: 3, kind: output, shape index: {}]  }
   0x1   :  { %s4144_s14 = smov 0   ;;  %s4146_s15 = smov 0  }
   0x2   :  { %s4148_s16 = smov 0  }
   0x3 LB: > { %s22_s17 = sadd.s32 1, %s4114_s15  ;;  %p65_p1 = scmp.ne.s32.totalorder %s4106_s13, %s4102_s12  ;;  %s4118_s16 = sphi %s4148_s16, %s13_s16   ;;  %s4114_s15 = sphi %s4146_s15, %s5065_s15   ;;  %s4110_s14 = sphi %s4144_s14, %s5064_s14   ;;  %s4106_s13 = sphi %s4142_s13, %s5063_s13   ;;  %s4102_s12 = sphi %s4140_s12, %s5062_s12  }
   0x4   : > { %p23_p0 = scmp.ge.s32.totalorder %s22_s17, 2  ;;  %p66_p2 = scmp.eq.s32.totalorder %s4118_s16, 0 }
   0x5   : > { %s58_s19 = sadd.s32 1, %s4106_s13  ;;  %p3354_p5 = scmp.ge.s32.totalorder %s4118_s16, 2 }
   0x6   : > { %s5067_s17 = smov (%p23_p0, %s22_s17), 0  ;;  %p67_p3 = por %p66_p2, %p65_p1 }
   0x7   : > { %s55_s18 = ssub.s32 %s4114_s15, %s5067_s17  ;;  %153 = sbr.rel (%p3354_p5) target bundleno = 144 (0x90), region = 20 }
   0x8   : > { %p56_p4 = scmp.eq.s32.totalorder %s55_s18, 0 }
   0xa   : > { %s4175_s20 = scalar_select %p56_p4, %s4106_s13, %s58_s19  }
   0xc   : > { %156 = sbr.rel (!%p67_p3) target bundleno = 144 (0x90), region = 24  ;;  %s158_s21 = sand.u32 (%p67_p3), 1, %s4106_s13  }
   0xd   : > { %s3638_s22 = sshll.u32 (%p67_p3), %s4114_s15, 3  ;;  %s3355_s23 = sshll.u32 (%p67_p3), %s158_s21, 11 }
   0xe   : > { %s4183_s26 = scalar_lea.vmem (%p67_p3), %s5059_s1, %s3638_s22  ;;  %s4188_s27 = scalar_lea.vmem (%p67_p3), [#allocation2], %s3355_s23 }
   0xf   : > { %v702_v0 = vld [vmem:[%s4183_s26] sm:$0xff] (%p67_p3)  ;;  %v704_v1 = vld [vmem:[%s4183_s26 + $0x10] sm:$0xff] (%p67_p3) }
  0x10   : > { %v706_v2 = vld [vmem:[%s4183_s26 + $0x20] sm:$0xff] (%p67_p3)  ;;  %703 = vst [vmem:[%s4188_s27] sm:$0xff] (%p67_p3), %v702_v0  ;;  %705 = vst [vmem:[%s4188_s27 + $0x8] sm:$0xff] (%p67_p3), %v704_v1  ;;  %v708_v3 = vld [vmem:[%s4183_s26 + $0x30] sm:$0xff] (%p67_p3) }
  0x11   : > { %707 = vst [vmem:[%s4188_s27 + $0x10] sm:$0xff] %v706_v2  ;;  %v710_v4 = vld [vmem:[%s4183_s26 + $0x40] sm:$0xff]  ;;  %v712_v5 = vld [vmem:[%s4183_s26 + $0x50] sm:$0xff]  ;;  %709 = vst [vmem:[%s4188_s27 + $0x18] sm:$0xff] %v708_v3 }
  0x12   : > { %711 = vst [vmem:[%s4188_s27 + $0x20] sm:$0xff] %v710_v4  ;;  %713 = vst [vmem:[%s4188_s27 + $0x28] sm:$0xff] %v712_v5  ;;  %v714_v6 = vld [vmem:[%s4183_s26 + $0x60] sm:$0xff]  ;;  %v716_v7 = vld [vmem:[%s4183_s26 + $0x70] sm:$0xff] }
  0x13   : > { %v718_v8 = vld [vmem:[%s4183_s26 + $0x80] sm:$0xff]  ;;  %715 = vst [vmem:[%s4188_s27 + $0x30] sm:$0xff] %v714_v6  ;;  %717 = vst [vmem:[%s4188_s27 + $0x38] sm:$0xff] %v716_v7  ;;  %v720_v9 = vld [vmem:[%s4183_s26 + $0x90] sm:$0xff] }
  0x14   : > { %719 = vst [vmem:[%s4188_s27 + $0x40] sm:$0xff] %v718_v8  ;;  %v722_v10 = vld [vmem:[%s4183_s26 + $0xa0] sm:$0xff]  ;;  %v724_v11 = vld [vmem:[%s4183_s26 + $0xb0] sm:$0xff]  ;;  %721 = vst [vmem:[%s4188_s27 + $0x48] sm:$0xff] %v720_v9 }
  0x15   : > { %723 = vst [vmem:[%s4188_s27 + $0x50] sm:$0xff] %v722_v10  ;;  %725 = vst [vmem:[%s4188_s27 + $0x58] sm:$0xff] %v724_v11  ;;  %v726_v12 = vld [vmem:[%s4183_s26 + $0xc0] sm:$0xff]  ;;  %v728_v13 = vld [vmem:[%s4183_s26 + $0xd0] sm:$0xff] }
  0x16   : > { %v730_v14 = vld [vmem:[%s4183_s26 + $0xe0] sm:$0xff]  ;;  %727 = vst [vmem:[%s4188_s27 + $0x60] sm:$0xff] %v726_v12  ;;  %729 = vst [vmem:[%s4188_s27 + $0x68] sm:$0xff] %v728_v13  ;;  %v732_v15 = vld [vmem:[%s4183_s26 + $0xf0] sm:$0xff] }
  0x17   : > { %731 = vst [vmem:[%s4188_s27 + $0x70] sm:$0xff] %v730_v14  ;;  %v734_v16 = vld [vmem:[%s4183_s26 + $0x100] sm:$0xff]  ;;  %v736_v17 = vld [vmem:[%s4183_s26 + $0x110] sm:$0xff]  ;;  %733 = vst [vmem:[%s4188_s27 + $0x78] sm:$0xff] %v732_v15 }
  0x18   : > { %735 = vst [vmem:[%s4188_s27 + $0x80] sm:$0xff] %v734_v16  ;;  %737 = vst [vmem:[%s4188_s27 + $0x88] sm:$0xff] %v736_v17  ;;  %v738_v18 = vld [vmem:[%s4183_s26 + $0x120] sm:$0xff]  ;;  %v740_v19 = vld [vmem:[%s4183_s26 + $0x130] sm:$0xff] }
  0x19   : > { %v742_v20 = vld [vmem:[%s4183_s26 + $0x140] sm:$0xff]  ;;  %739 = vst [vmem:[%s4188_s27 + $0x90] sm:$0xff] %v738_v18  ;;  %741 = vst [vmem:[%s4188_s27 + $0x98] sm:$0xff] %v740_v19  ;;  %v744_v21 = vld [vmem:[%s4183_s26 + $0x150] sm:$0xff] }
  0x1a   : > { %743 = vst [vmem:[%s4188_s27 + $0xa0] sm:$0xff] %v742_v20  ;;  %v746_v22 = vld [vmem:[%s4183_s26 + $0x160] sm:$0xff]  ;;  %v748_v23 = vld [vmem:[%s4183_s26 + $0x170] sm:$0xff]  ;;  %745 = vst [vmem:[%s4188_s27 + $0xa8] sm:$0xff] %v744_v21 }
  0x1b   : > { %747 = vst [vmem:[%s4188_s27 + $0xb0] sm:$0xff] %v746_v22  ;;  %749 = vst [vmem:[%s4188_s27 + $0xb8] sm:$0xff] %v748_v23  ;;  %v750_v24 = vld [vmem:[%s4183_s26 + $0x180] sm:$0xff]  ;;  %v752_v25 = vld [vmem:[%s4183_s26 + $0x190] sm:$0xff] }
  0x1c   : > { %v754_v26 = vld [vmem:[%s4183_s26 + $0x1a0] sm:$0xff]  ;;  %751 = vst [vmem:[%s4188_s27 + $0xc0] sm:$0xff] %v750_v24  ;;  %753 = vst [vmem:[%s4188_s27 + $0xc8] sm:$0xff] %v752_v25  ;;  %v756_v27 = vld [vmem:[%s4183_s26 + $0x1b0] sm:$0xff] }
  0x1d   : > { %755 = vst [vmem:[%s4188_s27 + $0xd0] sm:$0xff] %v754_v26  ;;  %v758_v28 = vld [vmem:[%s4183_s26 + $0x1c0] sm:$0xff]  ;;  %v760_v29 = vld [vmem:[%s4183_s26 + $0x1d0] sm:$0xff]  ;;  %757 = vst [vmem:[%s4188_s27 + $0xd8] sm:$0xff] %v756_v27 }
  0x1e   : > { %759 = vst [vmem:[%s4188_s27 + $0xe0] sm:$0xff] %v758_v28  ;;  %761 = vst [vmem:[%s4188_s27 + $0xe8] sm:$0xff] %v760_v29  ;;  %v762_v30 = vld [vmem:[%s4183_s26 + $0x1e0] sm:$0xff]  ;;  %v764_v31 = vld [vmem:[%s4183_s26 + $0x1f0] sm:$0xff] }
  0x1f   : > { %v766_v32 = vld [vmem:[%s4183_s26 + $0x200] sm:$0xff]  ;;  %763 = vst [vmem:[%s4188_s27 + $0xf0] sm:$0xff] %v762_v30  ;;  %765 = vst [vmem:[%s4188_s27 + $0xf8] sm:$0xff] %v764_v31  ;;  %v768_v33 = vld [vmem:[%s4183_s26 + $0x210] sm:$0xff] }
  0x20   : > { %767 = vst [vmem:[%s4188_s27 + $0x100] sm:$0xff] %v766_v32  ;;  %v770_v34 = vld [vmem:[%s4183_s26 + $0x220] sm:$0xff]  ;;  %v772_v35 = vld [vmem:[%s4183_s26 + $0x230] sm:$0xff]  ;;  %769 = vst [vmem:[%s4188_s27 + $0x108] sm:$0xff] %v768_v33 }
  0x21   : > { %771 = vst [vmem:[%s4188_s27 + $0x110] sm:$0xff] %v770_v34  ;;  %773 = vst [vmem:[%s4188_s27 + $0x118] sm:$0xff] %v772_v35  ;;  %v774_v36 = vld [vmem:[%s4183_s26 + $0x240] sm:$0xff]  ;;  %v776_v37 = vld [vmem:[%s4183_s26 + $0x250] sm:$0xff] }
  0x22   : > { %v778_v38 = vld [vmem:[%s4183_s26 + $0x260] sm:$0xff]  ;;  %775 = vst [vmem:[%s4188_s27 + $0x120] sm:$0xff] %v774_v36  ;;  %777 = vst [vmem:[%s4188_s27 + $0x128] sm:$0xff] %v776_v37  ;;  %v780_v39 = vld [vmem:[%s4183_s26 + $0x270] sm:$0xff] }
  0x23   : > { %779 = vst [vmem:[%s4188_s27 + $0x130] sm:$0xff] %v778_v38  ;;  %v782_v40 = vld [vmem:[%s4183_s26 + $0x280] sm:$0xff]  ;;  %v784_v41 = vld [vmem:[%s4183_s26 + $0x290] sm:$0xff]  ;;  %781 = vst [vmem:[%s4188_s27 + $0x138] sm:$0xff] %v780_v39 }
  0x24   : > { %783 = vst [vmem:[%s4188_s27 + $0x140] sm:$0xff] %v782_v40  ;;  %785 = vst [vmem:[%s4188_s27 + $0x148] sm:$0xff] %v784_v41  ;;  %v786_v42 = vld [vmem:[%s4183_s26 + $0x2a0] sm:$0xff]  ;;  %v788_v43 = vld [vmem:[%s4183_s26 + $0x2b0] sm:$0xff] }
  0x25   : > { %v790_v44 = vld [vmem:[%s4183_s26 + $0x2c0] sm:$0xff]  ;;  %787 = vst [vmem:[%s4188_s27 + $0x150] sm:$0xff] %v786_v42  ;;  %789 = vst [vmem:[%s4188_s27 + $0x158] sm:$0xff] %v788_v43  ;;  %v792_v45 = vld [vmem:[%s4183_s26 + $0x2d0] sm:$0xff] }
  0x26   : > { %791 = vst [vmem:[%s4188_s27 + $0x160] sm:$0xff] %v790_v44  ;;  %v794_v46 = vld [vmem:[%s4183_s26 + $0x2e0] sm:$0xff]  ;;  %v796_v47 = vld [vmem:[%s4183_s26 + $0x2f0] sm:$0xff]  ;;  %793 = vst [vmem:[%s4188_s27 + $0x168] sm:$0xff] %v792_v45 }
  0x27   : > { %795 = vst [vmem:[%s4188_s27 + $0x170] sm:$0xff] %v794_v46  ;;  %797 = vst [vmem:[%s4188_s27 + $0x178] sm:$0xff] %v796_v47  ;;  %v798_v48 = vld [vmem:[%s4183_s26 + $0x300] sm:$0xff]  ;;  %v800_v49 = vld [vmem:[%s4183_s26 + $0x310] sm:$0xff] }
  0x28   : > { %v802_v50 = vld [vmem:[%s4183_s26 + $0x320] sm:$0xff]  ;;  %799 = vst [vmem:[%s4188_s27 + $0x180] sm:$0xff] %v798_v48  ;;  %801 = vst [vmem:[%s4188_s27 + $0x188] sm:$0xff] %v800_v49  ;;  %v804_v51 = vld [vmem:[%s4183_s26 + $0x330] sm:$0xff] }
  0x29   : > { %803 = vst [vmem:[%s4188_s27 + $0x190] sm:$0xff] %v802_v50  ;;  %v806_v52 = vld [vmem:[%s4183_s26 + $0x340] sm:$0xff]  ;;  %v808_v53 = vld [vmem:[%s4183_s26 + $0x350] sm:$0xff]  ;;  %805 = vst [vmem:[%s4188_s27 + $0x198] sm:$0xff] %v804_v51 }
  0x2a   : > { %807 = vst [vmem:[%s4188_s27 + $0x1a0] sm:$0xff] %v806_v52  ;;  %809 = vst [vmem:[%s4188_s27 + $0x1a8] sm:$0xff] %v808_v53  ;;  %v810_v54 = vld [vmem:[%s4183_s26 + $0x360] sm:$0xff]  ;;  %v812_v55 = vld [vmem:[%s4183_s26 + $0x370] sm:$0xff] }
  0x2b   : > { %v814_v56 = vld [vmem:[%s4183_s26 + $0x380] sm:$0xff]  ;;  %811 = vst [vmem:[%s4188_s27 + $0x1b0] sm:$0xff] %v810_v54  ;;  %813 = vst [vmem:[%s4188_s27 + $0x1b8] sm:$0xff] %v812_v55  ;;  %v816_v57 = vld [vmem:[%s4183_s26 + $0x390] sm:$0xff] }
  0x2c   : > { %815 = vst [vmem:[%s4188_s27 + $0x1c0] sm:$0xff] %v814_v56  ;;  %v818_v58 = vld [vmem:[%s4183_s26 + $0x3a0] sm:$0xff]  ;;  %v820_v59 = vld [vmem:[%s4183_s26 + $0x3b0] sm:$0xff]  ;;  %817 = vst [vmem:[%s4188_s27 + $0x1c8] sm:$0xff] %v816_v57 }
  0x2d   : > { %819 = vst [vmem:[%s4188_s27 + $0x1d0] sm:$0xff] %v818_v58  ;;  %821 = vst [vmem:[%s4188_s27 + $0x1d8] sm:$0xff] %v820_v59  ;;  %v822_v60 = vld [vmem:[%s4183_s26 + $0x3c0] sm:$0xff]  ;;  %v824_v61 = vld [vmem:[%s4183_s26 + $0x3d0] sm:$0xff] }
  0x2e   : > { %v826_v62 = vld [vmem:[%s4183_s26 + $0x3e0] sm:$0xff]  ;;  %823 = vst [vmem:[%s4188_s27 + $0x1e0] sm:$0xff] %v822_v60  ;;  %825 = vst [vmem:[%s4188_s27 + $0x1e8] sm:$0xff] %v824_v61  ;;  %v828_v63 = vld [vmem:[%s4183_s26 + $0x3f0] sm:$0xff] }
  0x2f   : > { %827 = vst [vmem:[%s4188_s27 + $0x1f0] sm:$0xff] %v826_v62  ;;  %v830_v0 = vld [vmem:[%s4183_s26 + $0x400] sm:$0xff]  ;;  %v832_v1 = vld [vmem:[%s4183_s26 + $0x410] sm:$0xff]  ;;  %829 = vst [vmem:[%s4188_s27 + $0x1f8] sm:$0xff] %v828_v63 }
  0x30   : > { %831 = vst [vmem:[%s4188_s27 + $0x200] sm:$0xff] %v830_v0  ;;  %833 = vst [vmem:[%s4188_s27 + $0x208] sm:$0xff] %v832_v1  ;;  %v834_v2 = vld [vmem:[%s4183_s26 + $0x420] sm:$0xff]  ;;  %v836_v3 = vld [vmem:[%s4183_s26 + $0x430] sm:$0xff] }
  0x31   : > { %v838_v4 = vld [vmem:[%s4183_s26 + $0x440] sm:$0xff]  ;;  %835 = vst [vmem:[%s4188_s27 + $0x210] sm:$0xff] %v834_v2  ;;  %837 = vst [vmem:[%s4188_s27 + $0x218] sm:$0xff] %v836_v3  ;;  %v840_v5 = vld [vmem:[%s4183_s26 + $0x450] sm:$0xff] }
  0x32   : > { %839 = vst [vmem:[%s4188_s27 + $0x220] sm:$0xff] %v838_v4  ;;  %v842_v6 = vld [vmem:[%s4183_s26 + $0x460] sm:$0xff]  ;;  %v844_v7 = vld [vmem:[%s4183_s26 + $0x470] sm:$0xff]  ;;  %841 = vst [vmem:[%s4188_s27 + $0x228] sm:$0xff] %v840_v5 }
  0x33   : > { %843 = vst [vmem:[%s4188_s27 + $0x230] sm:$0xff] %v842_v6  ;;  %845 = vst [vmem:[%s4188_s27 + $0x238] sm:$0xff] %v844_v7  ;;  %v846_v8 = vld [vmem:[%s4183_s26 + $0x480] sm:$0xff]  ;;  %v848_v9 = vld [vmem:[%s4183_s26 + $0x490] sm:$0xff] }
  0x34   : > { %v850_v10 = vld [vmem:[%s4183_s26 + $0x4a0] sm:$0xff]  ;;  %847 = vst [vmem:[%s4188_s27 + $0x240] sm:$0xff] %v846_v8  ;;  %849 = vst [vmem:[%s4188_s27 + $0x248] sm:$0xff] %v848_v9  ;;  %v852_v11 = vld [vmem:[%s4183_s26 + $0x4b0] sm:$0xff] }
  0x35   : > { %851 = vst [vmem:[%s4188_s27 + $0x250] sm:$0xff] %v850_v10  ;;  %v854_v12 = vld [vmem:[%s4183_s26 + $0x4c0] sm:$0xff]  ;;  %v856_v13 = vld [vmem:[%s4183_s26 + $0x4d0] sm:$0xff]  ;;  %853 = vst [vmem:[%s4188_s27 + $0x258] sm:$0xff] %v852_v11 }
  0x36   : > { %855 = vst [vmem:[%s4188_s27 + $0x260] sm:$0xff] %v854_v12  ;;  %857 = vst [vmem:[%s4188_s27 + $0x268] sm:$0xff] %v856_v13  ;;  %v858_v14 = vld [vmem:[%s4183_s26 + $0x4e0] sm:$0xff]  ;;  %v860_v15 = vld [vmem:[%s4183_s26 + $0x4f0] sm:$0xff] }
  0x37   : > { %v862_v16 = vld [vmem:[%s4183_s26 + $0x500] sm:$0xff]  ;;  %859 = vst [vmem:[%s4188_s27 + $0x270] sm:$0xff] %v858_v14  ;;  %861 = vst [vmem:[%s4188_s27 + $0x278] sm:$0xff] %v860_v15  ;;  %v864_v17 = vld [vmem:[%s4183_s26 + $0x510] sm:$0xff] }
  0x38   : > { %863 = vst [vmem:[%s4188_s27 + $0x280] sm:$0xff] %v862_v16  ;;  %v866_v18 = vld [vmem:[%s4183_s26 + $0x520] sm:$0xff]  ;;  %v868_v19 = vld [vmem:[%s4183_s26 + $0x530] sm:$0xff]  ;;  %865 = vst [vmem:[%s4188_s27 + $0x288] sm:$0xff] %v864_v17 }
  0x39   : > { %867 = vst [vmem:[%s4188_s27 + $0x290] sm:$0xff] %v866_v18  ;;  %869 = vst [vmem:[%s4188_s27 + $0x298] sm:$0xff] %v868_v19  ;;  %v870_v20 = vld [vmem:[%s4183_s26 + $0x540] sm:$0xff]  ;;  %v872_v21 = vld [vmem:[%s4183_s26 + $0x550] sm:$0xff] }
  0x3a   : > { %v874_v22 = vld [vmem:[%s4183_s26 + $0x560] sm:$0xff]  ;;  %871 = vst [vmem:[%s4188_s27 + $0x2a0] sm:$0xff] %v870_v20  ;;  %873 = vst [vmem:[%s4188_s27 + $0x2a8] sm:$0xff] %v872_v21  ;;  %v876_v23 = vld [vmem:[%s4183_s26 + $0x570] sm:$0xff] }
  0x3b   : > { %875 = vst [vmem:[%s4188_s27 + $0x2b0] sm:$0xff] %v874_v22  ;;  %v878_v24 = vld [vmem:[%s4183_s26 + $0x580] sm:$0xff]  ;;  %v880_v25 = vld [vmem:[%s4183_s26 + $0x590] sm:$0xff]  ;;  %877 = vst [vmem:[%s4188_s27 + $0x2b8] sm:$0xff] %v876_v23 }
  0x3c   : > { %879 = vst [vmem:[%s4188_s27 + $0x2c0] sm:$0xff] %v878_v24  ;;  %881 = vst [vmem:[%s4188_s27 + $0x2c8] sm:$0xff] %v880_v25  ;;  %v882_v26 = vld [vmem:[%s4183_s26 + $0x5a0] sm:$0xff]  ;;  %v884_v27 = vld [vmem:[%s4183_s26 + $0x5b0] sm:$0xff] }
  0x3d   : > { %v886_v28 = vld [vmem:[%s4183_s26 + $0x5c0] sm:$0xff]  ;;  %883 = vst [vmem:[%s4188_s27 + $0x2d0] sm:$0xff] %v882_v26  ;;  %885 = vst [vmem:[%s4188_s27 + $0x2d8] sm:$0xff] %v884_v27  ;;  %v888_v29 = vld [vmem:[%s4183_s26 + $0x5d0] sm:$0xff] }
  0x3e   : > { %887 = vst [vmem:[%s4188_s27 + $0x2e0] sm:$0xff] %v886_v28  ;;  %v890_v30 = vld [vmem:[%s4183_s26 + $0x5e0] sm:$0xff]  ;;  %v892_v31 = vld [vmem:[%s4183_s26 + $0x5f0] sm:$0xff]  ;;  %889 = vst [vmem:[%s4188_s27 + $0x2e8] sm:$0xff] %v888_v29 }
  0x3f   : > { %891 = vst [vmem:[%s4188_s27 + $0x2f0] sm:$0xff] %v890_v30  ;;  %893 = vst [vmem:[%s4188_s27 + $0x2f8] sm:$0xff] %v892_v31  ;;  %v894_v32 = vld [vmem:[%s4183_s26 + $0x600] sm:$0xff]  ;;  %v896_v33 = vld [vmem:[%s4183_s26 + $0x610] sm:$0xff] }
  0x40   : > { %v898_v34 = vld [vmem:[%s4183_s26 + $0x620] sm:$0xff]  ;;  %895 = vst [vmem:[%s4188_s27 + $0x300] sm:$0xff] %v894_v32  ;;  %897 = vst [vmem:[%s4188_s27 + $0x308] sm:$0xff] %v896_v33  ;;  %v900_v35 = vld [vmem:[%s4183_s26 + $0x630] sm:$0xff] }
  0x41   : > { %899 = vst [vmem:[%s4188_s27 + $0x310] sm:$0xff] %v898_v34  ;;  %v902_v36 = vld [vmem:[%s4183_s26 + $0x640] sm:$0xff]  ;;  %v904_v37 = vld [vmem:[%s4183_s26 + $0x650] sm:$0xff]  ;;  %901 = vst [vmem:[%s4188_s27 + $0x318] sm:$0xff] %v900_v35 }
  0x42   : > { %903 = vst [vmem:[%s4188_s27 + $0x320] sm:$0xff] %v902_v36  ;;  %905 = vst [vmem:[%s4188_s27 + $0x328] sm:$0xff] %v904_v37  ;;  %v906_v38 = vld [vmem:[%s4183_s26 + $0x660] sm:$0xff]  ;;  %v908_v39 = vld [vmem:[%s4183_s26 + $0x670] sm:$0xff] }
  0x43   : > { %v910_v40 = vld [vmem:[%s4183_s26 + $0x680] sm:$0xff]  ;;  %907 = vst [vmem:[%s4188_s27 + $0x330] sm:$0xff] %v906_v38  ;;  %909 = vst [vmem:[%s4188_s27 + $0x338] sm:$0xff] %v908_v39  ;;  %v912_v41 = vld [vmem:[%s4183_s26 + $0x690] sm:$0xff] }
  0x44   : > { %911 = vst [vmem:[%s4188_s27 + $0x340] sm:$0xff] %v910_v40  ;;  %v914_v42 = vld [vmem:[%s4183_s26 + $0x6a0] sm:$0xff]  ;;  %v916_v43 = vld [vmem:[%s4183_s26 + $0x6b0] sm:$0xff]  ;;  %913 = vst [vmem:[%s4188_s27 + $0x348] sm:$0xff] %v912_v41 }
  0x45   : > { %915 = vst [vmem:[%s4188_s27 + $0x350] sm:$0xff] %v914_v42  ;;  %917 = vst [vmem:[%s4188_s27 + $0x358] sm:$0xff] %v916_v43  ;;  %v918_v44 = vld [vmem:[%s4183_s26 + $0x6c0] sm:$0xff]  ;;  %v920_v45 = vld [vmem:[%s4183_s26 + $0x6d0] sm:$0xff] }
  0x46   : > { %v922_v46 = vld [vmem:[%s4183_s26 + $0x6e0] sm:$0xff]  ;;  %919 = vst [vmem:[%s4188_s27 + $0x360] sm:$0xff] %v918_v44  ;;  %921 = vst [vmem:[%s4188_s27 + $0x368] sm:$0xff] %v920_v45  ;;  %v924_v47 = vld [vmem:[%s4183_s26 + $0x6f0] sm:$0xff] }
  0x47   : > { %923 = vst [vmem:[%s4188_s27 + $0x370] sm:$0xff] %v922_v46  ;;  %v926_v48 = vld [vmem:[%s4183_s26 + $0x700] sm:$0xff]  ;;  %v928_v49 = vld [vmem:[%s4183_s26 + $0x710] sm:$0xff]  ;;  %925 = vst [vmem:[%s4188_s27 + $0x378] sm:$0xff] %v924_v47 }
  0x48   : > { %927 = vst [vmem:[%s4188_s27 + $0x380] sm:$0xff] %v926_v48  ;;  %929 = vst [vmem:[%s4188_s27 + $0x388] sm:$0xff] %v928_v49  ;;  %v930_v50 = vld [vmem:[%s4183_s26 + $0x720] sm:$0xff]  ;;  %v932_v51 = vld [vmem:[%s4183_s26 + $0x730] sm:$0xff] }
  0x49   : > { %v934_v52 = vld [vmem:[%s4183_s26 + $0x740] sm:$0xff]  ;;  %931 = vst [vmem:[%s4188_s27 + $0x390] sm:$0xff] %v930_v50  ;;  %933 = vst [vmem:[%s4188_s27 + $0x398] sm:$0xff] %v932_v51  ;;  %v936_v53 = vld [vmem:[%s4183_s26 + $0x750] sm:$0xff] }
  0x4a   : > { %935 = vst [vmem:[%s4188_s27 + $0x3a0] sm:$0xff] %v934_v52  ;;  %v938_v54 = vld [vmem:[%s4183_s26 + $0x760] sm:$0xff]  ;;  %v940_v55 = vld [vmem:[%s4183_s26 + $0x770] sm:$0xff]  ;;  %937 = vst [vmem:[%s4188_s27 + $0x3a8] sm:$0xff] %v936_v53 }
  0x4b   : > { %939 = vst [vmem:[%s4188_s27 + $0x3b0] sm:$0xff] %v938_v54  ;;  %941 = vst [vmem:[%s4188_s27 + $0x3b8] sm:$0xff] %v940_v55  ;;  %v942_v56 = vld [vmem:[%s4183_s26 + $0x780] sm:$0xff]  ;;  %v944_v57 = vld [vmem:[%s4183_s26 + $0x790] sm:$0xff] }
  0x4c   : > { %v946_v58 = vld [vmem:[%s4183_s26 + $0x7a0] sm:$0xff]  ;;  %943 = vst [vmem:[%s4188_s27 + $0x3c0] sm:$0xff] %v942_v56  ;;  %945 = vst [vmem:[%s4188_s27 + $0x3c8] sm:$0xff] %v944_v57  ;;  %v948_v59 = vld [vmem:[%s4183_s26 + $0x7b0] sm:$0xff] }
  0x4d   : > { %947 = vst [vmem:[%s4188_s27 + $0x3d0] sm:$0xff] %v946_v58  ;;  %v950_v60 = vld [vmem:[%s4183_s26 + $0x7c0] sm:$0xff]  ;;  %v952_v61 = vld [vmem:[%s4183_s26 + $0x7d0] sm:$0xff]  ;;  %949 = vst [vmem:[%s4188_s27 + $0x3d8] sm:$0xff] %v948_v59 }
  0x4e   : > { %951 = vst [vmem:[%s4188_s27 + $0x3e0] sm:$0xff] %v950_v60  ;;  %953 = vst [vmem:[%s4188_s27 + $0x3e8] sm:$0xff] %v952_v61  ;;  %v954_v62 = vld [vmem:[%s4183_s26 + $0x7e0] sm:$0xff]  ;;  %v956_v63 = vld [vmem:[%s4183_s26 + $0x7f0] sm:$0xff] }
  0x4f   : > { %v958_v0 = vld [vmem:[%s4183_s26 + $0x800] sm:$0xff]  ;;  %955 = vst [vmem:[%s4188_s27 + $0x3f0] sm:$0xff] %v954_v62  ;;  %957 = vst [vmem:[%s4188_s27 + $0x3f8] sm:$0xff] %v956_v63  ;;  %v960_v1 = vld [vmem:[%s4183_s26 + $0x810] sm:$0xff] }
  0x50   : > { %959 = vst [vmem:[%s4188_s27 + $0x400] sm:$0xff] %v958_v0  ;;  %v962_v2 = vld [vmem:[%s4183_s26 + $0x820] sm:$0xff]  ;;  %v964_v3 = vld [vmem:[%s4183_s26 + $0x830] sm:$0xff]  ;;  %961 = vst [vmem:[%s4188_s27 + $0x408] sm:$0xff] %v960_v1 }
  0x51   : > { %963 = vst [vmem:[%s4188_s27 + $0x410] sm:$0xff] %v962_v2  ;;  %965 = vst [vmem:[%s4188_s27 + $0x418] sm:$0xff] %v964_v3  ;;  %v966_v4 = vld [vmem:[%s4183_s26 + $0x840] sm:$0xff]  ;;  %v968_v5 = vld [vmem:[%s4183_s26 + $0x850] sm:$0xff] }
  0x52   : > { %v970_v6 = vld [vmem:[%s4183_s26 + $0x860] sm:$0xff]  ;;  %967 = vst [vmem:[%s4188_s27 + $0x420] sm:$0xff] %v966_v4  ;;  %969 = vst [vmem:[%s4188_s27 + $0x428] sm:$0xff] %v968_v5  ;;  %v972_v7 = vld [vmem:[%s4183_s26 + $0x870] sm:$0xff] }
  0x53   : > { %971 = vst [vmem:[%s4188_s27 + $0x430] sm:$0xff] %v970_v6  ;;  %v974_v8 = vld [vmem:[%s4183_s26 + $0x880] sm:$0xff]  ;;  %v976_v9 = vld [vmem:[%s4183_s26 + $0x890] sm:$0xff]  ;;  %973 = vst [vmem:[%s4188_s27 + $0x438] sm:$0xff] %v972_v7 }
  0x54   : > { %975 = vst [vmem:[%s4188_s27 + $0x440] sm:$0xff] %v974_v8  ;;  %977 = vst [vmem:[%s4188_s27 + $0x448] sm:$0xff] %v976_v9  ;;  %v978_v10 = vld [vmem:[%s4183_s26 + $0x8a0] sm:$0xff]  ;;  %v980_v11 = vld [vmem:[%s4183_s26 + $0x8b0] sm:$0xff] }
  0x55   : > { %v982_v12 = vld [vmem:[%s4183_s26 + $0x8c0] sm:$0xff]  ;;  %979 = vst [vmem:[%s4188_s27 + $0x450] sm:$0xff] %v978_v10  ;;  %981 = vst [vmem:[%s4188_s27 + $0x458] sm:$0xff] %v980_v11  ;;  %v984_v13 = vld [vmem:[%s4183_s26 + $0x8d0] sm:$0xff] }
  0x56   : > { %983 = vst [vmem:[%s4188_s27 + $0x460] sm:$0xff] %v982_v12  ;;  %v986_v14 = vld [vmem:[%s4183_s26 + $0x8e0] sm:$0xff]  ;;  %v988_v15 = vld [vmem:[%s4183_s26 + $0x8f0] sm:$0xff]  ;;  %985 = vst [vmem:[%s4188_s27 + $0x468] sm:$0xff] %v984_v13 }
  0x57   : > { %987 = vst [vmem:[%s4188_s27 + $0x470] sm:$0xff] %v986_v14  ;;  %989 = vst [vmem:[%s4188_s27 + $0x478] sm:$0xff] %v988_v15  ;;  %v990_v16 = vld [vmem:[%s4183_s26 + $0x900] sm:$0xff]  ;;  %v992_v17 = vld [vmem:[%s4183_s26 + $0x910] sm:$0xff] }
  0x58   : > { %v994_v18 = vld [vmem:[%s4183_s26 + $0x920] sm:$0xff]  ;;  %991 = vst [vmem:[%s4188_s27 + $0x480] sm:$0xff] %v990_v16  ;;  %993 = vst [vmem:[%s4188_s27 + $0x488] sm:$0xff] %v992_v17  ;;  %v996_v19 = vld [vmem:[%s4183_s26 + $0x930] sm:$0xff] }
  0x59   : > { %995 = vst [vmem:[%s4188_s27 + $0x490] sm:$0xff] %v994_v18  ;;  %v998_v20 = vld [vmem:[%s4183_s26 + $0x940] sm:$0xff]  ;;  %v1000_v21 = vld [vmem:[%s4183_s26 + $0x950] sm:$0xff]  ;;  %997 = vst [vmem:[%s4188_s27 + $0x498] sm:$0xff] %v996_v19 }
  0x5a   : > { %999 = vst [vmem:[%s4188_s27 + $0x4a0] sm:$0xff] %v998_v20  ;;  %1001 = vst [vmem:[%s4188_s27 + $0x4a8] sm:$0xff] %v1000_v21  ;;  %v1002_v22 = vld [vmem:[%s4183_s26 + $0x960] sm:$0xff]  ;;  %v1004_v23 = vld [vmem:[%s4183_s26 + $0x970] sm:$0xff] }
  0x5b   : > { %v1006_v24 = vld [vmem:[%s4183_s26 + $0x980] sm:$0xff]  ;;  %1003 = vst [vmem:[%s4188_s27 + $0x4b0] sm:$0xff] %v1002_v22  ;;  %1005 = vst [vmem:[%s4188_s27 + $0x4b8] sm:$0xff] %v1004_v23  ;;  %v1008_v25 = vld [vmem:[%s4183_s26 + $0x990] sm:$0xff] }
  0x5c   : > { %1007 = vst [vmem:[%s4188_s27 + $0x4c0] sm:$0xff] %v1006_v24  ;;  %v1010_v26 = vld [vmem:[%s4183_s26 + $0x9a0] sm:$0xff]  ;;  %v1012_v27 = vld [vmem:[%s4183_s26 + $0x9b0] sm:$0xff]  ;;  %1009 = vst [vmem:[%s4188_s27 + $0x4c8] sm:$0xff] %v1008_v25 }
  0x5d   : > { %1011 = vst [vmem:[%s4188_s27 + $0x4d0] sm:$0xff] %v1010_v26  ;;  %1013 = vst [vmem:[%s4188_s27 + $0x4d8] sm:$0xff] %v1012_v27  ;;  %v1014_v28 = vld [vmem:[%s4183_s26 + $0x9c0] sm:$0xff]  ;;  %v1016_v29 = vld [vmem:[%s4183_s26 + $0x9d0] sm:$0xff] }
  0x5e   : > { %v1018_v30 = vld [vmem:[%s4183_s26 + $0x9e0] sm:$0xff]  ;;  %1015 = vst [vmem:[%s4188_s27 + $0x4e0] sm:$0xff] %v1014_v28  ;;  %1017 = vst [vmem:[%s4188_s27 + $0x4e8] sm:$0xff] %v1016_v29  ;;  %v1020_v31 = vld [vmem:[%s4183_s26 + $0x9f0] sm:$0xff] }
  0x5f   : > { %1019 = vst [vmem:[%s4188_s27 + $0x4f0] sm:$0xff] %v1018_v30  ;;  %v1022_v32 = vld [vmem:[%s4183_s26 + $0xa00] sm:$0xff]  ;;  %v1024_v33 = vld [vmem:[%s4183_s26 + $0xa10] sm:$0xff]  ;;  %1021 = vst [vmem:[%s4188_s27 + $0x4f8] sm:$0xff] %v1020_v31 }
  0x60   : > { %1023 = vst [vmem:[%s4188_s27 + $0x500] sm:$0xff] %v1022_v32  ;;  %1025 = vst [vmem:[%s4188_s27 + $0x508] sm:$0xff] %v1024_v33  ;;  %v1026_v34 = vld [vmem:[%s4183_s26 + $0xa20] sm:$0xff]  ;;  %v1028_v35 = vld [vmem:[%s4183_s26 + $0xa30] sm:$0xff] }
  0x61   : > { %v1030_v36 = vld [vmem:[%s4183_s26 + $0xa40] sm:$0xff]  ;;  %1027 = vst [vmem:[%s4188_s27 + $0x510] sm:$0xff] %v1026_v34  ;;  %1029 = vst [vmem:[%s4188_s27 + $0x518] sm:$0xff] %v1028_v35  ;;  %v1032_v37 = vld [vmem:[%s4183_s26 + $0xa50] sm:$0xff] }
  0x62   : > { %1031 = vst [vmem:[%s4188_s27 + $0x520] sm:$0xff] %v1030_v36  ;;  %v1034_v38 = vld [vmem:[%s4183_s26 + $0xa60] sm:$0xff]  ;;  %v1036_v39 = vld [vmem:[%s4183_s26 + $0xa70] sm:$0xff]  ;;  %1033 = vst [vmem:[%s4188_s27 + $0x528] sm:$0xff] %v1032_v37 }
  0x63   : > { %1035 = vst [vmem:[%s4188_s27 + $0x530] sm:$0xff] %v1034_v38  ;;  %1037 = vst [vmem:[%s4188_s27 + $0x538] sm:$0xff] %v1036_v39  ;;  %v1038_v40 = vld [vmem:[%s4183_s26 + $0xa80] sm:$0xff]  ;;  %v1040_v41 = vld [vmem:[%s4183_s26 + $0xa90] sm:$0xff] }
  0x64   : > { %v1042_v42 = vld [vmem:[%s4183_s26 + $0xaa0] sm:$0xff]  ;;  %1039 = vst [vmem:[%s4188_s27 + $0x540] sm:$0xff] %v1038_v40  ;;  %1041 = vst [vmem:[%s4188_s27 + $0x548] sm:$0xff] %v1040_v41  ;;  %v1044_v43 = vld [vmem:[%s4183_s26 + $0xab0] sm:$0xff] }
  0x65   : > { %1043 = vst [vmem:[%s4188_s27 + $0x550] sm:$0xff] %v1042_v42  ;;  %v1046_v44 = vld [vmem:[%s4183_s26 + $0xac0] sm:$0xff]  ;;  %v1048_v45 = vld [vmem:[%s4183_s26 + $0xad0] sm:$0xff]  ;;  %1045 = vst [vmem:[%s4188_s27 + $0x558] sm:$0xff] %v1044_v43 }
  0x66   : > { %1047 = vst [vmem:[%s4188_s27 + $0x560] sm:$0xff] %v1046_v44  ;;  %1049 = vst [vmem:[%s4188_s27 + $0x568] sm:$0xff] %v1048_v45  ;;  %v1050_v46 = vld [vmem:[%s4183_s26 + $0xae0] sm:$0xff]  ;;  %v1052_v47 = vld [vmem:[%s4183_s26 + $0xaf0] sm:$0xff] }
  0x67   : > { %v1054_v48 = vld [vmem:[%s4183_s26 + $0xb00] sm:$0xff]  ;;  %1051 = vst [vmem:[%s4188_s27 + $0x570] sm:$0xff] %v1050_v46  ;;  %1053 = vst [vmem:[%s4188_s27 + $0x578] sm:$0xff] %v1052_v47  ;;  %v1056_v49 = vld [vmem:[%s4183_s26 + $0xb10] sm:$0xff] }
  0x68   : > { %1055 = vst [vmem:[%s4188_s27 + $0x580] sm:$0xff] %v1054_v48  ;;  %v1058_v50 = vld [vmem:[%s4183_s26 + $0xb20] sm:$0xff]  ;;  %v1060_v51 = vld [vmem:[%s4183_s26 + $0xb30] sm:$0xff]  ;;  %1057 = vst [vmem:[%s4188_s27 + $0x588] sm:$0xff] %v1056_v49 }
  0x69   : > { %1059 = vst [vmem:[%s4188_s27 + $0x590] sm:$0xff] %v1058_v50  ;;  %1061 = vst [vmem:[%s4188_s27 + $0x598] sm:$0xff] %v1060_v51  ;;  %v1062_v52 = vld [vmem:[%s4183_s26 + $0xb40] sm:$0xff]  ;;  %v1064_v53 = vld [vmem:[%s4183_s26 + $0xb50] sm:$0xff] }
  0x6a   : > { %v1066_v54 = vld [vmem:[%s4183_s26 + $0xb60] sm:$0xff]  ;;  %1063 = vst [vmem:[%s4188_s27 + $0x5a0] sm:$0xff] %v1062_v52  ;;  %1065 = vst [vmem:[%s4188_s27 + $0x5a8] sm:$0xff] %v1064_v53  ;;  %v1068_v55 = vld [vmem:[%s4183_s26 + $0xb70] sm:$0xff] }
  0x6b   : > { %1067 = vst [vmem:[%s4188_s27 + $0x5b0] sm:$0xff] %v1066_v54  ;;  %v1070_v56 = vld [vmem:[%s4183_s26 + $0xb80] sm:$0xff]  ;;  %v1072_v57 = vld [vmem:[%s4183_s26 + $0xb90] sm:$0xff]  ;;  %1069 = vst [vmem:[%s4188_s27 + $0x5b8] sm:$0xff] %v1068_v55 }
  0x6c   : > { %1071 = vst [vmem:[%s4188_s27 + $0x5c0] sm:$0xff] %v1070_v56  ;;  %1073 = vst [vmem:[%s4188_s27 + $0x5c8] sm:$0xff] %v1072_v57  ;;  %v1074_v58 = vld [vmem:[%s4183_s26 + $0xba0] sm:$0xff]  ;;  %v1076_v59 = vld [vmem:[%s4183_s26 + $0xbb0] sm:$0xff] }
  0x6d   : > { %v1078_v60 = vld [vmem:[%s4183_s26 + $0xbc0] sm:$0xff]  ;;  %1075 = vst [vmem:[%s4188_s27 + $0x5d0] sm:$0xff] %v1074_v58  ;;  %1077 = vst [vmem:[%s4188_s27 + $0x5d8] sm:$0xff] %v1076_v59  ;;  %v1080_v61 = vld [vmem:[%s4183_s26 + $0xbd0] sm:$0xff] }
  0x6e   : > { %1079 = vst [vmem:[%s4188_s27 + $0x5e0] sm:$0xff] %v1078_v60  ;;  %v1082_v62 = vld [vmem:[%s4183_s26 + $0xbe0] sm:$0xff]  ;;  %v1084_v63 = vld [vmem:[%s4183_s26 + $0xbf0] sm:$0xff]  ;;  %1081 = vst [vmem:[%s4188_s27 + $0x5e8] sm:$0xff] %v1080_v61 }
  0x6f   : > { %1083 = vst [vmem:[%s4188_s27 + $0x5f0] sm:$0xff] %v1082_v62  ;;  %1085 = vst [vmem:[%s4188_s27 + $0x5f8] sm:$0xff] %v1084_v63  ;;  %v1086_v0 = vld [vmem:[%s4183_s26 + $0xc00] sm:$0xff]  ;;  %v1088_v1 = vld [vmem:[%s4183_s26 + $0xc10] sm:$0xff] }
  0x70   : > { %v1090_v2 = vld [vmem:[%s4183_s26 + $0xc20] sm:$0xff]  ;;  %1087 = vst [vmem:[%s4188_s27 + $0x600] sm:$0xff] %v1086_v0  ;;  %1089 = vst [vmem:[%s4188_s27 + $0x608] sm:$0xff] %v1088_v1  ;;  %v1092_v3 = vld [vmem:[%s4183_s26 + $0xc30] sm:$0xff] }
  0x71   : > { %1091 = vst [vmem:[%s4188_s27 + $0x610] sm:$0xff] %v1090_v2  ;;  %v1094_v4 = vld [vmem:[%s4183_s26 + $0xc40] sm:$0xff]  ;;  %v1096_v5 = vld [vmem:[%s4183_s26 + $0xc50] sm:$0xff]  ;;  %1093 = vst [vmem:[%s4188_s27 + $0x618] sm:$0xff] %v1092_v3 }
  0x72   : > { %1095 = vst [vmem:[%s4188_s27 + $0x620] sm:$0xff] %v1094_v4  ;;  %1097 = vst [vmem:[%s4188_s27 + $0x628] sm:$0xff] %v1096_v5  ;;  %v1098_v6 = vld [vmem:[%s4183_s26 + $0xc60] sm:$0xff]  ;;  %v1100_v7 = vld [vmem:[%s4183_s26 + $0xc70] sm:$0xff] }
  0x73   : > { %v1102_v8 = vld [vmem:[%s4183_s26 + $0xc80] sm:$0xff]  ;;  %1099 = vst [vmem:[%s4188_s27 + $0x630] sm:$0xff] %v1098_v6  ;;  %1101 = vst [vmem:[%s4188_s27 + $0x638] sm:$0xff] %v1100_v7  ;;  %v1104_v9 = vld [vmem:[%s4183_s26 + $0xc90] sm:$0xff] }
  0x74   : > { %1103 = vst [vmem:[%s4188_s27 + $0x640] sm:$0xff] %v1102_v8  ;;  %v1106_v10 = vld [vmem:[%s4183_s26 + $0xca0] sm:$0xff]  ;;  %v1108_v11 = vld [vmem:[%s4183_s26 + $0xcb0] sm:$0xff]  ;;  %1105 = vst [vmem:[%s4188_s27 + $0x648] sm:$0xff] %v1104_v9 }
  0x75   : > { %1107 = vst [vmem:[%s4188_s27 + $0x650] sm:$0xff] %v1106_v10  ;;  %1109 = vst [vmem:[%s4188_s27 + $0x658] sm:$0xff] %v1108_v11  ;;  %v1110_v12 = vld [vmem:[%s4183_s26 + $0xcc0] sm:$0xff]  ;;  %v1112_v13 = vld [vmem:[%s4183_s26 + $0xcd0] sm:$0xff] }
  0x76   : > { %v1114_v14 = vld [vmem:[%s4183_s26 + $0xce0] sm:$0xff]  ;;  %1111 = vst [vmem:[%s4188_s27 + $0x660] sm:$0xff] %v1110_v12  ;;  %1113 = vst [vmem:[%s4188_s27 + $0x668] sm:$0xff] %v1112_v13  ;;  %v1116_v15 = vld [vmem:[%s4183_s26 + $0xcf0] sm:$0xff] }
  0x77   : > { %1115 = vst [vmem:[%s4188_s27 + $0x670] sm:$0xff] %v1114_v14  ;;  %v1118_v16 = vld [vmem:[%s4183_s26 + $0xd00] sm:$0xff]  ;;  %v1120_v17 = vld [vmem:[%s4183_s26 + $0xd10] sm:$0xff]  ;;  %1117 = vst [vmem:[%s4188_s27 + $0x678] sm:$0xff] %v1116_v15 }
  0x78   : > { %1119 = vst [vmem:[%s4188_s27 + $0x680] sm:$0xff] %v1118_v16  ;;  %1121 = vst [vmem:[%s4188_s27 + $0x688] sm:$0xff] %v1120_v17  ;;  %v1122_v18 = vld [vmem:[%s4183_s26 + $0xd20] sm:$0xff]  ;;  %v1124_v19 = vld [vmem:[%s4183_s26 + $0xd30] sm:$0xff] }
  0x79   : > { %v1126_v20 = vld [vmem:[%s4183_s26 + $0xd40] sm:$0xff]  ;;  %1123 = vst [vmem:[%s4188_s27 + $0x690] sm:$0xff] %v1122_v18  ;;  %1125 = vst [vmem:[%s4188_s27 + $0x698] sm:$0xff] %v1124_v19  ;;  %v1128_v21 = vld [vmem:[%s4183_s26 + $0xd50] sm:$0xff] }
  0x7a   : > { %1127 = vst [vmem:[%s4188_s27 + $0x6a0] sm:$0xff] %v1126_v20  ;;  %v1130_v22 = vld [vmem:[%s4183_s26 + $0xd60] sm:$0xff]  ;;  %v1132_v23 = vld [vmem:[%s4183_s26 + $0xd70] sm:$0xff]  ;;  %1129 = vst [vmem:[%s4188_s27 + $0x6a8] sm:$0xff] %v1128_v21 }
  0x7b   : > { %1131 = vst [vmem:[%s4188_s27 + $0x6b0] sm:$0xff] %v1130_v22  ;;  %1133 = vst [vmem:[%s4188_s27 + $0x6b8] sm:$0xff] %v1132_v23  ;;  %v1134_v24 = vld [vmem:[%s4183_s26 + $0xd80] sm:$0xff]  ;;  %v1136_v25 = vld [vmem:[%s4183_s26 + $0xd90] sm:$0xff] }
  0x7c   : > { %v1138_v26 = vld [vmem:[%s4183_s26 + $0xda0] sm:$0xff]  ;;  %1135 = vst [vmem:[%s4188_s27 + $0x6c0] sm:$0xff] %v1134_v24  ;;  %1137 = vst [vmem:[%s4188_s27 + $0x6c8] sm:$0xff] %v1136_v25  ;;  %v1140_v27 = vld [vmem:[%s4183_s26 + $0xdb0] sm:$0xff] }
  0x7d   : > { %1139 = vst [vmem:[%s4188_s27 + $0x6d0] sm:$0xff] %v1138_v26  ;;  %v1142_v28 = vld [vmem:[%s4183_s26 + $0xdc0] sm:$0xff]  ;;  %v1144_v29 = vld [vmem:[%s4183_s26 + $0xdd0] sm:$0xff]  ;;  %1141 = vst [vmem:[%s4188_s27 + $0x6d8] sm:$0xff] %v1140_v27 }
  0x7e   : > { %1143 = vst [vmem:[%s4188_s27 + $0x6e0] sm:$0xff] %v1142_v28  ;;  %1145 = vst [vmem:[%s4188_s27 + $0x6e8] sm:$0xff] %v1144_v29  ;;  %v1146_v30 = vld [vmem:[%s4183_s26 + $0xde0] sm:$0xff]  ;;  %v1148_v31 = vld [vmem:[%s4183_s26 + $0xdf0] sm:$0xff] }
  0x7f   : > { %v1150_v32 = vld [vmem:[%s4183_s26 + $0xe00] sm:$0xff]  ;;  %1147 = vst [vmem:[%s4188_s27 + $0x6f0] sm:$0xff] %v1146_v30  ;;  %1149 = vst [vmem:[%s4188_s27 + $0x6f8] sm:$0xff] %v1148_v31  ;;  %v1152_v33 = vld [vmem:[%s4183_s26 + $0xe10] sm:$0xff] }
  0x80   : > { %1151 = vst [vmem:[%s4188_s27 + $0x700] sm:$0xff] %v1150_v32  ;;  %v1154_v34 = vld [vmem:[%s4183_s26 + $0xe20] sm:$0xff]  ;;  %v1156_v35 = vld [vmem:[%s4183_s26 + $0xe30] sm:$0xff]  ;;  %1153 = vst [vmem:[%s4188_s27 + $0x708] sm:$0xff] %v1152_v33 }
  0x81   : > { %1155 = vst [vmem:[%s4188_s27 + $0x710] sm:$0xff] %v1154_v34  ;;  %1157 = vst [vmem:[%s4188_s27 + $0x718] sm:$0xff] %v1156_v35  ;;  %v1158_v36 = vld [vmem:[%s4183_s26 + $0xe40] sm:$0xff]  ;;  %v1160_v37 = vld [vmem:[%s4183_s26 + $0xe50] sm:$0xff] }
  0x82   : > { %v1162_v38 = vld [vmem:[%s4183_s26 + $0xe60] sm:$0xff]  ;;  %1159 = vst [vmem:[%s4188_s27 + $0x720] sm:$0xff] %v1158_v36  ;;  %1161 = vst [vmem:[%s4188_s27 + $0x728] sm:$0xff] %v1160_v37  ;;  %v1164_v39 = vld [vmem:[%s4183_s26 + $0xe70] sm:$0xff] }
  0x83   : > { %1163 = vst [vmem:[%s4188_s27 + $0x730] sm:$0xff] %v1162_v38  ;;  %v1166_v40 = vld [vmem:[%s4183_s26 + $0xe80] sm:$0xff]  ;;  %v1168_v41 = vld [vmem:[%s4183_s26 + $0xe90] sm:$0xff]  ;;  %1165 = vst [vmem:[%s4188_s27 + $0x738] sm:$0xff] %v1164_v39 }
  0x84   : > { %1167 = vst [vmem:[%s4188_s27 + $0x740] sm:$0xff] %v1166_v40  ;;  %1169 = vst [vmem:[%s4188_s27 + $0x748] sm:$0xff] %v1168_v41  ;;  %v1170_v42 = vld [vmem:[%s4183_s26 + $0xea0] sm:$0xff]  ;;  %v1172_v43 = vld [vmem:[%s4183_s26 + $0xeb0] sm:$0xff] }
  0x85   : > { %v1174_v44 = vld [vmem:[%s4183_s26 + $0xec0] sm:$0xff]  ;;  %1171 = vst [vmem:[%s4188_s27 + $0x750] sm:$0xff] %v1170_v42  ;;  %1173 = vst [vmem:[%s4188_s27 + $0x758] sm:$0xff] %v1172_v43  ;;  %v1176_v45 = vld [vmem:[%s4183_s26 + $0xed0] sm:$0xff] }
  0x86   : > { %1175 = vst [vmem:[%s4188_s27 + $0x760] sm:$0xff] %v1174_v44  ;;  %v1178_v46 = vld [vmem:[%s4183_s26 + $0xee0] sm:$0xff]  ;;  %v1180_v47 = vld [vmem:[%s4183_s26 + $0xef0] sm:$0xff]  ;;  %1177 = vst [vmem:[%s4188_s27 + $0x768] sm:$0xff] %v1176_v45 }
  0x87   : > { %1179 = vst [vmem:[%s4188_s27 + $0x770] sm:$0xff] %v1178_v46  ;;  %1181 = vst [vmem:[%s4188_s27 + $0x778] sm:$0xff] %v1180_v47  ;;  %v1182_v48 = vld [vmem:[%s4183_s26 + $0xf00] sm:$0xff]  ;;  %v1184_v49 = vld [vmem:[%s4183_s26 + $0xf10] sm:$0xff] }
  0x88   : > { %v1186_v50 = vld [vmem:[%s4183_s26 + $0xf20] sm:$0xff]  ;;  %1183 = vst [vmem:[%s4188_s27 + $0x780] sm:$0xff] %v1182_v48  ;;  %1185 = vst [vmem:[%s4188_s27 + $0x788] sm:$0xff] %v1184_v49  ;;  %v1188_v51 = vld [vmem:[%s4183_s26 + $0xf30] sm:$0xff] }
  0x89   : > { %1187 = vst [vmem:[%s4188_s27 + $0x790] sm:$0xff] %v1186_v50  ;;  %v1190_v52 = vld [vmem:[%s4183_s26 + $0xf40] sm:$0xff]  ;;  %v1192_v53 = vld [vmem:[%s4183_s26 + $0xf50] sm:$0xff]  ;;  %1189 = vst [vmem:[%s4188_s27 + $0x798] sm:$0xff] %v1188_v51 }
  0x8a   : > { %1191 = vst [vmem:[%s4188_s27 + $0x7a0] sm:$0xff] %v1190_v52  ;;  %1193 = vst [vmem:[%s4188_s27 + $0x7a8] sm:$0xff] %v1192_v53  ;;  %v1194_v54 = vld [vmem:[%s4183_s26 + $0xf60] sm:$0xff]  ;;  %v1196_v55 = vld [vmem:[%s4183_s26 + $0xf70] sm:$0xff] }
  0x8b   : > { %v1198_v56 = vld [vmem:[%s4183_s26 + $0xf80] sm:$0xff]  ;;  %1195 = vst [vmem:[%s4188_s27 + $0x7b0] sm:$0xff] %v1194_v54  ;;  %1197 = vst [vmem:[%s4188_s27 + $0x7b8] sm:$0xff] %v1196_v55  ;;  %v1200_v57 = vld [vmem:[%s4183_s26 + $0xf90] sm:$0xff] }
  0x8c   : > { %1199 = vst [vmem:[%s4188_s27 + $0x7c0] sm:$0xff] %v1198_v56  ;;  %v1202_v58 = vld [vmem:[%s4183_s26 + $0xfa0] sm:$0xff]  ;;  %v1204_v59 = vld [vmem:[%s4183_s26 + $0xfb0] sm:$0xff]  ;;  %1201 = vst [vmem:[%s4188_s27 + $0x7c8] sm:$0xff] %v1200_v57 }
  0x8d   : > { %1203 = vst [vmem:[%s4188_s27 + $0x7d0] sm:$0xff] %v1202_v58  ;;  %1205 = vst [vmem:[%s4188_s27 + $0x7d8] sm:$0xff] %v1204_v59  ;;  %v1206_v60 = vld [vmem:[%s4183_s26 + $0xfc0] sm:$0xff]  ;;  %v1208_v61 = vld [vmem:[%s4183_s26 + $0xfd0] sm:$0xff] }
  0x8e   : > { %v1210_v62 = vld [vmem:[%s4183_s26 + $0xfe0] sm:$0xff]  ;;  %1207 = vst [vmem:[%s4188_s27 + $0x7e0] sm:$0xff] %v1206_v60  ;;  %1209 = vst [vmem:[%s4188_s27 + $0x7e8] sm:$0xff] %v1208_v61  ;;  %v1212_v63 = vld [vmem:[%s4183_s26 + $0xff0] sm:$0xff] }
  0x8f   : > { %1211 = vst [vmem:[%s4188_s27 + $0x7f0] sm:$0xff] %v1210_v62  ;;  %1213 = vst [vmem:[%s4188_s27 + $0x7f8] sm:$0xff] %v1212_v63 }
  0x90 PF: > { %p3358_p6 = scmp.ge.s32.totalorder %s4118_s16, 1  ;;  %p1226_p7 = scmp.lt.s32.totalorder %s4118_s16, 3 }
  0x92   : > { %p1227_p8 = pnand %p3358_p6, %p1226_p7 }
  0x93   : > { %s1233_s28 = sand.u32 (!%p1227_p8), 1, %s4102_s12   ;;  %s3360_s26 = sshll.u32 (!%p1227_p8), %s4110_s14, 1 }
  0x94   : > { %1230 = sbr.rel (%p1227_p8) target bundleno = 612 (0x264), region = 66  ;;  %s3359_s6 = sshll.u32 (!%p1227_p8), %s1233_s28, 11 }
  0x95   : > { %s4716_s7 = scalar_lea.vmem (!%p1227_p8), [#allocation2], %s3359_s6  ;;  %p1276_p9 = scmp.lt.s32.totalorder (!%p1227_p8), %s3360_s26, 3 }
  0x99   : > { %v4705_v0 = vld [vmem:[%s5058_s0] sm:$0xff]  ;;  %v4710_v1 = vld [vmem:[%s5058_s0 + $0x8] sm:$0xff]  ;;  %v3680_v4 = vld [vmem:[%s4716_s7 + $0x74] ss:$8 sps:$4 sm:$0xff]   ;;  %s5069_s26 = smov (!%p1276_p9, %s3360_s26), 3 }
  0x9a   : > { %v3364_v2 = vcombine.high %v4705_v0, %v4705_v0  ;;  %v3366_v3 = vcombine.high %v4710_v1, %v4710_v1  ;;  %v3682_v5 = vld [vmem:[%s4716_s7 + $0x174] ss:$8 sps:$4 sm:$0xff]   ;;  %2902 = vmatprep.subr.bf16.mxu0 %v3680_v4  ;;  %v3684_v6 = vld [vmem:[%s4716_s7 + $0x70] ss:$8 sps:$4 sm:$0xff]   ;;  %v3686_v8 = vld [vmem:[%s4716_s7 + $0x64] ss:$8 sps:$4 sm:$0xff]   ;;  %s1278_s28 = scalar_lea.vmem %s5060_s2, %s5069_s26 }
  0x9b   : > { %v3685_v7 = vld [vmem:[%s4716_s7 + $0x170] ss:$8 sps:$4 sm:$0xff]   ;;  %2943 = vmatprep.subr.bf16.mxu1 %v3682_v5  ;;  %2903 = vmatpush1.bf16.msra.mxu0 %v3684_v6  ;;  %v3688_v9 = vld [vmem:[%s4716_s7 + $0x164] ss:$8 sps:$4 sm:$0xff]   ;;  %v3690_v10 = vld [vmem:[%s4716_s7 + $0x60] ss:$8 sps:$4 sm:$0xff]  }
  0x9c   : > { %2934 = vmatprep.mubr.bf16.mxu0 %v3364_v2  ;;  %2975 = vmatprep.mubr.bf16.mxu1 %v3366_v3  ;;  %v3691_v11 = vld [vmem:[%s4716_s7 + $0x160] ss:$8 sps:$4 sm:$0xff]   ;;  %v3692_v12 = vld [vmem:[%s4716_s7 + $0x54] ss:$8 sps:$4 sm:$0xff]   ;;  %v3696_v14 = vld [vmem:[%s4716_s7 + $0x50] ss:$8 sps:$4 sm:$0xff]  }
  0x9d   : > { %2944 = vmatpush1.bf16.msra.mxu1 %v3685_v7  ;;  %2904 = vmatprep.subr.bf16.mxu0 %v3686_v8  ;;  %v3694_v13 = vld [vmem:[%s4716_s7 + $0x154] ss:$8 sps:$4 sm:$0xff]   ;;  %v3697_v15 = vld [vmem:[%s4716_s7 + $0x150] ss:$8 sps:$4 sm:$0xff]   ;;  %v3698_v16 = vld [vmem:[%s4716_s7 + $0x44] ss:$8 sps:$4 sm:$0xff]  }
  0x9e   : > { %2945 = vmatprep.subr.bf16.mxu1 %v3688_v9  ;;  %v3700_v17 = vld [vmem:[%s4716_s7 + $0x144] ss:$8 sps:$4 sm:$0xff]   ;;  %v3702_v18 = vld [vmem:[%s4716_s7 + $0x40] ss:$8 sps:$4 sm:$0xff]   ;;  %v3704_v20 = vld [vmem:[%s4716_s7 + $0x34] ss:$8 sps:$4 sm:$0xff]  }
  0x9f   : > { %2905 = vmatpush1.bf16.msra.mxu0 %v3690_v10  ;;  %v3703_v19 = vld [vmem:[%s4716_s7 + $0x140] ss:$8 sps:$4 sm:$0xff]   ;;  %v3706_v21 = vld [vmem:[%s4716_s7 + $0x134] ss:$8 sps:$4 sm:$0xff]   ;;  %v3708_v22 = vld [vmem:[%s4716_s7 + $0x30] ss:$8 sps:$4 sm:$0xff]   ;;  %v3363_v10 = vcombine.low %v4705_v0, %v4705_v0 }
  0xa0   : > { %2906 = vmatprep.subr.bf16.mxu0 %v3692_v12  ;;  %v3709_v23 = vld [vmem:[%s4716_s7 + $0x130] ss:$8 sps:$4 sm:$0xff]   ;;  %v3710_v24 = vld [vmem:[%s4716_s7 + $0x24] ss:$8 sps:$4 sm:$0xff]   ;;  %v3714_v26 = vld [vmem:[%s4716_s7 + $0x20] ss:$8 sps:$4 sm:$0xff]  }
  0xa1   : > { %2946 = vmatpush1.bf16.msra.mxu1 %v3691_v11  ;;  %v3712_v25 = vld [vmem:[%s4716_s7 + $0x124] ss:$8 sps:$4 sm:$0xff]   ;;  %v3715_v27 = vld [vmem:[%s4716_s7 + $0x120] ss:$8 sps:$4 sm:$0xff]   ;;  %v3716_v28 = vld [vmem:[%s4716_s7 + $0x14] ss:$8 sps:$4 sm:$0xff]   ;;  %v3365_v11 = vcombine.low %v4710_v1, %v4710_v1 }
  0xa2   : > { %2947 = vmatprep.subr.bf16.mxu1 %v3694_v13  ;;  %v3718_v29 = vld [vmem:[%s4716_s7 + $0x114] ss:$8 sps:$4 sm:$0xff]   ;;  %v3720_v30 = vld [vmem:[%s4716_s7 + $0x10] ss:$8 sps:$4 sm:$0xff]   ;;  %v3722_v32 = vld [vmem:[%s4716_s7 + $0x4] ss:$8 sps:$4 sm:$0xff]  }
  0xa3   : > { %2907 = vmatpush1.bf16.msra.mxu0 %v3696_v14  ;;  %v3721_v31 = vld [vmem:[%s4716_s7 + $0x110] ss:$8 sps:$4 sm:$0xff]   ;;  %v3724_v33 = vld [vmem:[%s4716_s7 + $0x104] ss:$8 sps:$4 sm:$0xff]   ;;  %v3726_v34 = vld [vmem:[%s4716_s7] ss:$8 sps:$4 sm:$0xff]  }
  0xa4   : > { %2908 = vmatprep.subr.bf16.mxu0 %v3698_v16  ;;  %v3727_v35 = vld [vmem:[%s4716_s7 + $0x100] ss:$8 sps:$4 sm:$0xff]   ;;  %v3728_v36 = vld [vmem:[%s4716_s7 + $0xf4] ss:$8 sps:$4 sm:$0xff]   ;;  %v3732_v38 = vld [vmem:[%s4716_s7 + $0xf0] ss:$8 sps:$4 sm:$0xff]  }
  0xa5   : > { %2948 = vmatpush1.bf16.msra.mxu1 %v3697_v15  ;;  %v3730_v37 = vld [vmem:[%s4716_s7 + $0x1f4] ss:$8 sps:$4 sm:$0xff]   ;;  %v3733_v39 = vld [vmem:[%s4716_s7 + $0x1f0] ss:$8 sps:$4 sm:$0xff]   ;;  %v3734_v40 = vld [vmem:[%s4716_s7 + $0xe4] ss:$8 sps:$4 sm:$0xff]  }
  0xa6   : > { %2949 = vmatprep.subr.bf16.mxu1 %v3700_v17  ;;  %v3736_v41 = vld [vmem:[%s4716_s7 + $0x1e4] ss:$8 sps:$4 sm:$0xff]   ;;  %v3738_v42 = vld [vmem:[%s4716_s7 + $0xe0] ss:$8 sps:$4 sm:$0xff]   ;;  %v3740_v44 = vld [vmem:[%s4716_s7 + $0xd4] ss:$8 sps:$4 sm:$0xff]  }
  0xa7   : > { %2909 = vmatpush1.bf16.msra.mxu0 %v3702_v18  ;;  %v3739_v43 = vld [vmem:[%s4716_s7 + $0x1e0] ss:$8 sps:$4 sm:$0xff]   ;;  %v3742_v45 = vld [vmem:[%s4716_s7 + $0x1d4] ss:$8 sps:$4 sm:$0xff]   ;;  %v3744_v46 = vld [vmem:[%s4716_s7 + $0xd0] ss:$8 sps:$4 sm:$0xff]  }
  0xa8   : > { %2910 = vmatprep.subr.bf16.mxu0 %v3704_v20  ;;  %v3745_v47 = vld [vmem:[%s4716_s7 + $0x1d0] ss:$8 sps:$4 sm:$0xff]   ;;  %v3746_v48 = vld [vmem:[%s4716_s7 + $0xc4] ss:$8 sps:$4 sm:$0xff]   ;;  %v3750_v50 = vld [vmem:[%s4716_s7 + $0xc0] ss:$8 sps:$4 sm:$0xff]  }
  0xa9   : > { %2950 = vmatpush1.bf16.msra.mxu1 %v3703_v19  ;;  %v3748_v49 = vld [vmem:[%s4716_s7 + $0x1c4] ss:$8 sps:$4 sm:$0xff]   ;;  %v3751_v51 = vld [vmem:[%s4716_s7 + $0x1c0] ss:$8 sps:$4 sm:$0xff]   ;;  %v3752_v52 = vld [vmem:[%s4716_s7 + $0xb4] ss:$8 sps:$4 sm:$0xff]  }
  0xaa   : > { %2951 = vmatprep.subr.bf16.mxu1 %v3706_v21  ;;  %v3754_v53 = vld [vmem:[%s4716_s7 + $0x1b4] ss:$8 sps:$4 sm:$0xff]   ;;  %v3756_v54 = vld [vmem:[%s4716_s7 + $0xb0] ss:$8 sps:$4 sm:$0xff]   ;;  %v3758_v56 = vld [vmem:[%s4716_s7 + $0xa4] ss:$8 sps:$4 sm:$0xff]  }
  0xab   : > { %2911 = vmatpush1.bf16.msra.mxu0 %v3708_v22  ;;  %v3757_v55 = vld [vmem:[%s4716_s7 + $0x1b0] ss:$8 sps:$4 sm:$0xff]   ;;  %v3760_v57 = vld [vmem:[%s4716_s7 + $0x1a4] ss:$8 sps:$4 sm:$0xff]   ;;  %v3762_v58 = vld [vmem:[%s4716_s7 + $0xa0] ss:$8 sps:$4 sm:$0xff]  }
  0xac   : > { %2912 = vmatprep.subr.bf16.mxu0 %v3710_v24  ;;  %v3763_v59 = vld [vmem:[%s4716_s7 + $0x1a0] ss:$8 sps:$4 sm:$0xff]   ;;  %v3764_v60 = vld [vmem:[%s4716_s7 + $0x94] ss:$8 sps:$4 sm:$0xff]   ;;  %v3768_v62 = vld [vmem:[%s4716_s7 + $0x90] ss:$8 sps:$4 sm:$0xff]  }
  0xad   : > { %2952 = vmatpush1.bf16.msra.mxu1 %v3709_v23  ;;  %v3766_v61 = vld [vmem:[%s4716_s7 + $0x194] ss:$8 sps:$4 sm:$0xff]   ;;  %v3769_v63 = vld [vmem:[%s4716_s7 + $0x190] ss:$8 sps:$4 sm:$0xff]   ;;  %v3770_v2 = vld [vmem:[%s4716_s7 + $0x84] ss:$8 sps:$4 sm:$0xff]  }
  0xae   : > { %2953 = vmatprep.subr.bf16.mxu1 %v3712_v25  ;;  %v3772_v3 = vld [vmem:[%s4716_s7 + $0x184] ss:$8 sps:$4 sm:$0xff]   ;;  %v3774_v4 = vld [vmem:[%s4716_s7 + $0x80] ss:$8 sps:$4 sm:$0xff]   ;;  %v3782_v6 = vld [vmem:[%s4716_s7 + $0x274] ss:$8 sps:$4 sm:$0xff]  }
  0xaf   : > { %2913 = vmatpush1.bf16.msra.mxu0 %v3714_v26  ;;  %v3775_v5 = vld [vmem:[%s4716_s7 + $0x180] ss:$8 sps:$4 sm:$0xff]   ;;  %v3785_v7 = vld [vmem:[%s4716_s7 + $0x374] ss:$8 sps:$4 sm:$0xff]   ;;  %v3780_v12 = vld [vmem:[%s4716_s7 + $0x270] ss:$8 sps:$4 sm:$0xff]  }
  0xb0   : > { %2914 = vmatprep.subr.bf16.mxu0 %v3716_v28  ;;  %v4787_v8 = vld [vmem:[%s5058_s0 + $0x10] sm:$0xff]  ;;  %v4792_v9 = vld [vmem:[%s5058_s0 + $0x18] sm:$0xff]  ;;  %v3788_v14 = vld [vmem:[%s4716_s7 + $0x264] ss:$8 sps:$4 sm:$0xff]   ;;  %s3362_s29 = sshll.u32 %s5069_s26, 2 }
  0xb1   : > { %2954 = vmatpush1.bf16.msra.mxu1 %v3715_v27  ;;  %v3783_v13 = vld [vmem:[%s4716_s7 + $0x370] ss:$8 sps:$4 sm:$0xff]   ;;  %v3791_v15 = vld [vmem:[%s4716_s7 + $0x364] ss:$8 sps:$4 sm:$0xff]   ;;  %v3368_v16 = vcombine.high %v4787_v8, %v4787_v8  ;;  %v3370_v0 = vcombine.high %v4792_v9, %v4792_v9  ;;  %v3786_v1 = vld [vmem:[%s4716_s7 + $0x260] ss:$8 sps:$4 sm:$0xff]   ;;  %s1288_s5 = scalar_lea.vmem %s5061_s3, %s3362_s29 }
  0xb2   : > { %2955 = vmatprep.subr.bf16.mxu1 %v3718_v29  ;;  %v3789_v17 = vld [vmem:[%s4716_s7 + $0x360] ss:$8 sps:$4 sm:$0xff]   ;;  %v3794_v18 = vld [vmem:[%s4716_s7 + $0x254] ss:$8 sps:$4 sm:$0xff]   ;;  %v3792_v20 = vld [vmem:[%s4716_s7 + $0x250] ss:$8 sps:$4 sm:$0xff]  }
  0xb3   : > { %2915 = vmatpush1.bf16.msra.mxu0 %v3720_v30  ;;  %v3797_v19 = vld [vmem:[%s4716_s7 + $0x354] ss:$8 sps:$4 sm:$0xff]   ;;  %v3795_v21 = vld [vmem:[%s4716_s7 + $0x350] ss:$8 sps:$4 sm:$0xff]   ;;  %v3800_v22 = vld [vmem:[%s4716_s7 + $0x244] ss:$8 sps:$4 sm:$0xff]  }
  0xb4   : > { %2916 = vmatprep.subr.bf16.mxu0 %v3722_v32  ;;  %v3803_v23 = vld [vmem:[%s4716_s7 + $0x344] ss:$8 sps:$4 sm:$0xff]   ;;  %v3798_v24 = vld [vmem:[%s4716_s7 + $0x240] ss:$8 sps:$4 sm:$0xff]   ;;  %v3806_v26 = vld [vmem:[%s4716_s7 + $0x234] ss:$8 sps:$4 sm:$0xff]  }
  0xb5   : > { %2956 = vmatpush1.bf16.msra.mxu1 %v3721_v31  ;;  %v3801_v25 = vld [vmem:[%s4716_s7 + $0x340] ss:$8 sps:$4 sm:$0xff]   ;;  %v3809_v27 = vld [vmem:[%s4716_s7 + $0x334] ss:$8 sps:$4 sm:$0xff]   ;;  %v3804_v28 = vld [vmem:[%s4716_s7 + $0x230] ss:$8 sps:$4 sm:$0xff]  }
  0xb6   : > { %2957 = vmatprep.subr.bf16.mxu1 %v3724_v33  ;;  %v3807_v29 = vld [vmem:[%s4716_s7 + $0x330] ss:$8 sps:$4 sm:$0xff]   ;;  %v3812_v30 = vld [vmem:[%s4716_s7 + $0x224] ss:$8 sps:$4 sm:$0xff]   ;;  %v3810_v32 = vld [vmem:[%s4716_s7 + $0x220] ss:$8 sps:$4 sm:$0xff]  }
  0xb7   : > { %2917 = vmatpush1.bf16.msra.mxu0 %v3726_v34  ;;  %v3815_v31 = vld [vmem:[%s4716_s7 + $0x324] ss:$8 sps:$4 sm:$0xff]   ;;  %v3813_v33 = vld [vmem:[%s4716_s7 + $0x320] ss:$8 sps:$4 sm:$0xff]   ;;  %v3818_v34 = vld [vmem:[%s4716_s7 + $0x214] ss:$8 sps:$4 sm:$0xff]  }
  0xb8   : > { %2918 = vmatprep.subr.bf16.mxu0 %v3728_v36  ;;  %v3816_v36 = vld [vmem:[%s4716_s7 + $0x210] ss:$8 sps:$4 sm:$0xff]  }
  0xb9   : > { %2958 = vmatpush1.bf16.msra.mxu1 %v3727_v35  ;;  %v3821_v35 = vld [vmem:[%s4716_s7 + $0x314] ss:$8 sps:$4 sm:$0xff]  }
  0xba   : > { %2959 = vmatprep.subr.bf16.mxu1 %v3730_v37  ;;  %v3819_v37 = vld [vmem:[%s4716_s7 + $0x310] ss:$8 sps:$4 sm:$0xff]  }
  0xbb   : > { %2919 = vmatpush2.bf16.msra.mxu0 %v3732_v38  ;;  %v3824_v38 = vld [vmem:[%s4716_s7 + $0x204] ss:$8 sps:$4 sm:$0xff]  }
  0xbc   : > { %2920 = vmatprep.subr.bf16.mxu0 %v3734_v40  ;;  %v3822_v40 = vld [vmem:[%s4716_s7 + $0x200] ss:$8 sps:$4 sm:$0xff]  }
  0xbd   : > { %2960 = vmatpush2.bf16.msra.mxu1 %v3733_v39  ;;  %v3827_v39 = vld [vmem:[%s4716_s7 + $0x304] ss:$8 sps:$4 sm:$0xff]  }
  0xbe   : > { %2961 = vmatprep.subr.bf16.mxu1 %v3736_v41  ;;  %v3825_v41 = vld [vmem:[%s4716_s7 + $0x300] ss:$8 sps:$4 sm:$0xff]  }
  0xbf   : > { %2921 = vmatpush2.bf16.msra.mxu0 %v3738_v42  ;;  %v3830_v42 = vld [vmem:[%s4716_s7 + $0x2f4] ss:$8 sps:$4 sm:$0xff]  }
  0xc0   : > { %2922 = vmatprep.subr.bf16.mxu0 %v3740_v44  ;;  %v3828_v44 = vld [vmem:[%s4716_s7 + $0x2f0] ss:$8 sps:$4 sm:$0xff]  }
  0xc1   : > { %2962 = vmatpush2.bf16.msra.mxu1 %v3739_v43  ;;  %v3833_v43 = vld [vmem:[%s4716_s7 + $0x3f4] ss:$8 sps:$4 sm:$0xff]  }
  0xc2   : > { %2963 = vmatprep.subr.bf16.mxu1 %v3742_v45  ;;  %v3831_v45 = vld [vmem:[%s4716_s7 + $0x3f0] ss:$8 sps:$4 sm:$0xff]  }
  0xc3   : > { %2923 = vmatpush2.bf16.msra.mxu0 %v3744_v46  ;;  %v3836_v46 = vld [vmem:[%s4716_s7 + $0x2e4] ss:$8 sps:$4 sm:$0xff]  }
  0xc4   : > { %2924 = vmatprep.subr.bf16.mxu0 %v3746_v48  ;;  %v3834_v48 = vld [vmem:[%s4716_s7 + $0x2e0] ss:$8 sps:$4 sm:$0xff]  }
  0xc5   : > { %2964 = vmatpush2.bf16.msra.mxu1 %v3745_v47  ;;  %v3839_v47 = vld [vmem:[%s4716_s7 + $0x3e4] ss:$8 sps:$4 sm:$0xff]  }
  0xc6   : > { %2965 = vmatprep.subr.bf16.mxu1 %v3748_v49  ;;  %v3837_v49 = vld [vmem:[%s4716_s7 + $0x3e0] ss:$8 sps:$4 sm:$0xff]  }
  0xc7   : > { %2925 = vmatpush2.bf16.msra.mxu0 %v3750_v50  ;;  %v3842_v50 = vld [vmem:[%s4716_s7 + $0x2d4] ss:$8 sps:$4 sm:$0xff]  }
  0xc8   : > { %2926 = vmatprep.subr.bf16.mxu0 %v3752_v52  ;;  %v3840_v52 = vld [vmem:[%s4716_s7 + $0x2d0] ss:$8 sps:$4 sm:$0xff]  }
  0xc9   : > { %2966 = vmatpush2.bf16.msra.mxu1 %v3751_v51  ;;  %v3845_v51 = vld [vmem:[%s4716_s7 + $0x3d4] ss:$8 sps:$4 sm:$0xff]  }
  0xca   : > { %2967 = vmatprep.subr.bf16.mxu1 %v3754_v53  ;;  %v3843_v53 = vld [vmem:[%s4716_s7 + $0x3d0] ss:$8 sps:$4 sm:$0xff]  }
  0xcb   : > { %2927 = vmatpush2.bf16.msra.mxu0 %v3756_v54  ;;  %v3848_v54 = vld [vmem:[%s4716_s7 + $0x2c4] ss:$8 sps:$4 sm:$0xff]  }
  0xcc   : > { %2928 = vmatprep.subr.bf16.mxu0 %v3758_v56  ;;  %v3846_v56 = vld [vmem:[%s4716_s7 + $0x2c0] ss:$8 sps:$4 sm:$0xff]  }
  0xcd   : > { %2968 = vmatpush2.bf16.msra.mxu1 %v3757_v55  ;;  %v3851_v55 = vld [vmem:[%s4716_s7 + $0x3c4] ss:$8 sps:$4 sm:$0xff]  }
  0xce   : > { %2969 = vmatprep.subr.bf16.mxu1 %v3760_v57  ;;  %v3849_v57 = vld [vmem:[%s4716_s7 + $0x3c0] ss:$8 sps:$4 sm:$0xff]  }
  0xcf   : > { %2929 = vmatpush2.bf16.msra.mxu0 %v3762_v58  ;;  %v3854_v58 = vld [vmem:[%s4716_s7 + $0x2b4] ss:$8 sps:$4 sm:$0xff]  }
  0xd0   : > { %2930 = vmatprep.subr.bf16.mxu0 %v3764_v60  ;;  %v3852_v60 = vld [vmem:[%s4716_s7 + $0x2b0] ss:$8 sps:$4 sm:$0xff]  }
  0xd1   : > { %2970 = vmatpush2.bf16.msra.mxu1 %v3763_v59  ;;  %v3857_v59 = vld [vmem:[%s4716_s7 + $0x3b4] ss:$8 sps:$4 sm:$0xff]  }
  0xd2   : > { %2971 = vmatprep.subr.bf16.mxu1 %v3766_v61  ;;  %v3855_v61 = vld [vmem:[%s4716_s7 + $0x3b0] ss:$8 sps:$4 sm:$0xff]  }
  0xd3   : > { %2931 = vmatpush2.bf16.msra.mxu0 %v3768_v62  ;;  %v3860_v62 = vld [vmem:[%s4716_s7 + $0x2a4] ss:$8 sps:$4 sm:$0xff]  }
  0xd4   : > { %2932 = vmatprep.subr.bf16.mxu0 %v3770_v2  ;;  %v3858_v2 = vld [vmem:[%s4716_s7 + $0x2a0] ss:$8 sps:$4 sm:$0xff]  }
  0xd5   : > { %2972 = vmatpush2.bf16.msra.mxu1 %v3769_v63  ;;  %v3863_v63 = vld [vmem:[%s4716_s7 + $0x3a4] ss:$8 sps:$4 sm:$0xff]  }
  0xd6   : > { %2973 = vmatprep.subr.bf16.mxu1 %v3772_v3  ;;  %v3861_v3 = vld [vmem:[%s4716_s7 + $0x3a0] ss:$8 sps:$4 sm:$0xff]  }
  0xd7   : > { %2933 = vmatpush2.bf16.msra.mxu0 %v3774_v4  ;;  %v3866_v4 = vld [vmem:[%s4716_s7 + $0x294] ss:$8 sps:$4 sm:$0xff]  }
  0xd8   : > { %2984 = vmatprep.subr.bf16.mxu0 %v3782_v6  ;;  %v3864_v6 = vld [vmem:[%s4716_s7 + $0x290] ss:$8 sps:$4 sm:$0xff]  }
  0xd9   : > { %2974 = vmatpush2.bf16.msra.mxu1 %v3775_v5  ;;  %v3869_v5 = vld [vmem:[%s4716_s7 + $0x394] ss:$8 sps:$4 sm:$0xff]  }
  0xda   : > { %3025 = vmatprep.subr.bf16.mxu1 %v3785_v7  ;;  %2935 = vmatmul.mubr.bf16.vlgmr.msra.gmra.mxu0 %v3363_v10  ;;  %v3867_v7 = vld [vmem:[%s4716_s7 + $0x390] ss:$8 sps:$4 sm:$0xff]   ;;  %v3872_v10 = vld [vmem:[%s4716_s7 + $0x284] ss:$8 sps:$4 sm:$0xff]  }
  0xdb   : > { %2985 = vmatpush1.bf16.msra.mxu0 %v3780_v12  ;;  %3016 = vmatprep.mubr.bf16.mxu0 %v3368_v16  ;;  %v3870_v12 = vld [vmem:[%s4716_s7 + $0x280] ss:$8 sps:$4 sm:$0xff]   ;;  %v3367_v16 = vcombine.low %v4787_v8, %v4787_v8  ;;  %v3888_v8 = vld [vmem:[%s4716_s7 + $0x464] ss:$8 sps:$4 sm:$0xff]  }
  0xdc   : > { %2976 = vmatmul.mubr.bf16.vlgmr.msra.gmra.mxu1 %v3365_v11  ;;  %2986 = vmatprep.subr.bf16.mxu0 %v3788_v14  ;;  %v3875_v11 = vld [vmem:[%s4716_s7 + $0x384] ss:$8 sps:$4 sm:$0xff]   ;;  %v3882_v14 = vld [vmem:[%s4716_s7 + $0x474] ss:$8 sps:$4 sm:$0xff]  }
  0xdd   : > { %3026 = vmatpush1.bf16.msra.mxu1 %v3783_v13  ;;  %3057 = vmatprep.mubr.bf16.mxu1 %v3370_v0  ;;  %v3873_v13 = vld [vmem:[%s4716_s7 + $0x380] ss:$8 sps:$4 sm:$0xff]   ;;  %v3369_v0 = vcombine.low %v4792_v9, %v4792_v9  ;;  %v3891_v9 = vld [vmem:[%s4716_s7 + $0x564] ss:$8 sps:$4 sm:$0xff]  }
  0xde   : > { %3027 = vmatprep.subr.bf16.mxu1 %v3791_v15  ;;  %v3885_v15 = vld [vmem:[%s4716_s7 + $0x574] ss:$8 sps:$4 sm:$0xff]  }
  0xdf   : > { %2987 = vmatpush1.bf16.msra.mxu0 %v3786_v1  ;;  %v3880_v1 = vld [vmem:[%s4716_s7 + $0x470] ss:$8 sps:$4 sm:$0xff]  }
  0xe0   : > { %2988 = vmatprep.subr.bf16.mxu0 %v3794_v18  ;;  %v4875_v18 = vld [vmem:[%s5058_s0 + $0x20] sm:$0xff] }
  0xe1   : > { %3028 = vmatpush1.bf16.msra.mxu1 %v3789_v17  ;;  %v3883_v17 = vld [vmem:[%s4716_s7 + $0x570] ss:$8 sps:$4 sm:$0xff]  }
  0xe2   : > { %3029 = vmatprep.subr.bf16.mxu1 %v3797_v19  ;;  %v4880_v19 = vld [vmem:[%s5058_s0 + $0x28] sm:$0xff] }
  0xe3   : > { %2989 = vmatpush1.bf16.msra.mxu0 %v3792_v20  ;;  %v3372_v20 = vcombine.high %v4875_v18, %v4875_v18 }
  0xe4   : > { %2990 = vmatprep.subr.bf16.mxu0 %v3800_v22  ;;  %v3886_v22 = vld [vmem:[%s4716_s7 + $0x460] ss:$8 sps:$4 sm:$0xff]  }
  0xe5   : > { %3030 = vmatpush1.bf16.msra.mxu1 %v3795_v21  ;;  %v3374_v21 = vcombine.high %v4880_v19, %v4880_v19 }
  0xe6   : > { %3031 = vmatprep.subr.bf16.mxu1 %v3803_v23  ;;  %v3889_v23 = vld [vmem:[%s4716_s7 + $0x560] ss:$8 sps:$4 sm:$0xff]  }
  0xe7   : > { %2991 = vmatpush1.bf16.msra.mxu0 %v3798_v24  ;;  %v3894_v24 = vld [vmem:[%s4716_s7 + $0x454] ss:$8 sps:$4 sm:$0xff]  }
  0xe8   : > { %2992 = vmatprep.subr.bf16.mxu0 %v3806_v26  ;;  %v3892_v26 = vld [vmem:[%s4716_s7 + $0x450] ss:$8 sps:$4 sm:$0xff]  }
  0xe9   : > { %3032 = vmatpush1.bf16.msra.mxu1 %v3801_v25  ;;  %v3897_v25 = vld [vmem:[%s4716_s7 + $0x554] ss:$8 sps:$4 sm:$0xff]  }
  0xea   : > { %3033 = vmatprep.subr.bf16.mxu1 %v3809_v27  ;;  %v3895_v27 = vld [vmem:[%s4716_s7 + $0x550] ss:$8 sps:$4 sm:$0xff]  }
  0xeb   : > { %2993 = vmatpush1.bf16.msra.mxu0 %v3804_v28  ;;  %v3900_v28 = vld [vmem:[%s4716_s7 + $0x444] ss:$8 sps:$4 sm:$0xff]  }
  0xec   : > { %2994 = vmatprep.subr.bf16.mxu0 %v3812_v30  ;;  %v3898_v30 = vld [vmem:[%s4716_s7 + $0x440] ss:$8 sps:$4 sm:$0xff]  }
  0xed   : > { %3034 = vmatpush1.bf16.msra.mxu1 %v3807_v29  ;;  %v3903_v29 = vld [vmem:[%s4716_s7 + $0x544] ss:$8 sps:$4 sm:$0xff]  }
  0xee   : > { %3035 = vmatprep.subr.bf16.mxu1 %v3815_v31  ;;  %v3901_v31 = vld [vmem:[%s4716_s7 + $0x540] ss:$8 sps:$4 sm:$0xff]  }
  0xef   : > { %2995 = vmatpush1.bf16.msra.mxu0 %v3810_v32  ;;  %v3906_v32 = vld [vmem:[%s4716_s7 + $0x434] ss:$8 sps:$4 sm:$0xff]  }
  0xf0   : > { %2996 = vmatprep.subr.bf16.mxu0 %v3818_v34  ;;  %v3904_v34 = vld [vmem:[%s4716_s7 + $0x430] ss:$8 sps:$4 sm:$0xff]  }
  0xf1   : > { %3036 = vmatpush1.bf16.msra.mxu1 %v3813_v33  ;;  %v3909_v33 = vld [vmem:[%s4716_s7 + $0x534] ss:$8 sps:$4 sm:$0xff]  }
  0xf2   : > { %3037 = vmatprep.subr.bf16.mxu1 %v3821_v35  ;;  %v3907_v35 = vld [vmem:[%s4716_s7 + $0x530] ss:$8 sps:$4 sm:$0xff]  }
  0xf3   : > { %2997 = vmatpush1.bf16.msra.mxu0 %v3816_v36  ;;  %v3912_v36 = vld [vmem:[%s4716_s7 + $0x424] ss:$8 sps:$4 sm:$0xff]  }
  0xf4   : > { %2998 = vmatprep.subr.bf16.mxu0 %v3824_v38  ;;  %v3910_v38 = vld [vmem:[%s4716_s7 + $0x420] ss:$8 sps:$4 sm:$0xff]  }
  0xf5   : > { %3038 = vmatpush1.bf16.msra.mxu1 %v3819_v37  ;;  %v3915_v37 = vld [vmem:[%s4716_s7 + $0x524] ss:$8 sps:$4 sm:$0xff]  }
  0xf6   : > { %3039 = vmatprep.subr.bf16.mxu1 %v3827_v39  ;;  %v3913_v39 = vld [vmem:[%s4716_s7 + $0x520] ss:$8 sps:$4 sm:$0xff]  }
  0xf7   : > { %2999 = vmatpush1.bf16.msra.mxu0 %v3822_v40  ;;  %v3918_v40 = vld [vmem:[%s4716_s7 + $0x414] ss:$8 sps:$4 sm:$0xff]  }
  0xf8   : > { %3000 = vmatprep.subr.bf16.mxu0 %v3830_v42  ;;  %v3916_v42 = vld [vmem:[%s4716_s7 + $0x410] ss:$8 sps:$4 sm:$0xff]  }
  0xf9   : > { %3040 = vmatpush1.bf16.msra.mxu1 %v3825_v41  ;;  %v3921_v41 = vld [vmem:[%s4716_s7 + $0x514] ss:$8 sps:$4 sm:$0xff]  }
  0xfa   : > { %3041 = vmatprep.subr.bf16.mxu1 %v3833_v43  ;;  %v3919_v43 = vld [vmem:[%s4716_s7 + $0x510] ss:$8 sps:$4 sm:$0xff]  }
  0xfb   : > { %3001 = vmatpush2.bf16.msra.mxu0 %v3828_v44  ;;  %v3924_v44 = vld [vmem:[%s4716_s7 + $0x404] ss:$8 sps:$4 sm:$0xff]  }
  0xfc   : > { %3002 = vmatprep.subr.bf16.mxu0 %v3836_v46  ;;  %v3922_v46 = vld [vmem:[%s4716_s7 + $0x400] ss:$8 sps:$4 sm:$0xff]  }
  0xfd   : > { %3042 = vmatpush2.bf16.msra.mxu1 %v3831_v45  ;;  %v3927_v45 = vld [vmem:[%s4716_s7 + $0x504] ss:$8 sps:$4 sm:$0xff]  }
  0xfe   : > { %3043 = vmatprep.subr.bf16.mxu1 %v3839_v47  ;;  %v3925_v47 = vld [vmem:[%s4716_s7 + $0x500] ss:$8 sps:$4 sm:$0xff]  }
  0xff   : > { %3003 = vmatpush2.bf16.msra.mxu0 %v3834_v48  ;;  %v3930_v48 = vld [vmem:[%s4716_s7 + $0x4f4] ss:$8 sps:$4 sm:$0xff]  }
 0x100   : > { %3004 = vmatprep.subr.bf16.mxu0 %v3842_v50  ;;  %v3928_v50 = vld [vmem:[%s4716_s7 + $0x4f0] ss:$8 sps:$4 sm:$0xff]  }
 0x101   : > { %3044 = vmatpush2.bf16.msra.mxu1 %v3837_v49  ;;  %v3933_v49 = vld [vmem:[%s4716_s7 + $0x5f4] ss:$8 sps:$4 sm:$0xff]  }
 0x102   : > { %3045 = vmatprep.subr.bf16.mxu1 %v3845_v51  ;;  %v3931_v51 = vld [vmem:[%s4716_s7 + $0x5f0] ss:$8 sps:$4 sm:$0xff]  }
 0x103   : > { %3005 = vmatpush2.bf16.msra.mxu0 %v3840_v52  ;;  %v3936_v52 = vld [vmem:[%s4716_s7 + $0x4e4] ss:$8 sps:$4 sm:$0xff]  }
 0x104   : > { %3006 = vmatprep.subr.bf16.mxu0 %v3848_v54  ;;  %v3934_v54 = vld [vmem:[%s4716_s7 + $0x4e0] ss:$8 sps:$4 sm:$0xff]  }
 0x105   : > { %3046 = vmatpush2.bf16.msra.mxu1 %v3843_v53  ;;  %v3939_v53 = vld [vmem:[%s4716_s7 + $0x5e4] ss:$8 sps:$4 sm:$0xff]  }
 0x106   : > { %3047 = vmatprep.subr.bf16.mxu1 %v3851_v55  ;;  %v3937_v55 = vld [vmem:[%s4716_s7 + $0x5e0] ss:$8 sps:$4 sm:$0xff]  }
 0x107   : > { %3007 = vmatpush2.bf16.msra.mxu0 %v3846_v56  ;;  %v3942_v56 = vld [vmem:[%s4716_s7 + $0x4d4] ss:$8 sps:$4 sm:$0xff]  }
 0x108   : > { %3008 = vmatprep.subr.bf16.mxu0 %v3854_v58  ;;  %v3940_v58 = vld [vmem:[%s4716_s7 + $0x4d0] ss:$8 sps:$4 sm:$0xff]  }
 0x109   : > { %3048 = vmatpush2.bf16.msra.mxu1 %v3849_v57  ;;  %v3945_v57 = vld [vmem:[%s4716_s7 + $0x5d4] ss:$8 sps:$4 sm:$0xff]  }
 0x10a   : > { %3049 = vmatprep.subr.bf16.mxu1 %v3857_v59  ;;  %v3943_v59 = vld [vmem:[%s4716_s7 + $0x5d0] ss:$8 sps:$4 sm:$0xff]  }
 0x10b   : > { %3009 = vmatpush2.bf16.msra.mxu0 %v3852_v60  ;;  %v3948_v60 = vld [vmem:[%s4716_s7 + $0x4c4] ss:$8 sps:$4 sm:$0xff]  }
 0x10c   : > { %3010 = vmatprep.subr.bf16.mxu0 %v3860_v62  ;;  %v3946_v62 = vld [vmem:[%s4716_s7 + $0x4c0] ss:$8 sps:$4 sm:$0xff]  }
 0x10d   : > { %3050 = vmatpush2.bf16.msra.mxu1 %v3855_v61  ;;  %v3951_v61 = vld [vmem:[%s4716_s7 + $0x5c4] ss:$8 sps:$4 sm:$0xff]  }
 0x10e   : > { %3051 = vmatprep.subr.bf16.mxu1 %v3863_v63  ;;  %v3949_v63 = vld [vmem:[%s4716_s7 + $0x5c0] ss:$8 sps:$4 sm:$0xff]  }
 0x10f   : > { %3011 = vmatpush2.bf16.msra.mxu0 %v3858_v2  ;;  %v3954_v2 = vld [vmem:[%s4716_s7 + $0x4b4] ss:$8 sps:$4 sm:$0xff]  }
 0x110   : > { %3012 = vmatprep.subr.bf16.mxu0 %v3866_v4  ;;  %v3952_v4 = vld [vmem:[%s4716_s7 + $0x4b0] ss:$8 sps:$4 sm:$0xff]  }
 0x111   : > { %3052 = vmatpush2.bf16.msra.mxu1 %v3861_v3  ;;  %v3957_v3 = vld [vmem:[%s4716_s7 + $0x5b4] ss:$8 sps:$4 sm:$0xff]  }
 0x112   : > { %3053 = vmatprep.subr.bf16.mxu1 %v3869_v5  ;;  %v3955_v5 = vld [vmem:[%s4716_s7 + $0x5b0] ss:$8 sps:$4 sm:$0xff]  }
 0x113   : > { %3013 = vmatpush2.bf16.msra.mxu0 %v3864_v6  ;;  %v3960_v6 = vld [vmem:[%s4716_s7 + $0x4a4] ss:$8 sps:$4 sm:$0xff]  }
 0x114   : > { %3014 = vmatprep.subr.bf16.mxu0 %v3872_v10  ;;  %v3958_v10 = vld [vmem:[%s4716_s7 + $0x4a0] ss:$8 sps:$4 sm:$0xff]  }
 0x115   : > { %3054 = vmatpush2.bf16.msra.mxu1 %v3867_v7  ;;  %v3963_v7 = vld [vmem:[%s4716_s7 + $0x5a4] ss:$8 sps:$4 sm:$0xff]  }
 0x116   : > { %3055 = vmatprep.subr.bf16.mxu1 %v3875_v11  ;;  %v3961_v11 = vld [vmem:[%s4716_s7 + $0x5a0] ss:$8 sps:$4 sm:$0xff]  }
 0x117   : > { %3015 = vmatpush2.bf16.msra.mxu0 %v3870_v12  ;;  %v3966_v12 = vld [vmem:[%s4716_s7 + $0x494] ss:$8 sps:$4 sm:$0xff]  }
 0x118   : > { %3066 = vmatprep.subr.bf16.mxu0 %v3882_v14  ;;  %v3964_v14 = vld [vmem:[%s4716_s7 + $0x490] ss:$8 sps:$4 sm:$0xff]  }
 0x119   : > { %3056 = vmatpush2.bf16.msra.mxu1 %v3873_v13  ;;  %v3969_v13 = vld [vmem:[%s4716_s7 + $0x594] ss:$8 sps:$4 sm:$0xff]  }
 0x11a   : > { %3107 = vmatprep.subr.bf16.mxu1 %v3885_v15  ;;  %3017 = vmatmul.mubr.bf16.vlgmr.msra.gmra.mxu0 %v3367_v16  ;;  %v3967_v15 = vld [vmem:[%s4716_s7 + $0x590] ss:$8 sps:$4 sm:$0xff]   ;;  %v3972_v16 = vld [vmem:[%s4716_s7 + $0x484] ss:$8 sps:$4 sm:$0xff]  }
 0x11b   : > { %3067 = vmatpush1.bf16.msra.mxu0 %v3880_v1  ;;  %3098 = vmatprep.mubr.bf16.mxu0 %v3372_v20  ;;  %v3970_v1 = vld [vmem:[%s4716_s7 + $0x480] ss:$8 sps:$4 sm:$0xff]   ;;  %v3371_v20 = vcombine.low %v4875_v18, %v4875_v18  ;;  %v3983_v18 = vld [vmem:[%s4716_s7 + $0x770] ss:$8 sps:$4 sm:$0xff]  }
 0x11c   : > { %3058 = vmatmul.mubr.bf16.vlgmr.msra.gmra.mxu1 %v3369_v0  ;;  %3068 = vmatprep.subr.bf16.mxu0 %v3888_v8  ;;  %v3975_v0 = vld [vmem:[%s4716_s7 + $0x584] ss:$8 sps:$4 sm:$0xff]   ;;  %v3982_v8 = vld [vmem:[%s4716_s7 + $0x674] ss:$8 sps:$4 sm:$0xff]  }
 0x11d   : > { %3108 = vmatpush1.bf16.msra.mxu1 %v3883_v17  ;;  %3139 = vmatprep.mubr.bf16.mxu1 %v3374_v21  ;;  %v3973_v17 = vld [vmem:[%s4716_s7 + $0x580] ss:$8 sps:$4 sm:$0xff]   ;;  %v3373_v21 = vcombine.low %v4880_v19, %v4880_v19  ;;  %v3988_v19 = vld [vmem:[%s4716_s7 + $0x664] ss:$8 sps:$4 sm:$0xff]  }
 0x11e   : > { %3109 = vmatprep.subr.bf16.mxu1 %v3891_v9  ;;  %v3985_v9 = vld [vmem:[%s4716_s7 + $0x774] ss:$8 sps:$4 sm:$0xff]  }
 0x11f   : > { %3069 = vmatpush1.bf16.msra.mxu0 %v3886_v22  ;;  %v4955_v22 = vld [vmem:[%s5058_s0 + $0x30] sm:$0xff] }
 0x120   : > { %3070 = vmatprep.subr.bf16.mxu0 %v3894_v24  ;;  %v3980_v24 = vld [vmem:[%s4716_s7 + $0x670] ss:$8 sps:$4 sm:$0xff]  }
 0x121   : > { %3110 = vmatpush1.bf16.msra.mxu1 %v3889_v23  ;;  %v4960_v23 = vld [vmem:[%s5058_s0 + $0x38] sm:$0xff] }
 0x122   : > { %3111 = vmatprep.subr.bf16.mxu1 %v3897_v25  ;;  %v3991_v25 = vld [vmem:[%s4716_s7 + $0x764] ss:$8 sps:$4 sm:$0xff]  }
 0x123   : > { %3071 = vmatpush1.bf16.msra.mxu0 %v3892_v26  ;;  %v3376_v26 = vcombine.high %v4955_v22, %v4955_v22 }
 0x124   : > { %3072 = vmatprep.subr.bf16.mxu0 %v3900_v28  ;;  %v3986_v28 = vld [vmem:[%s4716_s7 + $0x660] ss:$8 sps:$4 sm:$0xff]  }
 0x125   : > { %3112 = vmatpush1.bf16.msra.mxu1 %v3895_v27  ;;  %v3378_v27 = vcombine.high %v4960_v23, %v4960_v23 }
 0x126   : > { %3113 = vmatprep.subr.bf16.mxu1 %v3903_v29  ;;  %v3989_v29 = vld [vmem:[%s4716_s7 + $0x760] ss:$8 sps:$4 sm:$0xff]  }
 0x127   : > { %3073 = vmatpush1.bf16.msra.mxu0 %v3898_v30  ;;  %v3994_v30 = vld [vmem:[%s4716_s7 + $0x654] ss:$8 sps:$4 sm:$0xff]  }
 0x128   : > { %3074 = vmatprep.subr.bf16.mxu0 %v3906_v32  ;;  %v3992_v32 = vld [vmem:[%s4716_s7 + $0x650] ss:$8 sps:$4 sm:$0xff]  }
 0x129   : > { %3114 = vmatpush1.bf16.msra.mxu1 %v3901_v31  ;;  %v3997_v31 = vld [vmem:[%s4716_s7 + $0x754] ss:$8 sps:$4 sm:$0xff]  }
 0x12a   : > { %3115 = vmatprep.subr.bf16.mxu1 %v3909_v33  ;;  %v3995_v33 = vld [vmem:[%s4716_s7 + $0x750] ss:$8 sps:$4 sm:$0xff]  }
 0x12b   : > { %3075 = vmatpush1.bf16.msra.mxu0 %v3904_v34  ;;  %v4000_v34 = vld [vmem:[%s4716_s7 + $0x644] ss:$8 sps:$4 sm:$0xff]  }
 0x12c   : > { %3076 = vmatprep.subr.bf16.mxu0 %v3912_v36  ;;  %v3998_v36 = vld [vmem:[%s4716_s7 + $0x640] ss:$8 sps:$4 sm:$0xff]  }
 0x12d   : > { %3116 = vmatpush1.bf16.msra.mxu1 %v3907_v35  ;;  %v4003_v35 = vld [vmem:[%s4716_s7 + $0x744] ss:$8 sps:$4 sm:$0xff]  }
 0x12e   : > { %3117 = vmatprep.subr.bf16.mxu1 %v3915_v37  ;;  %v4001_v37 = vld [vmem:[%s4716_s7 + $0x740] ss:$8 sps:$4 sm:$0xff]  }
 0x12f   : > { %3077 = vmatpush1.bf16.msra.mxu0 %v3910_v38  ;;  %v4006_v38 = vld [vmem:[%s4716_s7 + $0x634] ss:$8 sps:$4 sm:$0xff]  }
 0x130   : > { %3078 = vmatprep.subr.bf16.mxu0 %v3918_v40  ;;  %v4004_v40 = vld [vmem:[%s4716_s7 + $0x630] ss:$8 sps:$4 sm:$0xff]  }
 0x131   : > { %3118 = vmatpush1.bf16.msra.mxu1 %v3913_v39  ;;  %v4009_v39 = vld [vmem:[%s4716_s7 + $0x734] ss:$8 sps:$4 sm:$0xff]  }
 0x132   : > { %3119 = vmatprep.subr.bf16.mxu1 %v3921_v41  ;;  %v4007_v41 = vld [vmem:[%s4716_s7 + $0x730] ss:$8 sps:$4 sm:$0xff]  }
 0x133   : > { %3079 = vmatpush1.bf16.msra.mxu0 %v3916_v42  ;;  %v4012_v42 = vld [vmem:[%s4716_s7 + $0x624] ss:$8 sps:$4 sm:$0xff]  }
 0x134   : > { %3080 = vmatprep.subr.bf16.mxu0 %v3924_v44  ;;  %v4010_v44 = vld [vmem:[%s4716_s7 + $0x620] ss:$8 sps:$4 sm:$0xff]  }
 0x135   : > { %3120 = vmatpush1.bf16.msra.mxu1 %v3919_v43  ;;  %v4015_v43 = vld [vmem:[%s4716_s7 + $0x724] ss:$8 sps:$4 sm:$0xff]  }
 0x136   : > { %3121 = vmatprep.subr.bf16.mxu1 %v3927_v45  ;;  %v4013_v45 = vld [vmem:[%s4716_s7 + $0x720] ss:$8 sps:$4 sm:$0xff]  }
 0x137   : > { %3081 = vmatpush1.bf16.msra.mxu0 %v3922_v46  ;;  %v4018_v46 = vld [vmem:[%s4716_s7 + $0x614] ss:$8 sps:$4 sm:$0xff]  }
 0x138   : > { %3082 = vmatprep.subr.bf16.mxu0 %v3930_v48  ;;  %v4016_v48 = vld [vmem:[%s4716_s7 + $0x610] ss:$8 sps:$4 sm:$0xff]  }
 0x139   : > { %3122 = vmatpush1.bf16.msra.mxu1 %v3925_v47  ;;  %v4021_v47 = vld [vmem:[%s4716_s7 + $0x714] ss:$8 sps:$4 sm:$0xff]  }
 0x13a   : > { %3123 = vmatprep.subr.bf16.mxu1 %v3933_v49  ;;  %v4019_v49 = vld [vmem:[%s4716_s7 + $0x710] ss:$8 sps:$4 sm:$0xff]  }
 0x13b   : > { %3083 = vmatpush2.bf16.msra.mxu0 %v3928_v50  ;;  %v4024_v50 = vld [vmem:[%s4716_s7 + $0x604] ss:$8 sps:$4 sm:$0xff]  }
 0x13c   : > { %3084 = vmatprep.subr.bf16.mxu0 %v3936_v52  ;;  %v4022_v52 = vld [vmem:[%s4716_s7 + $0x600] ss:$8 sps:$4 sm:$0xff]  }
 0x13d   : > { %3124 = vmatpush2.bf16.msra.mxu1 %v3931_v51  ;;  %v4027_v51 = vld [vmem:[%s4716_s7 + $0x704] ss:$8 sps:$4 sm:$0xff]  }
 0x13e   : > { %3125 = vmatprep.subr.bf16.mxu1 %v3939_v53  ;;  %v4025_v53 = vld [vmem:[%s4716_s7 + $0x700] ss:$8 sps:$4 sm:$0xff]  }
 0x13f   : > { %3085 = vmatpush2.bf16.msra.mxu0 %v3934_v54  ;;  %v4030_v54 = vld [vmem:[%s4716_s7 + $0x6f4] ss:$8 sps:$4 sm:$0xff]  }
 0x140   : > { %3086 = vmatprep.subr.bf16.mxu0 %v3942_v56  ;;  %v4028_v56 = vld [vmem:[%s4716_s7 + $0x6f0] ss:$8 sps:$4 sm:$0xff]  }
 0x141   : > { %3126 = vmatpush2.bf16.msra.mxu1 %v3937_v55  ;;  %v4033_v55 = vld [vmem:[%s4716_s7 + $0x7f4] ss:$8 sps:$4 sm:$0xff]  }
 0x142   : > { %3127 = vmatprep.subr.bf16.mxu1 %v3945_v57  ;;  %v4031_v57 = vld [vmem:[%s4716_s7 + $0x7f0] ss:$8 sps:$4 sm:$0xff]  }
 0x143   : > { %3087 = vmatpush2.bf16.msra.mxu0 %v3940_v58  ;;  %v4036_v58 = vld [vmem:[%s4716_s7 + $0x6e4] ss:$8 sps:$4 sm:$0xff]  }
 0x144   : > { %3088 = vmatprep.subr.bf16.mxu0 %v3948_v60  ;;  %v4034_v60 = vld [vmem:[%s4716_s7 + $0x6e0] ss:$8 sps:$4 sm:$0xff]  }
 0x145   : > { %3128 = vmatpush2.bf16.msra.mxu1 %v3943_v59  ;;  %v4039_v59 = vld [vmem:[%s4716_s7 + $0x7e4] ss:$8 sps:$4 sm:$0xff]  }
 0x146   : > { %3129 = vmatprep.subr.bf16.mxu1 %v3951_v61  ;;  %v4037_v61 = vld [vmem:[%s4716_s7 + $0x7e0] ss:$8 sps:$4 sm:$0xff]  }
 0x147   : > { %3089 = vmatpush2.bf16.msra.mxu0 %v3946_v62  ;;  %v4042_v62 = vld [vmem:[%s4716_s7 + $0x6d4] ss:$8 sps:$4 sm:$0xff]  }
 0x148   : > { %3090 = vmatprep.subr.bf16.mxu0 %v3954_v2  ;;  %v4040_v2 = vld [vmem:[%s4716_s7 + $0x6d0] ss:$8 sps:$4 sm:$0xff]  }
 0x149   : > { %3130 = vmatpush2.bf16.msra.mxu1 %v3949_v63  ;;  %v4045_v63 = vld [vmem:[%s4716_s7 + $0x7d4] ss:$8 sps:$4 sm:$0xff]  }
 0x14a   : > { %3131 = vmatprep.subr.bf16.mxu1 %v3957_v3  ;;  %v4043_v3 = vld [vmem:[%s4716_s7 + $0x7d0] ss:$8 sps:$4 sm:$0xff]  }
 0x14b   : > { %3091 = vmatpush2.bf16.msra.mxu0 %v3952_v4  ;;  %v4048_v4 = vld [vmem:[%s4716_s7 + $0x6c4] ss:$8 sps:$4 sm:$0xff]  }
 0x14c   : > { %3092 = vmatprep.subr.bf16.mxu0 %v3960_v6  ;;  %v4046_v6 = vld [vmem:[%s4716_s7 + $0x6c0] ss:$8 sps:$4 sm:$0xff]  }
 0x14d   : > { %3132 = vmatpush2.bf16.msra.mxu1 %v3955_v5  ;;  %v4051_v5 = vld [vmem:[%s4716_s7 + $0x7c4] ss:$8 sps:$4 sm:$0xff]  }
 0x14e   : > { %3133 = vmatprep.subr.bf16.mxu1 %v3963_v7  ;;  %v4049_v7 = vld [vmem:[%s4716_s7 + $0x7c0] ss:$8 sps:$4 sm:$0xff]  }
 0x14f   : > { %3093 = vmatpush2.bf16.msra.mxu0 %v3958_v10  ;;  %v4054_v10 = vld [vmem:[%s4716_s7 + $0x6b4] ss:$8 sps:$4 sm:$0xff]  }
 0x150   : > { %3094 = vmatprep.subr.bf16.mxu0 %v3966_v12  ;;  %v4052_v12 = vld [vmem:[%s4716_s7 + $0x6b0] ss:$8 sps:$4 sm:$0xff]  }
 0x151   : > { %3134 = vmatpush2.bf16.msra.mxu1 %v3961_v11  ;;  %v4057_v11 = vld [vmem:[%s4716_s7 + $0x7b4] ss:$8 sps:$4 sm:$0xff]  }
 0x152   : > { %3135 = vmatprep.subr.bf16.mxu1 %v3969_v13  ;;  %v4055_v13 = vld [vmem:[%s4716_s7 + $0x7b0] ss:$8 sps:$4 sm:$0xff]  }
 0x153   : > { %3095 = vmatpush2.bf16.msra.mxu0 %v3964_v14  ;;  %v4060_v14 = vld [vmem:[%s4716_s7 + $0x6a4] ss:$8 sps:$4 sm:$0xff]  }
 0x154   : > { %3096 = vmatprep.subr.bf16.mxu0 %v3972_v16  ;;  %v4058_v16 = vld [vmem:[%s4716_s7 + $0x6a0] ss:$8 sps:$4 sm:$0xff]  }
 0x155   : > { %3136 = vmatpush2.bf16.msra.mxu1 %v3967_v15  ;;  %v4063_v15 = vld [vmem:[%s4716_s7 + $0x7a4] ss:$8 sps:$4 sm:$0xff]  }
 0x156   : > { %3137 = vmatprep.subr.bf16.mxu1 %v3975_v0  ;;  %v4061_v0 = vld [vmem:[%s4716_s7 + $0x7a0] ss:$8 sps:$4 sm:$0xff]  }
 0x157   : > { %3097 = vmatpush2.bf16.msra.mxu0 %v3970_v1  ;;  %v1556_v1 = vlaneseq }
 0x158   : > { %3148 = vmatprep.subr.bf16.mxu0 %v3982_v8  ;;  %v4069_v8 = vld [vmem:[%s4716_s7 + $0x794] ss:$8 sps:$4 sm:$0xff]  }
 0x159   : > { %3138 = vmatpush2.bf16.msra.mxu1 %v3973_v17  ;;  %v4066_v17 = vld [vmem:[%s4716_s7 + $0x694] ss:$8 sps:$4 sm:$0xff]  }
 0x15a   : > { %3189 = vmatprep.subr.bf16.mxu1 %v3985_v9  ;;  %3099 = vmatmul.mubr.bf16.vlgmr.msra.gmra.mxu0 %v3371_v20  ;;  %v4064_v9 = vld [vmem:[%s4716_s7 + $0x690] ss:$8 sps:$4 sm:$0xff]  }
 0x15b   : > { %3149 = vmatpush1.bf16.msra.mxu0 %v3980_v24  ;;  %3180 = vmatprep.mubr.bf16.mxu0 %v3376_v26  ;;  %v4067_v20 = vld [vmem:[%s4716_s7 + $0x790] ss:$8 sps:$4 sm:$0xff]   ;;  %v4072_v24 = vld [vmem:[%s4716_s7 + $0x684] ss:$8 sps:$4 sm:$0xff]  }
 0x15c   : > { %3140 = vmatmul.mubr.bf16.vlgmr.msra.gmra.mxu1 %v3373_v21  ;;  %3150 = vmatprep.subr.bf16.mxu0 %v3988_v19  ;;  %v1557_v21 = vshrl.u32 %v1556_v1, 7  ;;  %v4070_v19 = vld [vmem:[%s4716_s7 + $0x680] ss:$8 sps:$4 sm:$0xff]  }
 0x15d   : > { %3190 = vmatpush1.bf16.msra.mxu1 %v3983_v18  ;;  %3221 = vmatprep.mubr.bf16.mxu1 %v3378_v27  ;;  %v4075_v18 = vld [vmem:[%s4716_s7 + $0x784] ss:$8 sps:$4 sm:$0xff]   ;;  %v1554_v27 = vld [vmem:[%s1278_s28] sm:$0x3] }
 0x15e   : > { %3191 = vmatprep.subr.bf16.mxu1 %v3991_v25  ;;  %v4073_v25 = vld [vmem:[%s4716_s7 + $0x780] ss:$8 sps:$4 sm:$0xff]   ;;  %v1558_v26 = vsub.s32 0, %v1557_v21 }
 0x15f   : > { %3151 = vmatpush1.bf16.msra.mxu0 %v3986_v28  ;;  %v1562_v28 = vsub.s32 1, %v1557_v21 }
 0x160   : > { %3152 = vmatprep.subr.bf16.mxu0 %v3994_v30  ;;  %v3377_v30 = vcombine.low %v4960_v23, %v4960_v23 }
 0x161   : > { %3192 = vmatpush1.bf16.msra.mxu1 %v3989_v29  ;;  %v3375_v29 = vcombine.low %v4955_v22, %v4955_v22 }
 0x162   : > { %3193 = vmatprep.subr.bf16.mxu1 %v3997_v31  ;;  %v1559_v31 = vrot.slane %v1554_v27, %v1558_v26 }
 0x163   : > { %3153 = vmatpush1.bf16.msra.mxu0 %v3992_v32  ;;  %v1563_v32 = vrot.slane %v1554_v27, %v1562_v28 }
 0x164   : > { %3154 = vmatprep.subr.bf16.mxu0 %v4000_v34 }
 0x165   : > { %3194 = vmatpush1.bf16.msra.mxu1 %v3995_v33 }
 0x166   : > { %3195 = vmatprep.subr.bf16.mxu1 %v4003_v35 }
 0x167   : > { %3155 = vmatpush1.bf16.msra.mxu0 %v3998_v36 }
 0x168   : > { %3156 = vmatprep.subr.bf16.mxu0 %v4006_v38 }
 0x169   : > { %3196 = vmatpush1.bf16.msra.mxu1 %v4001_v37 }
 0x16a   : > { %3197 = vmatprep.subr.bf16.mxu1 %v4009_v39 }
 0x16b   : > { %3157 = vmatpush1.bf16.msra.mxu0 %v4004_v40 }
 0x16c   : > { %3158 = vmatprep.subr.bf16.mxu0 %v4012_v42 }
 0x16d   : > { %3198 = vmatpush1.bf16.msra.mxu1 %v4007_v41 }
 0x16e   : > { %3199 = vmatprep.subr.bf16.mxu1 %v4015_v43 }
 0x16f   : > { %3159 = vmatpush1.bf16.msra.mxu0 %v4010_v44 }
 0x170   : > { %3160 = vmatprep.subr.bf16.mxu0 %v4018_v46 }
 0x171   : > { %3200 = vmatpush1.bf16.msra.mxu1 %v4013_v45 }
 0x172   : > { %3201 = vmatprep.subr.bf16.mxu1 %v4021_v47 }
 0x173   : > { %3161 = vmatpush1.bf16.msra.mxu0 %v4016_v48 }
 0x174   : > { %3162 = vmatprep.subr.bf16.mxu0 %v4024_v50 }
 0x175   : > { %3202 = vmatpush1.bf16.msra.mxu1 %v4019_v49 }
 0x176   : > { %3203 = vmatprep.subr.bf16.mxu1 %v4027_v51 }
 0x177   : > { %3163 = vmatpush1.bf16.msra.mxu0 %v4022_v52 }
 0x178   : > { %3164 = vmatprep.subr.bf16.mxu0 %v4030_v54 }
 0x179   : > { %3204 = vmatpush1.bf16.msra.mxu1 %v4025_v53 }
 0x17a   : > { %3205 = vmatprep.subr.bf16.mxu1 %v4033_v55 }
 0x17b   : > { %3165 = vmatpush2.bf16.msra.mxu0 %v4028_v56 }
 0x17c   : > { %3166 = vmatprep.subr.bf16.mxu0 %v4036_v58 }
 0x17d   : > { %3206 = vmatpush2.bf16.msra.mxu1 %v4031_v57 }
 0x17e   : > { %3207 = vmatprep.subr.bf16.mxu1 %v4039_v59 }
 0x17f   : > { %3167 = vmatpush2.bf16.msra.mxu0 %v4034_v60 }
 0x180   : > { %3168 = vmatprep.subr.bf16.mxu0 %v4042_v62 }
 0x181   : > { %3208 = vmatpush2.bf16.msra.mxu1 %v4037_v61 }
 0x182   : > { %3209 = vmatprep.subr.bf16.mxu1 %v4045_v63 }
 0x183   : > { %3169 = vmatpush2.bf16.msra.mxu0 %v4040_v2 }
 0x184   : > { %3170 = vmatprep.subr.bf16.mxu0 %v4048_v4 }
 0x185   : > { %3210 = vmatpush2.bf16.msra.mxu1 %v4043_v3 }
 0x186   : > { %3211 = vmatprep.subr.bf16.mxu1 %v4051_v5 }
 0x187   : > { %3171 = vmatpush2.bf16.msra.mxu0 %v4046_v6 }
 0x188   : > { %3172 = vmatprep.subr.bf16.mxu0 %v4054_v10 }
 0x189   : > { %3212 = vmatpush2.bf16.msra.mxu1 %v4049_v7 }
 0x18a   : > { %3213 = vmatprep.subr.bf16.mxu1 %v4057_v11 }
 0x18b   : > { %3173 = vmatpush2.bf16.msra.mxu0 %v4052_v12 }
 0x18c   : > { %3174 = vmatprep.subr.bf16.mxu0 %v4060_v14 }
 0x18d   : > { %3214 = vmatpush2.bf16.msra.mxu1 %v4055_v13 }
 0x18e   : > { %3215 = vmatprep.subr.bf16.mxu1 %v4063_v15 }
 0x18f   : > { %3175 = vmatpush2.bf16.msra.mxu0 %v4058_v16 }
 0x190   : > { %3176 = vmatprep.subr.bf16.mxu0 %v4066_v17 }
 0x191   : > { %3216 = vmatpush2.bf16.msra.mxu1 %v4061_v0 }
 0x192   : > { %3217 = vmatprep.subr.bf16.mxu1 %v4069_v8 }
 0x193   : > { %3177 = vmatpush2.bf16.msra.mxu0 %v4064_v9 }
 0x194   : > { %3178 = vmatprep.subr.bf16.mxu0 %v4072_v24 }
 0x195   : > { %3218 = vmatpush2.bf16.msra.mxu1 %v4067_v20 }
 0x196   : > { %3219 = vmatprep.subr.bf16.mxu1 %v4075_v18 }
 0x197   : > { %3179 = vmatpush2.bf16.msra.mxu0 %v4070_v19 }
 0x199   : > { %3220 = vmatpush2.bf16.msra.mxu1 %v4073_v25 }
 0x19a   : > { %v2936_v33 = vpop.f32.mrf.mxu0  ;;  %3181 = vmatmul.mubr.bf16.vlgmr.msra.gmra.mxu0 %v3375_v29 }
 0x19b   : > { %v2937_v35 = vadd.f32 %v2936_v33, %v1559_v31 }
 0x19c   : > { %v2977_v34 = vpop.f32.mrf.mxu1  ;;  %3222 = vmatmul.mubr.bf16.vlgmr.msra.gmra.mxu1 %v3377_v30  ;;  %v2938_v36 = vpop.f32.mrf.mxu0 }
 0x19d   : > { %v2978_v38 = vadd.f32 %v2977_v34, %v2937_v35  ;;  %v2939_v39 = vadd.f32 %v2938_v36, %v1563_v32 }
 0x19e   : > { %v2979_v37 = vpop.f32.mrf.mxu1  ;;  %v2940_v40 = vpop.f32.mrf.mxu0 }
 0x19f   : > { %v2980_v42 = vadd.f32 %v2979_v37, %v2939_v39 }
 0x1a0   : > { %v2981_v41 = vpop.f32.mrf.mxu1  ;;  %v2941_v22 = vpop.f32.mrf.mxu0 }
 0x1a2   : > { %v2982_v43 = vpop.f32.mrf.mxu1 }
 0x1da   : > { %v3018_v44 = vpop.f32.mrf.mxu0 }
 0x1db   : > { %v3019_v45 = vadd.f32 %v3018_v44, %v2978_v38 }
 0x1dc   : > { %v3059_v23 = vpop.f32.mrf.mxu1  ;;  %v3020_v46 = vpop.f32.mrf.mxu0 }
 0x1dd   : > { %v3060_v48 = vadd.f32 %v3059_v23, %v3019_v45  ;;  %v3021_v49 = vadd.f32 %v3020_v46, %v2980_v42 }
 0x1de   : > { %v3061_v47 = vpop.f32.mrf.mxu1  ;;  %v3022_v50 = vpop.f32.mrf.mxu0 }
 0x1df   : > { %v3062_v52 = vadd.f32 %v3061_v47, %v3021_v49 }
 0x1e0   : > { %v3063_v51 = vpop.f32.mrf.mxu1  ;;  %v3023_v53 = vpop.f32.mrf.mxu0 }
 0x1e2   : > { %v3064_v54 = vpop.f32.mrf.mxu1 }
 0x21a   : > { %v3100_v55 = vpop.f32.mrf.mxu0 }
 0x21b   : > { %v3101_v57 = vadd.f32 %v3100_v55, %v3060_v48 }
 0x21c   : > { %v3141_v56 = vpop.f32.mrf.mxu1  ;;  %v3102_v58 = vpop.f32.mrf.mxu0 }
 0x21d   : > { %v3142_v60 = vadd.f32 %v3141_v56, %v3101_v57  ;;  %v3103_v3 = vadd.f32 %v3102_v58, %v3062_v52 }
 0x21e   : > { %v3143_v59 = vpop.f32.mrf.mxu1  ;;  %v3104_v61 = vpop.f32.mrf.mxu0 }
 0x21f   : > { %v3144_v6 = vadd.f32 %v3143_v59, %v3103_v3 }
 0x220   : > { %v3145_v62 = vpop.f32.mrf.mxu1  ;;  %v3105_v63 = vpop.f32.mrf.mxu0 }
 0x222   : > { %v3146_v2 = vpop.f32.mrf.mxu1 }
 0x25a   : > { %v3182_v4 = vpop.f32.mrf.mxu0 }
 0x25b   : > { %v3183_v7 = vadd.f32 %v3182_v4, %v3142_v60 }
 0x25c   : > { %v3223_v5 = vpop.f32.mrf.mxu1  ;;  %v3184_v10 = vpop.f32.mrf.mxu0 }
 0x25d   : > { %v3185_v12 = vadd.f32 %v3184_v10, %v3144_v6  ;;  %v3224_v15 = vadd.f32 %v3223_v5, %v3183_v7 }
 0x25e   : > { %v3225_v11 = vpop.f32.mrf.mxu1  ;;  %v3186_v13 = vpop.f32.mrf.mxu0 }
 0x25f   : > { %v3226_v16 = vadd.f32 %v3225_v11, %v3185_v12 }
 0x260   : > { %v3227_v14 = vpop.f32.mrf.mxu1  ;;  %v3187_v0 = vpop.f32.mrf.mxu0 }
 0x261   : > { %v3639_v17 = vpack.c.bf16 %v3226_v16, %v3224_v15 }
 0x262   : > { %v3228_v1 = vpop.f32.mrf.mxu1 }
 0x263   : > { %3238 = vst [vmem:[%s1288_s5] sm:$0xff] %v3639_v17 }
 0x264 PF: > { %s13_s16 = sadd.s32 1, %s4118_s16   ;;  %s5062_s12 = smov %s4106_s13 }
 0x265   : > { %p10_p10 = scmp.ge.s32.totalorder %s13_s16, 4   ;;  %s5063_s13 = smov %s4175_s20 }
 0x266   : > { %s5064_s14 = smov %s4114_s15  ;;  %s5065_s15 = smov %s5067_s17 }
 0x267   :  { %12 = sbr.rel (!%p10_p10) target bundleno = 3 (0x3), region = 111 }

</bundles_post_ra>
